<compile_context>
chip_gen: v7x
topology: tpu7x:2x2x1
jax: 0.10.0
libtpu: 0.0.40
codegen_flags: <defaults>
</compile_context>

<pallas_src>
import functools

import jax
import jax.numpy as jnp
from jax import lax
from jax.experimental import pallas as pl
from jax.experimental.pallas import tpu as pltpu


# ----------------------------------------------------------------------------
# Pallas kernel 1: fused bidirectional LSTM over (T, Fin, N) batched sequences
# ----------------------------------------------------------------------------
def _bilstm_kernel(L, T, N, x_ref, wih_ref, whh_ref, b_ref, o_ref,
                   pre_f_ref, pre_b_ref):
    # x_ref:     (T, Fin, N)   per-timestep feature blocks
    # wih_ref:   (8L, Fin)     rows = [fwd i,f,o,g ; bwd i,f,o,g]
    # whh_ref:   (8L, L)       rows = [fwd Whh (4L,L) ; bwd Whh (4L,L)]
    # b_ref:     (8L, 1)       b_ih + b_hh, both directions, gate-reordered
    # o_ref:     (T, 2, L, N)  o[t, 0] = h_fwd(t), o[t, 1] = h_bwd(t)
    # pre_*_ref: (T, 4L, N)    hoisted input projection per direction (scratch)
    L3, L4 = 3 * L, 4 * L

    # ---- hoisted input projection (off the serial path), bias folded in.
    # Per-t matmuls write straight into leading-dim-indexed scratch: no
    # unaligned lane slicing / relayout.
    wih = wih_ref[...]
    bias = jnp.broadcast_to(b_ref[...], (8 * L, N))   # broadcast hoisted once
    for t in range(T):
        proj = jnp.dot(wih, x_ref[t], preferred_element_type=jnp.float32) + bias
        pre_f_ref[t] = proj[:L4]
        pre_b_ref[t] = proj[L4:]

    whh_f = whh_ref[:L4, :]       # loop-invariant loads
    whh_b = whh_ref[L4:, :]

    def cell(gates, c_prev):
        # gate row order [i, f, o, g]: one batched sigmoid slab + one tanh.
        # Exact reciprocal: approx EUP rcp error would compound over the
        # recurrence (approx=True is the perf knob if tolerance allows).
        sig = pl.reciprocal(1.0 + jnp.exp(-gates[:L3]), approx=False)
        i_g, f_g, o_g = sig[:L], sig[L:2 * L], sig[2 * L:L3]
        g_g = jnp.tanh(gates[L3:])
        c_new = f_g * c_prev + i_g * g_g
        return o_g * jnp.tanh(c_new), c_new

    # ---- recurrence: only the small W_hh matmuls + nonlinearities are on the
    # serial path.  State carried as 4 separate (L, N) values (no concats).
    def step(s, carry):
        h_f, c_f, h_b, c_b = carry
        tb = T - 1 - s
        gates_f = (jnp.dot(whh_f, h_f, preferred_element_type=jnp.float32)
                   + pre_f_ref[s])
        gates_b = (jnp.dot(whh_b, h_b, preferred_element_type=jnp.float32)
                   + pre_b_ref[tb])
        h_f, c_f = cell(gates_f, c_f)
        h_b, c_b = cell(gates_b, c_b)
        # TODO(synk): with N=32 these are masked (32/128-lane) stores; at
        #   production sizes pick N = B*spatial as a multiple of 128.
        o_ref[s, 0] = h_f
        o_ref[tb, 1] = h_b
        return h_f, c_f, h_b, c_b

    zero = jnp.zeros((L, N), jnp.float32)
    # Fully unrolled (T is small/static): gives the scheduler visibility to
    # overlap consecutive steps of the latency-bound chain.
    lax.fori_loop(0, T, step, (zero, zero, zero, zero), unroll=True)


def _reorder_gates(w, L):
    """PyTorch LSTM gate rows [i, f, g, o] -> [i, f, o, g] so the sigmoid
    gates form one contiguous slab (batched EUP push)."""
    return jnp.concatenate([w[:2 * L], w[3 * L:], w[2 * L:3 * L]], axis=0)


def bilstm_fused(x_tfn, T, N, p):
    """Fused bidirectional LSTM.  x_tfn: (T, Fin, N).  Returns (T, 2, L, N);
    reshaping to (T, 2L, N) afterwards is a free reinterpretation."""
    L = p["w_hh_f"].shape[1]
    wih = jnp.concatenate([_reorder_gates(p["w_ih_f"], L),
                           _reorder_gates(p["w_ih_b"], L)], axis=0)     # (8L, Fin)
    whh = jnp.concatenate([_reorder_gates(p["w_hh_f"], L),
                           _reorder_gates(p["w_hh_b"], L)], axis=0)     # (8L, L)
    b = jnp.concatenate([_reorder_gates(p["b_ih_f"] + p["b_hh_f"], L),
                         _reorder_gates(p["b_ih_b"] + p["b_hh_b"], L)]
                        ).reshape(8 * L, 1)                             # (8L, 1)

    kernel = functools.partial(_bilstm_kernel, L, T, N)
    # TODO(synk): for production sizes tile over the independent N axis with a
    #   "parallel" grid (Nblk a multiple of 128) and set vmem_limit_bytes for
    #   the v7x 64 MiB VMEM budget; single-block is fine at these toy shapes.
    return pl.pallas_call(
        kernel,
        out_shape=jax.ShapeDtypeStruct((T, 2, L, N), jnp.float32),
        scratch_shapes=[pltpu.VMEM((T, 4 * L, N), jnp.float32),
                        pltpu.VMEM((T, 4 * L, N), jnp.float32)],
    )(x_tfn, wih, whh, b)


# ----------------------------------------------------------------------------
# Pallas kernel 2: 1x1 conv (matmul) + BatchNorm(batch stats) + channel softmax
# ----------------------------------------------------------------------------
def _conv_bn_softmax_kernel(B, HW, feat_ref, w_ref, b_ref, gamma_ref, beta_ref,
                            out_ref):
    # feat: (2L, M) with M = B*HW, columns ordered (b, h, w); w: (G2, 2L)
    # b/gamma/beta: (G2, 1); out: (B, G2, HW)
    logits = jnp.dot(w_ref[...], feat_ref[...],
                     preferred_element_type=jnp.float32) + b_ref[...]    # (G2, M)
    # BatchNorm2d training-mode batch stats (biased var), single data pass.
    inv_m = 1.0 / float(B * HW)
    mu = jnp.sum(logits, axis=1, keepdims=True) * inv_m
    var = jnp.sum(logits * logits, axis=1, keepdims=True) * inv_m - mu * mu
    normed = (logits - mu) * lax.rsqrt(var + 1e-5) * gamma_ref[...] + beta_ref[...]
    # softmax over the G^2 channel (sublane) axis
    mx = jnp.max(normed, axis=0, keepdims=True)
    e = jnp.exp(normed - mx)
    p = e * pl.reciprocal(jnp.sum(e, axis=0, keepdims=True), approx=False)
    for bi in range(B):                              # 128-aligned lane slices
        out_ref[bi] = p[:, bi * HW:(bi + 1) * HW]


# ----------------------------------------------------------------------------
# Pallas kernel 3: grouped conv3d hot path == per-batch (HW, G2) @ (G2, C)
# ----------------------------------------------------------------------------
def _attn_apply_kernel(B, wk_ref, xst_ref, o_ref):
    # wk:  (B, HW, G2)  per-position G^2 mixing weights (bug-faithful raw view)
    # xst: (B, G2, C)   dilated GxG samples of x, transposed
    # o:   (B, HW, C)   conv3d flat (hw, c) order: final (B,C,H,W) is a free view.
    # Single invocation, all batches: a (B,) grid at B=2 is pure overhead.
    for bi in range(B):
        o_ref[bi] = jnp.dot(wk_ref[bi], xst_ref[bi],
                            preferred_element_type=jnp.float32)


# ----------------------------------------------------------------------------
# Full forward
# ----------------------------------------------------------------------------
def attention_global_forward(x, params, *, G, dil):
    B, C, d2, d3 = x.shape
    assert d2 == d3, "Renet requires a square feature map"
    assert d2 == dil * (G - 1) + 1, "spatial size must match dilated kernel extent"
    L = params["vert"]["w_hh_f"].shape[1]
    G2 = G * G
    HW = d2 * d3

    # ---------------- Renet ----------------
    # vertical LSTM: sequence over d3, one sequence per (b, column index in d2)
    Tv, Nv = d3, B * d2
    xv = jnp.transpose(x, (3, 1, 0, 2)).reshape(Tv, C, Nv)
    hv = bilstm_fused(xv, Tv, Nv, params["vert"])            # (Tv, 2, L, Nv)

    # horizontal LSTM: sequence over d2, one sequence per (b, row index in d3)
    # TODO(synk): the d2<->d3 re-bucketing between the LSTM stages is an
    #   inherent spatial transpose; left to XLA (tiny here) rather than done
    #   with in-kernel relayouts.
    Th, Nh = d2, B * d3
    xh = jnp.transpose(hv.reshape(d3, 2 * L, B, d2),
                       (3, 1, 2, 0)).reshape(Th, 2 * L, Nh)
    hh = bilstm_fused(xh, Th, Nh, params["horiz"])           # (Th, 2, L, Nh)

    # 1x1 conv + BN(batch stats) + softmax over the G^2 channel dim.
    # feat columns ordered (b, d2, d3) so the (B, G2, HW) output already has
    # the (B, G2, H, W) memory layout the PyTorch raw reshape reinterprets.
    feat = jnp.transpose(hh.reshape(d2, 2 * L, B, d3),
                         (1, 2, 0, 3)).reshape(2 * L, B * HW)
    probs = pl.pallas_call(
        functools.partial(_conv_bn_softmax_kernel, B, HW),
        out_shape=jax.ShapeDtypeStruct((B, G2, HW), jnp.float32),
    )(feat, params["conv_w"], params["conv_b"].reshape(G2, 1),
      params["bn_gamma"].reshape(G2, 1), params["bn_beta"].reshape(G2, 1))

    # ---------------- attention application (grouped conv3d) ----------------
    # PyTorch: kernel.reshape(B*H*W, 1, 1, G, G) is a raw row-major
    # reinterpretation of the (B, G2, H, W) buffer -> same bytes as:
    Wk = probs.reshape(B, HW, G2)                    # free XLA bitcast reshape
    # TODO(synk): this linear-memory reinterpretation is why softmax and apply
    #   stay separate pallas_calls (an in-kernel (G2,HW)->(HW,G2) reshape is
    #   not a cheap/ reliably lowerable relayout); the hop is ~72 KB.
    # dilated G x G sampling grid of the input (padding=0, stride=1)
    Xs = x[:, :, ::dil, ::dil][:, :, :G, :G].reshape(B, C, G2)   # (B, C, G2)
    Xst = jnp.transpose(Xs, (0, 2, 1))                           # (B, G2, C)

    out = pl.pallas_call(
        functools.partial(_attn_apply_kernel, B),
        out_shape=jax.ShapeDtypeStruct((B, HW, C), jnp.float32),
    )(Wk, Xst)                                                   # (B, HW, C)

    # conv3d output is (1, B*HW, C, 1, 1); its flat order within a batch is
    # (hw, c), so torch.reshape(..., (B, C, H, W)) is a free reinterpretation:
    return out.reshape(B, C, d2, d3)


# ----------------------------------------------------------------------------
# Deterministic parameter initialization (PyTorch default-ish uniform init)
# ----------------------------------------------------------------------------
def init_params(key, C, L, G):
    G2 = G * G
    s_lstm = 1.0 / float(L) ** 0.5
    s_conv = 1.0 / float(2 * L) ** 0.5

    def u(k, shape, scale):
        return jax.random.uniform(k, shape, jnp.float32, -scale, scale)

    def lstm_p(kbase, in_dim):
        k = jax.random.split(kbase, 8)
        return {
            "w_ih_f": u(k[0], (4 * L, in_dim), s_lstm),
            "w_hh_f": u(k[1], (4 * L, L), s_lstm),
            "b_ih_f": u(k[2], (4 * L,), s_lstm),
            "b_hh_f": u(k[3], (4 * L,), s_lstm),
            "w_ih_b": u(k[4], (4 * L, in_dim), s_lstm),
            "w_hh_b": u(k[5], (4 * L, L), s_lstm),
            "b_ih_b": u(k[6], (4 * L,), s_lstm),
            "b_hh_b": u(k[7], (4 * L,), s_lstm),
        }

    kv, kh, kc, kb = jax.random.split(key, 4)
    return {
        "vert": lstm_p(kv, C),            # vertical_LSTM: input_size = inchannel
        "horiz": lstm_p(kh, 2 * L),       # horizontal_LSTM (== inchannel here)
        # TODO(synk): reference declares Conv2d(LSTM_channel, G^2, 1) but feeds
        # 2*LSTM_channel channels; weights built with in_channels = 2*LSTM_channel.
        "conv_w": u(kc, (G2, 2 * L), s_conv),
        "conv_b": u(kb, (G2,), s_conv),
        "bn_gamma": jnp.ones((G2,), jnp.float32),
        "bn_beta": jnp.zeros((G2,), jnp.float32),
    }


if __name__ == "__main__":
    # Small config consistent with the module's constraints:
    #   inchannel = 2 * renet_LSTM_channel, spatial = att_dilation*(G-1)+1
    B, C, S = 2, 16, 16
    L, G, DIL = 8, 6, 3
    assert C == 2 * L and S == DIL * (G - 1) + 1

    key = jax.random.PRNGKey(0)
    kx, kp = jax.random.split(key)
    x = jax.random.normal(kx, (B, C, S, S), jnp.float32)
    params = init_params(kp, C, L, G)

    fwd = jax.jit(functools.partial(attention_global_forward, G=G, dil=DIL))
    out = fwd(x, params)
    out = jax.block_until_ready(out)

    assert out.shape == (B, C, S, S), out.shape
    assert bool(jnp.all(jnp.isfinite(out)))
    print("KERNEL_OK")
</pallas_src>

<mosaic_0001>
module attributes {stable_mosaic.version = 11 : i64} {
  func.func @_bilstm_kernel(%arg0: memref<16x16x32xf32, #tpu.memory_space<vmem>>, %arg1: memref<64x16xf32, #tpu.memory_space<vmem>>, %arg2: memref<64x8xf32, #tpu.memory_space<vmem>>, %arg3: memref<64x1xf32, #tpu.memory_space<vmem>>, %arg4: memref<16x2x8x32xf32, #tpu.memory_space<vmem>>, %arg5: memref<16x32x32xf32, #tpu.memory_space<vmem>>, %arg6: memref<16x32x32xf32, #tpu.memory_space<vmem>>) attributes {dimension_semantics = [], scalar_prefetch = 0 : i64, scratch_operands = 2 : i64, tpu.core_type = #tpu.core_type<tc>} {
    %c0 = arith.constant 0 : index
    %c0_0 = arith.constant 0 : index
    %0 = vector.load %arg1[%c0, %c0_0] : memref<64x16xf32, #tpu.memory_space<vmem>>, vector<64x16xf32>
    %c0_1 = arith.constant 0 : index
    %c0_2 = arith.constant 0 : index
    %1 = vector.load %arg3[%c0_1, %c0_2] : memref<64x1xf32, #tpu.memory_space<vmem>>, vector<64x1xf32>
    %2 = vector.shape_cast %1 : vector<64x1xf32> to vector<64x1xf32>
    %3 = vector.broadcast %2 : vector<64x1xf32> to vector<64x32xf32>
    %c0_3 = arith.constant 0 : index
    %c0_4 = arith.constant 0 : index
    %c0_5 = arith.constant 0 : index
    %4 = vector.load %arg0[%c0_3, %c0_4, %c0_5] : memref<16x16x32xf32, #tpu.memory_space<vmem>>, vector<1x16x32xf32>
    %5 = vector.shape_cast %4 : vector<1x16x32xf32> to vector<16x32xf32>
    %cst = arith.constant dense<0.000000e+00> : vector<64x32xf32>
    %6 = tpu.matmul %0, %5, %cst {dimension_numbers = #tpu.dot_dimension_numbers<[1], [0], [0], [1], [0, 0, 1, 1], [], []>} : vector<64x16xf32>, vector<16x32xf32>, vector<64x32xf32> -> vector<64x32xf32>
    %7 = arith.addf %6, %3 : vector<64x32xf32>
    %8 = vector.extract_strided_slice %7 {offsets = [0, 0], sizes = [32, 32], strides = [1, 1]} : vector<64x32xf32> to vector<32x32xf32>
    %c0_6 = arith.constant 0 : index
    %c0_7 = arith.constant 0 : index
    %c0_8 = arith.constant 0 : index
    %9 = vector.load %arg5[%c0_6, %c0_7, %c0_8] : memref<16x32x32xf32, #tpu.memory_space<vmem>>, vector<1x32x32xf32>
    %10 = vector.shape_cast %9 : vector<1x32x32xf32> to vector<32x32xf32>
    %11 = vector.shape_cast %8 : vector<32x32xf32> to vector<1x32x32xf32>
    tpu.vector_store %arg5[%c0_6, %c0_7, %c0_8], %11 {strides = array<i32>} : memref<16x32x32xf32, #tpu.memory_space<vmem>>, vector<1x32x32xf32>,
    %12 = vector.extract_strided_slice %7 {offsets = [32, 0], sizes = [32, 32], strides = [1, 1]} : vector<64x32xf32> to vector<32x32xf32>
    %c0_9 = arith.constant 0 : index
    %c0_10 = arith.constant 0 : index
    %c0_11 = arith.constant 0 : index
    %13 = vector.load %arg6[%c0_9, %c0_10, %c0_11] : memref<16x32x32xf32, #tpu.memory_space<vmem>>, vector<1x32x32xf32>
    %14 = vector.shape_cast %13 : vector<1x32x32xf32> to vector<32x32xf32>
    %15 = vector.shape_cast %12 : vector<32x32xf32> to vector<1x32x32xf32>
    tpu.vector_store %arg6[%c0_9, %c0_10, %c0_11], %15 {strides = array<i32>} : memref<16x32x32xf32, #tpu.memory_space<vmem>>, vector<1x32x32xf32>,
    %c1 = arith.constant 1 : index
    %c0_12 = arith.constant 0 : index
    %c0_13 = arith.constant 0 : index
    %16 = vector.load %arg0[%c1, %c0_12, %c0_13] : memref<16x16x32xf32, #tpu.memory_space<vmem>>, vector<1x16x32xf32>
    %17 = vector.shape_cast %16 : vector<1x16x32xf32> to vector<16x32xf32>
    %cst_14 = arith.constant dense<0.000000e+00> : vector<64x32xf32>
    %18 = tpu.matmul %0, %17, %cst_14 {dimension_numbers = #tpu.dot_dimension_numbers<[1], [0], [0], [1], [0, 0, 1, 1], [], []>} : vector<64x16xf32>, vector<16x32xf32>, vector<64x32xf32> -> vector<64x32xf32>
    %19 = arith.addf %18, %3 : vector<64x32xf32>
    %20 = vector.extract_strided_slice %19 {offsets = [0, 0], sizes = [32, 32], strides = [1, 1]} : vector<64x32xf32> to vector<32x32xf32>
    %c1_15 = arith.constant 1 : index
    %c0_16 = arith.constant 0 : index
    %c0_17 = arith.constant 0 : index
    %21 = vector.load %arg5[%c1_15, %c0_16, %c0_17] : memref<16x32x32xf32, #tpu.memory_space<vmem>>, vector<1x32x32xf32>
    %22 = vector.shape_cast %21 : vector<1x32x32xf32> to vector<32x32xf32>
    %23 = vector.shape_cast %20 : vector<32x32xf32> to vector<1x32x32xf32>
    tpu.vector_store %arg5[%c1_15, %c0_16, %c0_17], %23 {strides = array<i32>} : memref<16x32x32xf32, #tpu.memory_space<vmem>>, vector<1x32x32xf32>,
    %24 = vector.extract_strided_slice %19 {offsets = [32, 0], sizes = [32, 32], strides = [1, 1]} : vector<64x32xf32> to vector<32x32xf32>
    %c1_18 = arith.constant 1 : index
    %c0_19 = arith.constant 0 : index
    %c0_20 = arith.constant 0 : index
    %25 = vector.load %arg6[%c1_18, %c0_19, %c0_20] : memref<16x32x32xf32, #tpu.memory_space<vmem>>, vector<1x32x32xf32>
    %26 = vector.shape_cast %25 : vector<1x32x32xf32> to vector<32x32xf32>
    %27 = vector.shape_cast %24 : vector<32x32xf32> to vector<1x32x32xf32>
    tpu.vector_store %arg6[%c1_18, %c0_19, %c0_20], %27 {strides = array<i32>} : memref<16x32x32xf32, #tpu.memory_space<vmem>>, vector<1x32x32xf32>,
    %c2 = arith.constant 2 : index
    %c0_21 = arith.constant 0 : index
    %c0_22 = arith.constant 0 : index
    %28 = vector.load %arg0[%c2, %c0_21, %c0_22] : memref<16x16x32xf32, #tpu.memory_space<vmem>>, vector<1x16x32xf32>
    %29 = vector.shape_cast %28 : vector<1x16x32xf32> to vector<16x32xf32>
    %cst_23 = arith.constant dense<0.000000e+00> : vector<64x32xf32>
    %30 = tpu.matmul %0, %29, %cst_23 {dimension_numbers = #tpu.dot_dimension_numbers<[1], [0], [0], [1], [0, 0, 1, 1], [], []>} : vector<64x16xf32>, vector<16x32xf32>, vector<64x32xf32> -> vector<64x32xf32>
    %31 = arith.addf %30, %3 : vector<64x32xf32>
    %32 = vector.extract_strided_slice %31 {offsets = [0, 0], sizes = [32, 32], strides = [1, 1]} : vector<64x32xf32> to vector<32x32xf32>
    %c2_24 = arith.constant 2 : index
    %c0_25 = arith.constant 0 : index
    %c0_26 = arith.constant 0 : index
    %33 = vector.load %arg5[%c2_24, %c0_25, %c0_26] : memref<16x32x32xf32, #tpu.memory_space<vmem>>, vector<1x32x32xf32>
    %34 = vector.shape_cast %33 : vector<1x32x32xf32> to vector<32x32xf32>
    %35 = vector.shape_cast %32 : vector<32x32xf32> to vector<1x32x32xf32>
    tpu.vector_store %arg5[%c2_24, %c0_25, %c0_26], %35 {strides = array<i32>} : memref<16x32x32xf32, #tpu.memory_space<vmem>>, vector<1x32x32xf32>,
    %36 = vector.extract_strided_slice %31 {offsets = [32, 0], sizes = [32, 32], strides = [1, 1]} : vector<64x32xf32> to vector<32x32xf32>
    %c2_27 = arith.constant 2 : index
    %c0_28 = arith.constant 0 : index
    %c0_29 = arith.constant 0 : index
    %37 = vector.load %arg6[%c2_27, %c0_28, %c0_29] : memref<16x32x32xf32, #tpu.memory_space<vmem>>, vector<1x32x32xf32>
    %38 = vector.shape_cast %37 : vector<1x32x32xf32> to vector<32x32xf32>
    %39 = vector.shape_cast %36 : vector<32x32xf32> to vector<1x32x32xf32>
    tpu.vector_store %arg6[%c2_27, %c0_28, %c0_29], %39 {strides = array<i32>} : memref<16x32x32xf32, #tpu.memory_space<vmem>>, vector<1x32x32xf32>,
    %c3 = arith.constant 3 : index
    %c0_30 = arith.constant 0 : index
    %c0_31 = arith.constant 0 : index
    %40 = vector.load %arg0[%c3, %c0_30, %c0_31] : memref<16x16x32xf32, #tpu.memory_space<vmem>>, vector<1x16x32xf32>
    %41 = vector.shape_cast %40 : vector<1x16x32xf32> to vector<16x32xf32>
    %cst_32 = arith.constant dense<0.000000e+00> : vector<64x32xf32>
    %42 = tpu.matmul %0, %41, %cst_32 {dimension_numbers = #tpu.dot_dimension_numbers<[1], [0], [0], [1], [0, 0, 1, 1], [], []>} : vector<64x16xf32>, vector<16x32xf32>, vector<64x32xf32> -> vector<64x32xf32>
    %43 = arith.addf %42, %3 : vector<64x32xf32>
    %44 = vector.extract_strided_slice %43 {offsets = [0, 0], sizes = [32, 32], strides = [1, 1]} : vector<64x32xf32> to vector<32x32xf32>
    %c3_33 = arith.constant 3 : index
    %c0_34 = arith.constant 0 : index
    %c0_35 = arith.constant 0 : index
    %45 = vector.load %arg5[%c3_33, %c0_34, %c0_35] : memref<16x32x32xf32, #tpu.memory_space<vmem>>, vector<1x32x32xf32>
    %46 = vector.shape_cast %45 : vector<1x32x32xf32> to vector<32x32xf32>
    %47 = vector.shape_cast %44 : vector<32x32xf32> to vector<1x32x32xf32>
    tpu.vector_store %arg5[%c3_33, %c0_34, %c0_35], %47 {strides = array<i32>} : memref<16x32x32xf32, #tpu.memory_space<vmem>>, vector<1x32x32xf32>,
    %48 = vector.extract_strided_slice %43 {offsets = [32, 0], sizes = [32, 32], strides = [1, 1]} : vector<64x32xf32> to vector<32x32xf32>
    %c3_36 = arith.constant 3 : index
    %c0_37 = arith.constant 0 : index
    %c0_38 = arith.constant 0 : index
    %49 = vector.load %arg6[%c3_36, %c0_37, %c0_38] : memref<16x32x32xf32, #tpu.memory_space<vmem>>, vector<1x32x32xf32>
    %50 = vector.shape_cast %49 : vector<1x32x32xf32> to vector<32x32xf32>
    %51 = vector.shape_cast %48 : vector<32x32xf32> to vector<1x32x32xf32>
    tpu.vector_store %arg6[%c3_36, %c0_37, %c0_38], %51 {strides = array<i32>} : memref<16x32x32xf32, #tpu.memory_space<vmem>>, vector<1x32x32xf32>,
    %c4 = arith.constant 4 : index
    %c0_39 = arith.constant 0 : index
    %c0_40 = arith.constant 0 : index
    %52 = vector.load %arg0[%c4, %c0_39, %c0_40] : memref<16x16x32xf32, #tpu.memory_space<vmem>>, vector<1x16x32xf32>
    %53 = vector.shape_cast %52 : vector<1x16x32xf32> to vector<16x32xf32>
    %cst_41 = arith.constant dense<0.000000e+00> : vector<64x32xf32>
    %54 = tpu.matmul %0, %53, %cst_41 {dimension_numbers = #tpu.dot_dimension_numbers<[1], [0], [0], [1], [0, 0, 1, 1], [], []>} : vector<64x16xf32>, vector<16x32xf32>, vector<64x32xf32> -> vector<64x32xf32>
    %55 = arith.addf %54, %3 : vector<64x32xf32>
    %56 = vector.extract_strided_slice %55 {offsets = [0, 0], sizes = [32, 32], strides = [1, 1]} : vector<64x32xf32> to vector<32x32xf32>
    %c4_42 = arith.constant 4 : index
    %c0_43 = arith.constant 0 : index
    %c0_44 = arith.constant 0 : index
    %57 = vector.load %arg5[%c4_42, %c0_43, %c0_44] : memref<16x32x32xf32, #tpu.memory_space<vmem>>, vector<1x32x32xf32>
    %58 = vector.shape_cast %57 : vector<1x32x32xf32> to vector<32x32xf32>
    %59 = vector.shape_cast %56 : vector<32x32xf32> to vector<1x32x32xf32>
    tpu.vector_store %arg5[%c4_42, %c0_43, %c0_44], %59 {strides = array<i32>} : memref<16x32x32xf32, #tpu.memory_space<vmem>>, vector<1x32x32xf32>,
    %60 = vector.extract_strided_slice %55 {offsets = [32, 0], sizes = [32, 32], strides = [1, 1]} : vector<64x32xf32> to vector<32x32xf32>
    %c4_45 = arith.constant 4 : index
    %c0_46 = arith.constant 0 : index
    %c0_47 = arith.constant 0 : index
    %61 = vector.load %arg6[%c4_45, %c0_46, %c0_47] : memref<16x32x32xf32, #tpu.memory_space<vmem>>, vector<1x32x32xf32>
    %62 = vector.shape_cast %61 : vector<1x32x32xf32> to vector<32x32xf32>
    %63 = vector.shape_cast %60 : vector<32x32xf32> to vector<1x32x32xf32>
    tpu.vector_store %arg6[%c4_45, %c0_46, %c0_47], %63 {strides = array<i32>} : memref<16x32x32xf32, #tpu.memory_space<vmem>>, vector<1x32x32xf32>,
    %c5 = arith.constant 5 : index
    %c0_48 = arith.constant 0 : index
    %c0_49 = arith.constant 0 : index
    %64 = vector.load %arg0[%c5, %c0_48, %c0_49] : memref<16x16x32xf32, #tpu.memory_space<vmem>>, vector<1x16x32xf32>
    %65 = vector.shape_cast %64 : vector<1x16x32xf32> to vector<16x32xf32>
    %cst_50 = arith.constant dense<0.000000e+00> : vector<64x32xf32>
    %66 = tpu.matmul %0, %65, %cst_50 {dimension_numbers = #tpu.dot_dimension_numbers<[1], [0], [0], [1], [0, 0, 1, 1], [], []>} : vector<64x16xf32>, vector<16x32xf32>, vector<64x32xf32> -> vector<64x32xf32>
    %67 = arith.addf %66, %3 : vector<64x32xf32>
    %68 = vector.extract_strided_slice %67 {offsets = [0, 0], sizes = [32, 32], strides = [1, 1]} : vector<64x32xf32> to vector<32x32xf32>
    %c5_51 = arith.constant 5 : index
    %c0_52 = arith.constant 0 : index
    %c0_53 = arith.constant 0 : index
    %69 = vector.load %arg5[%c5_51, %c0_52, %c0_53] : memref<16x32x32xf32, #tpu.memory_space<vmem>>, vector<1x32x32xf32>
    %70 = vector.shape_cast %69 : vector<1x32x32xf32> to vector<32x32xf32>
    %71 = vector.shape_cast %68 : vector<32x32xf32> to vector<1x32x32xf32>
    tpu.vector_store %arg5[%c5_51, %c0_52, %c0_53], %71 {strides = array<i32>} : memref<16x32x32xf32, #tpu.memory_space<vmem>>, vector<1x32x32xf32>,
    %72 = vector.extract_strided_slice %67 {offsets = [32, 0], sizes = [32, 32], strides = [1, 1]} : vector<64x32xf32> to vector<32x32xf32>
    %c5_54 = arith.constant 5 : index
    %c0_55 = arith.constant 0 : index
    %c0_56 = arith.constant 0 : index
    %73 = vector.load %arg6[%c5_54, %c0_55, %c0_56] : memref<16x32x32xf32, #tpu.memory_space<vmem>>, vector<1x32x32xf32>
    %74 = vector.shape_cast %73 : vector<1x32x32xf32> to vector<32x32xf32>
    %75 = vector.shape_cast %72 : vector<32x32xf32> to vector<1x32x32xf32>
    tpu.vector_store %arg6[%c5_54, %c0_55, %c0_56], %75 {strides = array<i32>} : memref<16x32x32xf32, #tpu.memory_space<vmem>>, vector<1x32x32xf32>,
    %c6 = arith.constant 6 : index
    %c0_57 = arith.constant 0 : index
    %c0_58 = arith.constant 0 : index
    %76 = vector.load %arg0[%c6, %c0_57, %c0_58] : memref<16x16x32xf32, #tpu.memory_space<vmem>>, vector<1x16x32xf32>
    %77 = vector.shape_cast %76 : vector<1x16x32xf32> to vector<16x32xf32>
    %cst_59 = arith.constant dense<0.000000e+00> : vector<64x32xf32>
    %78 = tpu.matmul %0, %77, %cst_59 {dimension_numbers = #tpu.dot_dimension_numbers<[1], [0], [0], [1], [0, 0, 1, 1], [], []>} : vector<64x16xf32>, vector<16x32xf32>, vector<64x32xf32> -> vector<64x32xf32>
    %79 = arith.addf %78, %3 : vector<64x32xf32>
    %80 = vector.extract_strided_slice %79 {offsets = [0, 0], sizes = [32, 32], strides = [1, 1]} : vector<64x32xf32> to vector<32x32xf32>
    %c6_60 = arith.constant 6 : index
    %c0_61 = arith.constant 0 : index
    %c0_62 = arith.constant 0 : index
    %81 = vector.load %arg5[%c6_60, %c0_61, %c0_62] : memref<16x32x32xf32, #tpu.memory_space<vmem>>, vector<1x32x32xf32>
    %82 = vector.shape_cast %81 : vector<1x32x32xf32> to vector<32x32xf32>
    %83 = vector.shape_cast %80 : vector<32x32xf32> to vector<1x32x32xf32>
    tpu.vector_store %arg5[%c6_60, %c0_61, %c0_62], %83 {strides = array<i32>} : memref<16x32x32xf32, #tpu.memory_space<vmem>>, vector<1x32x32xf32>,
    %84 = vector.extract_strided_slice %79 {offsets = [32, 0], sizes = [32, 32], strides = [1, 1]} : vector<64x32xf32> to vector<32x32xf32>
    %c6_63 = arith.constant 6 : index
    %c0_64 = arith.constant 0 : index
    %c0_65 = arith.constant 0 : index
    %85 = vector.load %arg6[%c6_63, %c0_64, %c0_65] : memref<16x32x32xf32, #tpu.memory_space<vmem>>, vector<1x32x32xf32>
    %86 = vector.shape_cast %85 : vector<1x32x32xf32> to vector<32x32xf32>
    %87 = vector.shape_cast %84 : vector<32x32xf32> to vector<1x32x32xf32>
    tpu.vector_store %arg6[%c6_63, %c0_64, %c0_65], %87 {strides = array<i32>} : memref<16x32x32xf32, #tpu.memory_space<vmem>>, vector<1x32x32xf32>,
    %c7 = arith.constant 7 : index
    %c0_66 = arith.constant 0 : index
    %c0_67 = arith.constant 0 : index
    %88 = vector.load %arg0[%c7, %c0_66, %c0_67] : memref<16x16x32xf32, #tpu.memory_space<vmem>>, vector<1x16x32xf32>
    %89 = vector.shape_cast %88 : vector<1x16x32xf32> to vector<16x32xf32>
    %cst_68 = arith.constant dense<0.000000e+00> : vector<64x32xf32>
    %90 = tpu.matmul %0, %89, %cst_68 {dimension_numbers = #tpu.dot_dimension_numbers<[1], [0], [0], [1], [0, 0, 1, 1], [], []>} : vector<64x16xf32>, vector<16x32xf32>, vector<64x32xf32> -> vector<64x32xf32>
    %91 = arith.addf %90, %3 : vector<64x32xf32>
    %92 = vector.extract_strided_slice %91 {offsets = [0, 0], sizes = [32, 32], strides = [1, 1]} : vector<64x32xf32> to vector<32x32xf32>
    %c7_69 = arith.constant 7 : index
    %c0_70 = arith.constant 0 : index
    %c0_71 = arith.constant 0 : index
    %93 = vector.load %arg5[%c7_69, %c0_70, %c0_71] : memref<16x32x32xf32, #tpu.memory_space<vmem>>, vector<1x32x32xf32>
    %94 = vector.shape_cast %93 : vector<1x32x32xf32> to vector<32x32xf32>
    %95 = vector.shape_cast %92 : vector<32x32xf32> to vector<1x32x32xf32>
    tpu.vector_store %arg5[%c7_69, %c0_70, %c0_71], %95 {strides = array<i32>} : memref<16x32x32xf32, #tpu.memory_space<vmem>>, vector<1x32x32xf32>,
    %96 = vector.extract_strided_slice %91 {offsets = [32, 0], sizes = [32, 32], strides = [1, 1]} : vector<64x32xf32> to vector<32x32xf32>
    %c7_72 = arith.constant 7 : index
    %c0_73 = arith.constant 0 : index
    %c0_74 = arith.constant 0 : index
    %97 = vector.load %arg6[%c7_72, %c0_73, %c0_74] : memref<16x32x32xf32, #tpu.memory_space<vmem>>, vector<1x32x32xf32>
    %98 = vector.shape_cast %97 : vector<1x32x32xf32> to vector<32x32xf32>
    %99 = vector.shape_cast %96 : vector<32x32xf32> to vector<1x32x32xf32>
    tpu.vector_store %arg6[%c7_72, %c0_73, %c0_74], %99 {strides = array<i32>} : memref<16x32x32xf32, #tpu.memory_space<vmem>>, vector<1x32x32xf32>,
    %c8 = arith.constant 8 : index
    %c0_75 = arith.constant 0 : index
    %c0_76 = arith.constant 0 : index
    %100 = vector.load %arg0[%c8, %c0_75, %c0_76] : memref<16x16x32xf32, #tpu.memory_space<vmem>>, vector<1x16x32xf32>
    %101 = vector.shape_cast %100 : vector<1x16x32xf32> to vector<16x32xf32>
    %cst_77 = arith.constant dense<0.000000e+00> : vector<64x32xf32>
    %102 = tpu.matmul %0, %101, %cst_77 {dimension_numbers = #tpu.dot_dimension_numbers<[1], [0], [0], [1], [0, 0, 1, 1], [], []>} : vector<64x16xf32>, vector<16x32xf32>, vector<64x32xf32> -> vector<64x32xf32>
    %103 = arith.addf %102, %3 : vector<64x32xf32>
    %104 = vector.extract_strided_slice %103 {offsets = [0, 0], sizes = [32, 32], strides = [1, 1]} : vector<64x32xf32> to vector<32x32xf32>
    %c8_78 = arith.constant 8 : index
    %c0_79 = arith.constant 0 : index
    %c0_80 = arith.constant 0 : index
    %105 = vector.load %arg5[%c8_78, %c0_79, %c0_80] : memref<16x32x32xf32, #tpu.memory_space<vmem>>, vector<1x32x32xf32>
    %106 = vector.shape_cast %105 : vector<1x32x32xf32> to vector<32x32xf32>
    %107 = vector.shape_cast %104 : vector<32x32xf32> to vector<1x32x32xf32>
    tpu.vector_store %arg5[%c8_78, %c0_79, %c0_80], %107 {strides = array<i32>} : memref<16x32x32xf32, #tpu.memory_space<vmem>>, vector<1x32x32xf32>,
    %108 = vector.extract_strided_slice %103 {offsets = [32, 0], sizes = [32, 32], strides = [1, 1]} : vector<64x32xf32> to vector<32x32xf32>
    %c8_81 = arith.constant 8 : index
    %c0_82 = arith.constant 0 : index
    %c0_83 = arith.constant 0 : index
    %109 = vector.load %arg6[%c8_81, %c0_82, %c0_83] : memref<16x32x32xf32, #tpu.memory_space<vmem>>, vector<1x32x32xf32>
    %110 = vector.shape_cast %109 : vector<1x32x32xf32> to vector<32x32xf32>
    %111 = vector.shape_cast %108 : vector<32x32xf32> to vector<1x32x32xf32>
    tpu.vector_store %arg6[%c8_81, %c0_82, %c0_83], %111 {strides = array<i32>} : memref<16x32x32xf32, #tpu.memory_space<vmem>>, vector<1x32x32xf32>,
    %c9 = arith.constant 9 : index
    %c0_84 = arith.constant 0 : index
    %c0_85 = arith.constant 0 : index
    %112 = vector.load %arg0[%c9, %c0_84, %c0_85] : memref<16x16x32xf32, #tpu.memory_space<vmem>>, vector<1x16x32xf32>
    %113 = vector.shape_cast %112 : vector<1x16x32xf32> to vector<16x32xf32>
    %cst_86 = arith.constant dense<0.000000e+00> : vector<64x32xf32>
    %114 = tpu.matmul %0, %113, %cst_86 {dimension_numbers = #tpu.dot_dimension_numbers<[1], [0], [0], [1], [0, 0, 1, 1], [], []>} : vector<64x16xf32>, vector<16x32xf32>, vector<64x32xf32> -> vector<64x32xf32>
    %115 = arith.addf %114, %3 : vector<64x32xf32>
    %116 = vector.extract_strided_slice %115 {offsets = [0, 0], sizes = [32, 32], strides = [1, 1]} : vector<64x32xf32> to vector<32x32xf32>
    %c9_87 = arith.constant 9 : index
    %c0_88 = arith.constant 0 : index
    %c0_89 = arith.constant 0 : index
    %117 = vector.load %arg5[%c9_87, %c0_88, %c0_89] : memref<16x32x32xf32, #tpu.memory_space<vmem>>, vector<1x32x32xf32>
    %118 = vector.shape_cast %117 : vector<1x32x32xf32> to vector<32x32xf32>
    %119 = vector.shape_cast %116 : vector<32x32xf32> to vector<1x32x32xf32>
    tpu.vector_store %arg5[%c9_87, %c0_88, %c0_89], %119 {strides = array<i32>} : memref<16x32x32xf32, #tpu.memory_space<vmem>>, vector<1x32x32xf32>,
    %120 = vector.extract_strided_slice %115 {offsets = [32, 0], sizes = [32, 32], strides = [1, 1]} : vector<64x32xf32> to vector<32x32xf32>
    %c9_90 = arith.constant 9 : index
    %c0_91 = arith.constant 0 : index
    %c0_92 = arith.constant 0 : index
    %121 = vector.load %arg6[%c9_90, %c0_91, %c0_92] : memref<16x32x32xf32, #tpu.memory_space<vmem>>, vector<1x32x32xf32>
    %122 = vector.shape_cast %121 : vector<1x32x32xf32> to vector<32x32xf32>
    %123 = vector.shape_cast %120 : vector<32x32xf32> to vector<1x32x32xf32>
    tpu.vector_store %arg6[%c9_90, %c0_91, %c0_92], %123 {strides = array<i32>} : memref<16x32x32xf32, #tpu.memory_space<vmem>>, vector<1x32x32xf32>,
    %c10 = arith.constant 10 : index
    %c0_93 = arith.constant 0 : index
    %c0_94 = arith.constant 0 : index
    %124 = vector.load %arg0[%c10, %c0_93, %c0_94] : memref<16x16x32xf32, #tpu.memory_space<vmem>>, vector<1x16x32xf32>
    %125 = vector.shape_cast %124 : vector<1x16x32xf32> to vector<16x32xf32>
    %cst_95 = arith.constant dense<0.000000e+00> : vector<64x32xf32>
    %126 = tpu.matmul %0, %125, %cst_95 {dimension_numbers = #tpu.dot_dimension_numbers<[1], [0], [0], [1], [0, 0, 1, 1], [], []>} : vector<64x16xf32>, vector<16x32xf32>, vector<64x32xf32> -> vector<64x32xf32>
    %127 = arith.addf %126, %3 : vector<64x32xf32>
    %128 = vector.extract_strided_slice %127 {offsets = [0, 0], sizes = [32, 32], strides = [1, 1]} : vector<64x32xf32> to vector<32x32xf32>
    %c10_96 = arith.constant 10 : index
    %c0_97 = arith.constant 0 : index
    %c0_98 = arith.constant 0 : index
    %129 = vector.load %arg5[%c10_96, %c0_97, %c0_98] : memref<16x32x32xf32, #tpu.memory_space<vmem>>, vector<1x32x32xf32>
    %130 = vector.shape_cast %129 : vector<1x32x32xf32> to vector<32x32xf32>
    %131 = vector.shape_cast %128 : vector<32x32xf32> to vector<1x32x32xf32>
    tpu.vector_store %arg5[%c10_96, %c0_97, %c0_98], %131 {strides = array<i32>} : memref<16x32x32xf32, #tpu.memory_space<vmem>>, vector<1x32x32xf32>,
    %132 = vector.extract_strided_slice %127 {offsets = [32, 0], sizes = [32, 32], strides = [1, 1]} : vector<64x32xf32> to vector<32x32xf32>
    %c10_99 = arith.constant 10 : index
    %c0_100 = arith.constant 0 : index
    %c0_101 = arith.constant 0 : index
    %133 = vector.load %arg6[%c10_99, %c0_100, %c0_101] : memref<16x32x32xf32, #tpu.memory_space<vmem>>, vector<1x32x32xf32>
    %134 = vector.shape_cast %133 : vector<1x32x32xf32> to vector<32x32xf32>
    %135 = vector.shape_cast %132 : vector<32x32xf32> to vector<1x32x32xf32>
    tpu.vector_store %arg6[%c10_99, %c0_100, %c0_101], %135 {strides = array<i32>} : memref<16x32x32xf32, #tpu.memory_space<vmem>>, vector<1x32x32xf32>,
    %c11 = arith.constant 11 : index
    %c0_102 = arith.constant 0 : index
    %c0_103 = arith.constant 0 : index
    %136 = vector.load %arg0[%c11, %c0_102, %c0_103] : memref<16x16x32xf32, #tpu.memory_space<vmem>>, vector<1x16x32xf32>
    %137 = vector.shape_cast %136 : vector<1x16x32xf32> to vector<16x32xf32>
    %cst_104 = arith.constant dense<0.000000e+00> : vector<64x32xf32>
    %138 = tpu.matmul %0, %137, %cst_104 {dimension_numbers = #tpu.dot_dimension_numbers<[1], [0], [0], [1], [0, 0, 1, 1], [], []>} : vector<64x16xf32>, vector<16x32xf32>, vector<64x32xf32> -> vector<64x32xf32>
    %139 = arith.addf %138, %3 : vector<64x32xf32>
    %140 = vector.extract_strided_slice %139 {offsets = [0, 0], sizes = [32, 32], strides = [1, 1]} : vector<64x32xf32> to vector<32x32xf32>
    %c11_105 = arith.constant 11 : index
    %c0_106 = arith.constant 0 : index
    %c0_107 = arith.constant 0 : index
    %141 = vector.load %arg5[%c11_105, %c0_106, %c0_107] : memref<16x32x32xf32, #tpu.memory_space<vmem>>, vector<1x32x32xf32>
    %142 = vector.shape_cast %141 : vector<1x32x32xf32> to vector<32x32xf32>
    %143 = vector.shape_cast %140 : vector<32x32xf32> to vector<1x32x32xf32>
    tpu.vector_store %arg5[%c11_105, %c0_106, %c0_107], %143 {strides = array<i32>} : memref<16x32x32xf32, #tpu.memory_space<vmem>>, vector<1x32x32xf32>,
    %144 = vector.extract_strided_slice %139 {offsets = [32, 0], sizes = [32, 32], strides = [1, 1]} : vector<64x32xf32> to vector<32x32xf32>
    %c11_108 = arith.constant 11 : index
    %c0_109 = arith.constant 0 : index
    %c0_110 = arith.constant 0 : index
    %145 = vector.load %arg6[%c11_108, %c0_109, %c0_110] : memref<16x32x32xf32, #tpu.memory_space<vmem>>, vector<1x32x32xf32>
    %146 = vector.shape_cast %145 : vector<1x32x32xf32> to vector<32x32xf32>
    %147 = vector.shape_cast %144 : vector<32x32xf32> to vector<1x32x32xf32>
    tpu.vector_store %arg6[%c11_108, %c0_109, %c0_110], %147 {strides = array<i32>} : memref<16x32x32xf32, #tpu.memory_space<vmem>>, vector<1x32x32xf32>,
    %c12 = arith.constant 12 : index
    %c0_111 = arith.constant 0 : index
    %c0_112 = arith.constant 0 : index
    %148 = vector.load %arg0[%c12, %c0_111, %c0_112] : memref<16x16x32xf32, #tpu.memory_space<vmem>>, vector<1x16x32xf32>
    %149 = vector.shape_cast %148 : vector<1x16x32xf32> to vector<16x32xf32>
    %cst_113 = arith.constant dense<0.000000e+00> : vector<64x32xf32>
    %150 = tpu.matmul %0, %149, %cst_113 {dimension_numbers = #tpu.dot_dimension_numbers<[1], [0], [0], [1], [0, 0, 1, 1], [], []>} : vector<64x16xf32>, vector<16x32xf32>, vector<64x32xf32> -> vector<64x32xf32>
    %151 = arith.addf %150, %3 : vector<64x32xf32>
    %152 = vector.extract_strided_slice %151 {offsets = [0, 0], sizes = [32, 32], strides = [1, 1]} : vector<64x32xf32> to vector<32x32xf32>
    %c12_114 = arith.constant 12 : index
    %c0_115 = arith.constant 0 : index
    %c0_116 = arith.constant 0 : index
    %153 = vector.load %arg5[%c12_114, %c0_115, %c0_116] : memref<16x32x32xf32, #tpu.memory_space<vmem>>, vector<1x32x32xf32>
    %154 = vector.shape_cast %153 : vector<1x32x32xf32> to vector<32x32xf32>
    %155 = vector.shape_cast %152 : vector<32x32xf32> to vector<1x32x32xf32>
    tpu.vector_store %arg5[%c12_114, %c0_115, %c0_116], %155 {strides = array<i32>} : memref<16x32x32xf32, #tpu.memory_space<vmem>>, vector<1x32x32xf32>,
    %156 = vector.extract_strided_slice %151 {offsets = [32, 0], sizes = [32, 32], strides = [1, 1]} : vector<64x32xf32> to vector<32x32xf32>
    %c12_117 = arith.constant 12 : index
    %c0_118 = arith.constant 0 : index
    %c0_119 = arith.constant 0 : index
    %157 = vector.load %arg6[%c12_117, %c0_118, %c0_119] : memref<16x32x32xf32, #tpu.memory_space<vmem>>, vector<1x32x32xf32>
    %158 = vector.shape_cast %157 : vector<1x32x32xf32> to vector<32x32xf32>
    %159 = vector.shape_cast %156 : vector<32x32xf32> to vector<1x32x32xf32>
    tpu.vector_store %arg6[%c12_117, %c0_118, %c0_119], %159 {strides = array<i32>} : memref<16x32x32xf32, #tpu.memory_space<vmem>>, vector<1x32x32xf32>,
    %c13 = arith.constant 13 : index
    %c0_120 = arith.constant 0 : index
    %c0_121 = arith.constant 0 : index
    %160 = vector.load %arg0[%c13, %c0_120, %c0_121] : memref<16x16x32xf32, #tpu.memory_space<vmem>>, vector<1x16x32xf32>
    %161 = vector.shape_cast %160 : vector<1x16x32xf32> to vector<16x32xf32>
    %cst_122 = arith.constant dense<0.000000e+00> : vector<64x32xf32>
    %162 = tpu.matmul %0, %161, %cst_122 {dimension_numbers = #tpu.dot_dimension_numbers<[1], [0], [0], [1], [0, 0, 1, 1], [], []>} : vector<64x16xf32>, vector<16x32xf32>, vector<64x32xf32> -> vector<64x32xf32>
    %163 = arith.addf %162, %3 : vector<64x32xf32>
    %164 = vector.extract_strided_slice %163 {offsets = [0, 0], sizes = [32, 32], strides = [1, 1]} : vector<64x32xf32> to vector<32x32xf32>
    %c13_123 = arith.constant 13 : index
    %c0_124 = arith.constant 0 : index
    %c0_125 = arith.constant 0 : index
    %165 = vector.load %arg5[%c13_123, %c0_124, %c0_125] : memref<16x32x32xf32, #tpu.memory_space<vmem>>, vector<1x32x32xf32>
    %166 = vector.shape_cast %165 : vector<1x32x32xf32> to vector<32x32xf32>
    %167 = vector.shape_cast %164 : vector<32x32xf32> to vector<1x32x32xf32>
    tpu.vector_store %arg5[%c13_123, %c0_124, %c0_125], %167 {strides = array<i32>} : memref<16x32x32xf32, #tpu.memory_space<vmem>>, vector<1x32x32xf32>,
    %168 = vector.extract_strided_slice %163 {offsets = [32, 0], sizes = [32, 32], strides = [1, 1]} : vector<64x32xf32> to vector<32x32xf32>
    %c13_126 = arith.constant 13 : index
    %c0_127 = arith.constant 0 : index
    %c0_128 = arith.constant 0 : index
    %169 = vector.load %arg6[%c13_126, %c0_127, %c0_128] : memref<16x32x32xf32, #tpu.memory_space<vmem>>, vector<1x32x32xf32>
    %170 = vector.shape_cast %169 : vector<1x32x32xf32> to vector<32x32xf32>
    %171 = vector.shape_cast %168 : vector<32x32xf32> to vector<1x32x32xf32>
    tpu.vector_store %arg6[%c13_126, %c0_127, %c0_128], %171 {strides = array<i32>} : memref<16x32x32xf32, #tpu.memory_space<vmem>>, vector<1x32x32xf32>,
    %c14 = arith.constant 14 : index
    %c0_129 = arith.constant 0 : index
    %c0_130 = arith.constant 0 : index
    %172 = vector.load %arg0[%c14, %c0_129, %c0_130] : memref<16x16x32xf32, #tpu.memory_space<vmem>>, vector<1x16x32xf32>
    %173 = vector.shape_cast %172 : vector<1x16x32xf32> to vector<16x32xf32>
    %cst_131 = arith.constant dense<0.000000e+00> : vector<64x32xf32>
    %174 = tpu.matmul %0, %173, %cst_131 {dimension_numbers = #tpu.dot_dimension_numbers<[1], [0], [0], [1], [0, 0, 1, 1], [], []>} : vector<64x16xf32>, vector<16x32xf32>, vector<64x32xf32> -> vector<64x32xf32>
    %175 = arith.addf %174, %3 : vector<64x32xf32>
    %176 = vector.extract_strided_slice %175 {offsets = [0, 0], sizes = [32, 32], strides = [1, 1]} : vector<64x32xf32> to vector<32x32xf32>
    %c14_132 = arith.constant 14 : index
    %c0_133 = arith.constant 0 : index
    %c0_134 = arith.constant 0 : index
    %177 = vector.load %arg5[%c14_132, %c0_133, %c0_134] : memref<16x32x32xf32, #tpu.memory_space<vmem>>, vector<1x32x32xf32>
    %178 = vector.shape_cast %177 : vector<1x32x32xf32> to vector<32x32xf32>
    %179 = vector.shape_cast %176 : vector<32x32xf32> to vector<1x32x32xf32>
    tpu.vector_store %arg5[%c14_132, %c0_133, %c0_134], %179 {strides = array<i32>} : memref<16x32x32xf32, #tpu.memory_space<vmem>>, vector<1x32x32xf32>,
    %180 = vector.extract_strided_slice %175 {offsets = [32, 0], sizes = [32, 32], strides = [1, 1]} : vector<64x32xf32> to vector<32x32xf32>
    %c14_135 = arith.constant 14 : index
    %c0_136 = arith.constant 0 : index
    %c0_137 = arith.constant 0 : index
    %181 = vector.load %arg6[%c14_135, %c0_136, %c0_137] : memref<16x32x32xf32, #tpu.memory_space<vmem>>, vector<1x32x32xf32>
    %182 = vector.shape_cast %181 : vector<1x32x32xf32> to vector<32x32xf32>
    %183 = vector.shape_cast %180 : vector<32x32xf32> to vector<1x32x32xf32>
    tpu.vector_store %arg6[%c14_135, %c0_136, %c0_137], %183 {strides = array<i32>} : memref<16x32x32xf32, #tpu.memory_space<vmem>>, vector<1x32x32xf32>,
    %c15 = arith.constant 15 : index
    %c0_138 = arith.constant 0 : index
    %c0_139 = arith.constant 0 : index
    %184 = vector.load %arg0[%c15, %c0_138, %c0_139] : memref<16x16x32xf32, #tpu.memory_space<vmem>>, vector<1x16x32xf32>
    %185 = vector.shape_cast %184 : vector<1x16x32xf32> to vector<16x32xf32>
    %cst_140 = arith.constant dense<0.000000e+00> : vector<64x32xf32>
    %186 = tpu.matmul %0, %185, %cst_140 {dimension_numbers = #tpu.dot_dimension_numbers<[1], [0], [0], [1], [0, 0, 1, 1], [], []>} : vector<64x16xf32>, vector<16x32xf32>, vector<64x32xf32> -> vector<64x32xf32>
    %187 = arith.addf %186, %3 : vector<64x32xf32>
    %188 = vector.extract_strided_slice %187 {offsets = [0, 0], sizes = [32, 32], strides = [1, 1]} : vector<64x32xf32> to vector<32x32xf32>
    %c15_141 = arith.constant 15 : index
    %c0_142 = arith.constant 0 : index
    %c0_143 = arith.constant 0 : index
    %189 = vector.load %arg5[%c15_141, %c0_142, %c0_143] : memref<16x32x32xf32, #tpu.memory_space<vmem>>, vector<1x32x32xf32>
    %190 = vector.shape_cast %189 : vector<1x32x32xf32> to vector<32x32xf32>
    %191 = vector.shape_cast %188 : vector<32x32xf32> to vector<1x32x32xf32>
    tpu.vector_store %arg5[%c15_141, %c0_142, %c0_143], %191 {strides = array<i32>} : memref<16x32x32xf32, #tpu.memory_space<vmem>>, vector<1x32x32xf32>,
    %192 = vector.extract_strided_slice %187 {offsets = [32, 0], sizes = [32, 32], strides = [1, 1]} : vector<64x32xf32> to vector<32x32xf32>
    %c15_144 = arith.constant 15 : index
    %c0_145 = arith.constant 0 : index
    %c0_146 = arith.constant 0 : index
    %193 = vector.load %arg6[%c15_144, %c0_145, %c0_146] : memref<16x32x32xf32, #tpu.memory_space<vmem>>, vector<1x32x32xf32>
    %194 = vector.shape_cast %193 : vector<1x32x32xf32> to vector<32x32xf32>
    %195 = vector.shape_cast %192 : vector<32x32xf32> to vector<1x32x32xf32>
    tpu.vector_store %arg6[%c15_144, %c0_145, %c0_146], %195 {strides = array<i32>} : memref<16x32x32xf32, #tpu.memory_space<vmem>>, vector<1x32x32xf32>,
    %c0_147 = arith.constant 0 : index
    %c0_148 = arith.constant 0 : index
    %196 = vector.load %arg2[%c0_147, %c0_148] : memref<64x8xf32, #tpu.memory_space<vmem>>, vector<32x8xf32>
    %c32 = arith.constant 32 : index
    %c0_149 = arith.constant 0 : index
    %197 = vector.load %arg2[%c32, %c0_149] : memref<64x8xf32, #tpu.memory_space<vmem>>, vector<32x8xf32>
    %cst_150 = arith.constant 0.000000e+00 : f32
    %198 = vector.broadcast %cst_150 : f32 to vector<8x32xf32>
    %c0_i32 = arith.constant 0 : i32
    %c15_i32 = arith.constant 15 : i32
    %199 = arith.subi %c15_i32, %c0_i32 : i32
    %cst_151 = arith.constant dense<0.000000e+00> : vector<32x32xf32>
    %200 = tpu.matmul %196, %198, %cst_151 {dimension_numbers = #tpu.dot_dimension_numbers<[1], [0], [0], [1], [0, 0, 1, 1], [], []>} : vector<32x8xf32>, vector<8x32xf32>, vector<32x32xf32> -> vector<32x32xf32>
    %201 = arith.index_cast %c0_i32 : i32 to index
    %c0_152 = arith.constant 0 : index
    %c0_153 = arith.constant 0 : index
    %202 = vector.load %arg5[%201, %c0_152, %c0_153] : memref<16x32x32xf32, #tpu.memory_space<vmem>>, vector<1x32x32xf32>
    %203 = vector.shape_cast %202 : vector<1x32x32xf32> to vector<32x32xf32>
    %204 = arith.addf %200, %203 : vector<32x32xf32>
    %cst_154 = arith.constant dense<0.000000e+00> : vector<32x32xf32>
    %205 = tpu.matmul %197, %198, %cst_154 {dimension_numbers = #tpu.dot_dimension_numbers<[1], [0], [0], [1], [0, 0, 1, 1], [], []>} : vector<32x8xf32>, vector<8x32xf32>, vector<32x32xf32> -> vector<32x32xf32>
    %206 = arith.index_cast %199 : i32 to index
    %c0_155 = arith.constant 0 : index
    %c0_156 = arith.constant 0 : index
    %207 = vector.load %arg6[%206, %c0_155, %c0_156] : memref<16x32x32xf32, #tpu.memory_space<vmem>>, vector<1x32x32xf32>
    %208 = vector.shape_cast %207 : vector<1x32x32xf32> to vector<32x32xf32>
    %209 = arith.addf %205, %208 : vector<32x32xf32>
    %210 = vector.extract_strided_slice %204 {offsets = [0, 0], sizes = [24, 32], strides = [1, 1]} : vector<32x32xf32> to vector<24x32xf32>
    %cst_157 = arith.constant 0.000000e+00 : f32
    %211 = vector.broadcast %cst_157 : f32 to vector<24x32xf32>
    %212 = arith.subf %211, %210 : vector<24x32xf32>
    %213 = math.exp %212 : vector<24x32xf32>
    %cst_158 = arith.constant 1.000000e+00 : f32
    %214 = vector.broadcast %cst_158 : f32 to vector<24x32xf32>
    %215 = arith.addf %214, %213 : vector<24x32xf32>
    %216 = tpu.reciprocal %215 : vector<24x32xf32> -> vector<24x32xf32>
    %217 = vector.extract_strided_slice %216 {offsets = [0, 0], sizes = [8, 32], strides = [1, 1]} : vector<24x32xf32> to vector<8x32xf32>
    %218 = vector.extract_strided_slice %216 {offsets = [8, 0], sizes = [8, 32], strides = [1, 1]} : vector<24x32xf32> to vector<8x32xf32>
    %219 = vector.extract_strided_slice %216 {offsets = [16, 0], sizes = [8, 32], strides = [1, 1]} : vector<24x32xf32> to vector<8x32xf32>
    %220 = vector.extract_strided_slice %204 {offsets = [24, 0], sizes = [8, 32], strides = [1, 1]} : vector<32x32xf32> to vector<8x32xf32>
    %221 = math.tanh %220 : vector<8x32xf32>
    %222 = arith.mulf %218, %198 : vector<8x32xf32>
    %223 = arith.mulf %217, %221 : vector<8x32xf32>
    %224 = arith.addf %222, %223 : vector<8x32xf32>
    %225 = math.tanh %224 : vector<8x32xf32>
    %226 = arith.mulf %219, %225 : vector<8x32xf32>
    %227 = vector.extract_strided_slice %209 {offsets = [0, 0], sizes = [24, 32], strides = [1, 1]} : vector<32x32xf32> to vector<24x32xf32>
    %cst_159 = arith.constant 0.000000e+00 : f32
    %228 = vector.broadcast %cst_159 : f32 to vector<24x32xf32>
    %229 = arith.subf %228, %227 : vector<24x32xf32>
    %230 = math.exp %229 : vector<24x32xf32>
    %cst_160 = arith.constant 1.000000e+00 : f32
    %231 = vector.broadcast %cst_160 : f32 to vector<24x32xf32>
    %232 = arith.addf %231, %230 : vector<24x32xf32>
    %233 = tpu.reciprocal %232 : vector<24x32xf32> -> vector<24x32xf32>
    %234 = vector.extract_strided_slice %233 {offsets = [0, 0], sizes = [8, 32], strides = [1, 1]} : vector<24x32xf32> to vector<8x32xf32>
    %235 = vector.extract_strided_slice %233 {offsets = [8, 0], sizes = [8, 32], strides = [1, 1]} : vector<24x32xf32> to vector<8x32xf32>
    %236 = vector.extract_strided_slice %233 {offsets = [16, 0], sizes = [8, 32], strides = [1, 1]} : vector<24x32xf32> to vector<8x32xf32>
    %237 = vector.extract_strided_slice %209 {offsets = [24, 0], sizes = [8, 32], strides = [1, 1]} : vector<32x32xf32> to vector<8x32xf32>
    %238 = math.tanh %237 : vector<8x32xf32>
    %239 = arith.mulf %235, %198 : vector<8x32xf32>
    %240 = arith.mulf %234, %238 : vector<8x32xf32>
    %241 = arith.addf %239, %240 : vector<8x32xf32>
    %242 = math.tanh %241 : vector<8x32xf32>
    %243 = arith.mulf %236, %242 : vector<8x32xf32>
    %244 = arith.index_cast %c0_i32 : i32 to index
    %c0_161 = arith.constant 0 : index
    %c0_162 = arith.constant 0 : index
    %c0_163 = arith.constant 0 : index
    %245 = vector.load %arg4[%244, %c0_161, %c0_162, %c0_163] : memref<16x2x8x32xf32, #tpu.memory_space<vmem>>, vector<1x1x8x32xf32>
    %246 = vector.shape_cast %245 : vector<1x1x8x32xf32> to vector<8x32xf32>
    %247 = vector.shape_cast %226 : vector<8x32xf32> to vector<1x1x8x32xf32>
    tpu.vector_store %arg4[%244, %c0_161, %c0_162, %c0_163], %247 {strides = array<i32>} : memref<16x2x8x32xf32, #tpu.memory_space<vmem>>, vector<1x1x8x32xf32>,
    %248 = arith.index_cast %199 : i32 to index
    %c1_164 = arith.constant 1 : index
    %c0_165 = arith.constant 0 : index
    %c0_166 = arith.constant 0 : index
    %249 = vector.load %arg4[%248, %c1_164, %c0_165, %c0_166] : memref<16x2x8x32xf32, #tpu.memory_space<vmem>>, vector<1x1x8x32xf32>
    %250 = vector.shape_cast %249 : vector<1x1x8x32xf32> to vector<8x32xf32>
    %251 = vector.shape_cast %243 : vector<8x32xf32> to vector<1x1x8x32xf32>
    tpu.vector_store %arg4[%248, %c1_164, %c0_165, %c0_166], %251 {strides = array<i32>} : memref<16x2x8x32xf32, #tpu.memory_space<vmem>>, vector<1x1x8x32xf32>,
    %c1_i32 = arith.constant 1 : i32
    %c15_i32_167 = arith.constant 15 : i32
    %252 = arith.subi %c15_i32_167, %c1_i32 : i32
    %cst_168 = arith.constant dense<0.000000e+00> : vector<32x32xf32>
    %253 = tpu.matmul %196, %226, %cst_168 {dimension_numbers = #tpu.dot_dimension_numbers<[1], [0], [0], [1], [0, 0, 1, 1], [], []>} : vector<32x8xf32>, vector<8x32xf32>, vector<32x32xf32> -> vector<32x32xf32>
    %254 = arith.index_cast %c1_i32 : i32 to index
    %c0_169 = arith.constant 0 : index
    %c0_170 = arith.constant 0 : index
    %255 = vector.load %arg5[%254, %c0_169, %c0_170] : memref<16x32x32xf32, #tpu.memory_space<vmem>>, vector<1x32x32xf32>
    %256 = vector.shape_cast %255 : vector<1x32x32xf32> to vector<32x32xf32>
    %257 = arith.addf %253, %256 : vector<32x32xf32>
    %cst_171 = arith.constant dense<0.000000e+00> : vector<32x32xf32>
    %258 = tpu.matmul %197, %243, %cst_171 {dimension_numbers = #tpu.dot_dimension_numbers<[1], [0], [0], [1], [0, 0, 1, 1], [], []>} : vector<32x8xf32>, vector<8x32xf32>, vector<32x32xf32> -> vector<32x32xf32>
    %259 = arith.index_cast %252 : i32 to index
    %c0_172 = arith.constant 0 : index
    %c0_173 = arith.constant 0 : index
    %260 = vector.load %arg6[%259, %c0_172, %c0_173] : memref<16x32x32xf32, #tpu.memory_space<vmem>>, vector<1x32x32xf32>
    %261 = vector.shape_cast %260 : vector<1x32x32xf32> to vector<32x32xf32>
    %262 = arith.addf %258, %261 : vector<32x32xf32>
    %263 = vector.extract_strided_slice %257 {offsets = [0, 0], sizes = [24, 32], strides = [1, 1]} : vector<32x32xf32> to vector<24x32xf32>
    %cst_174 = arith.constant 0.000000e+00 : f32
    %264 = vector.broadcast %cst_174 : f32 to vector<24x32xf32>
    %265 = arith.subf %264, %263 : vector<24x32xf32>
    %266 = math.exp %265 : vector<24x32xf32>
    %cst_175 = arith.constant 1.000000e+00 : f32
    %267 = vector.broadcast %cst_175 : f32 to vector<24x32xf32>
    %268 = arith.addf %267, %266 : vector<24x32xf32>
    %269 = tpu.reciprocal %268 : vector<24x32xf32> -> vector<24x32xf32>
    %270 = vector.extract_strided_slice %269 {offsets = [0, 0], sizes = [8, 32], strides = [1, 1]} : vector<24x32xf32> to vector<8x32xf32>
    %271 = vector.extract_strided_slice %269 {offsets = [8, 0], sizes = [8, 32], strides = [1, 1]} : vector<24x32xf32> to vector<8x32xf32>
    %272 = vector.extract_strided_slice %269 {offsets = [16, 0], sizes = [8, 32], strides = [1, 1]} : vector<24x32xf32> to vector<8x32xf32>
    %273 = vector.extract_strided_slice %257 {offsets = [24, 0], sizes = [8, 32], strides = [1, 1]} : vector<32x32xf32> to vector<8x32xf32>
    %274 = math.tanh %273 : vector<8x32xf32>
    %275 = arith.mulf %271, %224 : vector<8x32xf32>
    %276 = arith.mulf %270, %274 : vector<8x32xf32>
    %277 = arith.addf %275, %276 : vector<8x32xf32>
    %278 = math.tanh %277 : vector<8x32xf32>
    %279 = arith.mulf %272, %278 : vector<8x32xf32>
    %280 = vector.extract_strided_slice %262 {offsets = [0, 0], sizes = [24, 32], strides = [1, 1]} : vector<32x32xf32> to vector<24x32xf32>
    %cst_176 = arith.constant 0.000000e+00 : f32
    %281 = vector.broadcast %cst_176 : f32 to vector<24x32xf32>
    %282 = arith.subf %281, %280 : vector<24x32xf32>
    %283 = math.exp %282 : vector<24x32xf32>
    %cst_177 = arith.constant 1.000000e+00 : f32
    %284 = vector.broadcast %cst_177 : f32 to vector<24x32xf32>
    %285 = arith.addf %284, %283 : vector<24x32xf32>
    %286 = tpu.reciprocal %285 : vector<24x32xf32> -> vector<24x32xf32>
    %287 = vector.extract_strided_slice %286 {offsets = [0, 0], sizes = [8, 32], strides = [1, 1]} : vector<24x32xf32> to vector<8x32xf32>
    %288 = vector.extract_strided_slice %286 {offsets = [8, 0], sizes = [8, 32], strides = [1, 1]} : vector<24x32xf32> to vector<8x32xf32>
    %289 = vector.extract_strided_slice %286 {offsets = [16, 0], sizes = [8, 32], strides = [1, 1]} : vector<24x32xf32> to vector<8x32xf32>
    %290 = vector.extract_strided_slice %262 {offsets = [24, 0], sizes = [8, 32], strides = [1, 1]} : vector<32x32xf32> to vector<8x32xf32>
    %291 = math.tanh %290 : vector<8x32xf32>
    %292 = arith.mulf %288, %241 : vector<8x32xf32>
    %293 = arith.mulf %287, %291 : vector<8x32xf32>
    %294 = arith.addf %292, %293 : vector<8x32xf32>
    %295 = math.tanh %294 : vector<8x32xf32>
    %296 = arith.mulf %289, %295 : vector<8x32xf32>
    %297 = arith.index_cast %c1_i32 : i32 to index
    %c0_178 = arith.constant 0 : index
    %c0_179 = arith.constant 0 : index
    %c0_180 = arith.constant 0 : index
    %298 = vector.load %arg4[%297, %c0_178, %c0_179, %c0_180] : memref<16x2x8x32xf32, #tpu.memory_space<vmem>>, vector<1x1x8x32xf32>
    %299 = vector.shape_cast %298 : vector<1x1x8x32xf32> to vector<8x32xf32>
    %300 = vector.shape_cast %279 : vector<8x32xf32> to vector<1x1x8x32xf32>
    tpu.vector_store %arg4[%297, %c0_178, %c0_179, %c0_180], %300 {strides = array<i32>} : memref<16x2x8x32xf32, #tpu.memory_space<vmem>>, vector<1x1x8x32xf32>,
    %301 = arith.index_cast %252 : i32 to index
    %c1_181 = arith.constant 1 : index
    %c0_182 = arith.constant 0 : index
    %c0_183 = arith.constant 0 : index
    %302 = vector.load %arg4[%301, %c1_181, %c0_182, %c0_183] : memref<16x2x8x32xf32, #tpu.memory_space<vmem>>, vector<1x1x8x32xf32>
    %303 = vector.shape_cast %302 : vector<1x1x8x32xf32> to vector<8x32xf32>
    %304 = vector.shape_cast %296 : vector<8x32xf32> to vector<1x1x8x32xf32>
    tpu.vector_store %arg4[%301, %c1_181, %c0_182, %c0_183], %304 {strides = array<i32>} : memref<16x2x8x32xf32, #tpu.memory_space<vmem>>, vector<1x1x8x32xf32>,
    %c2_i32 = arith.constant 2 : i32
    %c15_i32_184 = arith.constant 15 : i32
    %305 = arith.subi %c15_i32_184, %c2_i32 : i32
    %cst_185 = arith.constant dense<0.000000e+00> : vector<32x32xf32>
    %306 = tpu.matmul %196, %279, %cst_185 {dimension_numbers = #tpu.dot_dimension_numbers<[1], [0], [0], [1], [0, 0, 1, 1], [], []>} : vector<32x8xf32>, vector<8x32xf32>, vector<32x32xf32> -> vector<32x32xf32>
    %307 = arith.index_cast %c2_i32 : i32 to index
    %c0_186 = arith.constant 0 : index
    %c0_187 = arith.constant 0 : index
    %308 = vector.load %arg5[%307, %c0_186, %c0_187] : memref<16x32x32xf32, #tpu.memory_space<vmem>>, vector<1x32x32xf32>
    %309 = vector.shape_cast %308 : vector<1x32x32xf32> to vector<32x32xf32>
    %310 = arith.addf %306, %309 : vector<32x32xf32>
    %cst_188 = arith.constant dense<0.000000e+00> : vector<32x32xf32>
    %311 = tpu.matmul %197, %296, %cst_188 {dimension_numbers = #tpu.dot_dimension_numbers<[1], [0], [0], [1], [0, 0, 1, 1], [], []>} : vector<32x8xf32>, vector<8x32xf32>, vector<32x32xf32> -> vector<32x32xf32>
    %312 = arith.index_cast %305 : i32 to index
    %c0_189 = arith.constant 0 : index
    %c0_190 = arith.constant 0 : index
    %313 = vector.load %arg6[%312, %c0_189, %c0_190] : memref<16x32x32xf32, #tpu.memory_space<vmem>>, vector<1x32x32xf32>
    %314 = vector.shape_cast %313 : vector<1x32x32xf32> to vector<32x32xf32>
    %315 = arith.addf %311, %314 : vector<32x32xf32>
    %316 = vector.extract_strided_slice %310 {offsets = [0, 0], sizes = [24, 32], strides = [1, 1]} : vector<32x32xf32> to vector<24x32xf32>
    %cst_191 = arith.constant 0.000000e+00 : f32
    %317 = vector.broadcast %cst_191 : f32 to vector<24x32xf32>
    %318 = arith.subf %317, %316 : vector<24x32xf32>
    %319 = math.exp %318 : vector<24x32xf32>
    %cst_192 = arith.constant 1.000000e+00 : f32
    %320 = vector.broadcast %cst_192 : f32 to vector<24x32xf32>
    %321 = arith.addf %320, %319 : vector<24x32xf32>
    %322 = tpu.reciprocal %321 : vector<24x32xf32> -> vector<24x32xf32>
    %323 = vector.extract_strided_slice %322 {offsets = [0, 0], sizes = [8, 32], strides = [1, 1]} : vector<24x32xf32> to vector<8x32xf32>
    %324 = vector.extract_strided_slice %322 {offsets = [8, 0], sizes = [8, 32], strides = [1, 1]} : vector<24x32xf32> to vector<8x32xf32>
    %325 = vector.extract_strided_slice %322 {offsets = [16, 0], sizes = [8, 32], strides = [1, 1]} : vector<24x32xf32> to vector<8x32xf32>
    %326 = vector.extract_strided_slice %310 {offsets = [24, 0], sizes = [8, 32], strides = [1, 1]} : vector<32x32xf32> to vector<8x32xf32>
    %327 = math.tanh %326 : vector<8x32xf32>
    %328 = arith.mulf %324, %277 : vector<8x32xf32>
    %329 = arith.mulf %323, %327 : vector<8x32xf32>
    %330 = arith.addf %328, %329 : vector<8x32xf32>
    %331 = math.tanh %330 : vector<8x32xf32>
    %332 = arith.mulf %325, %331 : vector<8x32xf32>
    %333 = vector.extract_strided_slice %315 {offsets = [0, 0], sizes = [24, 32], strides = [1, 1]} : vector<32x32xf32> to vector<24x32xf32>
    %cst_193 = arith.constant 0.000000e+00 : f32
    %334 = vector.broadcast %cst_193 : f32 to vector<24x32xf32>
    %335 = arith.subf %334, %333 : vector<24x32xf32>
    %336 = math.exp %335 : vector<24x32xf32>
    %cst_194 = arith.constant 1.000000e+00 : f32
    %337 = vector.broadcast %cst_194 : f32 to vector<24x32xf32>
    %338 = arith.addf %337, %336 : vector<24x32xf32>
    %339 = tpu.reciprocal %338 : vector<24x32xf32> -> vector<24x32xf32>
    %340 = vector.extract_strided_slice %339 {offsets = [0, 0], sizes = [8, 32], strides = [1, 1]} : vector<24x32xf32> to vector<8x32xf32>
    %341 = vector.extract_strided_slice %339 {offsets = [8, 0], sizes = [8, 32], strides = [1, 1]} : vector<24x32xf32> to vector<8x32xf32>
    %342 = vector.extract_strided_slice %339 {offsets = [16, 0], sizes = [8, 32], strides = [1, 1]} : vector<24x32xf32> to vector<8x32xf32>
    %343 = vector.extract_strided_slice %315 {offsets = [24, 0], sizes = [8, 32], strides = [1, 1]} : vector<32x32xf32> to vector<8x32xf32>
    %344 = math.tanh %343 : vector<8x32xf32>
    %345 = arith.mulf %341, %294 : vector<8x32xf32>
    %346 = arith.mulf %340, %344 : vector<8x32xf32>
    %347 = arith.addf %345, %346 : vector<8x32xf32>
    %348 = math.tanh %347 : vector<8x32xf32>
    %349 = arith.mulf %342, %348 : vector<8x32xf32>
    %350 = arith.index_cast %c2_i32 : i32 to index
    %c0_195 = arith.constant 0 : index
    %c0_196 = arith.constant 0 : index
    %c0_197 = arith.constant 0 : index
    %351 = vector.load %arg4[%350, %c0_195, %c0_196, %c0_197] : memref<16x2x8x32xf32, #tpu.memory_space<vmem>>, vector<1x1x8x32xf32>
    %352 = vector.shape_cast %351 : vector<1x1x8x32xf32> to vector<8x32xf32>
    %353 = vector.shape_cast %332 : vector<8x32xf32> to vector<1x1x8x32xf32>
    tpu.vector_store %arg4[%350, %c0_195, %c0_196, %c0_197], %353 {strides = array<i32>} : memref<16x2x8x32xf32, #tpu.memory_space<vmem>>, vector<1x1x8x32xf32>,
    %354 = arith.index_cast %305 : i32 to index
    %c1_198 = arith.constant 1 : index
    %c0_199 = arith.constant 0 : index
    %c0_200 = arith.constant 0 : index
    %355 = vector.load %arg4[%354, %c1_198, %c0_199, %c0_200] : memref<16x2x8x32xf32, #tpu.memory_space<vmem>>, vector<1x1x8x32xf32>
    %356 = vector.shape_cast %355 : vector<1x1x8x32xf32> to vector<8x32xf32>
    %357 = vector.shape_cast %349 : vector<8x32xf32> to vector<1x1x8x32xf32>
    tpu.vector_store %arg4[%354, %c1_198, %c0_199, %c0_200], %357 {strides = array<i32>} : memref<16x2x8x32xf32, #tpu.memory_space<vmem>>, vector<1x1x8x32xf32>,
    %c3_i32 = arith.constant 3 : i32
    %c15_i32_201 = arith.constant 15 : i32
    %358 = arith.subi %c15_i32_201, %c3_i32 : i32
    %cst_202 = arith.constant dense<0.000000e+00> : vector<32x32xf32>
    %359 = tpu.matmul %196, %332, %cst_202 {dimension_numbers = #tpu.dot_dimension_numbers<[1], [0], [0], [1], [0, 0, 1, 1], [], []>} : vector<32x8xf32>, vector<8x32xf32>, vector<32x32xf32> -> vector<32x32xf32>
    %360 = arith.index_cast %c3_i32 : i32 to index
    %c0_203 = arith.constant 0 : index
    %c0_204 = arith.constant 0 : index
    %361 = vector.load %arg5[%360, %c0_203, %c0_204] : memref<16x32x32xf32, #tpu.memory_space<vmem>>, vector<1x32x32xf32>
    %362 = vector.shape_cast %361 : vector<1x32x32xf32> to vector<32x32xf32>
    %363 = arith.addf %359, %362 : vector<32x32xf32>
    %cst_205 = arith.constant dense<0.000000e+00> : vector<32x32xf32>
    %364 = tpu.matmul %197, %349, %cst_205 {dimension_numbers = #tpu.dot_dimension_numbers<[1], [0], [0], [1], [0, 0, 1, 1], [], []>} : vector<32x8xf32>, vector<8x32xf32>, vector<32x32xf32> -> vector<32x32xf32>
    %365 = arith.index_cast %358 : i32 to index
    %c0_206 = arith.constant 0 : index
    %c0_207 = arith.constant 0 : index
    %366 = vector.load %arg6[%365, %c0_206, %c0_207] : memref<16x32x32xf32, #tpu.memory_space<vmem>>, vector<1x32x32xf32>
    %367 = vector.shape_cast %366 : vector<1x32x32xf32> to vector<32x32xf32>
    %368 = arith.addf %364, %367 : vector<32x32xf32>
    %369 = vector.extract_strided_slice %363 {offsets = [0, 0], sizes = [24, 32], strides = [1, 1]} : vector<32x32xf32> to vector<24x32xf32>
    %cst_208 = arith.constant 0.000000e+00 : f32
    %370 = vector.broadcast %cst_208 : f32 to vector<24x32xf32>
    %371 = arith.subf %370, %369 : vector<24x32xf32>
    %372 = math.exp %371 : vector<24x32xf32>
    %cst_209 = arith.constant 1.000000e+00 : f32
    %373 = vector.broadcast %cst_209 : f32 to vector<24x32xf32>
    %374 = arith.addf %373, %372 : vector<24x32xf32>
    %375 = tpu.reciprocal %374 : vector<24x32xf32> -> vector<24x32xf32>
    %376 = vector.extract_strided_slice %375 {offsets = [0, 0], sizes = [8, 32], strides = [1, 1]} : vector<24x32xf32> to vector<8x32xf32>
    %377 = vector.extract_strided_slice %375 {offsets = [8, 0], sizes = [8, 32], strides = [1, 1]} : vector<24x32xf32> to vector<8x32xf32>
    %378 = vector.extract_strided_slice %375 {offsets = [16, 0], sizes = [8, 32], strides = [1, 1]} : vector<24x32xf32> to vector<8x32xf32>
    %379 = vector.extract_strided_slice %363 {offsets = [24, 0], sizes = [8, 32], strides = [1, 1]} : vector<32x32xf32> to vector<8x32xf32>
    %380 = math.tanh %379 : vector<8x32xf32>
    %381 = arith.mulf %377, %330 : vector<8x32xf32>
    %382 = arith.mulf %376, %380 : vector<8x32xf32>
    %383 = arith.addf %381, %382 : vector<8x32xf32>
    %384 = math.tanh %383 : vector<8x32xf32>
    %385 = arith.mulf %378, %384 : vector<8x32xf32>
    %386 = vector.extract_strided_slice %368 {offsets = [0, 0], sizes = [24, 32], strides = [1, 1]} : vector<32x32xf32> to vector<24x32xf32>
    %cst_210 = arith.constant 0.000000e+00 : f32
    %387 = vector.broadcast %cst_210 : f32 to vector<24x32xf32>
    %388 = arith.subf %387, %386 : vector<24x32xf32>
    %389 = math.exp %388 : vector<24x32xf32>
    %cst_211 = arith.constant 1.000000e+00 : f32
    %390 = vector.broadcast %cst_211 : f32 to vector<24x32xf32>
    %391 = arith.addf %390, %389 : vector<24x32xf32>
    %392 = tpu.reciprocal %391 : vector<24x32xf32> -> vector<24x32xf32>
    %393 = vector.extract_strided_slice %392 {offsets = [0, 0], sizes = [8, 32], strides = [1, 1]} : vector<24x32xf32> to vector<8x32xf32>
    %394 = vector.extract_strided_slice %392 {offsets = [8, 0], sizes = [8, 32], strides = [1, 1]} : vector<24x32xf32> to vector<8x32xf32>
    %395 = vector.extract_strided_slice %392 {offsets = [16, 0], sizes = [8, 32], strides = [1, 1]} : vector<24x32xf32> to vector<8x32xf32>
    %396 = vector.extract_strided_slice %368 {offsets = [24, 0], sizes = [8, 32], strides = [1, 1]} : vector<32x32xf32> to vector<8x32xf32>
    %397 = math.tanh %396 : vector<8x32xf32>
    %398 = arith.mulf %394, %347 : vector<8x32xf32>
    %399 = arith.mulf %393, %397 : vector<8x32xf32>
    %400 = arith.addf %398, %399 : vector<8x32xf32>
    %401 = math.tanh %400 : vector<8x32xf32>
    %402 = arith.mulf %395, %401 : vector<8x32xf32>
    %403 = arith.index_cast %c3_i32 : i32 to index
    %c0_212 = arith.constant 0 : index
    %c0_213 = arith.constant 0 : index
    %c0_214 = arith.constant 0 : index
    %404 = vector.load %arg4[%403, %c0_212, %c0_213, %c0_214] : memref<16x2x8x32xf32, #tpu.memory_space<vmem>>, vector<1x1x8x32xf32>
    %405 = vector.shape_cast %404 : vector<1x1x8x32xf32> to vector<8x32xf32>
    %406 = vector.shape_cast %385 : vector<8x32xf32> to vector<1x1x8x32xf32>
    tpu.vector_store %arg4[%403, %c0_212, %c0_213, %c0_214], %406 {strides = array<i32>} : memref<16x2x8x32xf32, #tpu.memory_space<vmem>>, vector<1x1x8x32xf32>,
    %407 = arith.index_cast %358 : i32 to index
    %c1_215 = arith.constant 1 : index
    %c0_216 = arith.constant 0 : index
    %c0_217 = arith.constant 0 : index
    %408 = vector.load %arg4[%407, %c1_215, %c0_216, %c0_217] : memref<16x2x8x32xf32, #tpu.memory_space<vmem>>, vector<1x1x8x32xf32>
    %409 = vector.shape_cast %408 : vector<1x1x8x32xf32> to vector<8x32xf32>
    %410 = vector.shape_cast %402 : vector<8x32xf32> to vector<1x1x8x32xf32>
    tpu.vector_store %arg4[%407, %c1_215, %c0_216, %c0_217], %410 {strides = array<i32>} : memref<16x2x8x32xf32, #tpu.memory_space<vmem>>, vector<1x1x8x32xf32>,
    %c4_i32 = arith.constant 4 : i32
    %c15_i32_218 = arith.constant 15 : i32
    %411 = arith.subi %c15_i32_218, %c4_i32 : i32
    %cst_219 = arith.constant dense<0.000000e+00> : vector<32x32xf32>
    %412 = tpu.matmul %196, %385, %cst_219 {dimension_numbers = #tpu.dot_dimension_numbers<[1], [0], [0], [1], [0, 0, 1, 1], [], []>} : vector<32x8xf32>, vector<8x32xf32>, vector<32x32xf32> -> vector<32x32xf32>
    %413 = arith.index_cast %c4_i32 : i32 to index
    %c0_220 = arith.constant 0 : index
    %c0_221 = arith.constant 0 : index
    %414 = vector.load %arg5[%413, %c0_220, %c0_221] : memref<16x32x32xf32, #tpu.memory_space<vmem>>, vector<1x32x32xf32>
    %415 = vector.shape_cast %414 : vector<1x32x32xf32> to vector<32x32xf32>
    %416 = arith.addf %412, %415 : vector<32x32xf32>
    %cst_222 = arith.constant dense<0.000000e+00> : vector<32x32xf32>
    %417 = tpu.matmul %197, %402, %cst_222 {dimension_numbers = #tpu.dot_dimension_numbers<[1], [0], [0], [1], [0, 0, 1, 1], [], []>} : vector<32x8xf32>, vector<8x32xf32>, vector<32x32xf32> -> vector<32x32xf32>
    %418 = arith.index_cast %411 : i32 to index
    %c0_223 = arith.constant 0 : index
    %c0_224 = arith.constant 0 : index
    %419 = vector.load %arg6[%418, %c0_223, %c0_224] : memref<16x32x32xf32, #tpu.memory_space<vmem>>, vector<1x32x32xf32>
    %420 = vector.shape_cast %419 : vector<1x32x32xf32> to vector<32x32xf32>
    %421 = arith.addf %417, %420 : vector<32x32xf32>
    %422 = vector.extract_strided_slice %416 {offsets = [0, 0], sizes = [24, 32], strides = [1, 1]} : vector<32x32xf32> to vector<24x32xf32>
    %cst_225 = arith.constant 0.000000e+00 : f32
    %423 = vector.broadcast %cst_225 : f32 to vector<24x32xf32>
    %424 = arith.subf %423, %422 : vector<24x32xf32>
    %425 = math.exp %424 : vector<24x32xf32>
    %cst_226 = arith.constant 1.000000e+00 : f32
    %426 = vector.broadcast %cst_226 : f32 to vector<24x32xf32>
    %427 = arith.addf %426, %425 : vector<24x32xf32>
    %428 = tpu.reciprocal %427 : vector<24x32xf32> -> vector<24x32xf32>
    %429 = vector.extract_strided_slice %428 {offsets = [0, 0], sizes = [8, 32], strides = [1, 1]} : vector<24x32xf32> to vector<8x32xf32>
    %430 = vector.extract_strided_slice %428 {offsets = [8, 0], sizes = [8, 32], strides = [1, 1]} : vector<24x32xf32> to vector<8x32xf32>
    %431 = vector.extract_strided_slice %428 {offsets = [16, 0], sizes = [8, 32], strides = [1, 1]} : vector<24x32xf32> to vector<8x32xf32>
    %432 = vector.extract_strided_slice %416 {offsets = [24, 0], sizes = [8, 32], strides = [1, 1]} : vector<32x32xf32> to vector<8x32xf32>
    %433 = math.tanh %432 : vector<8x32xf32>
    %434 = arith.mulf %430, %383 : vector<8x32xf32>
    %435 = arith.mulf %429, %433 : vector<8x32xf32>
    %436 = arith.addf %434, %435 : vector<8x32xf32>
    %437 = math.tanh %436 : vector<8x32xf32>
    %438 = arith.mulf %431, %437 : vector<8x32xf32>
    %439 = vector.extract_strided_slice %421 {offsets = [0, 0], sizes = [24, 32], strides = [1, 1]} : vector<32x32xf32> to vector<24x32xf32>
    %cst_227 = arith.constant 0.000000e+00 : f32
    %440 = vector.broadcast %cst_227 : f32 to vector<24x32xf32>
    %441 = arith.subf %440, %439 : vector<24x32xf32>
    %442 = math.exp %441 : vector<24x32xf32>
    %cst_228 = arith.constant 1.000000e+00 : f32
    %443 = vector.broadcast %cst_228 : f32 to vector<24x32xf32>
    %444 = arith.addf %443, %442 : vector<24x32xf32>
    %445 = tpu.reciprocal %444 : vector<24x32xf32> -> vector<24x32xf32>
    %446 = vector.extract_strided_slice %445 {offsets = [0, 0], sizes = [8, 32], strides = [1, 1]} : vector<24x32xf32> to vector<8x32xf32>
    %447 = vector.extract_strided_slice %445 {offsets = [8, 0], sizes = [8, 32], strides = [1, 1]} : vector<24x32xf32> to vector<8x32xf32>
    %448 = vector.extract_strided_slice %445 {offsets = [16, 0], sizes = [8, 32], strides = [1, 1]} : vector<24x32xf32> to vector<8x32xf32>
    %449 = vector.extract_strided_slice %421 {offsets = [24, 0], sizes = [8, 32], strides = [1, 1]} : vector<32x32xf32> to vector<8x32xf32>
    %450 = math.tanh %449 : vector<8x32xf32>
    %451 = arith.mulf %447, %400 : vector<8x32xf32>
    %452 = arith.mulf %446, %450 : vector<8x32xf32>
    %453 = arith.addf %451, %452 : vector<8x32xf32>
    %454 = math.tanh %453 : vector<8x32xf32>
    %455 = arith.mulf %448, %454 : vector<8x32xf32>
    %456 = arith.index_cast %c4_i32 : i32 to index
    %c0_229 = arith.constant 0 : index
    %c0_230 = arith.constant 0 : index
    %c0_231 = arith.constant 0 : index
    %457 = vector.load %arg4[%456, %c0_229, %c0_230, %c0_231] : memref<16x2x8x32xf32, #tpu.memory_space<vmem>>, vector<1x1x8x32xf32>
    %458 = vector.shape_cast %457 : vector<1x1x8x32xf32> to vector<8x32xf32>
    %459 = vector.shape_cast %438 : vector<8x32xf32> to vector<1x1x8x32xf32>
    tpu.vector_store %arg4[%456, %c0_229, %c0_230, %c0_231], %459 {strides = array<i32>} : memref<16x2x8x32xf32, #tpu.memory_space<vmem>>, vector<1x1x8x32xf32>,
    %460 = arith.index_cast %411 : i32 to index
    %c1_232 = arith.constant 1 : index
    %c0_233 = arith.constant 0 : index
    %c0_234 = arith.constant 0 : index
    %461 = vector.load %arg4[%460, %c1_232, %c0_233, %c0_234] : memref<16x2x8x32xf32, #tpu.memory_space<vmem>>, vector<1x1x8x32xf32>
    %462 = vector.shape_cast %461 : vector<1x1x8x32xf32> to vector<8x32xf32>
    %463 = vector.shape_cast %455 : vector<8x32xf32> to vector<1x1x8x32xf32>
    tpu.vector_store %arg4[%460, %c1_232, %c0_233, %c0_234], %463 {strides = array<i32>} : memref<16x2x8x32xf32, #tpu.memory_space<vmem>>, vector<1x1x8x32xf32>,
    %c5_i32 = arith.constant 5 : i32
    %c15_i32_235 = arith.constant 15 : i32
    %464 = arith.subi %c15_i32_235, %c5_i32 : i32
    %cst_236 = arith.constant dense<0.000000e+00> : vector<32x32xf32>
    %465 = tpu.matmul %196, %438, %cst_236 {dimension_numbers = #tpu.dot_dimension_numbers<[1], [0], [0], [1], [0, 0, 1, 1], [], []>} : vector<32x8xf32>, vector<8x32xf32>, vector<32x32xf32> -> vector<32x32xf32>
    %466 = arith.index_cast %c5_i32 : i32 to index
    %c0_237 = arith.constant 0 : index
    %c0_238 = arith.constant 0 : index
    %467 = vector.load %arg5[%466, %c0_237, %c0_238] : memref<16x32x32xf32, #tpu.memory_space<vmem>>, vector<1x32x32xf32>
    %468 = vector.shape_cast %467 : vector<1x32x32xf32> to vector<32x32xf32>
    %469 = arith.addf %465, %468 : vector<32x32xf32>
    %cst_239 = arith.constant dense<0.000000e+00> : vector<32x32xf32>
    %470 = tpu.matmul %197, %455, %cst_239 {dimension_numbers = #tpu.dot_dimension_numbers<[1], [0], [0], [1], [0, 0, 1, 1], [], []>} : vector<32x8xf32>, vector<8x32xf32>, vector<32x32xf32> -> vector<32x32xf32>
    %471 = arith.index_cast %464 : i32 to index
    %c0_240 = arith.constant 0 : index
    %c0_241 = arith.constant 0 : index
    %472 = vector.load %arg6[%471, %c0_240, %c0_241] : memref<16x32x32xf32, #tpu.memory_space<vmem>>, vector<1x32x32xf32>
    %473 = vector.shape_cast %472 : vector<1x32x32xf32> to vector<32x32xf32>
    %474 = arith.addf %470, %473 : vector<32x32xf32>
    %475 = vector.extract_strided_slice %469 {offsets = [0, 0], sizes = [24, 32], strides = [1, 1]} : vector<32x32xf32> to vector<24x32xf32>
    %cst_242 = arith.constant 0.000000e+00 : f32
    %476 = vector.broadcast %cst_242 : f32 to vector<24x32xf32>
    %477 = arith.subf %476, %475 : vector<24x32xf32>
    %478 = math.exp %477 : vector<24x32xf32>
    %cst_243 = arith.constant 1.000000e+00 : f32
    %479 = vector.broadcast %cst_243 : f32 to vector<24x32xf32>
    %480 = arith.addf %479, %478 : vector<24x32xf32>
    %481 = tpu.reciprocal %480 : vector<24x32xf32> -> vector<24x32xf32>
    %482 = vector.extract_strided_slice %481 {offsets = [0, 0], sizes = [8, 32], strides = [1, 1]} : vector<24x32xf32> to vector<8x32xf32>
    %483 = vector.extract_strided_slice %481 {offsets = [8, 0], sizes = [8, 32], strides = [1, 1]} : vector<24x32xf32> to vector<8x32xf32>
    %484 = vector.extract_strided_slice %481 {offsets = [16, 0], sizes = [8, 32], strides = [1, 1]} : vector<24x32xf32> to vector<8x32xf32>
    %485 = vector.extract_strided_slice %469 {offsets = [24, 0], sizes = [8, 32], strides = [1, 1]} : vector<32x32xf32> to vector<8x32xf32>
    %486 = math.tanh %485 : vector<8x32xf32>
    %487 = arith.mulf %483, %436 : vector<8x32xf32>
    %488 = arith.mulf %482, %486 : vector<8x32xf32>
    %489 = arith.addf %487, %488 : vector<8x32xf32>
    %490 = math.tanh %489 : vector<8x32xf32>
    %491 = arith.mulf %484, %490 : vector<8x32xf32>
    %492 = vector.extract_strided_slice %474 {offsets = [0, 0], sizes = [24, 32], strides = [1, 1]} : vector<32x32xf32> to vector<24x32xf32>
    %cst_244 = arith.constant 0.000000e+00 : f32
    %493 = vector.broadcast %cst_244 : f32 to vector<24x32xf32>
    %494 = arith.subf %493, %492 : vector<24x32xf32>
    %495 = math.exp %494 : vector<24x32xf32>
    %cst_245 = arith.constant 1.000000e+00 : f32
    %496 = vector.broadcast %cst_245 : f32 to vector<24x32xf32>
    %497 = arith.addf %496, %495 : vector<24x32xf32>
    %498 = tpu.reciprocal %497 : vector<24x32xf32> -> vector<24x32xf32>
    %499 = vector.extract_strided_slice %498 {offsets = [0, 0], sizes = [8, 32], strides = [1, 1]} : vector<24x32xf32> to vector<8x32xf32>
    %500 = vector.extract_strided_slice %498 {offsets = [8, 0], sizes = [8, 32], strides = [1, 1]} : vector<24x32xf32> to vector<8x32xf32>
    %501 = vector.extract_strided_slice %498 {offsets = [16, 0], sizes = [8, 32], strides = [1, 1]} : vector<24x32xf32> to vector<8x32xf32>
    %502 = vector.extract_strided_slice %474 {offsets = [24, 0], sizes = [8, 32], strides = [1, 1]} : vector<32x32xf32> to vector<8x32xf32>
    %503 = math.tanh %502 : vector<8x32xf32>
    %504 = arith.mulf %500, %453 : vector<8x32xf32>
    %505 = arith.mulf %499, %503 : vector<8x32xf32>
    %506 = arith.addf %504, %505 : vector<8x32xf32>
    %507 = math.tanh %506 : vector<8x32xf32>
    %508 = arith.mulf %501, %507 : vector<8x32xf32>
    %509 = arith.index_cast %c5_i32 : i32 to index
    %c0_246 = arith.constant 0 : index
    %c0_247 = arith.constant 0 : index
    %c0_248 = arith.constant 0 : index
    %510 = vector.load %arg4[%509, %c0_246, %c0_247, %c0_248] : memref<16x2x8x32xf32, #tpu.memory_space<vmem>>, vector<1x1x8x32xf32>
    %511 = vector.shape_cast %510 : vector<1x1x8x32xf32> to vector<8x32xf32>
    %512 = vector.shape_cast %491 : vector<8x32xf32> to vector<1x1x8x32xf32>
    tpu.vector_store %arg4[%509, %c0_246, %c0_247, %c0_248], %512 {strides = array<i32>} : memref<16x2x8x32xf32, #tpu.memory_space<vmem>>, vector<1x1x8x32xf32>,
    %513 = arith.index_cast %464 : i32 to index
    %c1_249 = arith.constant 1 : index
    %c0_250 = arith.constant 0 : index
    %c0_251 = arith.constant 0 : index
    %514 = vector.load %arg4[%513, %c1_249, %c0_250, %c0_251] : memref<16x2x8x32xf32, #tpu.memory_space<vmem>>, vector<1x1x8x32xf32>
    %515 = vector.shape_cast %514 : vector<1x1x8x32xf32> to vector<8x32xf32>
    %516 = vector.shape_cast %508 : vector<8x32xf32> to vector<1x1x8x32xf32>
    tpu.vector_store %arg4[%513, %c1_249, %c0_250, %c0_251], %516 {strides = array<i32>} : memref<16x2x8x32xf32, #tpu.memory_space<vmem>>, vector<1x1x8x32xf32>,
    %c6_i32 = arith.constant 6 : i32
    %c15_i32_252 = arith.constant 15 : i32
    %517 = arith.subi %c15_i32_252, %c6_i32 : i32
    %cst_253 = arith.constant dense<0.000000e+00> : vector<32x32xf32>
    %518 = tpu.matmul %196, %491, %cst_253 {dimension_numbers = #tpu.dot_dimension_numbers<[1], [0], [0], [1], [0, 0, 1, 1], [], []>} : vector<32x8xf32>, vector<8x32xf32>, vector<32x32xf32> -> vector<32x32xf32>
    %519 = arith.index_cast %c6_i32 : i32 to index
    %c0_254 = arith.constant 0 : index
    %c0_255 = arith.constant 0 : index
    %520 = vector.load %arg5[%519, %c0_254, %c0_255] : memref<16x32x32xf32, #tpu.memory_space<vmem>>, vector<1x32x32xf32>
    %521 = vector.shape_cast %520 : vector<1x32x32xf32> to vector<32x32xf32>
    %522 = arith.addf %518, %521 : vector<32x32xf32>
    %cst_256 = arith.constant dense<0.000000e+00> : vector<32x32xf32>
    %523 = tpu.matmul %197, %508, %cst_256 {dimension_numbers = #tpu.dot_dimension_numbers<[1], [0], [0], [1], [0, 0, 1, 1], [], []>} : vector<32x8xf32>, vector<8x32xf32>, vector<32x32xf32> -> vector<32x32xf32>
    %524 = arith.index_cast %517 : i32 to index
    %c0_257 = arith.constant 0 : index
    %c0_258 = arith.constant 0 : index
    %525 = vector.load %arg6[%524, %c0_257, %c0_258] : memref<16x32x32xf32, #tpu.memory_space<vmem>>, vector<1x32x32xf32>
    %526 = vector.shape_cast %525 : vector<1x32x32xf32> to vector<32x32xf32>
    %527 = arith.addf %523, %526 : vector<32x32xf32>
    %528 = vector.extract_strided_slice %522 {offsets = [0, 0], sizes = [24, 32], strides = [1, 1]} : vector<32x32xf32> to vector<24x32xf32>
    %cst_259 = arith.constant 0.000000e+00 : f32
    %529 = vector.broadcast %cst_259 : f32 to vector<24x32xf32>
    %530 = arith.subf %529, %528 : vector<24x32xf32>
    %531 = math.exp %530 : vector<24x32xf32>
    %cst_260 = arith.constant 1.000000e+00 : f32
    %532 = vector.broadcast %cst_260 : f32 to vector<24x32xf32>
    %533 = arith.addf %532, %531 : vector<24x32xf32>
    %534 = tpu.reciprocal %533 : vector<24x32xf32> -> vector<24x32xf32>
    %535 = vector.extract_strided_slice %534 {offsets = [0, 0], sizes = [8, 32], strides = [1, 1]} : vector<24x32xf32> to vector<8x32xf32>
    %536 = vector.extract_strided_slice %534 {offsets = [8, 0], sizes = [8, 32], strides = [1, 1]} : vector<24x32xf32> to vector<8x32xf32>
    %537 = vector.extract_strided_slice %534 {offsets = [16, 0], sizes = [8, 32], strides = [1, 1]} : vector<24x32xf32> to vector<8x32xf32>
    %538 = vector.extract_strided_slice %522 {offsets = [24, 0], sizes = [8, 32], strides = [1, 1]} : vector<32x32xf32> to vector<8x32xf32>
    %539 = math.tanh %538 : vector<8x32xf32>
    %540 = arith.mulf %536, %489 : vector<8x32xf32>
    %541 = arith.mulf %535, %539 : vector<8x32xf32>
    %542 = arith.addf %540, %541 : vector<8x32xf32>
    %543 = math.tanh %542 : vector<8x32xf32>
    %544 = arith.mulf %537, %543 : vector<8x32xf32>
    %545 = vector.extract_strided_slice %527 {offsets = [0, 0], sizes = [24, 32], strides = [1, 1]} : vector<32x32xf32> to vector<24x32xf32>
    %cst_261 = arith.constant 0.000000e+00 : f32
    %546 = vector.broadcast %cst_261 : f32 to vector<24x32xf32>
    %547 = arith.subf %546, %545 : vector<24x32xf32>
    %548 = math.exp %547 : vector<24x32xf32>
    %cst_262 = arith.constant 1.000000e+00 : f32
    %549 = vector.broadcast %cst_262 : f32 to vector<24x32xf32>
    %550 = arith.addf %549, %548 : vector<24x32xf32>
    %551 = tpu.reciprocal %550 : vector<24x32xf32> -> vector<24x32xf32>
    %552 = vector.extract_strided_slice %551 {offsets = [0, 0], sizes = [8, 32], strides = [1, 1]} : vector<24x32xf32> to vector<8x32xf32>
    %553 = vector.extract_strided_slice %551 {offsets = [8, 0], sizes = [8, 32], strides = [1, 1]} : vector<24x32xf32> to vector<8x32xf32>
    %554 = vector.extract_strided_slice %551 {offsets = [16, 0], sizes = [8, 32], strides = [1, 1]} : vector<24x32xf32> to vector<8x32xf32>
    %555 = vector.extract_strided_slice %527 {offsets = [24, 0], sizes = [8, 32], strides = [1, 1]} : vector<32x32xf32> to vector<8x32xf32>
    %556 = math.tanh %555 : vector<8x32xf32>
    %557 = arith.mulf %553, %506 : vector<8x32xf32>
    %558 = arith.mulf %552, %556 : vector<8x32xf32>
    %559 = arith.addf %557, %558 : vector<8x32xf32>
    %560 = math.tanh %559 : vector<8x32xf32>
    %561 = arith.mulf %554, %560 : vector<8x32xf32>
    %562 = arith.index_cast %c6_i32 : i32 to index
    %c0_263 = arith.constant 0 : index
    %c0_264 = arith.constant 0 : index
    %c0_265 = arith.constant 0 : index
    %563 = vector.load %arg4[%562, %c0_263, %c0_264, %c0_265] : memref<16x2x8x32xf32, #tpu.memory_space<vmem>>, vector<1x1x8x32xf32>
    %564 = vector.shape_cast %563 : vector<1x1x8x32xf32> to vector<8x32xf32>
    %565 = vector.shape_cast %544 : vector<8x32xf32> to vector<1x1x8x32xf32>
    tpu.vector_store %arg4[%562, %c0_263, %c0_264, %c0_265], %565 {strides = array<i32>} : memref<16x2x8x32xf32, #tpu.memory_space<vmem>>, vector<1x1x8x32xf32>,
    %566 = arith.index_cast %517 : i32 to index
    %c1_266 = arith.constant 1 : index
    %c0_267 = arith.constant 0 : index
    %c0_268 = arith.constant 0 : index
    %567 = vector.load %arg4[%566, %c1_266, %c0_267, %c0_268] : memref<16x2x8x32xf32, #tpu.memory_space<vmem>>, vector<1x1x8x32xf32>
    %568 = vector.shape_cast %567 : vector<1x1x8x32xf32> to vector<8x32xf32>
    %569 = vector.shape_cast %561 : vector<8x32xf32> to vector<1x1x8x32xf32>
    tpu.vector_store %arg4[%566, %c1_266, %c0_267, %c0_268], %569 {strides = array<i32>} : memref<16x2x8x32xf32, #tpu.memory_space<vmem>>, vector<1x1x8x32xf32>,
    %c7_i32 = arith.constant 7 : i32
    %c15_i32_269 = arith.constant 15 : i32
    %570 = arith.subi %c15_i32_269, %c7_i32 : i32
    %cst_270 = arith.constant dense<0.000000e+00> : vector<32x32xf32>
    %571 = tpu.matmul %196, %544, %cst_270 {dimension_numbers = #tpu.dot_dimension_numbers<[1], [0], [0], [1], [0, 0, 1, 1], [], []>} : vector<32x8xf32>, vector<8x32xf32>, vector<32x32xf32> -> vector<32x32xf32>
    %572 = arith.index_cast %c7_i32 : i32 to index
    %c0_271 = arith.constant 0 : index
    %c0_272 = arith.constant 0 : index
    %573 = vector.load %arg5[%572, %c0_271, %c0_272] : memref<16x32x32xf32, #tpu.memory_space<vmem>>, vector<1x32x32xf32>
    %574 = vector.shape_cast %573 : vector<1x32x32xf32> to vector<32x32xf32>
    %575 = arith.addf %571, %574 : vector<32x32xf32>
    %cst_273 = arith.constant dense<0.000000e+00> : vector<32x32xf32>
    %576 = tpu.matmul %197, %561, %cst_273 {dimension_numbers = #tpu.dot_dimension_numbers<[1], [0], [0], [1], [0, 0, 1, 1], [], []>} : vector<32x8xf32>, vector<8x32xf32>, vector<32x32xf32> -> vector<32x32xf32>
    %577 = arith.index_cast %570 : i32 to index
    %c0_274 = arith.constant 0 : index
    %c0_275 = arith.constant 0 : index
    %578 = vector.load %arg6[%577, %c0_274, %c0_275] : memref<16x32x32xf32, #tpu.memory_space<vmem>>, vector<1x32x32xf32>
    %579 = vector.shape_cast %578 : vector<1x32x32xf32> to vector<32x32xf32>
    %580 = arith.addf %576, %579 : vector<32x32xf32>
    %581 = vector.extract_strided_slice %575 {offsets = [0, 0], sizes = [24, 32], strides = [1, 1]} : vector<32x32xf32> to vector<24x32xf32>
    %cst_276 = arith.constant 0.000000e+00 : f32
    %582 = vector.broadcast %cst_276 : f32 to vector<24x32xf32>
    %583 = arith.subf %582, %581 : vector<24x32xf32>
    %584 = math.exp %583 : vector<24x32xf32>
    %cst_277 = arith.constant 1.000000e+00 : f32
    %585 = vector.broadcast %cst_277 : f32 to vector<24x32xf32>
    %586 = arith.addf %585, %584 : vector<24x32xf32>
    %587 = tpu.reciprocal %586 : vector<24x32xf32> -> vector<24x32xf32>
    %588 = vector.extract_strided_slice %587 {offsets = [0, 0], sizes = [8, 32], strides = [1, 1]} : vector<24x32xf32> to vector<8x32xf32>
    %589 = vector.extract_strided_slice %587 {offsets = [8, 0], sizes = [8, 32], strides = [1, 1]} : vector<24x32xf32> to vector<8x32xf32>
    %590 = vector.extract_strided_slice %587 {offsets = [16, 0], sizes = [8, 32], strides = [1, 1]} : vector<24x32xf32> to vector<8x32xf32>
    %591 = vector.extract_strided_slice %575 {offsets = [24, 0], sizes = [8, 32], strides = [1, 1]} : vector<32x32xf32> to vector<8x32xf32>
    %592 = math.tanh %591 : vector<8x32xf32>
    %593 = arith.mulf %589, %542 : vector<8x32xf32>
    %594 = arith.mulf %588, %592 : vector<8x32xf32>
    %595 = arith.addf %593, %594 : vector<8x32xf32>
    %596 = math.tanh %595 : vector<8x32xf32>
    %597 = arith.mulf %590, %596 : vector<8x32xf32>
    %598 = vector.extract_strided_slice %580 {offsets = [0, 0], sizes = [24, 32], strides = [1, 1]} : vector<32x32xf32> to vector<24x32xf32>
    %cst_278 = arith.constant 0.000000e+00 : f32
    %599 = vector.broadcast %cst_278 : f32 to vector<24x32xf32>
    %600 = arith.subf %599, %598 : vector<24x32xf32>
    %601 = math.exp %600 : vector<24x32xf32>
    %cst_279 = arith.constant 1.000000e+00 : f32
    %602 = vector.broadcast %cst_279 : f32 to vector<24x32xf32>
    %603 = arith.addf %602, %601 : vector<24x32xf32>
    %604 = tpu.reciprocal %603 : vector<24x32xf32> -> vector<24x32xf32>
    %605 = vector.extract_strided_slice %604 {offsets = [0, 0], sizes = [8, 32], strides = [1, 1]} : vector<24x32xf32> to vector<8x32xf32>
    %606 = vector.extract_strided_slice %604 {offsets = [8, 0], sizes = [8, 32], strides = [1, 1]} : vector<24x32xf32> to vector<8x32xf32>
    %607 = vector.extract_strided_slice %604 {offsets = [16, 0], sizes = [8, 32], strides = [1, 1]} : vector<24x32xf32> to vector<8x32xf32>
    %608 = vector.extract_strided_slice %580 {offsets = [24, 0], sizes = [8, 32], strides = [1, 1]} : vector<32x32xf32> to vector<8x32xf32>
    %609 = math.tanh %608 : vector<8x32xf32>
    %610 = arith.mulf %606, %559 : vector<8x32xf32>
    %611 = arith.mulf %605, %609 : vector<8x32xf32>
    %612 = arith.addf %610, %611 : vector<8x32xf32>
    %613 = math.tanh %612 : vector<8x32xf32>
    %614 = arith.mulf %607, %613 : vector<8x32xf32>
    %615 = arith.index_cast %c7_i32 : i32 to index
    %c0_280 = arith.constant 0 : index
    %c0_281 = arith.constant 0 : index
    %c0_282 = arith.constant 0 : index
    %616 = vector.load %arg4[%615, %c0_280, %c0_281, %c0_282] : memref<16x2x8x32xf32, #tpu.memory_space<vmem>>, vector<1x1x8x32xf32>
    %617 = vector.shape_cast %616 : vector<1x1x8x32xf32> to vector<8x32xf32>
    %618 = vector.shape_cast %597 : vector<8x32xf32> to vector<1x1x8x32xf32>
    tpu.vector_store %arg4[%615, %c0_280, %c0_281, %c0_282], %618 {strides = array<i32>} : memref<16x2x8x32xf32, #tpu.memory_space<vmem>>, vector<1x1x8x32xf32>,
    %619 = arith.index_cast %570 : i32 to index
    %c1_283 = arith.constant 1 : index
    %c0_284 = arith.constant 0 : index
    %c0_285 = arith.constant 0 : index
    %620 = vector.load %arg4[%619, %c1_283, %c0_284, %c0_285] : memref<16x2x8x32xf32, #tpu.memory_space<vmem>>, vector<1x1x8x32xf32>
    %621 = vector.shape_cast %620 : vector<1x1x8x32xf32> to vector<8x32xf32>
    %622 = vector.shape_cast %614 : vector<8x32xf32> to vector<1x1x8x32xf32>
    tpu.vector_store %arg4[%619, %c1_283, %c0_284, %c0_285], %622 {strides = array<i32>} : memref<16x2x8x32xf32, #tpu.memory_space<vmem>>, vector<1x1x8x32xf32>,
    %c8_i32 = arith.constant 8 : i32
    %c15_i32_286 = arith.constant 15 : i32
    %623 = arith.subi %c15_i32_286, %c8_i32 : i32
    %cst_287 = arith.constant dense<0.000000e+00> : vector<32x32xf32>
    %624 = tpu.matmul %196, %597, %cst_287 {dimension_numbers = #tpu.dot_dimension_numbers<[1], [0], [0], [1], [0, 0, 1, 1], [], []>} : vector<32x8xf32>, vector<8x32xf32>, vector<32x32xf32> -> vector<32x32xf32>
    %625 = arith.index_cast %c8_i32 : i32 to index
    %c0_288 = arith.constant 0 : index
    %c0_289 = arith.constant 0 : index
    %626 = vector.load %arg5[%625, %c0_288, %c0_289] : memref<16x32x32xf32, #tpu.memory_space<vmem>>, vector<1x32x32xf32>
    %627 = vector.shape_cast %626 : vector<1x32x32xf32> to vector<32x32xf32>
    %628 = arith.addf %624, %627 : vector<32x32xf32>
    %cst_290 = arith.constant dense<0.000000e+00> : vector<32x32xf32>
    %629 = tpu.matmul %197, %614, %cst_290 {dimension_numbers = #tpu.dot_dimension_numbers<[1], [0], [0], [1], [0, 0, 1, 1], [], []>} : vector<32x8xf32>, vector<8x32xf32>, vector<32x32xf32> -> vector<32x32xf32>
    %630 = arith.index_cast %623 : i32 to index
    %c0_291 = arith.constant 0 : index
    %c0_292 = arith.constant 0 : index
    %631 = vector.load %arg6[%630, %c0_291, %c0_292] : memref<16x32x32xf32, #tpu.memory_space<vmem>>, vector<1x32x32xf32>
    %632 = vector.shape_cast %631 : vector<1x32x32xf32> to vector<32x32xf32>
    %633 = arith.addf %629, %632 : vector<32x32xf32>
    %634 = vector.extract_strided_slice %628 {offsets = [0, 0], sizes = [24, 32], strides = [1, 1]} : vector<32x32xf32> to vector<24x32xf32>
    %cst_293 = arith.constant 0.000000e+00 : f32
    %635 = vector.broadcast %cst_293 : f32 to vector<24x32xf32>
    %636 = arith.subf %635, %634 : vector<24x32xf32>
    %637 = math.exp %636 : vector<24x32xf32>
    %cst_294 = arith.constant 1.000000e+00 : f32
    %638 = vector.broadcast %cst_294 : f32 to vector<24x32xf32>
    %639 = arith.addf %638, %637 : vector<24x32xf32>
    %640 = tpu.reciprocal %639 : vector<24x32xf32> -> vector<24x32xf32>
    %641 = vector.extract_strided_slice %640 {offsets = [0, 0], sizes = [8, 32], strides = [1, 1]} : vector<24x32xf32> to vector<8x32xf32>
    %642 = vector.extract_strided_slice %640 {offsets = [8, 0], sizes = [8, 32], strides = [1, 1]} : vector<24x32xf32> to vector<8x32xf32>
    %643 = vector.extract_strided_slice %640 {offsets = [16, 0], sizes = [8, 32], strides = [1, 1]} : vector<24x32xf32> to vector<8x32xf32>
    %644 = vector.extract_strided_slice %628 {offsets = [24, 0], sizes = [8, 32], strides = [1, 1]} : vector<32x32xf32> to vector<8x32xf32>
    %645 = math.tanh %644 : vector<8x32xf32>
    %646 = arith.mulf %642, %595 : vector<8x32xf32>
    %647 = arith.mulf %641, %645 : vector<8x32xf32>
    %648 = arith.addf %646, %647 : vector<8x32xf32>
    %649 = math.tanh %648 : vector<8x32xf32>
    %650 = arith.mulf %643, %649 : vector<8x32xf32>
    %651 = vector.extract_strided_slice %633 {offsets = [0, 0], sizes = [24, 32], strides = [1, 1]} : vector<32x32xf32> to vector<24x32xf32>
    %cst_295 = arith.constant 0.000000e+00 : f32
    %652 = vector.broadcast %cst_295 : f32 to vector<24x32xf32>
    %653 = arith.subf %652, %651 : vector<24x32xf32>
    %654 = math.exp %653 : vector<24x32xf32>
    %cst_296 = arith.constant 1.000000e+00 : f32
    %655 = vector.broadcast %cst_296 : f32 to vector<24x32xf32>
    %656 = arith.addf %655, %654 : vector<24x32xf32>
    %657 = tpu.reciprocal %656 : vector<24x32xf32> -> vector<24x32xf32>
    %658 = vector.extract_strided_slice %657 {offsets = [0, 0], sizes = [8, 32], strides = [1, 1]} : vector<24x32xf32> to vector<8x32xf32>
    %659 = vector.extract_strided_slice %657 {offsets = [8, 0], sizes = [8, 32], strides = [1, 1]} : vector<24x32xf32> to vector<8x32xf32>
    %660 = vector.extract_strided_slice %657 {offsets = [16, 0], sizes = [8, 32], strides = [1, 1]} : vector<24x32xf32> to vector<8x32xf32>
    %661 = vector.extract_strided_slice %633 {offsets = [24, 0], sizes = [8, 32], strides = [1, 1]} : vector<32x32xf32> to vector<8x32xf32>
    %662 = math.tanh %661 : vector<8x32xf32>
    %663 = arith.mulf %659, %612 : vector<8x32xf32>
    %664 = arith.mulf %658, %662 : vector<8x32xf32>
    %665 = arith.addf %663, %664 : vector<8x32xf32>
    %666 = math.tanh %665 : vector<8x32xf32>
    %667 = arith.mulf %660, %666 : vector<8x32xf32>
    %668 = arith.index_cast %c8_i32 : i32 to index
    %c0_297 = arith.constant 0 : index
    %c0_298 = arith.constant 0 : index
    %c0_299 = arith.constant 0 : index
    %669 = vector.load %arg4[%668, %c0_297, %c0_298, %c0_299] : memref<16x2x8x32xf32, #tpu.memory_space<vmem>>, vector<1x1x8x32xf32>
    %670 = vector.shape_cast %669 : vector<1x1x8x32xf32> to vector<8x32xf32>
    %671 = vector.shape_cast %650 : vector<8x32xf32> to vector<1x1x8x32xf32>
    tpu.vector_store %arg4[%668, %c0_297, %c0_298, %c0_299], %671 {strides = array<i32>} : memref<16x2x8x32xf32, #tpu.memory_space<vmem>>, vector<1x1x8x32xf32>,
    %672 = arith.index_cast %623 : i32 to index
    %c1_300 = arith.constant 1 : index
    %c0_301 = arith.constant 0 : index
    %c0_302 = arith.constant 0 : index
    %673 = vector.load %arg4[%672, %c1_300, %c0_301, %c0_302] : memref<16x2x8x32xf32, #tpu.memory_space<vmem>>, vector<1x1x8x32xf32>
    %674 = vector.shape_cast %673 : vector<1x1x8x32xf32> to vector<8x32xf32>
    %675 = vector.shape_cast %667 : vector<8x32xf32> to vector<1x1x8x32xf32>
    tpu.vector_store %arg4[%672, %c1_300, %c0_301, %c0_302], %675 {strides = array<i32>} : memref<16x2x8x32xf32, #tpu.memory_space<vmem>>, vector<1x1x8x32xf32>,
    %c9_i32 = arith.constant 9 : i32
    %c15_i32_303 = arith.constant 15 : i32
    %676 = arith.subi %c15_i32_303, %c9_i32 : i32
    %cst_304 = arith.constant dense<0.000000e+00> : vector<32x32xf32>
    %677 = tpu.matmul %196, %650, %cst_304 {dimension_numbers = #tpu.dot_dimension_numbers<[1], [0], [0], [1], [0, 0, 1, 1], [], []>} : vector<32x8xf32>, vector<8x32xf32>, vector<32x32xf32> -> vector<32x32xf32>
    %678 = arith.index_cast %c9_i32 : i32 to index
    %c0_305 = arith.constant 0 : index
    %c0_306 = arith.constant 0 : index
    %679 = vector.load %arg5[%678, %c0_305, %c0_306] : memref<16x32x32xf32, #tpu.memory_space<vmem>>, vector<1x32x32xf32>
    %680 = vector.shape_cast %679 : vector<1x32x32xf32> to vector<32x32xf32>
    %681 = arith.addf %677, %680 : vector<32x32xf32>
    %cst_307 = arith.constant dense<0.000000e+00> : vector<32x32xf32>
    %682 = tpu.matmul %197, %667, %cst_307 {dimension_numbers = #tpu.dot_dimension_numbers<[1], [0], [0], [1], [0, 0, 1, 1], [], []>} : vector<32x8xf32>, vector<8x32xf32>, vector<32x32xf32> -> vector<32x32xf32>
    %683 = arith.index_cast %676 : i32 to index
    %c0_308 = arith.constant 0 : index
    %c0_309 = arith.constant 0 : index
    %684 = vector.load %arg6[%683, %c0_308, %c0_309] : memref<16x32x32xf32, #tpu.memory_space<vmem>>, vector<1x32x32xf32>
    %685 = vector.shape_cast %684 : vector<1x32x32xf32> to vector<32x32xf32>
    %686 = arith.addf %682, %685 : vector<32x32xf32>
    %687 = vector.extract_strided_slice %681 {offsets = [0, 0], sizes = [24, 32], strides = [1, 1]} : vector<32x32xf32> to vector<24x32xf32>
    %cst_310 = arith.constant 0.000000e+00 : f32
    %688 = vector.broadcast %cst_310 : f32 to vector<24x32xf32>
    %689 = arith.subf %688, %687 : vector<24x32xf32>
    %690 = math.exp %689 : vector<24x32xf32>
    %cst_311 = arith.constant 1.000000e+00 : f32
    %691 = vector.broadcast %cst_311 : f32 to vector<24x32xf32>
    %692 = arith.addf %691, %690 : vector<24x32xf32>
    %693 = tpu.reciprocal %692 : vector<24x32xf32> -> vector<24x32xf32>
    %694 = vector.extract_strided_slice %693 {offsets = [0, 0], sizes = [8, 32], strides = [1, 1]} : vector<24x32xf32> to vector<8x32xf32>
    %695 = vector.extract_strided_slice %693 {offsets = [8, 0], sizes = [8, 32], strides = [1, 1]} : vector<24x32xf32> to vector<8x32xf32>
    %696 = vector.extract_strided_slice %693 {offsets = [16, 0], sizes = [8, 32], strides = [1, 1]} : vector<24x32xf32> to vector<8x32xf32>
    %697 = vector.extract_strided_slice %681 {offsets = [24, 0], sizes = [8, 32], strides = [1, 1]} : vector<32x32xf32> to vector<8x32xf32>
    %698 = math.tanh %697 : vector<8x32xf32>
    %699 = arith.mulf %695, %648 : vector<8x32xf32>
    %700 = arith.mulf %694, %698 : vector<8x32xf32>
    %701 = arith.addf %699, %700 : vector<8x32xf32>
    %702 = math.tanh %701 : vector<8x32xf32>
    %703 = arith.mulf %696, %702 : vector<8x32xf32>
    %704 = vector.extract_strided_slice %686 {offsets = [0, 0], sizes = [24, 32], strides = [1, 1]} : vector<32x32xf32> to vector<24x32xf32>
    %cst_312 = arith.constant 0.000000e+00 : f32
    %705 = vector.broadcast %cst_312 : f32 to vector<24x32xf32>
    %706 = arith.subf %705, %704 : vector<24x32xf32>
    %707 = math.exp %706 : vector<24x32xf32>
    %cst_313 = arith.constant 1.000000e+00 : f32
    %708 = vector.broadcast %cst_313 : f32 to vector<24x32xf32>
    %709 = arith.addf %708, %707 : vector<24x32xf32>
    %710 = tpu.reciprocal %709 : vector<24x32xf32> -> vector<24x32xf32>
    %711 = vector.extract_strided_slice %710 {offsets = [0, 0], sizes = [8, 32], strides = [1, 1]} : vector<24x32xf32> to vector<8x32xf32>
    %712 = vector.extract_strided_slice %710 {offsets = [8, 0], sizes = [8, 32], strides = [1, 1]} : vector<24x32xf32> to vector<8x32xf32>
    %713 = vector.extract_strided_slice %710 {offsets = [16, 0], sizes = [8, 32], strides = [1, 1]} : vector<24x32xf32> to vector<8x32xf32>
    %714 = vector.extract_strided_slice %686 {offsets = [24, 0], sizes = [8, 32], strides = [1, 1]} : vector<32x32xf32> to vector<8x32xf32>
    %715 = math.tanh %714 : vector<8x32xf32>
    %716 = arith.mulf %712, %665 : vector<8x32xf32>
    %717 = arith.mulf %711, %715 : vector<8x32xf32>
    %718 = arith.addf %716, %717 : vector<8x32xf32>
    %719 = math.tanh %718 : vector<8x32xf32>
    %720 = arith.mulf %713, %719 : vector<8x32xf32>
    %721 = arith.index_cast %c9_i32 : i32 to index
    %c0_314 = arith.constant 0 : index
    %c0_315 = arith.constant 0 : index
    %c0_316 = arith.constant 0 : index
    %722 = vector.load %arg4[%721, %c0_314, %c0_315, %c0_316] : memref<16x2x8x32xf32, #tpu.memory_space<vmem>>, vector<1x1x8x32xf32>
    %723 = vector.shape_cast %722 : vector<1x1x8x32xf32> to vector<8x32xf32>
    %724 = vector.shape_cast %703 : vector<8x32xf32> to vector<1x1x8x32xf32>
    tpu.vector_store %arg4[%721, %c0_314, %c0_315, %c0_316], %724 {strides = array<i32>} : memref<16x2x8x32xf32, #tpu.memory_space<vmem>>, vector<1x1x8x32xf32>,
    %725 = arith.index_cast %676 : i32 to index
    %c1_317 = arith.constant 1 : index
    %c0_318 = arith.constant 0 : index
    %c0_319 = arith.constant 0 : index
    %726 = vector.load %arg4[%725, %c1_317, %c0_318, %c0_319] : memref<16x2x8x32xf32, #tpu.memory_space<vmem>>, vector<1x1x8x32xf32>
    %727 = vector.shape_cast %726 : vector<1x1x8x32xf32> to vector<8x32xf32>
    %728 = vector.shape_cast %720 : vector<8x32xf32> to vector<1x1x8x32xf32>
    tpu.vector_store %arg4[%725, %c1_317, %c0_318, %c0_319], %728 {strides = array<i32>} : memref<16x2x8x32xf32, #tpu.memory_space<vmem>>, vector<1x1x8x32xf32>,
    %c10_i32 = arith.constant 10 : i32
    %c15_i32_320 = arith.constant 15 : i32
    %729 = arith.subi %c15_i32_320, %c10_i32 : i32
    %cst_321 = arith.constant dense<0.000000e+00> : vector<32x32xf32>
    %730 = tpu.matmul %196, %703, %cst_321 {dimension_numbers = #tpu.dot_dimension_numbers<[1], [0], [0], [1], [0, 0, 1, 1], [], []>} : vector<32x8xf32>, vector<8x32xf32>, vector<32x32xf32> -> vector<32x32xf32>
    %731 = arith.index_cast %c10_i32 : i32 to index
    %c0_322 = arith.constant 0 : index
    %c0_323 = arith.constant 0 : index
    %732 = vector.load %arg5[%731, %c0_322, %c0_323] : memref<16x32x32xf32, #tpu.memory_space<vmem>>, vector<1x32x32xf32>
    %733 = vector.shape_cast %732 : vector<1x32x32xf32> to vector<32x32xf32>
    %734 = arith.addf %730, %733 : vector<32x32xf32>
    %cst_324 = arith.constant dense<0.000000e+00> : vector<32x32xf32>
    %735 = tpu.matmul %197, %720, %cst_324 {dimension_numbers = #tpu.dot_dimension_numbers<[1], [0], [0], [1], [0, 0, 1, 1], [], []>} : vector<32x8xf32>, vector<8x32xf32>, vector<32x32xf32> -> vector<32x32xf32>
    %736 = arith.index_cast %729 : i32 to index
    %c0_325 = arith.constant 0 : index
    %c0_326 = arith.constant 0 : index
    %737 = vector.load %arg6[%736, %c0_325, %c0_326] : memref<16x32x32xf32, #tpu.memory_space<vmem>>, vector<1x32x32xf32>
    %738 = vector.shape_cast %737 : vector<1x32x32xf32> to vector<32x32xf32>
    %739 = arith.addf %735, %738 : vector<32x32xf32>
    %740 = vector.extract_strided_slice %734 {offsets = [0, 0], sizes = [24, 32], strides = [1, 1]} : vector<32x32xf32> to vector<24x32xf32>
    %cst_327 = arith.constant 0.000000e+00 : f32
    %741 = vector.broadcast %cst_327 : f32 to vector<24x32xf32>
    %742 = arith.subf %741, %740 : vector<24x32xf32>
    %743 = math.exp %742 : vector<24x32xf32>
    %cst_328 = arith.constant 1.000000e+00 : f32
    %744 = vector.broadcast %cst_328 : f32 to vector<24x32xf32>
    %745 = arith.addf %744, %743 : vector<24x32xf32>
    %746 = tpu.reciprocal %745 : vector<24x32xf32> -> vector<24x32xf32>
    %747 = vector.extract_strided_slice %746 {offsets = [0, 0], sizes = [8, 32], strides = [1, 1]} : vector<24x32xf32> to vector<8x32xf32>
    %748 = vector.extract_strided_slice %746 {offsets = [8, 0], sizes = [8, 32], strides = [1, 1]} : vector<24x32xf32> to vector<8x32xf32>
    %749 = vector.extract_strided_slice %746 {offsets = [16, 0], sizes = [8, 32], strides = [1, 1]} : vector<24x32xf32> to vector<8x32xf32>
    %750 = vector.extract_strided_slice %734 {offsets = [24, 0], sizes = [8, 32], strides = [1, 1]} : vector<32x32xf32> to vector<8x32xf32>
    %751 = math.tanh %750 : vector<8x32xf32>
    %752 = arith.mulf %748, %701 : vector<8x32xf32>
    %753 = arith.mulf %747, %751 : vector<8x32xf32>
    %754 = arith.addf %752, %753 : vector<8x32xf32>
    %755 = math.tanh %754 : vector<8x32xf32>
    %756 = arith.mulf %749, %755 : vector<8x32xf32>
    %757 = vector.extract_strided_slice %739 {offsets = [0, 0], sizes = [24, 32], strides = [1, 1]} : vector<32x32xf32> to vector<24x32xf32>
    %cst_329 = arith.constant 0.000000e+00 : f32
    %758 = vector.broadcast %cst_329 : f32 to vector<24x32xf32>
    %759 = arith.subf %758, %757 : vector<24x32xf32>
    %760 = math.exp %759 : vector<24x32xf32>
    %cst_330 = arith.constant 1.000000e+00 : f32
    %761 = vector.broadcast %cst_330 : f32 to vector<24x32xf32>
    %762 = arith.addf %761, %760 : vector<24x32xf32>
    %763 = tpu.reciprocal %762 : vector<24x32xf32> -> vector<24x32xf32>
    %764 = vector.extract_strided_slice %763 {offsets = [0, 0], sizes = [8, 32], strides = [1, 1]} : vector<24x32xf32> to vector<8x32xf32>
    %765 = vector.extract_strided_slice %763 {offsets = [8, 0], sizes = [8, 32], strides = [1, 1]} : vector<24x32xf32> to vector<8x32xf32>
    %766 = vector.extract_strided_slice %763 {offsets = [16, 0], sizes = [8, 32], strides = [1, 1]} : vector<24x32xf32> to vector<8x32xf32>
    %767 = vector.extract_strided_slice %739 {offsets = [24, 0], sizes = [8, 32], strides = [1, 1]} : vector<32x32xf32> to vector<8x32xf32>
    %768 = math.tanh %767 : vector<8x32xf32>
    %769 = arith.mulf %765, %718 : vector<8x32xf32>
    %770 = arith.mulf %764, %768 : vector<8x32xf32>
    %771 = arith.addf %769, %770 : vector<8x32xf32>
    %772 = math.tanh %771 : vector<8x32xf32>
    %773 = arith.mulf %766, %772 : vector<8x32xf32>
    %774 = arith.index_cast %c10_i32 : i32 to index
    %c0_331 = arith.constant 0 : index
    %c0_332 = arith.constant 0 : index
    %c0_333 = arith.constant 0 : index
    %775 = vector.load %arg4[%774, %c0_331, %c0_332, %c0_333] : memref<16x2x8x32xf32, #tpu.memory_space<vmem>>, vector<1x1x8x32xf32>
    %776 = vector.shape_cast %775 : vector<1x1x8x32xf32> to vector<8x32xf32>
    %777 = vector.shape_cast %756 : vector<8x32xf32> to vector<1x1x8x32xf32>
    tpu.vector_store %arg4[%774, %c0_331, %c0_332, %c0_333], %777 {strides = array<i32>} : memref<16x2x8x32xf32, #tpu.memory_space<vmem>>, vector<1x1x8x32xf32>,
    %778 = arith.index_cast %729 : i32 to index
    %c1_334 = arith.constant 1 : index
    %c0_335 = arith.constant 0 : index
    %c0_336 = arith.constant 0 : index
    %779 = vector.load %arg4[%778, %c1_334, %c0_335, %c0_336] : memref<16x2x8x32xf32, #tpu.memory_space<vmem>>, vector<1x1x8x32xf32>
    %780 = vector.shape_cast %779 : vector<1x1x8x32xf32> to vector<8x32xf32>
    %781 = vector.shape_cast %773 : vector<8x32xf32> to vector<1x1x8x32xf32>
    tpu.vector_store %arg4[%778, %c1_334, %c0_335, %c0_336], %781 {strides = array<i32>} : memref<16x2x8x32xf32, #tpu.memory_space<vmem>>, vector<1x1x8x32xf32>,
    %c11_i32 = arith.constant 11 : i32
    %c15_i32_337 = arith.constant 15 : i32
    %782 = arith.subi %c15_i32_337, %c11_i32 : i32
    %cst_338 = arith.constant dense<0.000000e+00> : vector<32x32xf32>
    %783 = tpu.matmul %196, %756, %cst_338 {dimension_numbers = #tpu.dot_dimension_numbers<[1], [0], [0], [1], [0, 0, 1, 1], [], []>} : vector<32x8xf32>, vector<8x32xf32>, vector<32x32xf32> -> vector<32x32xf32>
    %784 = arith.index_cast %c11_i32 : i32 to index
    %c0_339 = arith.constant 0 : index
    %c0_340 = arith.constant 0 : index
    %785 = vector.load %arg5[%784, %c0_339, %c0_340] : memref<16x32x32xf32, #tpu.memory_space<vmem>>, vector<1x32x32xf32>
    %786 = vector.shape_cast %785 : vector<1x32x32xf32> to vector<32x32xf32>
    %787 = arith.addf %783, %786 : vector<32x32xf32>
    %cst_341 = arith.constant dense<0.000000e+00> : vector<32x32xf32>
    %788 = tpu.matmul %197, %773, %cst_341 {dimension_numbers = #tpu.dot_dimension_numbers<[1], [0], [0], [1], [0, 0, 1, 1], [], []>} : vector<32x8xf32>, vector<8x32xf32>, vector<32x32xf32> -> vector<32x32xf32>
    %789 = arith.index_cast %782 : i32 to index
    %c0_342 = arith.constant 0 : index
    %c0_343 = arith.constant 0 : index
    %790 = vector.load %arg6[%789, %c0_342, %c0_343] : memref<16x32x32xf32, #tpu.memory_space<vmem>>, vector<1x32x32xf32>
    %791 = vector.shape_cast %790 : vector<1x32x32xf32> to vector<32x32xf32>
    %792 = arith.addf %788, %791 : vector<32x32xf32>
    %793 = vector.extract_strided_slice %787 {offsets = [0, 0], sizes = [24, 32], strides = [1, 1]} : vector<32x32xf32> to vector<24x32xf32>
    %cst_344 = arith.constant 0.000000e+00 : f32
    %794 = vector.broadcast %cst_344 : f32 to vector<24x32xf32>
    %795 = arith.subf %794, %793 : vector<24x32xf32>
    %796 = math.exp %795 : vector<24x32xf32>
    %cst_345 = arith.constant 1.000000e+00 : f32
    %797 = vector.broadcast %cst_345 : f32 to vector<24x32xf32>
    %798 = arith.addf %797, %796 : vector<24x32xf32>
    %799 = tpu.reciprocal %798 : vector<24x32xf32> -> vector<24x32xf32>
    %800 = vector.extract_strided_slice %799 {offsets = [0, 0], sizes = [8, 32], strides = [1, 1]} : vector<24x32xf32> to vector<8x32xf32>
    %801 = vector.extract_strided_slice %799 {offsets = [8, 0], sizes = [8, 32], strides = [1, 1]} : vector<24x32xf32> to vector<8x32xf32>
    %802 = vector.extract_strided_slice %799 {offsets = [16, 0], sizes = [8, 32], strides = [1, 1]} : vector<24x32xf32> to vector<8x32xf32>
    %803 = vector.extract_strided_slice %787 {offsets = [24, 0], sizes = [8, 32], strides = [1, 1]} : vector<32x32xf32> to vector<8x32xf32>
    %804 = math.tanh %803 : vector<8x32xf32>
    %805 = arith.mulf %801, %754 : vector<8x32xf32>
    %806 = arith.mulf %800, %804 : vector<8x32xf32>
    %807 = arith.addf %805, %806 : vector<8x32xf32>
    %808 = math.tanh %807 : vector<8x32xf32>
    %809 = arith.mulf %802, %808 : vector<8x32xf32>
    %810 = vector.extract_strided_slice %792 {offsets = [0, 0], sizes = [24, 32], strides = [1, 1]} : vector<32x32xf32> to vector<24x32xf32>
    %cst_346 = arith.constant 0.000000e+00 : f32
    %811 = vector.broadcast %cst_346 : f32 to vector<24x32xf32>
    %812 = arith.subf %811, %810 : vector<24x32xf32>
    %813 = math.exp %812 : vector<24x32xf32>
    %cst_347 = arith.constant 1.000000e+00 : f32
    %814 = vector.broadcast %cst_347 : f32 to vector<24x32xf32>
    %815 = arith.addf %814, %813 : vector<24x32xf32>
    %816 = tpu.reciprocal %815 : vector<24x32xf32> -> vector<24x32xf32>
    %817 = vector.extract_strided_slice %816 {offsets = [0, 0], sizes = [8, 32], strides = [1, 1]} : vector<24x32xf32> to vector<8x32xf32>
    %818 = vector.extract_strided_slice %816 {offsets = [8, 0], sizes = [8, 32], strides = [1, 1]} : vector<24x32xf32> to vector<8x32xf32>
    %819 = vector.extract_strided_slice %816 {offsets = [16, 0], sizes = [8, 32], strides = [1, 1]} : vector<24x32xf32> to vector<8x32xf32>
    %820 = vector.extract_strided_slice %792 {offsets = [24, 0], sizes = [8, 32], strides = [1, 1]} : vector<32x32xf32> to vector<8x32xf32>
    %821 = math.tanh %820 : vector<8x32xf32>
    %822 = arith.mulf %818, %771 : vector<8x32xf32>
    %823 = arith.mulf %817, %821 : vector<8x32xf32>
    %824 = arith.addf %822, %823 : vector<8x32xf32>
    %825 = math.tanh %824 : vector<8x32xf32>
    %826 = arith.mulf %819, %825 : vector<8x32xf32>
    %827 = arith.index_cast %c11_i32 : i32 to index
    %c0_348 = arith.constant 0 : index
    %c0_349 = arith.constant 0 : index
    %c0_350 = arith.constant 0 : index
    %828 = vector.load %arg4[%827, %c0_348, %c0_349, %c0_350] : memref<16x2x8x32xf32, #tpu.memory_space<vmem>>, vector<1x1x8x32xf32>
    %829 = vector.shape_cast %828 : vector<1x1x8x32xf32> to vector<8x32xf32>
    %830 = vector.shape_cast %809 : vector<8x32xf32> to vector<1x1x8x32xf32>
    tpu.vector_store %arg4[%827, %c0_348, %c0_349, %c0_350], %830 {strides = array<i32>} : memref<16x2x8x32xf32, #tpu.memory_space<vmem>>, vector<1x1x8x32xf32>,
    %831 = arith.index_cast %782 : i32 to index
    %c1_351 = arith.constant 1 : index
    %c0_352 = arith.constant 0 : index
    %c0_353 = arith.constant 0 : index
    %832 = vector.load %arg4[%831, %c1_351, %c0_352, %c0_353] : memref<16x2x8x32xf32, #tpu.memory_space<vmem>>, vector<1x1x8x32xf32>
    %833 = vector.shape_cast %832 : vector<1x1x8x32xf32> to vector<8x32xf32>
    %834 = vector.shape_cast %826 : vector<8x32xf32> to vector<1x1x8x32xf32>
    tpu.vector_store %arg4[%831, %c1_351, %c0_352, %c0_353], %834 {strides = array<i32>} : memref<16x2x8x32xf32, #tpu.memory_space<vmem>>, vector<1x1x8x32xf32>,
    %c12_i32 = arith.constant 12 : i32
    %c15_i32_354 = arith.constant 15 : i32
    %835 = arith.subi %c15_i32_354, %c12_i32 : i32
    %cst_355 = arith.constant dense<0.000000e+00> : vector<32x32xf32>
    %836 = tpu.matmul %196, %809, %cst_355 {dimension_numbers = #tpu.dot_dimension_numbers<[1], [0], [0], [1], [0, 0, 1, 1], [], []>} : vector<32x8xf32>, vector<8x32xf32>, vector<32x32xf32> -> vector<32x32xf32>
    %837 = arith.index_cast %c12_i32 : i32 to index
    %c0_356 = arith.constant 0 : index
    %c0_357 = arith.constant 0 : index
    %838 = vector.load %arg5[%837, %c0_356, %c0_357] : memref<16x32x32xf32, #tpu.memory_space<vmem>>, vector<1x32x32xf32>
    %839 = vector.shape_cast %838 : vector<1x32x32xf32> to vector<32x32xf32>
    %840 = arith.addf %836, %839 : vector<32x32xf32>
    %cst_358 = arith.constant dense<0.000000e+00> : vector<32x32xf32>
    %841 = tpu.matmul %197, %826, %cst_358 {dimension_numbers = #tpu.dot_dimension_numbers<[1], [0], [0], [1], [0, 0, 1, 1], [], []>} : vector<32x8xf32>, vector<8x32xf32>, vector<32x32xf32> -> vector<32x32xf32>
    %842 = arith.index_cast %835 : i32 to index
    %c0_359 = arith.constant 0 : index
    %c0_360 = arith.constant 0 : index
    %843 = vector.load %arg6[%842, %c0_359, %c0_360] : memref<16x32x32xf32, #tpu.memory_space<vmem>>, vector<1x32x32xf32>
    %844 = vector.shape_cast %843 : vector<1x32x32xf32> to vector<32x32xf32>
    %845 = arith.addf %841, %844 : vector<32x32xf32>
    %846 = vector.extract_strided_slice %840 {offsets = [0, 0], sizes = [24, 32], strides = [1, 1]} : vector<32x32xf32> to vector<24x32xf32>
    %cst_361 = arith.constant 0.000000e+00 : f32
    %847 = vector.broadcast %cst_361 : f32 to vector<24x32xf32>
    %848 = arith.subf %847, %846 : vector<24x32xf32>
    %849 = math.exp %848 : vector<24x32xf32>
    %cst_362 = arith.constant 1.000000e+00 : f32
    %850 = vector.broadcast %cst_362 : f32 to vector<24x32xf32>
    %851 = arith.addf %850, %849 : vector<24x32xf32>
    %852 = tpu.reciprocal %851 : vector<24x32xf32> -> vector<24x32xf32>
    %853 = vector.extract_strided_slice %852 {offsets = [0, 0], sizes = [8, 32], strides = [1, 1]} : vector<24x32xf32> to vector<8x32xf32>
    %854 = vector.extract_strided_slice %852 {offsets = [8, 0], sizes = [8, 32], strides = [1, 1]} : vector<24x32xf32> to vector<8x32xf32>
    %855 = vector.extract_strided_slice %852 {offsets = [16, 0], sizes = [8, 32], strides = [1, 1]} : vector<24x32xf32> to vector<8x32xf32>
    %856 = vector.extract_strided_slice %840 {offsets = [24, 0], sizes = [8, 32], strides = [1, 1]} : vector<32x32xf32> to vector<8x32xf32>
    %857 = math.tanh %856 : vector<8x32xf32>
    %858 = arith.mulf %854, %807 : vector<8x32xf32>
    %859 = arith.mulf %853, %857 : vector<8x32xf32>
    %860 = arith.addf %858, %859 : vector<8x32xf32>
    %861 = math.tanh %860 : vector<8x32xf32>
    %862 = arith.mulf %855, %861 : vector<8x32xf32>
    %863 = vector.extract_strided_slice %845 {offsets = [0, 0], sizes = [24, 32], strides = [1, 1]} : vector<32x32xf32> to vector<24x32xf32>
    %cst_363 = arith.constant 0.000000e+00 : f32
    %864 = vector.broadcast %cst_363 : f32 to vector<24x32xf32>
    %865 = arith.subf %864, %863 : vector<24x32xf32>
    %866 = math.exp %865 : vector<24x32xf32>
    %cst_364 = arith.constant 1.000000e+00 : f32
    %867 = vector.broadcast %cst_364 : f32 to vector<24x32xf32>
    %868 = arith.addf %867, %866 : vector<24x32xf32>
    %869 = tpu.reciprocal %868 : vector<24x32xf32> -> vector<24x32xf32>
    %870 = vector.extract_strided_slice %869 {offsets = [0, 0], sizes = [8, 32], strides = [1, 1]} : vector<24x32xf32> to vector<8x32xf32>
    %871 = vector.extract_strided_slice %869 {offsets = [8, 0], sizes = [8, 32], strides = [1, 1]} : vector<24x32xf32> to vector<8x32xf32>
    %872 = vector.extract_strided_slice %869 {offsets = [16, 0], sizes = [8, 32], strides = [1, 1]} : vector<24x32xf32> to vector<8x32xf32>
    %873 = vector.extract_strided_slice %845 {offsets = [24, 0], sizes = [8, 32], strides = [1, 1]} : vector<32x32xf32> to vector<8x32xf32>
    %874 = math.tanh %873 : vector<8x32xf32>
    %875 = arith.mulf %871, %824 : vector<8x32xf32>
    %876 = arith.mulf %870, %874 : vector<8x32xf32>
    %877 = arith.addf %875, %876 : vector<8x32xf32>
    %878 = math.tanh %877 : vector<8x32xf32>
    %879 = arith.mulf %872, %878 : vector<8x32xf32>
    %880 = arith.index_cast %c12_i32 : i32 to index
    %c0_365 = arith.constant 0 : index
    %c0_366 = arith.constant 0 : index
    %c0_367 = arith.constant 0 : index
    %881 = vector.load %arg4[%880, %c0_365, %c0_366, %c0_367] : memref<16x2x8x32xf32, #tpu.memory_space<vmem>>, vector<1x1x8x32xf32>
    %882 = vector.shape_cast %881 : vector<1x1x8x32xf32> to vector<8x32xf32>
    %883 = vector.shape_cast %862 : vector<8x32xf32> to vector<1x1x8x32xf32>
    tpu.vector_store %arg4[%880, %c0_365, %c0_366, %c0_367], %883 {strides = array<i32>} : memref<16x2x8x32xf32, #tpu.memory_space<vmem>>, vector<1x1x8x32xf32>,
    %884 = arith.index_cast %835 : i32 to index
    %c1_368 = arith.constant 1 : index
    %c0_369 = arith.constant 0 : index
    %c0_370 = arith.constant 0 : index
    %885 = vector.load %arg4[%884, %c1_368, %c0_369, %c0_370] : memref<16x2x8x32xf32, #tpu.memory_space<vmem>>, vector<1x1x8x32xf32>
    %886 = vector.shape_cast %885 : vector<1x1x8x32xf32> to vector<8x32xf32>
    %887 = vector.shape_cast %879 : vector<8x32xf32> to vector<1x1x8x32xf32>
    tpu.vector_store %arg4[%884, %c1_368, %c0_369, %c0_370], %887 {strides = array<i32>} : memref<16x2x8x32xf32, #tpu.memory_space<vmem>>, vector<1x1x8x32xf32>,
    %c13_i32 = arith.constant 13 : i32
    %c15_i32_371 = arith.constant 15 : i32
    %888 = arith.subi %c15_i32_371, %c13_i32 : i32
    %cst_372 = arith.constant dense<0.000000e+00> : vector<32x32xf32>
    %889 = tpu.matmul %196, %862, %cst_372 {dimension_numbers = #tpu.dot_dimension_numbers<[1], [0], [0], [1], [0, 0, 1, 1], [], []>} : vector<32x8xf32>, vector<8x32xf32>, vector<32x32xf32> -> vector<32x32xf32>
    %890 = arith.index_cast %c13_i32 : i32 to index
    %c0_373 = arith.constant 0 : index
    %c0_374 = arith.constant 0 : index
    %891 = vector.load %arg5[%890, %c0_373, %c0_374] : memref<16x32x32xf32, #tpu.memory_space<vmem>>, vector<1x32x32xf32>
    %892 = vector.shape_cast %891 : vector<1x32x32xf32> to vector<32x32xf32>
    %893 = arith.addf %889, %892 : vector<32x32xf32>
    %cst_375 = arith.constant dense<0.000000e+00> : vector<32x32xf32>
    %894 = tpu.matmul %197, %879, %cst_375 {dimension_numbers = #tpu.dot_dimension_numbers<[1], [0], [0], [1], [0, 0, 1, 1], [], []>} : vector<32x8xf32>, vector<8x32xf32>, vector<32x32xf32> -> vector<32x32xf32>
    %895 = arith.index_cast %888 : i32 to index
    %c0_376 = arith.constant 0 : index
    %c0_377 = arith.constant 0 : index
    %896 = vector.load %arg6[%895, %c0_376, %c0_377] : memref<16x32x32xf32, #tpu.memory_space<vmem>>, vector<1x32x32xf32>
    %897 = vector.shape_cast %896 : vector<1x32x32xf32> to vector<32x32xf32>
    %898 = arith.addf %894, %897 : vector<32x32xf32>
    %899 = vector.extract_strided_slice %893 {offsets = [0, 0], sizes = [24, 32], strides = [1, 1]} : vector<32x32xf32> to vector<24x32xf32>
    %cst_378 = arith.constant 0.000000e+00 : f32
    %900 = vector.broadcast %cst_378 : f32 to vector<24x32xf32>
    %901 = arith.subf %900, %899 : vector<24x32xf32>
    %902 = math.exp %901 : vector<24x32xf32>
    %cst_379 = arith.constant 1.000000e+00 : f32
    %903 = vector.broadcast %cst_379 : f32 to vector<24x32xf32>
    %904 = arith.addf %903, %902 : vector<24x32xf32>
    %905 = tpu.reciprocal %904 : vector<24x32xf32> -> vector<24x32xf32>
    %906 = vector.extract_strided_slice %905 {offsets = [0, 0], sizes = [8, 32], strides = [1, 1]} : vector<24x32xf32> to vector<8x32xf32>
    %907 = vector.extract_strided_slice %905 {offsets = [8, 0], sizes = [8, 32], strides = [1, 1]} : vector<24x32xf32> to vector<8x32xf32>
    %908 = vector.extract_strided_slice %905 {offsets = [16, 0], sizes = [8, 32], strides = [1, 1]} : vector<24x32xf32> to vector<8x32xf32>
    %909 = vector.extract_strided_slice %893 {offsets = [24, 0], sizes = [8, 32], strides = [1, 1]} : vector<32x32xf32> to vector<8x32xf32>
    %910 = math.tanh %909 : vector<8x32xf32>
    %911 = arith.mulf %907, %860 : vector<8x32xf32>
    %912 = arith.mulf %906, %910 : vector<8x32xf32>
    %913 = arith.addf %911, %912 : vector<8x32xf32>
    %914 = math.tanh %913 : vector<8x32xf32>
    %915 = arith.mulf %908, %914 : vector<8x32xf32>
    %916 = vector.extract_strided_slice %898 {offsets = [0, 0], sizes = [24, 32], strides = [1, 1]} : vector<32x32xf32> to vector<24x32xf32>
    %cst_380 = arith.constant 0.000000e+00 : f32
    %917 = vector.broadcast %cst_380 : f32 to vector<24x32xf32>
    %918 = arith.subf %917, %916 : vector<24x32xf32>
    %919 = math.exp %918 : vector<24x32xf32>
    %cst_381 = arith.constant 1.000000e+00 : f32
    %920 = vector.broadcast %cst_381 : f32 to vector<24x32xf32>
    %921 = arith.addf %920, %919 : vector<24x32xf32>
    %922 = tpu.reciprocal %921 : vector<24x32xf32> -> vector<24x32xf32>
    %923 = vector.extract_strided_slice %922 {offsets = [0, 0], sizes = [8, 32], strides = [1, 1]} : vector<24x32xf32> to vector<8x32xf32>
    %924 = vector.extract_strided_slice %922 {offsets = [8, 0], sizes = [8, 32], strides = [1, 1]} : vector<24x32xf32> to vector<8x32xf32>
    %925 = vector.extract_strided_slice %922 {offsets = [16, 0], sizes = [8, 32], strides = [1, 1]} : vector<24x32xf32> to vector<8x32xf32>
    %926 = vector.extract_strided_slice %898 {offsets = [24, 0], sizes = [8, 32], strides = [1, 1]} : vector<32x32xf32> to vector<8x32xf32>
    %927 = math.tanh %926 : vector<8x32xf32>
    %928 = arith.mulf %924, %877 : vector<8x32xf32>
    %929 = arith.mulf %923, %927 : vector<8x32xf32>
    %930 = arith.addf %928, %929 : vector<8x32xf32>
    %931 = math.tanh %930 : vector<8x32xf32>
    %932 = arith.mulf %925, %931 : vector<8x32xf32>
    %933 = arith.index_cast %c13_i32 : i32 to index
    %c0_382 = arith.constant 0 : index
    %c0_383 = arith.constant 0 : index
    %c0_384 = arith.constant 0 : index
    %934 = vector.load %arg4[%933, %c0_382, %c0_383, %c0_384] : memref<16x2x8x32xf32, #tpu.memory_space<vmem>>, vector<1x1x8x32xf32>
    %935 = vector.shape_cast %934 : vector<1x1x8x32xf32> to vector<8x32xf32>
    %936 = vector.shape_cast %915 : vector<8x32xf32> to vector<1x1x8x32xf32>
    tpu.vector_store %arg4[%933, %c0_382, %c0_383, %c0_384], %936 {strides = array<i32>} : memref<16x2x8x32xf32, #tpu.memory_space<vmem>>, vector<1x1x8x32xf32>,
    %937 = arith.index_cast %888 : i32 to index
    %c1_385 = arith.constant 1 : index
    %c0_386 = arith.constant 0 : index
    %c0_387 = arith.constant 0 : index
    %938 = vector.load %arg4[%937, %c1_385, %c0_386, %c0_387] : memref<16x2x8x32xf32, #tpu.memory_space<vmem>>, vector<1x1x8x32xf32>
    %939 = vector.shape_cast %938 : vector<1x1x8x32xf32> to vector<8x32xf32>
    %940 = vector.shape_cast %932 : vector<8x32xf32> to vector<1x1x8x32xf32>
    tpu.vector_store %arg4[%937, %c1_385, %c0_386, %c0_387], %940 {strides = array<i32>} : memref<16x2x8x32xf32, #tpu.memory_space<vmem>>, vector<1x1x8x32xf32>,
    %c14_i32 = arith.constant 14 : i32
    %c15_i32_388 = arith.constant 15 : i32
    %941 = arith.subi %c15_i32_388, %c14_i32 : i32
    %cst_389 = arith.constant dense<0.000000e+00> : vector<32x32xf32>
    %942 = tpu.matmul %196, %915, %cst_389 {dimension_numbers = #tpu.dot_dimension_numbers<[1], [0], [0], [1], [0, 0, 1, 1], [], []>} : vector<32x8xf32>, vector<8x32xf32>, vector<32x32xf32> -> vector<32x32xf32>
    %943 = arith.index_cast %c14_i32 : i32 to index
    %c0_390 = arith.constant 0 : index
    %c0_391 = arith.constant 0 : index
    %944 = vector.load %arg5[%943, %c0_390, %c0_391] : memref<16x32x32xf32, #tpu.memory_space<vmem>>, vector<1x32x32xf32>
    %945 = vector.shape_cast %944 : vector<1x32x32xf32> to vector<32x32xf32>
    %946 = arith.addf %942, %945 : vector<32x32xf32>
    %cst_392 = arith.constant dense<0.000000e+00> : vector<32x32xf32>
    %947 = tpu.matmul %197, %932, %cst_392 {dimension_numbers = #tpu.dot_dimension_numbers<[1], [0], [0], [1], [0, 0, 1, 1], [], []>} : vector<32x8xf32>, vector<8x32xf32>, vector<32x32xf32> -> vector<32x32xf32>
    %948 = arith.index_cast %941 : i32 to index
    %c0_393 = arith.constant 0 : index
    %c0_394 = arith.constant 0 : index
    %949 = vector.load %arg6[%948, %c0_393, %c0_394] : memref<16x32x32xf32, #tpu.memory_space<vmem>>, vector<1x32x32xf32>
    %950 = vector.shape_cast %949 : vector<1x32x32xf32> to vector<32x32xf32>
    %951 = arith.addf %947, %950 : vector<32x32xf32>
    %952 = vector.extract_strided_slice %946 {offsets = [0, 0], sizes = [24, 32], strides = [1, 1]} : vector<32x32xf32> to vector<24x32xf32>
    %cst_395 = arith.constant 0.000000e+00 : f32
    %953 = vector.broadcast %cst_395 : f32 to vector<24x32xf32>
    %954 = arith.subf %953, %952 : vector<24x32xf32>
    %955 = math.exp %954 : vector<24x32xf32>
    %cst_396 = arith.constant 1.000000e+00 : f32
    %956 = vector.broadcast %cst_396 : f32 to vector<24x32xf32>
    %957 = arith.addf %956, %955 : vector<24x32xf32>
    %958 = tpu.reciprocal %957 : vector<24x32xf32> -> vector<24x32xf32>
    %959 = vector.extract_strided_slice %958 {offsets = [0, 0], sizes = [8, 32], strides = [1, 1]} : vector<24x32xf32> to vector<8x32xf32>
    %960 = vector.extract_strided_slice %958 {offsets = [8, 0], sizes = [8, 32], strides = [1, 1]} : vector<24x32xf32> to vector<8x32xf32>
    %961 = vector.extract_strided_slice %958 {offsets = [16, 0], sizes = [8, 32], strides = [1, 1]} : vector<24x32xf32> to vector<8x32xf32>
    %962 = vector.extract_strided_slice %946 {offsets = [24, 0], sizes = [8, 32], strides = [1, 1]} : vector<32x32xf32> to vector<8x32xf32>
    %963 = math.tanh %962 : vector<8x32xf32>
    %964 = arith.mulf %960, %913 : vector<8x32xf32>
    %965 = arith.mulf %959, %963 : vector<8x32xf32>
    %966 = arith.addf %964, %965 : vector<8x32xf32>
    %967 = math.tanh %966 : vector<8x32xf32>
    %968 = arith.mulf %961, %967 : vector<8x32xf32>
    %969 = vector.extract_strided_slice %951 {offsets = [0, 0], sizes = [24, 32], strides = [1, 1]} : vector<32x32xf32> to vector<24x32xf32>
    %cst_397 = arith.constant 0.000000e+00 : f32
    %970 = vector.broadcast %cst_397 : f32 to vector<24x32xf32>
    %971 = arith.subf %970, %969 : vector<24x32xf32>
    %972 = math.exp %971 : vector<24x32xf32>
    %cst_398 = arith.constant 1.000000e+00 : f32
    %973 = vector.broadcast %cst_398 : f32 to vector<24x32xf32>
    %974 = arith.addf %973, %972 : vector<24x32xf32>
    %975 = tpu.reciprocal %974 : vector<24x32xf32> -> vector<24x32xf32>
    %976 = vector.extract_strided_slice %975 {offsets = [0, 0], sizes = [8, 32], strides = [1, 1]} : vector<24x32xf32> to vector<8x32xf32>
    %977 = vector.extract_strided_slice %975 {offsets = [8, 0], sizes = [8, 32], strides = [1, 1]} : vector<24x32xf32> to vector<8x32xf32>
    %978 = vector.extract_strided_slice %975 {offsets = [16, 0], sizes = [8, 32], strides = [1, 1]} : vector<24x32xf32> to vector<8x32xf32>
    %979 = vector.extract_strided_slice %951 {offsets = [24, 0], sizes = [8, 32], strides = [1, 1]} : vector<32x32xf32> to vector<8x32xf32>
    %980 = math.tanh %979 : vector<8x32xf32>
    %981 = arith.mulf %977, %930 : vector<8x32xf32>
    %982 = arith.mulf %976, %980 : vector<8x32xf32>
    %983 = arith.addf %981, %982 : vector<8x32xf32>
    %984 = math.tanh %983 : vector<8x32xf32>
    %985 = arith.mulf %978, %984 : vector<8x32xf32>
    %986 = arith.index_cast %c14_i32 : i32 to index
    %c0_399 = arith.constant 0 : index
    %c0_400 = arith.constant 0 : index
    %c0_401 = arith.constant 0 : index
    %987 = vector.load %arg4[%986, %c0_399, %c0_400, %c0_401] : memref<16x2x8x32xf32, #tpu.memory_space<vmem>>, vector<1x1x8x32xf32>
    %988 = vector.shape_cast %987 : vector<1x1x8x32xf32> to vector<8x32xf32>
    %989 = vector.shape_cast %968 : vector<8x32xf32> to vector<1x1x8x32xf32>
    tpu.vector_store %arg4[%986, %c0_399, %c0_400, %c0_401], %989 {strides = array<i32>} : memref<16x2x8x32xf32, #tpu.memory_space<vmem>>, vector<1x1x8x32xf32>,
    %990 = arith.index_cast %941 : i32 to index
    %c1_402 = arith.constant 1 : index
    %c0_403 = arith.constant 0 : index
    %c0_404 = arith.constant 0 : index
    %991 = vector.load %arg4[%990, %c1_402, %c0_403, %c0_404] : memref<16x2x8x32xf32, #tpu.memory_space<vmem>>, vector<1x1x8x32xf32>
    %992 = vector.shape_cast %991 : vector<1x1x8x32xf32> to vector<8x32xf32>
    %993 = vector.shape_cast %985 : vector<8x32xf32> to vector<1x1x8x32xf32>
    tpu.vector_store %arg4[%990, %c1_402, %c0_403, %c0_404], %993 {strides = array<i32>} : memref<16x2x8x32xf32, #tpu.memory_space<vmem>>, vector<1x1x8x32xf32>,
    %c15_i32_405 = arith.constant 15 : i32
    %c15_i32_406 = arith.constant 15 : i32
    %994 = arith.subi %c15_i32_406, %c15_i32_405 : i32
    %cst_407 = arith.constant dense<0.000000e+00> : vector<32x32xf32>
    %995 = tpu.matmul %196, %968, %cst_407 {dimension_numbers = #tpu.dot_dimension_numbers<[1], [0], [0], [1], [0, 0, 1, 1], [], []>} : vector<32x8xf32>, vector<8x32xf32>, vector<32x32xf32> -> vector<32x32xf32>
    %996 = arith.index_cast %c15_i32_405 : i32 to index
    %c0_408 = arith.constant 0 : index
    %c0_409 = arith.constant 0 : index
    %997 = vector.load %arg5[%996, %c0_408, %c0_409] : memref<16x32x32xf32, #tpu.memory_space<vmem>>, vector<1x32x32xf32>
    %998 = vector.shape_cast %997 : vector<1x32x32xf32> to vector<32x32xf32>
    %999 = arith.addf %995, %998 : vector<32x32xf32>
    %cst_410 = arith.constant dense<0.000000e+00> : vector<32x32xf32>
    %1000 = tpu.matmul %197, %985, %cst_410 {dimension_numbers = #tpu.dot_dimension_numbers<[1], [0], [0], [1], [0, 0, 1, 1], [], []>} : vector<32x8xf32>, vector<8x32xf32>, vector<32x32xf32> -> vector<32x32xf32>
    %1001 = arith.index_cast %994 : i32 to index
    %c0_411 = arith.constant 0 : index
    %c0_412 = arith.constant 0 : index
    %1002 = vector.load %arg6[%1001, %c0_411, %c0_412] : memref<16x32x32xf32, #tpu.memory_space<vmem>>, vector<1x32x32xf32>
    %1003 = vector.shape_cast %1002 : vector<1x32x32xf32> to vector<32x32xf32>
    %1004 = arith.addf %1000, %1003 : vector<32x32xf32>
    %1005 = vector.extract_strided_slice %999 {offsets = [0, 0], sizes = [24, 32], strides = [1, 1]} : vector<32x32xf32> to vector<24x32xf32>
    %cst_413 = arith.constant 0.000000e+00 : f32
    %1006 = vector.broadcast %cst_413 : f32 to vector<24x32xf32>
    %1007 = arith.subf %1006, %1005 : vector<24x32xf32>
    %1008 = math.exp %1007 : vector<24x32xf32>
    %cst_414 = arith.constant 1.000000e+00 : f32
    %1009 = vector.broadcast %cst_414 : f32 to vector<24x32xf32>
    %1010 = arith.addf %1009, %1008 : vector<24x32xf32>
    %1011 = tpu.reciprocal %1010 : vector<24x32xf32> -> vector<24x32xf32>
    %1012 = vector.extract_strided_slice %1011 {offsets = [0, 0], sizes = [8, 32], strides = [1, 1]} : vector<24x32xf32> to vector<8x32xf32>
    %1013 = vector.extract_strided_slice %1011 {offsets = [8, 0], sizes = [8, 32], strides = [1, 1]} : vector<24x32xf32> to vector<8x32xf32>
    %1014 = vector.extract_strided_slice %1011 {offsets = [16, 0], sizes = [8, 32], strides = [1, 1]} : vector<24x32xf32> to vector<8x32xf32>
    %1015 = vector.extract_strided_slice %999 {offsets = [24, 0], sizes = [8, 32], strides = [1, 1]} : vector<32x32xf32> to vector<8x32xf32>
    %1016 = math.tanh %1015 : vector<8x32xf32>
    %1017 = arith.mulf %1013, %966 : vector<8x32xf32>
    %1018 = arith.mulf %1012, %1016 : vector<8x32xf32>
    %1019 = arith.addf %1017, %1018 : vector<8x32xf32>
    %1020 = math.tanh %1019 : vector<8x32xf32>
    %1021 = arith.mulf %1014, %1020 : vector<8x32xf32>
    %1022 = vector.extract_strided_slice %1004 {offsets = [0, 0], sizes = [24, 32], strides = [1, 1]} : vector<32x32xf32> to vector<24x32xf32>
    %cst_415 = arith.constant 0.000000e+00 : f32
    %1023 = vector.broadcast %cst_415 : f32 to vector<24x32xf32>
    %1024 = arith.subf %1023, %1022 : vector<24x32xf32>
    %1025 = math.exp %1024 : vector<24x32xf32>
    %cst_416 = arith.constant 1.000000e+00 : f32
    %1026 = vector.broadcast %cst_416 : f32 to vector<24x32xf32>
    %1027 = arith.addf %1026, %1025 : vector<24x32xf32>
    %1028 = tpu.reciprocal %1027 : vector<24x32xf32> -> vector<24x32xf32>
    %1029 = vector.extract_strided_slice %1028 {offsets = [0, 0], sizes = [8, 32], strides = [1, 1]} : vector<24x32xf32> to vector<8x32xf32>
    %1030 = vector.extract_strided_slice %1028 {offsets = [8, 0], sizes = [8, 32], strides = [1, 1]} : vector<24x32xf32> to vector<8x32xf32>
    %1031 = vector.extract_strided_slice %1028 {offsets = [16, 0], sizes = [8, 32], strides = [1, 1]} : vector<24x32xf32> to vector<8x32xf32>
    %1032 = vector.extract_strided_slice %1004 {offsets = [24, 0], sizes = [8, 32], strides = [1, 1]} : vector<32x32xf32> to vector<8x32xf32>
    %1033 = math.tanh %1032 : vector<8x32xf32>
    %1034 = arith.mulf %1030, %983 : vector<8x32xf32>
    %1035 = arith.mulf %1029, %1033 : vector<8x32xf32>
    %1036 = arith.addf %1034, %1035 : vector<8x32xf32>
    %1037 = math.tanh %1036 : vector<8x32xf32>
    %1038 = arith.mulf %1031, %1037 : vector<8x32xf32>
    %1039 = arith.index_cast %c15_i32_405 : i32 to index
    %c0_417 = arith.constant 0 : index
    %c0_418 = arith.constant 0 : index
    %c0_419 = arith.constant 0 : index
    %1040 = vector.load %arg4[%1039, %c0_417, %c0_418, %c0_419] : memref<16x2x8x32xf32, #tpu.memory_space<vmem>>, vector<1x1x8x32xf32>
    %1041 = vector.shape_cast %1040 : vector<1x1x8x32xf32> to vector<8x32xf32>
    %1042 = vector.shape_cast %1021 : vector<8x32xf32> to vector<1x1x8x32xf32>
    tpu.vector_store %arg4[%1039, %c0_417, %c0_418, %c0_419], %1042 {strides = array<i32>} : memref<16x2x8x32xf32, #tpu.memory_space<vmem>>, vector<1x1x8x32xf32>,
    %1043 = arith.index_cast %994 : i32 to index
    %c1_420 = arith.constant 1 : index
    %c0_421 = arith.constant 0 : index
    %c0_422 = arith.constant 0 : index
    %1044 = vector.load %arg4[%1043, %c1_420, %c0_421, %c0_422] : memref<16x2x8x32xf32, #tpu.memory_space<vmem>>, vector<1x1x8x32xf32>
    %1045 = vector.shape_cast %1044 : vector<1x1x8x32xf32> to vector<8x32xf32>
    %1046 = vector.shape_cast %1038 : vector<8x32xf32> to vector<1x1x8x32xf32>
    tpu.vector_store %arg4[%1043, %c1_420, %c0_421, %c0_422], %1046 {strides = array<i32>} : memref<16x2x8x32xf32, #tpu.memory_space<vmem>>, vector<1x1x8x32xf32>,
    %c16_i32 = arith.constant 16 : i32
    return
  }
}

module attributes {stable_mosaic.version = 11 : i64} {
  func.func @_conv_bn_softmax_kernel(%arg0: memref<16x512xf32, #tpu.memory_space<vmem>>, %arg1: memref<36x16xf32, #tpu.memory_space<vmem>>, %arg2: memref<36x1xf32, #tpu.memory_space<vmem>>, %arg3: memref<36x1xf32, #tpu.memory_space<vmem>>, %arg4: memref<36x1xf32, #tpu.memory_space<vmem>>, %arg5: memref<2x36x256xf32, #tpu.memory_space<vmem>>) attributes {dimension_semantics = [], scalar_prefetch = 0 : i64, scratch_operands = 0 : i64, tpu.core_type = #tpu.core_type<tc>} {
    %c0 = arith.constant 0 : index
    %c0_0 = arith.constant 0 : index
    %0 = vector.load %arg1[%c0, %c0_0] : memref<36x16xf32, #tpu.memory_space<vmem>>, vector<36x16xf32>
    %c0_1 = arith.constant 0 : index
    %c0_2 = arith.constant 0 : index
    %1 = vector.load %arg0[%c0_1, %c0_2] : memref<16x512xf32, #tpu.memory_space<vmem>>, vector<16x512xf32>
    %cst = arith.constant dense<0.000000e+00> : vector<36x512xf32>
    %2 = tpu.matmul %0, %1, %cst {dimension_numbers = #tpu.dot_dimension_numbers<[1], [0], [0], [1], [0, 0, 1, 1], [], []>} : vector<36x16xf32>, vector<16x512xf32>, vector<36x512xf32> -> vector<36x512xf32>
    %c0_3 = arith.constant 0 : index
    %c0_4 = arith.constant 0 : index
    %3 = vector.load %arg2[%c0_3, %c0_4] : memref<36x1xf32, #tpu.memory_space<vmem>>, vector<36x1xf32>
    %4 = vector.broadcast %3 : vector<36x1xf32> to vector<36x512xf32>
    %5 = arith.addf %2, %4 : vector<36x512xf32>
    %cst_5 = arith.constant dense<0.000000e+00> : vector<36xf32>
    %6 = vector.multi_reduction <add>, %5, %cst_5 [1] : vector<36x512xf32> to vector<36xf32>
    %7 = vector.shape_cast %6 : vector<36xf32> to vector<36x1xf32>
    %cst_6 = arith.constant 0.001953125 : f32
    %8 = vector.broadcast %cst_6 : f32 to vector<36x1xf32>
    %9 = arith.mulf %7, %8 : vector<36x1xf32>
    %10 = arith.mulf %5, %5 : vector<36x512xf32>
    %cst_7 = arith.constant dense<0.000000e+00> : vector<36xf32>
    %11 = vector.multi_reduction <add>, %10, %cst_7 [1] : vector<36x512xf32> to vector<36xf32>
    %12 = vector.shape_cast %11 : vector<36xf32> to vector<36x1xf32>
    %cst_8 = arith.constant 0.001953125 : f32
    %13 = vector.broadcast %cst_8 : f32 to vector<36x1xf32>
    %14 = arith.mulf %12, %13 : vector<36x1xf32>
    %15 = arith.mulf %9, %9 : vector<36x1xf32>
    %16 = arith.subf %14, %15 : vector<36x1xf32>
    %17 = vector.broadcast %9 : vector<36x1xf32> to vector<36x512xf32>
    %18 = arith.subf %5, %17 : vector<36x512xf32>
    %cst_9 = arith.constant 9.99999974E-6 : f32
    %19 = vector.broadcast %cst_9 : f32 to vector<36x1xf32>
    %20 = arith.addf %16, %19 : vector<36x1xf32>
    %21 = math.rsqrt %20 : vector<36x1xf32>
    %22 = vector.broadcast %21 : vector<36x1xf32> to vector<36x512xf32>
    %23 = arith.mulf %18, %22 : vector<36x512xf32>
    %c0_10 = arith.constant 0 : index
    %c0_11 = arith.constant 0 : index
    %24 = vector.load %arg3[%c0_10, %c0_11] : memref<36x1xf32, #tpu.memory_space<vmem>>, vector<36x1xf32>
    %25 = vector.broadcast %24 : vector<36x1xf32> to vector<36x512xf32>
    %26 = arith.mulf %23, %25 : vector<36x512xf32>
    %c0_12 = arith.constant 0 : index
    %c0_13 = arith.constant 0 : index
    %27 = vector.load %arg4[%c0_12, %c0_13] : memref<36x1xf32, #tpu.memory_space<vmem>>, vector<36x1xf32>
    %28 = vector.broadcast %27 : vector<36x1xf32> to vector<36x512xf32>
    %29 = arith.addf %26, %28 : vector<36x512xf32>
    %cst_14 = arith.constant dense<0xFF800000> : vector<512xf32>
    %30 = vector.multi_reduction <maximumf>, %29, %cst_14 [0] : vector<36x512xf32> to vector<512xf32>
    %31 = vector.shape_cast %30 : vector<512xf32> to vector<1x512xf32>
    %32 = vector.broadcast %31 : vector<1x512xf32> to vector<36x512xf32>
    %33 = arith.subf %29, %32 : vector<36x512xf32>
    %34 = math.exp %33 : vector<36x512xf32>
    %cst_15 = arith.constant dense<0.000000e+00> : vector<512xf32>
    %35 = vector.multi_reduction <add>, %34, %cst_15 [0] : vector<36x512xf32> to vector<512xf32>
    %36 = vector.shape_cast %35 : vector<512xf32> to vector<1x512xf32>
    %37 = tpu.reciprocal %36 : vector<1x512xf32> -> vector<1x512xf32>
    %38 = vector.broadcast %37 : vector<1x512xf32> to vector<36x512xf32>
    %39 = arith.mulf %34, %38 : vector<36x512xf32>
    %40 = vector.extract_strided_slice %39 {offsets = [0, 0], sizes = [36, 256], strides = [1, 1]} : vector<36x512xf32> to vector<36x256xf32>
    %c0_16 = arith.constant 0 : index
    %c0_17 = arith.constant 0 : index
    %c0_18 = arith.constant 0 : index
    %41 = vector.load %arg5[%c0_16, %c0_17, %c0_18] : memref<2x36x256xf32, #tpu.memory_space<vmem>>, vector<1x36x256xf32>
    %42 = vector.shape_cast %41 : vector<1x36x256xf32> to vector<36x256xf32>
    %43 = vector.shape_cast %40 : vector<36x256xf32> to vector<1x36x256xf32>
    tpu.vector_store %arg5[%c0_16, %c0_17, %c0_18], %43 {strides = array<i32>} : memref<2x36x256xf32, #tpu.memory_space<vmem>>, vector<1x36x256xf32>,
    %44 = vector.extract_strided_slice %39 {offsets = [0, 256], sizes = [36, 256], strides = [1, 1]} : vector<36x512xf32> to vector<36x256xf32>
    %c1 = arith.constant 1 : index
    %c0_19 = arith.constant 0 : index
    %c0_20 = arith.constant 0 : index
    %45 = vector.load %arg5[%c1, %c0_19, %c0_20] : memref<2x36x256xf32, #tpu.memory_space<vmem>>, vector<1x36x256xf32>
    %46 = vector.shape_cast %45 : vector<1x36x256xf32> to vector<36x256xf32>
    %47 = vector.shape_cast %44 : vector<36x256xf32> to vector<1x36x256xf32>
    tpu.vector_store %arg5[%c1, %c0_19, %c0_20], %47 {strides = array<i32>} : memref<2x36x256xf32, #tpu.memory_space<vmem>>, vector<1x36x256xf32>,
    return
  }
}

module attributes {stable_mosaic.version = 11 : i64} {
  func.func @_attn_apply_kernel(%arg0: memref<2x256x36xf32, #tpu.memory_space<vmem>>, %arg1: memref<2x36x16xf32, #tpu.memory_space<vmem>>, %arg2: memref<2x256x16xf32, #tpu.memory_space<vmem>>) attributes {dimension_semantics = [], scalar_prefetch = 0 : i64, scratch_operands = 0 : i64, tpu.core_type = #tpu.core_type<tc>} {
    %c0 = arith.constant 0 : index
    %c0_0 = arith.constant 0 : index
    %c0_1 = arith.constant 0 : index
    %0 = vector.load %arg0[%c0, %c0_0, %c0_1] : memref<2x256x36xf32, #tpu.memory_space<vmem>>, vector<1x256x36xf32>
    %1 = vector.shape_cast %0 : vector<1x256x36xf32> to vector<256x36xf32>
    %c0_2 = arith.constant 0 : index
    %c0_3 = arith.constant 0 : index
    %c0_4 = arith.constant 0 : index
    %2 = vector.load %arg1[%c0_2, %c0_3, %c0_4] : memref<2x36x16xf32, #tpu.memory_space<vmem>>, vector<1x36x16xf32>
    %3 = vector.shape_cast %2 : vector<1x36x16xf32> to vector<36x16xf32>
    %cst = arith.constant dense<0.000000e+00> : vector<256x16xf32>
    %4 = tpu.matmul %1, %3, %cst {dimension_numbers = #tpu.dot_dimension_numbers<[1], [0], [0], [1], [0, 0, 1, 1], [], []>} : vector<256x36xf32>, vector<36x16xf32>, vector<256x16xf32> -> vector<256x16xf32>
    %c0_5 = arith.constant 0 : index
    %c0_6 = arith.constant 0 : index
    %c0_7 = arith.constant 0 : index
    %5 = vector.load %arg2[%c0_5, %c0_6, %c0_7] : memref<2x256x16xf32, #tpu.memory_space<vmem>>, vector<1x256x16xf32>
    %6 = vector.shape_cast %5 : vector<1x256x16xf32> to vector<256x16xf32>
    %7 = vector.shape_cast %4 : vector<256x16xf32> to vector<1x256x16xf32>
    tpu.vector_store %arg2[%c0_5, %c0_6, %c0_7], %7 {strides = array<i32>} : memref<2x256x16xf32, #tpu.memory_space<vmem>>, vector<1x256x16xf32>,
    %c1 = arith.constant 1 : index
    %c0_8 = arith.constant 0 : index
    %c0_9 = arith.constant 0 : index
    %8 = vector.load %arg0[%c1, %c0_8, %c0_9] : memref<2x256x36xf32, #tpu.memory_space<vmem>>, vector<1x256x36xf32>
    %9 = vector.shape_cast %8 : vector<1x256x36xf32> to vector<256x36xf32>
    %c1_10 = arith.constant 1 : index
    %c0_11 = arith.constant 0 : index
    %c0_12 = arith.constant 0 : index
    %10 = vector.load %arg1[%c1_10, %c0_11, %c0_12] : memref<2x36x16xf32, #tpu.memory_space<vmem>>, vector<1x36x16xf32>
    %11 = vector.shape_cast %10 : vector<1x36x16xf32> to vector<36x16xf32>
    %cst_13 = arith.constant dense<0.000000e+00> : vector<256x16xf32>
    %12 = tpu.matmul %9, %11, %cst_13 {dimension_numbers = #tpu.dot_dimension_numbers<[1], [0], [0], [1], [0, 0, 1, 1], [], []>} : vector<256x36xf32>, vector<36x16xf32>, vector<256x16xf32> -> vector<256x16xf32>
    %c1_14 = arith.constant 1 : index
    %c0_15 = arith.constant 0 : index
    %c0_16 = arith.constant 0 : index
    %13 = vector.load %arg2[%c1_14, %c0_15, %c0_16] : memref<2x256x16xf32, #tpu.memory_space<vmem>>, vector<1x256x16xf32>
    %14 = vector.shape_cast %13 : vector<1x256x16xf32> to vector<256x16xf32>
    %15 = vector.shape_cast %12 : vector<256x16xf32> to vector<1x256x16xf32>
    tpu.vector_store %arg2[%c1_14, %c0_15, %c0_16], %15 {strides = array<i32>} : memref<2x256x16xf32, #tpu.memory_space<vmem>>, vector<1x256x16xf32>,
    return
  }
}

</mosaic_0001>

<bundles_post_ra>
// kernel: attention_global_forward.6
= control target key start
LH: loop header
LB: loop body
LE: loop exit
PB: predicated region body
PF: predicated region fallthrough
CT: control target
= control target key end

     0   :  { %v805_v3 = vmov 0.0   ;;  %v806_v8 = vmov 0   ;;  %vm63_vm0 = vcmask 130048   ;;  %vm289_vm1 = vcmask 1043456   ;;  %s1347_s0 = inlined_call_operand.vmem [shape: f32[16,512], index: 0, kind: input, shape index: {}]   ;;  %s1348_s1 = inlined_call_operand.vmem [shape: f32[36,16], index: 1, kind: input, shape index: {}]   ;;  %s1349_s2 = inlined_call_operand.vmem [shape: f32[36,1], index: 2, kind: input, shape index: {}]   ;;  %s1350_s3 = inlined_call_operand.vmem [shape: f32[36,1], index: 3, kind: input, shape index: {}]   ;;  %s1351_s4 = inlined_call_operand.vmem [shape: f32[36,1], index: 4, kind: input, shape index: {}]   ;;  %s1352_s5 = inlined_call_operand.vmem [shape: f32[2,36,256], index: 5, kind: output, shape index: {}]  }
   0x1   :  { %v26_v0 = vld [vmem:[%s1347_s0 + $0x8] sm:$0xff]  ;;  %v28_v2 = vld [vmem:[%s1347_s0 + $0x18] sm:$0xff]  ;;  %143 = vmatprep.mubr.f32.mxu0 %v805_v3  ;;  %238 = vmatprep.mubr.f32.mxu1 %v805_v3  ;;  %v25_v6 = vld [vmem:[%s1347_s0] sm:$0xff] }
   0x2   :  { %v30_v1 = vld [vmem:[%s1347_s0 + $0x28] sm:$0xff]  ;;  %v32_v5 = vld [vmem:[%s1347_s0 + $0x38] sm:$0xff]  ;;  %v29_v7 = vld [vmem:[%s1347_s0 + $0x20] sm:$0xff]  ;;  %745 = vset.pattern.permute.xlu0 %v806_v8  ;;  %746 = vset.pattern.permute.xlu1 %v806_v8 }
   0x3   :  { %v735_v4 = vpack.c.bf16 %v30_v1, %v26_v0  ;;  %v739_v9 = vpack.c.bf16 %v32_v5, %v28_v2  ;;  %v737_v10 = vpack.c.bf16 %v29_v7, %v25_v6  ;;  %v27_v11 = vld [vmem:[%s1347_s0 + $0x10] sm:$0xff]  ;;  %v20_v14 = vld [vmem:[%s1348_s1] sm:$0xff]  ;;  %v34_v17 = vld [vmem:[%s1349_s2 + $0x8] sm:$0xff] }
   0x4   :  { %v31_v12 = vld [vmem:[%s1347_s0 + $0x30] sm:$0xff]  ;;  %v33_v15 = vld [vmem:[%s1349_s2] sm:$0xff]  ;;  %v36_v18 = vld [vmem:[%s1349_s2 + $0x18] sm:$0xff] }
   0x5   :  { %736 = vmatprep.subr.bf16.mxu0 %v735_v4  ;;  %v741_v13 = vpack.c.bf16 %v31_v12, %v27_v11  ;;  %740 = vmatprep.subr.bf16.mxu1 %v739_v9  ;;  %v35_v16 = vld [vmem:[%s1349_s2 + $0x10] sm:$0xff]  ;;  %v21_v19 = vld [vmem:[%s1348_s1 + $0x8] sm:$0xff]  ;;  %v37_v20 = vld [vmem:[%s1349_s2 + $0x20] sm:$0xf] }
   0x6   :  { %738 = vmatpush1.bf16.msra.mxu0 %v737_v10  ;;  %40 = vperm.xlu0 %745, %v33_v15   ;;  %v419_v21 = vld [vmem:[%s1350_s3 + $0x8] sm:$0xff]  ;;  %v22_v22 = vld [vmem:[%s1348_s1 + $0x10] sm:$0xff]  ;;  %v418_v23 = vld [vmem:[%s1350_s3] sm:$0xff] }
   0x7   :  { %742 = vmatpush1.bf16.msra.mxu1 %v741_v13  ;;  %50 = vperm.xlu1 %746, %v35_v16   ;;  %v420_v24 = vld [vmem:[%s1350_s3 + $0x10] sm:$0xff]  ;;  %v23_v25 = vld [vmem:[%s1348_s1 + $0x18] sm:$0xff]  ;;  %v468_v26 = vld [vmem:[%s1351_s4] sm:$0xff] }
   0x8   :  { %v469_v27 = vld [vmem:[%s1351_s4 + $0x8] sm:$0xff]  ;;  %v24_v28 = vld [vmem:[%s1348_s1 + $0x20] sm:$0xf]  ;;  %v421_v29 = vld [vmem:[%s1350_s3 + $0x18] sm:$0xff] }
   0x9   :  { %715 = vmatmul.mubr.msk.f32.vlgmr.msra.gmra.mrb[0].mxu0 %vm63_vm0, %v20_v14  ;;  %v470_v30 = vld [vmem:[%s1351_s4 + $0x10] sm:$0xff]  ;;  %v422_v31 = vld [vmem:[%s1350_s3 + $0x20] sm:$0xf] }
   0xa   :  { %720 = vmatmul.mubr.msk.f32.vlgmr.msra.gmra.mrb[0].mxu1 %vm63_vm0, %v20_v14  ;;  %149 = vmatprep.mubr.f32.mxu0 %v805_v3 }
   0xb   :  { %244 = vmatprep.mubr.f32.mxu1 %v805_v3  ;;  %45 = vperm.xlu0 %745, %v34_v17  }
   0xc   :  { %55 = vperm.xlu1 %746, %v36_v18  }
   0xd   :  { %716 = vmatmul.mubr.msk.f32.gmra.mrb[2].mxu0 %vm63_vm0, %v21_v19 }
   0xe   :  { %721 = vmatmul.mubr.msk.f32.gmra.mrb[2].mxu1 %vm63_vm0, %v21_v19  ;;  %155 = vmatprep.mubr.f32.mxu0 %v805_v3 }
   0xf   :  { %250 = vmatprep.mubr.f32.mxu1 %v805_v3  ;;  %60 = vperm.xlu0 %745, %v37_v20  }
  0x10   :  { %430 = vperm.xlu1 %746, %v419_v21  }
  0x11   :  { %717 = vmatmul.mubr.msk.f32.gmra.mrb[4].mxu0 %vm63_vm0, %v22_v22 }
  0x12   :  { %722 = vmatmul.mubr.msk.f32.gmra.mrb[4].mxu1 %vm63_vm0, %v22_v22  ;;  %161 = vmatprep.mubr.f32.mxu0 %v805_v3 }
  0x13   :  { %256 = vmatprep.mubr.f32.mxu1 %v805_v3  ;;  %425 = vperm.xlu0 %745, %v418_v23  }
  0x14   :  { %435 = vperm.xlu1 %746, %v420_v24  }
  0x15   :  { %718 = vmatmul.mubr.msk.f32.gmra.mrb[6].mxu0 %vm63_vm0, %v23_v25 }
  0x16   :  { %723 = vmatmul.mubr.msk.f32.gmra.mrb[6].mxu1 %vm63_vm0, %v23_v25  ;;  %167 = vmatprep.mubr.f32.mxu0 %v805_v3 }
  0x17   :  { %262 = vmatprep.mubr.f32.mxu1 %v805_v3  ;;  %475 = vperm.xlu0 %745, %v468_v26  }
  0x18   :  { %480 = vperm.xlu1 %746, %v469_v27  }
  0x19   :  { %719 = vmatmul.mubr.msk.f32.gmra.mrb[8].mxu0 %vm63_vm0, %v24_v28 }
  0x1a   :  { %724 = vmatmul.mubr.msk.f32.gmra.mrb[8].mxu1 %vm63_vm0, %v24_v28 }
  0x1b   :  { %440 = vperm.xlu0 %745, %v421_v29  }
  0x1c   :  { %485 = vperm.xlu1 %746, %v470_v30  }
  0x1f   :  { %445 = vperm.xlu0 %745, %v422_v31  }
  0x85   :  { %v41_v32 = vpop.permute.xlu0 %40 }
  0x86   :  { %v51_v49 = vpop.permute.xlu1 %50 }
  0x8a   :  { %v46_v41 = vpop.permute.xlu0 %45 }
  0x8b   :  { %v56_v10 = vpop.permute.xlu1 %55 }
  0x8e   :  { %v61_v28 = vpop.permute.xlu0 %60 }
  0xdc   :  { %v145_v33 = vpop.f32.mrb[0].mxu0 }
  0xdd   :  { %v925_v34 = vadd.f32 %v145_v33, %v41_v32  ;;  %v240_v35 = vpop.f32.mrb[0].mxu1  ;;  %v147_v36 = vpop.f32.mrb[1].mxu0 }
  0xde   :  { %v927_v37 = vadd.f32 %v147_v36, %v41_v32  ;;  %v242_v38 = vpop.f32.mrb[1].mxu1  ;;  %v931_v40 = vadd.f32 %v240_v35, %v41_v32 }
  0xdf   :  { %v304_v39 = vmul.f32 %v925_v34, %v925_v34  ;;  %v937_v45 = vadd.f32 %v242_v38, %v41_v32 }
  0xe0   :  { %v269_v42 = vadd.f32 %v927_v37, %v925_v34  ;;  %v305_v43 = vmul.f32 %v927_v37, %v927_v37  ;;  %v151_v44 = vpop.f32.mrb[2].mxu0  ;;  %v306_v54 = vmul.f32 %v931_v40, %v931_v40 }
  0xe1   :  { %v939_v46 = vadd.f32 %v151_v44, %v46_v41  ;;  %v246_v47 = vpop.f32.mrb[2].mxu1  ;;  %v153_v48 = vpop.f32.mrb[3].mxu0  ;;  %v307_v1 = vmul.f32 %v937_v45, %v937_v45 }
  0xe2   :  { %v941_v50 = vadd.f32 %v153_v48, %v46_v41  ;;  %v248_v51 = vpop.f32.mrb[3].mxu1  ;;  %v270_v52 = vadd.f32 %v269_v42, %v931_v40  ;;  %v324_v53 = vadd.f32 %v305_v43, %v304_v39  ;;  %v948_v56 = vadd.f32 %v246_v47, %v46_v41 }
  0xe3   :  { %v308_v55 = vmul.f32 %v939_v46, %v939_v46  ;;  %v955_v61 = vadd.f32 %v248_v51, %v46_v41 }
  0xe4   :  { %v274_v57 = vadd.f32 %v941_v50, %v939_v46  ;;  %v309_v58 = vmul.f32 %v941_v50, %v941_v50  ;;  %v157_v59 = vpop.f32.mrb[4].mxu0  ;;  %v271_v60 = vadd.f32 %v270_v52, %v937_v45  ;;  %v325_v2 = vadd.f32 %v324_v53, %v306_v54 }
  0xe5   :  { %v957_v62 = vadd.f32 %v157_v59, %v51_v49  ;;  %v159_v63 = vpop.f32.mrb[5].mxu0  ;;  %v252_v0 = vpop.f32.mrb[4].mxu1  ;;  %v310_v8 = vmul.f32 %v948_v56, %v948_v56  ;;  %v311_v19 = vmul.f32 %v955_v61, %v955_v61 }
  0xe6   :  { %v961_v3 = vadd.f32 %v159_v63, %v51_v49  ;;  %v963_v4 = vadd.f32 %v252_v0, %v51_v49  ;;  %v254_v5 = vpop.f32.mrb[5].mxu1  ;;  %272 = vadd.xlane.f32.xlu1 %v271_v60  ;;  %v275_v6 = vadd.f32 %v274_v57, %v948_v56  ;;  %v329_v7 = vadd.f32 %v309_v58, %v308_v55 }
  0xe7   :  { %v312_v9 = vmul.f32 %v957_v62, %v957_v62  ;;  %v326_v15 = vadd.f32 %v325_v2, %v307_v1  ;;  %v984_v25 = vadd.f32 %v254_v5, %v51_v49 }
  0xe8   :  { %v279_v11 = vadd.f32 %v961_v3, %v957_v62  ;;  %v313_v12 = vmul.f32 %v961_v3, %v961_v3  ;;  %v163_v13 = vpop.f32.mrb[6].mxu0  ;;  %v276_v14 = vadd.f32 %v275_v6, %v955_v61  ;;  %v330_v20 = vadd.f32 %v329_v7, %v310_v8 }
  0xe9   :  { %v975_v16 = vadd.f32 %v163_v13, %v56_v10  ;;  %v258_v17 = vpop.f32.mrb[6].mxu1  ;;  %v165_v18 = vpop.f32.mrb[7].mxu0  ;;  %v314_v21 = vmul.f32 %v963_v4, %v963_v4  ;;  %v315_v59 = vmul.f32 %v984_v25, %v984_v25 }
  0xea   :  { %v981_v22 = vadd.f32 %v165_v18, %v56_v10  ;;  %v260_v23 = vpop.f32.mrb[7].mxu1  ;;  %277 = vadd.xlane.f32.xlu0 %v276_v14  ;;  %327 = vadd.xlane.f32.xlu1 %v326_v15  ;;  %v280_v24 = vadd.f32 %v279_v11, %v963_v4  ;;  %v334_v27 = vadd.f32 %v313_v12, %v312_v9 }
  0xeb   :  { %v316_v26 = vmul.f32 %v975_v16, %v975_v16  ;;  %v988_v29 = vadd.f32 %v258_v17, %v56_v10  ;;  %v331_v33 = vadd.f32 %v330_v20, %v311_v19  ;;  %v994_v35 = vadd.f32 %v260_v23, %v56_v10  ;;  %v471_v19 = vld [vmem:[%s1351_s4 + $0x18] sm:$0xff]  ;;  %v472_v20 = vld [vmem:[%s1351_s4 + $0x20] sm:$0xf]  ;;  %v1041_v23 = vpop.permute.xlu0 %425 }
  0xec   :  { %v284_v30 = vadd.f32 %v981_v22, %v975_v16  ;;  %v317_v31 = vmul.f32 %v981_v22, %v981_v22  ;;  %v169_v32 = vpop.f32.mrb[8].mxu0  ;;  %v281_v41 = vadd.f32 %v280_v24, %v984_v25  ;;  %v335_v48 = vadd.f32 %v334_v27, %v314_v21  ;;  %v1039_v21 = vpop.permute.xlu1 %430 }
  0xed   :  { %v996_v36 = vadd.f32 %v169_v32, %v61_v28  ;;  %v264_v38 = vpop.f32.mrb[8].mxu1  ;;  %v171_v39 = vpop.f32.mrb[9].mxu0  ;;  %v318_v63 = vmul.f32 %v988_v29, %v988_v29  ;;  %v319_v14 = vmul.f32 %v994_v35, %v994_v35 }
  0xee   :  { %v999_v42 = vadd.f32 %v264_v38, %v61_v28  ;;  %v1001_v43 = vadd.f32 %v171_v39, %v61_v28  ;;  %v266_v44 = vpop.f32.mrb[9].mxu1  ;;  %332 = vadd.xlane.f32.xlu0 %v331_v33  ;;  %v285_v47 = vadd.f32 %v284_v30, %v988_v29  ;;  %v339_v53 = vadd.f32 %v317_v31, %v316_v26 }
  0xef   :  { %v290_v49 = vsel %vm289_vm1, %v996_v36, 0.0  ;;  %v320_v51 = vmul.f32 %v996_v36, %v996_v36  ;;  %v1008_v52 = vadd.f32 %v266_v44, %v61_v28  ;;  %v336_v5 = vadd.f32 %v335_v48, %v315_v59  ;;  %v1045_v26 = vpop.permute.xlu0 %475 }
  0xf0   :  { %v322_v54 = vmul.f32 %v999_v42, %v999_v42  ;;  %v291_v55 = vsel %vm289_vm1, %v1001_v43, 0.0  ;;  %v321_v57 = vmul.f32 %v1001_v43, %v1001_v43  ;;  %v286_v58 = vadd.f32 %v285_v47, %v994_v35  ;;  %v1043_v24 = vpop.permute.xlu1 %435 }
  0xf1   :  { %v292_v60 = vadd.f32 %v291_v55, %v290_v49  ;;  %v293_v0 = vsel %vm289_vm1, %v999_v42, 0.0  ;;  %v344_v1 = vsel %vm289_vm1, %v320_v51, 0.0  ;;  %v295_v8 = vsel %vm289_vm1, %v1008_v52, 0.0 }
  0xf2   :  { %282 = vadd.xlane.f32.xlu0 %v281_v41  ;;  %287 = vadd.xlane.f32.xlu1 %v286_v58  ;;  %v345_v2 = vsel %vm289_vm1, %v321_v57, 0.0  ;;  %v340_v9 = vadd.f32 %v339_v53, %v318_v63  ;;  %v323_v10 = vmul.f32 %v1008_v52, %v1008_v52  ;;  %v347_v11 = vsel %vm289_vm1, %v322_v54, 0.0 }
  0xf3   :  { %v294_v6 = vadd.f32 %v293_v0, %v292_v60  ;;  %v346_v7 = vadd.f32 %v345_v2, %v344_v1  ;;  %v1049_v28 = vpop.permute.xlu0 %440 }
  0xf4   :  { %v341_v15 = vadd.f32 %v340_v9, %v319_v14  ;;  %v349_v17 = vsel %vm289_vm1, %v323_v10, 0.0  ;;  %v1047_v27 = vpop.permute.xlu1 %480 }
  0xf5   :  { %v296_v12 = vadd.f32 %v295_v8, %v294_v6  ;;  %v348_v13 = vadd.f32 %v347_v11, %v346_v7 }
  0xf6   :  { %337 = vadd.xlane.f32.xlu0 %v336_v5 }
  0xf7   :  { %297 = vadd.xlane.f32.xlu1 %v296_v12  ;;  %v350_v18 = vadd.f32 %v349_v17, %v348_v13  ;;  %v1053_v31 = vpop.permute.xlu0 %445 }
  0xf8   :  { %v1051_v30 = vpop.permute.xlu1 %485 }
  0xfa   :  { %342 = vadd.xlane.f32.xlu0 %v341_v15 }
  0xfb   :  { %351 = vadd.xlane.f32.xlu1 %v350_v18 }
 0x10c   :  { %490 = vperm.xlu1 %746, %v471_v19  }
 0x110   :  { %495 = vperm.xlu0 %745, %v472_v20  }
 0x173   :  { %v273_v32 = vpop.xlane.xlu1 %272 }
 0x174   :  { %v299_v33 = vmul.f32 0.001953125, %v273_v32 }
 0x176   :  { %v358_v47 = vmul.f32 %v299_v33, %v299_v33  ;;  %v368_v17 = vsub.f32 %v925_v34, %v299_v33  ;;  %v369_v19 = vsub.f32 %v927_v37, %v299_v33  ;;  %v370_v20 = vsub.f32 %v931_v40, %v299_v33 }
 0x177   :  { %v278_v38 = vpop.xlane.xlu0 %277  ;;  %v328_v39 = vpop.xlane.xlu1 %327  ;;  %v371_v32 = vsub.f32 %v937_v45, %v299_v33 }
 0x178   :  { %v300_v41 = vmul.f32 0.001953125, %v278_v38  ;;  %v353_v44 = vmul.f32 0.001953125, %v328_v39 }
 0x17a   :  { %v363_v48 = vsub.f32 %v353_v44, %v358_v47  ;;  %v359_v51 = vmul.f32 %v300_v41, %v300_v41  ;;  %v372_v39 = vsub.f32 %v939_v46, %v300_v41  ;;  %v373_v44 = vsub.f32 %v941_v50, %v300_v41 }
 0x17b   :  { %v333_v49 = vpop.xlane.xlu0 %332  ;;  %v374_v47 = vsub.f32 %v948_v56, %v300_v41 }
 0x17c   :  { %v354_v53 = vmul.f32 0.001953125, %v333_v49  ;;  %v388_v54 = vadd.f32 1e-05, %v363_v48 }
 0x17e   :  { %v364_v55 = vsub.f32 %v354_v53, %v359_v51  ;;  %747 = vrsqrt.f32 %v388_v54  ;;  %v375_v51 = vsub.f32 %v955_v61, %v300_v41 }
 0x17f   :  { %v283_v57 = vpop.xlane.xlu0 %282  ;;  %v288_v58 = vpop.xlane.xlu1 %287 }
 0x180   :  { %v389_v59 = vadd.f32 1e-05, %v364_v55  ;;  %v1055_v60 = vmul.f32 0.001953125, %v283_v57  ;;  %v1057_v0 = vmul.f32 0.001953125, %v288_v58 }
 0x182   :  { %749 = vrsqrt.f32 %v389_v59  ;;  %v360_v1 = vmul.f32 %v1055_v60, %v1055_v60  ;;  %v361_v11 = vmul.f32 %v1057_v0, %v1057_v0  ;;  %v376_v34 = vsub.f32 %v957_v62, %v1055_v60 }
 0x183   :  { %v338_v63 = vpop.xlane.xlu0 %337  ;;  %v377_v46 = vsub.f32 %v961_v3, %v1055_v60  ;;  %v378_v50 = vsub.f32 %v963_v4, %v1055_v60  ;;  %v379_v56 = vsub.f32 %v984_v25, %v1055_v60  ;;  %v380_v61 = vsub.f32 %v975_v16, %v1057_v0 }
 0x184   :  { %v355_v2 = vmul.f32 0.001953125, %v338_v63  ;;  %v298_v5 = vpop.xlane.xlu1 %297  ;;  %v381_v57 = vsub.f32 %v981_v22, %v1057_v0  ;;  %v382_v3 = vsub.f32 %v988_v29, %v1057_v0  ;;  %v383_v4 = vsub.f32 %v994_v35, %v1057_v0 }
 0x185   :  { %v1061_v6 = vmul.f32 0.001953125, %v298_v5 }
 0x186   :  { %v365_v7 = vsub.f32 %v355_v2, %v360_v1 }
 0x187   :  { %v343_v8 = vpop.xlane.xlu0 %342  ;;  %v362_v13 = vmul.f32 %v1061_v6, %v1061_v6  ;;  %v384_v60 = vsub.f32 %v996_v36, %v1061_v6  ;;  %v385_v22 = vsub.f32 %v1001_v43, %v1061_v6  ;;  %v386_v29 = vsub.f32 %v999_v42, %v1061_v6 }
 0x188   :  { %v390_v9 = vadd.f32 1e-05, %v365_v7  ;;  %v356_v10 = vmul.f32 0.001953125, %v343_v8  ;;  %v352_v12 = vpop.xlane.xlu1 %351  ;;  %v748_v15 = vpop.eup %747  ;;  %v387_v35 = vsub.f32 %v1008_v52, %v1061_v6 }
 0x189   :  { %v357_v14 = vmul.f32 0.001953125, %v352_v12  ;;  %v398_v37 = vmul.f32 %v748_v15, %v368_v17  ;;  %v399_v40 = vmul.f32 %v748_v15, %v369_v19  ;;  %v400_v54 = vmul.f32 %v748_v15, %v370_v20 }
 0x18a   :  { %751 = vrsqrt.f32 %v390_v9  ;;  %v366_v18 = vsub.f32 %v356_v10, %v361_v11  ;;  %v401_v45 = vmul.f32 %v748_v15, %v371_v32 }
 0x18b   :  { %v367_v38 = vsub.f32 %v357_v14, %v362_v13  ;;  %v448_v58 = vmul.f32 %v1041_v23, %v398_v37  ;;  %v449_v25 = vmul.f32 %v1041_v23, %v399_v40  ;;  %v450_v16 = vmul.f32 %v1041_v23, %v400_v54 }
 0x18c   :  { %v391_v48 = vadd.f32 1e-05, %v366_v18  ;;  %v750_v49 = vpop.eup %749  ;;  %v451_v59 = vmul.f32 %v1041_v23, %v401_v45  ;;  %v491_v37 = vpop.permute.xlu1 %490 }
 0x18d   :  { %v392_v53 = vadd.f32 1e-05, %v367_v38  ;;  %v402_v33 = vmul.f32 %v750_v49, %v372_v39  ;;  %v403_v62 = vmul.f32 %v750_v49, %v373_v44  ;;  %v404_v41 = vmul.f32 %v750_v49, %v374_v47 }
 0x18e   :  { %753 = vrsqrt.f32 %v391_v48  ;;  %v405_v55 = vmul.f32 %v750_v49, %v375_v51  ;;  %v1108_v43 = vadd.f32 %v1045_v26, %v448_v58  ;;  %v1111_v42 = vadd.f32 %v1045_v26, %v449_v25 }
 0x18f   :  { %755 = vrsqrt.f32 %v392_v53  ;;  %v452_v0 = vmul.f32 %v1039_v21, %v402_v33  ;;  %v453_v1 = vmul.f32 %v1039_v21, %v403_v62  ;;  %v454_v2 = vmul.f32 %v1039_v21, %v404_v41 }
 0x190   :  { %v455_v23 = vmul.f32 %v1039_v21, %v405_v55  ;;  %v1114_v52 = vadd.f32 %v1045_v26, %v450_v16  ;;  %v1117_v6 = vadd.f32 %v1045_v26, %v451_v59 }
 0x191   :  { %v1124_v13 = vadd.f32 %v1047_v27, %v452_v0  ;;  %v1127_v14 = vadd.f32 %v1047_v27, %v453_v1  ;;  %v1130_v15 = vadd.f32 %v1047_v27, %v454_v2 }
 0x192   :  { %v1133_v26 = vadd.f32 %v1047_v27, %v455_v23 }
 0x193   :  { %v518_v51 = vmax.f32 %v1108_v43, %v1124_v13  ;;  %v540_v53 = vmax.f32 %v1114_v52, %v1130_v15 }
 0x194   :  { %v752_v63 = vpop.eup %751 }
 0x195   :  { %v406_v5 = vmul.f32 %v752_v63, %v376_v34  ;;  %v407_v36 = vmul.f32 %v752_v63, %v377_v46  ;;  %v408_v7 = vmul.f32 %v752_v63, %v378_v50  ;;  %v409_v8 = vmul.f32 %v752_v63, %v379_v56 }
 0x196   :  { %v529_v34 = vmax.f32 %v1111_v42, %v1127_v14 }
 0x197   :  { %v456_v9 = vmul.f32 %v1043_v24, %v406_v5  ;;  %v457_v21 = vmul.f32 %v1043_v24, %v407_v36  ;;  %v458_v10 = vmul.f32 %v1043_v24, %v408_v7  ;;  %v459_v11 = vmul.f32 %v1043_v24, %v409_v8 }
 0x198   :  { %v754_v12 = vpop.eup %753 }
 0x199   :  { %v410_v17 = vmul.f32 %v754_v12, %v380_v61  ;;  %v411_v18 = vmul.f32 %v754_v12, %v381_v57  ;;  %v412_v19 = vmul.f32 %v754_v12, %v382_v3  ;;  %v413_v20 = vmul.f32 %v754_v12, %v383_v4  ;;  %v756_v44 = vpop.eup %755 }
 0x19a   :  { %v1136_v32 = vadd.f32 %v1051_v30, %v456_v9  ;;  %v1139_v24 = vadd.f32 %v1051_v30, %v457_v21  ;;  %v1142_v38 = vadd.f32 %v1051_v30, %v458_v10  ;;  %v1145_v39 = vadd.f32 %v1051_v30, %v459_v11 }
 0x19b   :  { %v460_v27 = vmul.f32 %v1049_v28, %v410_v17  ;;  %v461_v47 = vmul.f32 %v1049_v28, %v411_v18  ;;  %v462_v48 = vmul.f32 %v1049_v28, %v412_v19  ;;  %v463_v49 = vmul.f32 %v1049_v28, %v413_v20 }
 0x19c   :  { %v551_v30 = vmax.f32 %v1117_v6, %v1133_v26  ;;  %v414_v46 = vmul.f32 %v756_v44, %v384_v60  ;;  %v415_v50 = vmul.f32 %v756_v44, %v385_v22  ;;  %v416_v56 = vmul.f32 %v756_v44, %v386_v29  ;;  %v496_v22 = vpop.permute.xlu0 %495 }
 0x19d   :  { %v1159_v40 = vadd.f32 %v491_v37, %v460_v27  ;;  %v1161_v54 = vadd.f32 %v491_v37, %v461_v47  ;;  %v1163_v45 = vadd.f32 %v491_v37, %v462_v48  ;;  %v1165_v28 = vadd.f32 %v491_v37, %v463_v49 }
 0x19e   :  { %v417_v61 = vmul.f32 %v756_v44, %v387_v35  ;;  %v519_v33 = vmax.f32 %v518_v51, %v1136_v32  ;;  %v530_v62 = vmax.f32 %v529_v34, %v1139_v24  ;;  %v541_v41 = vmax.f32 %v540_v53, %v1142_v38 }
 0x19f   :  { %v552_v55 = vmax.f32 %v551_v30, %v1145_v39  ;;  %v464_v57 = vmul.f32 %v1053_v31, %v414_v46  ;;  %v465_v3 = vmul.f32 %v1053_v31, %v415_v50  ;;  %v466_v4 = vmul.f32 %v1053_v31, %v416_v56 }
 0x1a0   :  { %v467_v58 = vmul.f32 %v1053_v31, %v417_v61  ;;  %v520_v25 = vmax.f32 %v519_v33, %v1159_v40  ;;  %v531_v16 = vmax.f32 %v530_v62, %v1161_v54  ;;  %v542_v59 = vmax.f32 %v541_v41, %v1163_v45 }
 0x1a1   :  { %v553_v60 = vmax.f32 %v552_v55, %v1165_v28  ;;  %v1179_v29 = vadd.f32 %v496_v22, %v464_v57  ;;  %v1181_v35 = vadd.f32 %v496_v22, %v465_v3  ;;  %v1183_v63 = vadd.f32 %v496_v22, %v466_v4 }
 0x1a2   :  { %v1185_v0 = vadd.f32 %v496_v22, %v467_v58 }
 0x1a3   :  { %v521_v31 = vsel %vm289_vm1, %v1179_v29, -inf  ;;  %v532_v1 = vsel %vm289_vm1, %v1181_v35, -inf  ;;  %v543_v2 = vsel %vm289_vm1, %v1183_v63, -inf }
 0x1a4   :  { %v554_v23 = vsel %vm289_vm1, %v1185_v0, -inf  ;;  %v522_v5 = vmax.f32 %v520_v25, %v521_v31  ;;  %v533_v36 = vmax.f32 %v531_v16, %v532_v1  ;;  %v544_v7 = vmax.f32 %v542_v59, %v543_v2 }
 0x1a5   :  { %v555_v8 = vmax.f32 %v553_v60, %v554_v23 }
 0x1a6   :  { %v523_v9 = vrot.slane %v522_v5, 4  ;;  %v534_v21 = vrot.slane %v533_v36, 4  ;;  %v545_v10 = vrot.slane %v544_v7, 4 }
 0x1a7   :  { %v556_v11 = vrot.slane %v555_v8, 4 }
 0x1a8   :  { %v524_v12 = vmax.f32 %v522_v5, %v523_v9  ;;  %v535_v17 = vmax.f32 %v533_v36, %v534_v21  ;;  %v546_v18 = vmax.f32 %v544_v7, %v545_v10 }
 0x1a9   :  { %v557_v19 = vmax.f32 %v555_v8, %v556_v11 }
 0x1aa   :  { %v525_v20 = vrot.slane %v524_v12, 2  ;;  %v536_v44 = vrot.slane %v535_v17, 2  ;;  %v547_v27 = vrot.slane %v546_v18, 2 }
 0x1ab   :  { %v558_v47 = vrot.slane %v557_v19, 2 }
 0x1ac   :  { %v526_v48 = vmax.f32 %v524_v12, %v525_v20  ;;  %v537_v49 = vmax.f32 %v535_v17, %v536_v44  ;;  %v548_v51 = vmax.f32 %v546_v18, %v547_v27 }
 0x1ad   :  { %v559_v34 = vmax.f32 %v557_v19, %v558_v47 }
 0x1ae   :  { %v527_v53 = vrot.slane %v526_v48, 1  ;;  %v538_v30 = vrot.slane %v537_v49, 1  ;;  %v549_v37 = vrot.slane %v548_v51, 1 }
 0x1af   :  { %v560_v46 = vrot.slane %v559_v34, 1 }
 0x1b0   :  { %v528_v50 = vmax.f32 %v526_v48, %v527_v53  ;;  %v539_v56 = vmax.f32 %v537_v49, %v538_v30  ;;  %v550_v61 = vmax.f32 %v548_v51, %v549_v37 }
 0x1b1   :  { %v561_v33 = vmax.f32 %v559_v34, %v560_v46 }
 0x1b2   :  { %v562_v62 = vsub.f32 %v1108_v43, %v528_v50  ;;  %v563_v41 = vsub.f32 %v1111_v42, %v539_v56  ;;  %v564_v55 = vsub.f32 %v1114_v52, %v550_v61  ;;  %v566_v3 = vsub.f32 %v1124_v13, %v528_v50 }
 0x1b3   :  { %v565_v57 = vsub.f32 %v1117_v6, %v561_v33  ;;  %v567_v4 = vsub.f32 %v1127_v14, %v539_v56  ;;  %v568_v58 = vsub.f32 %v1130_v15, %v550_v61  ;;  %v569_v60 = vsub.f32 %v1133_v26, %v561_v33 }
 0x1b4   :  { %v582_v25 = vmul.f32 1.442695, %v562_v62  ;;  %v584_v16 = vmul.f32 1.442695, %v563_v41  ;;  %v586_v59 = vmul.f32 1.442695, %v564_v55  ;;  %v570_v43 = vsub.f32 %v1136_v32, %v528_v50 }
 0x1b5   :  { %v588_v22 = vmul.f32 1.442695, %v565_v57  ;;  %v590_v42 = vmul.f32 1.442695, %v566_v3  ;;  %v571_v52 = vsub.f32 %v1139_v24, %v539_v56  ;;  %v592_v6 = vmul.f32 1.442695, %v567_v4 }
 0x1b6   :  { %757 = vpow2.f32 %v582_v25  ;;  %v572_v13 = vsub.f32 %v1142_v38, %v550_v61  ;;  %v594_v14 = vmul.f32 1.442695, %v568_v58  ;;  %v573_v15 = vsub.f32 %v1145_v39, %v561_v33 }
 0x1b7   :  { %759 = vpow2.f32 %v584_v16  ;;  %v596_v31 = vmul.f32 1.442695, %v569_v60  ;;  %v574_v1 = vsub.f32 %v1159_v40, %v528_v50  ;;  %v598_v26 = vmul.f32 1.442695, %v570_v43 }
 0x1b8   :  { %761 = vpow2.f32 %v586_v59  ;;  %v575_v32 = vsub.f32 %v1161_v54, %v539_v56  ;;  %v600_v2 = vmul.f32 1.442695, %v571_v52  ;;  %v576_v24 = vsub.f32 %v1163_v45, %v550_v61 }
 0x1b9   :  { %763 = vpow2.f32 %v588_v22  ;;  %v602_v23 = vmul.f32 1.442695, %v572_v13  ;;  %v577_v38 = vsub.f32 %v1165_v28, %v561_v33  ;;  %v604_v5 = vmul.f32 1.442695, %v573_v15 }
 0x1ba   :  { %765 = vpow2.f32 %v590_v42  ;;  %v578_v39 = vsub.f32 %v1179_v29, %v528_v50  ;;  %v606_v36 = vmul.f32 1.442695, %v574_v1  ;;  %v579_v40 = vsub.f32 %v1181_v35, %v539_v56 }
 0x1bb   :  { %767 = vpow2.f32 %v592_v6  ;;  %v608_v7 = vmul.f32 1.442695, %v575_v32  ;;  %v580_v54 = vsub.f32 %v1183_v63, %v550_v61  ;;  %v610_v45 = vmul.f32 1.442695, %v576_v24 }
 0x1bc   :  { %769 = vpow2.f32 %v594_v14  ;;  %v581_v28 = vsub.f32 %v1185_v0, %v561_v33  ;;  %v612_v21 = vmul.f32 1.442695, %v577_v38  ;;  %v614_v29 = vmul.f32 1.442695, %v578_v39 }
 0x1bd   :  { %771 = vpow2.f32 %v596_v31  ;;  %v616_v35 = vmul.f32 1.442695, %v579_v40  ;;  %v618_v63 = vmul.f32 1.442695, %v580_v54 }
 0x1be   :  { %773 = vpow2.f32 %v598_v26  ;;  %v620_v18 = vmul.f32 1.442695, %v581_v28 }
 0x1bf   :  { %775 = vpow2.f32 %v600_v2 }
 0x1c0   :  { %v1213_v8 = vpop.eup %757  ;;  %777 = vpow2.f32 %v602_v23 }
 0x1c1   :  { %v1216_v9 = vpop.eup %759  ;;  %779 = vpow2.f32 %v604_v5 }
 0x1c2   :  { %v1219_v10 = vpop.eup %761  ;;  %781 = vpow2.f32 %v606_v36 }
 0x1c3   :  { %v1221_v11 = vpop.eup %763  ;;  %783 = vpow2.f32 %v608_v7 }
 0x1c4   :  { %v1223_v12 = vpop.eup %765  ;;  %785 = vpow2.f32 %v610_v45 }
 0x1c5   :  { %v1225_v17 = vpop.eup %767  ;;  %787 = vpow2.f32 %v612_v21  ;;  %v622_v0 = vadd.f32 %v1223_v12, %v1213_v8 }
 0x1c6   :  { %v1227_v19 = vpop.eup %769  ;;  %789 = vpow2.f32 %v614_v29  ;;  %v633_v44 = vadd.f32 %v1225_v17, %v1216_v9 }
 0x1c7   :  { %v1231_v20 = vpop.eup %771  ;;  %791 = vpow2.f32 %v616_v35  ;;  %v644_v47 = vadd.f32 %v1227_v19, %v1219_v10 }
 0x1c8   :  { %v1235_v27 = vpop.eup %773  ;;  %793 = vpow2.f32 %v618_v63  ;;  %v655_v49 = vadd.f32 %v1231_v20, %v1221_v11 }
 0x1c9   :  { %v1239_v48 = vpop.eup %775  ;;  %795 = vpow2.f32 %v620_v18  ;;  %v623_v34 = vadd.f32 %v1235_v27, %v622_v0 }
 0x1ca   :  { %v1243_v51 = vpop.eup %777  ;;  %v634_v30 = vadd.f32 %v1239_v48, %v633_v44 }
 0x1cb   :  { %v1246_v53 = vpop.eup %779  ;;  %v645_v46 = vadd.f32 %v1243_v51, %v644_v47 }
 0x1cc   :  { %v782_v37 = vpop.eup %781  ;;  %v656_v56 = vadd.f32 %v1246_v53, %v655_v49 }
 0x1cd   :  { %v784_v50 = vpop.eup %783  ;;  %v624_v33 = vadd.f32 %v782_v37, %v623_v34 }
 0x1ce   :  { %v786_v61 = vpop.eup %785  ;;  %v635_v41 = vadd.f32 %v784_v50, %v634_v30 }
 0x1cf   :  { %v1251_v62 = vpop.eup %787  ;;  %v646_v57 = vadd.f32 %v786_v61, %v645_v46 }
 0x1d0   :  { %v1253_v55 = vpop.eup %789  ;;  %v657_v58 = vadd.f32 %v1251_v62, %v656_v56 }
 0x1d1   :  { %v1255_v3 = vpop.eup %791  ;;  %v625_v4 = vsel %vm289_vm1, %v1253_v55, 0.0 }
 0x1d2   :  { %v1260_v25 = vpop.eup %793  ;;  %v626_v16 = vadd.f32 %v625_v4, %v624_v33  ;;  %v636_v59 = vsel %vm289_vm1, %v1255_v3, 0.0 }
 0x1d3   :  { %v1264_v60 = vpop.eup %795  ;;  %v637_v22 = vadd.f32 %v636_v59, %v635_v41  ;;  %v647_v43 = vsel %vm289_vm1, %v1260_v25, 0.0 }
 0x1d4   :  { %v627_v42 = vrot.slane %v626_v16, 4  ;;  %v648_v52 = vadd.f32 %v647_v43, %v646_v57  ;;  %v658_v6 = vsel %vm289_vm1, %v1264_v60, 0.0 }
 0x1d5   :  { %v638_v13 = vrot.slane %v637_v22, 4  ;;  %v659_v14 = vadd.f32 %v658_v6, %v657_v58 }
 0x1d6   :  { %v628_v15 = vadd.f32 %v627_v42, %v626_v16  ;;  %v649_v31 = vrot.slane %v648_v52, 4 }
 0x1d7   :  { %v639_v1 = vadd.f32 %v638_v13, %v637_v22  ;;  %v660_v26 = vrot.slane %v659_v14, 4 }
 0x1d8   :  { %v629_v32 = vrot.slane %v628_v15, 2  ;;  %v650_v2 = vadd.f32 %v649_v31, %v648_v52 }
 0x1d9   :  { %v640_v24 = vrot.slane %v639_v1, 2  ;;  %v661_v23 = vadd.f32 %v660_v26, %v659_v14 }
 0x1da   :  { %v630_v38 = vadd.f32 %v629_v32, %v628_v15  ;;  %v651_v5 = vrot.slane %v650_v2, 2 }
 0x1db   :  { %v641_v39 = vadd.f32 %v640_v24, %v639_v1  ;;  %v662_v36 = vrot.slane %v661_v23, 2 }
 0x1dc   :  { %v631_v40 = vrot.slane %v630_v38, 1  ;;  %v652_v7 = vadd.f32 %v651_v5, %v650_v2 }
 0x1dd   :  { %v642_v54 = vrot.slane %v641_v39, 1  ;;  %v663_v45 = vadd.f32 %v662_v36, %v661_v23 }
 0x1de   :  { %v632_v28 = vadd.f32 %v631_v40, %v630_v38  ;;  %v653_v21 = vrot.slane %v652_v7, 1 }
 0x1df   :  { %v643_v29 = vadd.f32 %v642_v54, %v641_v39  ;;  %v664_v35 = vrot.slane %v663_v45, 1 }
 0x1e0   :  { %v654_v63 = vadd.f32 %v653_v21, %v652_v7  ;;  %797 = vrcp.f32 %v632_v28 }
 0x1e1   :  { %v665_v18 = vadd.f32 %v664_v35, %v663_v45  ;;  %799 = vrcp.f32 %v643_v29 }
 0x1e2   :  { %801 = vrcp.f32 %v654_v63 }
 0x1e3   :  { %803 = vrcp.f32 %v665_v18 }
 0x1ea   :  { %v798_v0 = vpop.eup %797 }
 0x1eb   :  { %v800_v44 = vpop.eup %799  ;;  %v670_v47 = vmul.f32 %v798_v0, %v1213_v8  ;;  %v674_v49 = vmul.f32 %v798_v0, %v1223_v12  ;;  %v678_v34 = vmul.f32 %v798_v0, %v1235_v27  ;;  %v682_v30 = vmul.f32 %v798_v0, %v782_v37 }
 0x1ec   :  { %v802_v46 = vpop.eup %801  ;;  %v671_v56 = vmul.f32 %v800_v44, %v1216_v9  ;;  %v675_v33 = vmul.f32 %v800_v44, %v1225_v17  ;;  %v679_v41 = vmul.f32 %v800_v44, %v1239_v48  ;;  %v683_v57 = vmul.f32 %v800_v44, %v784_v50 }
 0x1ed   :  { %v804_v4 = vpop.eup %803  ;;  %v672_v58 = vmul.f32 %v802_v46, %v1219_v10  ;;  %v676_v16 = vmul.f32 %v802_v46, %v1227_v19  ;;  %v680_v8 = vmul.f32 %v802_v46, %v1243_v51  ;;  %v684_v59 = vmul.f32 %v802_v46, %v786_v61  ;;  %690 = vst [vmem:[%s1352_s5] sm:$0xff] %v670_v47 }
 0x1ee   :  { %692 = vst [vmem:[%s1352_s5 + $0x10] sm:$0xff] %v674_v49  ;;  %694 = vst [vmem:[%s1352_s5 + $0x20] sm:$0xff] %v678_v34  ;;  %v673_v9 = vmul.f32 %v804_v4, %v1221_v11  ;;  %v677_v10 = vmul.f32 %v804_v4, %v1231_v20  ;;  %v681_v12 = vmul.f32 %v804_v4, %v1246_v53 }
 0x1ef   :  { %696 = vst [vmem:[%s1352_s5 + $0x30] sm:$0xff] %v682_v30  ;;  %v685_v17 = vmul.f32 %v804_v4, %v1251_v62  ;;  %691 = vst [vmem:[%s1352_s5 + $0x8] sm:$0xff] %v671_v56  ;;  %v686_v11 = vmul.f32 %v798_v0, %v1253_v55  ;;  %v687_v19 = vmul.f32 %v800_v44, %v1255_v3 }
 0x1f0   :  { %693 = vst [vmem:[%s1352_s5 + $0x18] sm:$0xff] %v675_v33  ;;  %695 = vst [vmem:[%s1352_s5 + $0x28] sm:$0xff] %v679_v41  ;;  %v688_v20 = vmul.f32 %v802_v46, %v1260_v25  ;;  %v689_v27 = vmul.f32 %v804_v4, %v1264_v60 }
 0x1f1   :  { %697 = vst [vmem:[%s1352_s5 + $0x38] sm:$0xff] %v683_v57  ;;  %725 = vst [vmem:[%s1352_s5 + $0x50] sm:$0xff] %v672_v58 }
 0x1f2   :  { %727 = vst [vmem:[%s1352_s5 + $0x60] sm:$0xff] %v676_v16  ;;  %729 = vst [vmem:[%s1352_s5 + $0x70] sm:$0xff] %v680_v8 }
 0x1f3   :  { %731 = vst [vmem:[%s1352_s5 + $0x80] sm:$0xff] %v684_v59  ;;  %726 = vst [vmem:[%s1352_s5 + $0x58] sm:$0xff] %v673_v9 }
 0x1f4   :  { %728 = vst [vmem:[%s1352_s5 + $0x68] sm:$0xff] %v677_v10  ;;  %730 = vst [vmem:[%s1352_s5 + $0x78] sm:$0xff] %v681_v12 }
 0x1f5   :  { %732 = vst [vmem:[%s1352_s5 + $0x88] sm:$0xff] %v685_v17  ;;  %698 = vst [vmem:[%s1352_s5 + $0x40] sm:$0xf] %v686_v11 }
 0x1f6   :  { %699 = vst [vmem:[%s1352_s5 + $0x48] sm:$0xf] %v687_v19  ;;  %733 = vst [vmem:[%s1352_s5 + $0x90] sm:$0xf] %v688_v20 }
 0x1f7   :  { %734 = vst [vmem:[%s1352_s5 + $0x98] sm:$0xf] %v689_v27 }

// kernel: attention_global_forward.4
= control target key start
LH: loop header
LB: loop body
LE: loop exit
PB: predicated region body
PF: predicated region fallthrough
CT: control target
= control target key end

     0   :  { %vm75_vm0 = vcmask 130048   ;;  %v7357_v3 = vmov 0   ;;  %vm1996_vm1 = vcmask 64512   ;;  %vm205_vm2 = vcmask 261120   ;;  %s8730_s0 = inlined_call_operand.vmem [shape: f32[16,16,32], index: 0, kind: input, shape index: {}]   ;;  %s8731_s1 = inlined_call_operand.vmem [shape: f32[64,16], index: 1, kind: input, shape index: {}]   ;;  %s8732_s3 = inlined_call_operand.vmem [shape: f32[64,1], index: 3, kind: input, shape index: {}]   ;;  %s8733_s2 = inlined_call_operand.vmem [shape: f32[64,8], index: 2, kind: input, shape index: {}]   ;;  %s8734_s4 = inlined_call_operand.vmem [shape: f32[16,2,8,32], index: 4, kind: output, shape index: {}]  }
   0x1   :  { %v73_v0 = vld [vmem:[%s8730_s0] sm:$0xff]  ;;  %v74_v1 = vld [vmem:[%s8730_s0 + $0x8] sm:$0xff]  ;;  %v5612_v2 = vld [vmem:[%s8730_s0 + $0x10] sm:$0xff]  ;;  %6819 = vset.pattern.permute.xlu0 %v7357_v3  ;;  %6820 = vset.pattern.permute.xlu1 %v7357_v3 }
   0x2   :  { %v6753_v4 = vpack.c.bf16 %v74_v1, %v73_v0  ;;  %v5613_v5 = vld [vmem:[%s8730_s0 + $0x18] sm:$0xff]  ;;  %v7399_v6 = vld [vmem:[%s8731_s1] sm:$0xff]  ;;  %v5632_v8 = vld [vmem:[%s8730_s0 + $0x30] sm:$0xff]  ;;  %v7358_v1 = vmov 0.0  }
   0x3   :  { %v6757_v7 = vpack.c.bf16 %v5613_v5, %v5612_v2  ;;  %6245 = vmatprep.mubr.msk.f32.mxu0 %vm75_vm0, %v7399_v6  ;;  %6261 = vmatprep.mubr.msk.f32.mxu1 %vm75_vm0, %v7399_v6  ;;  %v5633_v9 = vld [vmem:[%s8730_s0 + $0x38] sm:$0xff]  ;;  %v7414_v10 = vld [vmem:[%s8731_s1 + $0x8] sm:$0xff]  ;;  %v5622_v12 = vld [vmem:[%s8730_s0 + $0x20] sm:$0xff] }
   0x4   :  { %6754 = vmatprep.subr.bf16.mxu0 %v6753_v4  ;;  %v6765_v11 = vpack.c.bf16 %v5633_v9, %v5632_v8  ;;  %v5623_v13 = vld [vmem:[%s8730_s0 + $0x28] sm:$0xff]  ;;  %v7425_v14 = vld [vmem:[%s8731_s1 + $0x10] sm:$0xff]  ;;  %v5653_v17 = vld [vmem:[%s8730_s0 + $0x58] sm:$0xff] }
   0x5   :  { %6758 = vmatprep.subr.bf16.mxu1 %v6757_v7  ;;  %6756 = vmatpush3.bf16.msra.mxu0 %v6753_v4  ;;  %v6761_v15 = vpack.c.bf16 %v5623_v13, %v5622_v12  ;;  %v5652_v16 = vld [vmem:[%s8730_s0 + $0x50] sm:$0xff]  ;;  %v5642_v19 = vld [vmem:[%s8730_s0 + $0x40] sm:$0xff]  ;;  %v5643_v20 = vld [vmem:[%s8730_s0 + $0x48] sm:$0xff] }
   0x6   :  { %6760 = vmatpush3.bf16.msra.mxu1 %v6757_v7  ;;  %v6773_v18 = vpack.c.bf16 %v5653_v17, %v5652_v16  ;;  %v6769_v21 = vpack.c.bf16 %v5643_v20, %v5642_v19  ;;  %v7448_v22 = vld [vmem:[%s8731_s1 + $0x18] sm:$0xff]  ;;  %v7455_v23 = vld [vmem:[%s8731_s1 + $0x20] sm:$0xff]  ;;  %v7472_v26 = vld [vmem:[%s8731_s1 + $0x28] sm:$0xff] }
   0x7   :  { %6766 = vmatprep.subr.bf16.mxu1 %v6765_v11  ;;  %6762 = vmatprep.subr.bf16.mxu0 %v6761_v15  ;;  %v25_v24 = vld [vmem:[%s8732_s3] sm:$0xff]  ;;  %v7479_v27 = vld [vmem:[%s8731_s1 + $0x30] sm:$0xff]  ;;  %v26_v28 = vld [vmem:[%s8732_s3 + $0x8] sm:$0xff] }
   0x8   :  { %6246 = vmatmul.mubr.msk.f32.vlgmr.msra.gmra.mrb[0].mxu0 %vm75_vm0, %v7414_v10  ;;  %v29_v25 = vld [vmem:[%s8732_s3 + $0x20] sm:$0xff]  ;;  %35 = vperm.xlu0 %6819, %v25_v24   ;;  %v30_v29 = vld [vmem:[%s8732_s3 + $0x28] sm:$0xff]  ;;  %v7496_v30 = vld [vmem:[%s8731_s1 + $0x38] sm:$0xff] }
   0x9   :  { %6262 = vmatmul.mubr.msk.f32.vlgmr.msra.gmra.mrb[0].mxu1 %vm75_vm0, %v7414_v10  ;;  %6248 = vmatprep.mubr.msk.f32.mxu0 %vm75_vm0, %v7425_v14  ;;  %v27_v31 = vld [vmem:[%s8732_s3 + $0x10] sm:$0xff]  ;;  %v5673_v33 = vld [vmem:[%s8730_s0 + $0x78] sm:$0xff]  ;;  %v5662_v35 = vld [vmem:[%s8730_s0 + $0x60] sm:$0xff] }
   0xa   :  { %6264 = vmatprep.mubr.msk.f32.mxu1 %vm75_vm0, %v7425_v14  ;;  %6768 = vmatpush3.bf16.msra.mxu1 %v6765_v11  ;;  %v5672_v32 = vld [vmem:[%s8730_s0 + $0x70] sm:$0xff]  ;;  %v5663_v36 = vld [vmem:[%s8730_s0 + $0x68] sm:$0xff]  ;;  %v28_v39 = vld [vmem:[%s8732_s3 + $0x18] sm:$0xff] }
   0xb   :  { %6764 = vmatpush3.bf16.msra.mxu0 %v6761_v15  ;;  %6774 = vmatprep.subr.bf16.mxu1 %v6773_v18  ;;  %v31_v34 = vld [vmem:[%s8732_s3 + $0x30] sm:$0xff]  ;;  %v6781_v37 = vpack.c.bf16 %v5673_v33, %v5672_v32  ;;  %v6777_v38 = vpack.c.bf16 %v5663_v36, %v5662_v35  ;;  %v32_v40 = vld [vmem:[%s8732_s3 + $0x38] sm:$0xff]  ;;  %v5682_v43 = vld [vmem:[%s8730_s0 + $0x80] sm:$0xff] }
   0xc   :  { %6249 = vmatmul.mubr.msk.f32.gmra.mrb[2].mxu0 %vm75_vm0, %v7448_v22  ;;  %6770 = vmatprep.subr.bf16.mxu0 %v6769_v21  ;;  %v5692_v41 = vld [vmem:[%s8730_s0 + $0x90] sm:$0xff]  ;;  %v5693_v42 = vld [vmem:[%s8730_s0 + $0x98] sm:$0xff]  ;;  %v5683_v44 = vld [vmem:[%s8730_s0 + $0x88] sm:$0xff] }
   0xd   :  { %6265 = vmatmul.mubr.msk.f32.gmra.mrb[2].mxu1 %vm75_vm0, %v7448_v22  ;;  %6251 = vmatprep.mubr.msk.f32.mxu0 %vm75_vm0, %v7455_v23  ;;  %v6789_v45 = vpack.c.bf16 %v5693_v42, %v5692_v41  ;;  %v6785_v46 = vpack.c.bf16 %v5683_v44, %v5682_v43  ;;  %v5712_v47 = vld [vmem:[%s8730_s0 + $0xb0] sm:$0xff]  ;;  %v5713_v48 = vld [vmem:[%s8730_s0 + $0xb8] sm:$0xff]  ;;  %v5702_v49 = vld [vmem:[%s8730_s0 + $0xa0] sm:$0xff] }
   0xe   :  { %6267 = vmatprep.mubr.msk.f32.mxu1 %vm75_vm0, %v7455_v23  ;;  %55 = vperm.xlu1 %6820, %v29_v25   ;;  %v5703_v50 = vld [vmem:[%s8730_s0 + $0xa8] sm:$0xff]  ;;  %v6797_v51 = vpack.c.bf16 %v5713_v48, %v5712_v47  ;;  %v5732_v53 = vld [vmem:[%s8730_s0 + $0xd0] sm:$0xff]  ;;  %v5733_v54 = vld [vmem:[%s8730_s0 + $0xd8] sm:$0xff] }
   0xf   :  { %40 = vperm.xlu0 %6819, %v26_v28   ;;  %v6793_v52 = vpack.c.bf16 %v5703_v50, %v5702_v49  ;;  %v5722_v55 = vld [vmem:[%s8730_s0 + $0xc0] sm:$0xff]  ;;  %v5723_v56 = vld [vmem:[%s8730_s0 + $0xc8] sm:$0xff]  ;;  %v6805_v57 = vpack.c.bf16 %v5733_v54, %v5732_v53  ;;  %v5752_v59 = vld [vmem:[%s8730_s0 + $0xf0] sm:$0xff] }
  0x10   :  { %6252 = vmatmul.mubr.msk.f32.gmra.mrb[4].mxu0 %vm75_vm0, %v7472_v26  ;;  %v6801_v58 = vpack.c.bf16 %v5723_v56, %v5722_v55  ;;  %v5753_v60 = vld [vmem:[%s8730_s0 + $0xf8] sm:$0xff]  ;;  %v5742_v61 = vld [vmem:[%s8730_s0 + $0xe0] sm:$0xff]  ;;  %v5743_v62 = vld [vmem:[%s8730_s0 + $0xe8] sm:$0xff] }
  0x11   :  { %6268 = vmatmul.mubr.msk.f32.gmra.mrb[4].mxu1 %vm75_vm0, %v7472_v26  ;;  %6254 = vmatprep.mubr.msk.f32.mxu0 %vm75_vm0, %v7479_v27  ;;  %v6813_v63 = vpack.c.bf16 %v5753_v60, %v5752_v59  ;;  %v6809_v0 = vpack.c.bf16 %v5743_v62, %v5742_v61  ;;  %v7799_v2 = vld [vmem:[%s8733_s2] sm:$0xff]  ;;  %v7815_v4 = vld [vmem:[%s8733_s2 + $0x8] sm:$0xff]  ;;  %v7832_v7 = vld [vmem:[%s8733_s2 + $0x30] sm:$0xff] }
  0x12   :  { %6270 = vmatprep.mubr.msk.f32.mxu1 %vm75_vm0, %v7479_v27  ;;  %60 = vperm.xlu1 %6820, %v30_v29   ;;  %v7804_v3 = vld [vmem:[%s8733_s2 + $0x20] sm:$0xff]  ;;  %v7822_v5 = vld [vmem:[%s8733_s2 + $0x28] sm:$0xff]  ;;  %v7843_v8 = vld [vmem:[%s8733_s2 + $0x18] sm:$0xff] }
  0x13   :  { %45 = vperm.xlu0 %6819, %v27_v31   ;;  %v7850_v9 = vld [vmem:[%s8733_s2 + $0x38] sm:$0xff] }
  0x14   :  { %6255 = vmatmul.mubr.msk.f32.gmra.mrb[6].mxu0 %vm75_vm0, %v7496_v30 }
  0x15   :  { %6271 = vmatmul.mubr.msk.f32.gmra.mrb[6].mxu1 %vm75_vm0, %v7496_v30  ;;  %6277 = vmatprep.mubr.msk.f32.mxu0 %vm75_vm0, %v7399_v6 }
  0x16   :  { %6293 = vmatprep.mubr.msk.f32.mxu1 %vm75_vm0, %v7399_v6  ;;  %65 = vperm.xlu1 %6820, %v31_v34  }
  0x17   :  { %50 = vperm.xlu0 %6819, %v28_v39  }
  0x18   :  { %6278 = vmatmul.mubr.msk.f32.vlgmr.msra.gmra.mrb[8].mxu0 %vm75_vm0, %v7414_v10 }
  0x19   :  { %6294 = vmatmul.mubr.msk.f32.vlgmr.msra.gmra.mrb[8].mxu1 %vm75_vm0, %v7414_v10  ;;  %6280 = vmatprep.mubr.msk.f32.mxu0 %vm75_vm0, %v7425_v14 }
  0x1a   :  { %6296 = vmatprep.mubr.msk.f32.mxu1 %vm75_vm0, %v7425_v14  ;;  %6776 = vmatpush3.bf16.msra.mxu1 %v6773_v18 }
  0x1b   :  { %6772 = vmatpush3.bf16.msra.mxu0 %v6769_v21  ;;  %6782 = vmatprep.subr.bf16.mxu1 %v6781_v37 }
  0x1c   :  { %6281 = vmatmul.mubr.msk.f32.gmra.mrb[10].mxu0 %vm75_vm0, %v7448_v22  ;;  %6778 = vmatprep.subr.bf16.mxu0 %v6777_v38 }
  0x1d   :  { %6297 = vmatmul.mubr.msk.f32.gmra.mrb[10].mxu1 %vm75_vm0, %v7448_v22  ;;  %6283 = vmatprep.mubr.msk.f32.mxu0 %vm75_vm0, %v7455_v23 }
  0x1e   :  { %6299 = vmatprep.mubr.msk.f32.mxu1 %vm75_vm0, %v7455_v23  ;;  %70 = vperm.xlu1 %6820, %v32_v40  }
  0x20   :  { %6284 = vmatmul.mubr.msk.f32.gmra.mrb[12].mxu0 %vm75_vm0, %v7472_v26 }
  0x21   :  { %6300 = vmatmul.mubr.msk.f32.gmra.mrb[12].mxu1 %vm75_vm0, %v7472_v26  ;;  %6286 = vmatprep.mubr.msk.f32.mxu0 %vm75_vm0, %v7479_v27 }
  0x22   :  { %6302 = vmatprep.mubr.msk.f32.mxu1 %vm75_vm0, %v7479_v27 }
  0x24   :  { %6287 = vmatmul.mubr.msk.f32.gmra.mrb[14].mxu0 %vm75_vm0, %v7496_v30 }
  0x25   :  { %6303 = vmatmul.mubr.msk.f32.gmra.mrb[14].mxu1 %vm75_vm0, %v7496_v30  ;;  %6309 = vmatprep.mubr.msk.f32.mxu0 %vm75_vm0, %v7399_v6 }
  0x26   :  { %6325 = vmatprep.mubr.msk.f32.mxu1 %vm75_vm0, %v7399_v6 }
  0x28   :  { %6310 = vmatmul.mubr.msk.f32.vlgmr.msra.gmra.mrb[16].mxu0 %vm75_vm0, %v7414_v10 }
  0x29   :  { %6326 = vmatmul.mubr.msk.f32.vlgmr.msra.gmra.mrb[16].mxu1 %vm75_vm0, %v7414_v10  ;;  %6312 = vmatprep.mubr.msk.f32.mxu0 %vm75_vm0, %v7425_v14 }
  0x2a   :  { %6328 = vmatprep.mubr.msk.f32.mxu1 %vm75_vm0, %v7425_v14  ;;  %6784 = vmatpush3.bf16.msra.mxu1 %v6781_v37 }
  0x2b   :  { %6780 = vmatpush3.bf16.msra.mxu0 %v6777_v38  ;;  %6790 = vmatprep.subr.bf16.mxu1 %v6789_v45 }
  0x2c   :  { %6313 = vmatmul.mubr.msk.f32.gmra.mrb[18].mxu0 %vm75_vm0, %v7448_v22  ;;  %6786 = vmatprep.subr.bf16.mxu0 %v6785_v46 }
  0x2d   :  { %6329 = vmatmul.mubr.msk.f32.gmra.mrb[18].mxu1 %vm75_vm0, %v7448_v22  ;;  %6315 = vmatprep.mubr.msk.f32.mxu0 %vm75_vm0, %v7455_v23 }
  0x2e   :  { %6331 = vmatprep.mubr.msk.f32.mxu1 %vm75_vm0, %v7455_v23 }
  0x30   :  { %6316 = vmatmul.mubr.msk.f32.gmra.mrb[20].mxu0 %vm75_vm0, %v7472_v26 }
  0x31   :  { %6332 = vmatmul.mubr.msk.f32.gmra.mrb[20].mxu1 %vm75_vm0, %v7472_v26  ;;  %6318 = vmatprep.mubr.msk.f32.mxu0 %vm75_vm0, %v7479_v27 }
  0x32   :  { %6334 = vmatprep.mubr.msk.f32.mxu1 %vm75_vm0, %v7479_v27 }
  0x34   :  { %6319 = vmatmul.mubr.msk.f32.gmra.mrb[22].mxu0 %vm75_vm0, %v7496_v30 }
  0x35   :  { %6335 = vmatmul.mubr.msk.f32.gmra.mrb[22].mxu1 %vm75_vm0, %v7496_v30  ;;  %6341 = vmatprep.mubr.msk.f32.mxu0 %vm75_vm0, %v7399_v6 }
  0x36   :  { %6357 = vmatprep.mubr.msk.f32.mxu1 %vm75_vm0, %v7399_v6 }
  0x38   :  { %6342 = vmatmul.mubr.msk.f32.vlgmr.msra.gmra.mrb[24].mxu0 %vm75_vm0, %v7414_v10 }
  0x39   :  { %6358 = vmatmul.mubr.msk.f32.vlgmr.msra.gmra.mrb[24].mxu1 %vm75_vm0, %v7414_v10  ;;  %6344 = vmatprep.mubr.msk.f32.mxu0 %vm75_vm0, %v7425_v14 }
  0x3a   :  { %6360 = vmatprep.mubr.msk.f32.mxu1 %vm75_vm0, %v7425_v14  ;;  %6792 = vmatpush3.bf16.msra.mxu1 %v6789_v45 }
  0x3b   :  { %6788 = vmatpush3.bf16.msra.mxu0 %v6785_v46  ;;  %6798 = vmatprep.subr.bf16.mxu1 %v6797_v51 }
  0x3c   :  { %6345 = vmatmul.mubr.msk.f32.gmra.mrb[26].mxu0 %vm75_vm0, %v7448_v22  ;;  %6794 = vmatprep.subr.bf16.mxu0 %v6793_v52 }
  0x3d   :  { %6361 = vmatmul.mubr.msk.f32.gmra.mrb[26].mxu1 %vm75_vm0, %v7448_v22  ;;  %6347 = vmatprep.mubr.msk.f32.mxu0 %vm75_vm0, %v7455_v23 }
  0x3e   :  { %6363 = vmatprep.mubr.msk.f32.mxu1 %vm75_vm0, %v7455_v23 }
  0x40   :  { %6348 = vmatmul.mubr.msk.f32.gmra.mrb[28].mxu0 %vm75_vm0, %v7472_v26 }
  0x41   :  { %6364 = vmatmul.mubr.msk.f32.gmra.mrb[28].mxu1 %vm75_vm0, %v7472_v26  ;;  %6350 = vmatprep.mubr.msk.f32.mxu0 %vm75_vm0, %v7479_v27 }
  0x42   :  { %6366 = vmatprep.mubr.msk.f32.mxu1 %vm75_vm0, %v7479_v27 }
  0x44   :  { %6351 = vmatmul.mubr.msk.f32.gmra.mrb[30].mxu0 %vm75_vm0, %v7496_v30 }
  0x45   :  { %6367 = vmatmul.mubr.msk.f32.gmra.mrb[30].mxu1 %vm75_vm0, %v7496_v30  ;;  %6373 = vmatprep.mubr.msk.f32.mxu0 %vm75_vm0, %v7399_v6 }
  0x46   :  { %6389 = vmatprep.mubr.msk.f32.mxu1 %vm75_vm0, %v7399_v6 }
  0x48   :  { %6374 = vmatmul.mubr.msk.f32.vlgmr.msra.gmra.mrb[32].mxu0 %vm75_vm0, %v7414_v10 }
  0x49   :  { %6390 = vmatmul.mubr.msk.f32.vlgmr.msra.gmra.mrb[32].mxu1 %vm75_vm0, %v7414_v10  ;;  %6376 = vmatprep.mubr.msk.f32.mxu0 %vm75_vm0, %v7425_v14 }
  0x4a   :  { %6392 = vmatprep.mubr.msk.f32.mxu1 %vm75_vm0, %v7425_v14  ;;  %6800 = vmatpush3.bf16.msra.mxu1 %v6797_v51 }
  0x4b   :  { %6796 = vmatpush3.bf16.msra.mxu0 %v6793_v52  ;;  %6806 = vmatprep.subr.bf16.mxu1 %v6805_v57 }
  0x4c   :  { %6377 = vmatmul.mubr.msk.f32.gmra.mrb[34].mxu0 %vm75_vm0, %v7448_v22  ;;  %6802 = vmatprep.subr.bf16.mxu0 %v6801_v58 }
  0x4d   :  { %6393 = vmatmul.mubr.msk.f32.gmra.mrb[34].mxu1 %vm75_vm0, %v7448_v22  ;;  %6379 = vmatprep.mubr.msk.f32.mxu0 %vm75_vm0, %v7455_v23 }
  0x4e   :  { %6395 = vmatprep.mubr.msk.f32.mxu1 %vm75_vm0, %v7455_v23 }
  0x50   :  { %6380 = vmatmul.mubr.msk.f32.gmra.mrb[36].mxu0 %vm75_vm0, %v7472_v26 }
  0x51   :  { %6396 = vmatmul.mubr.msk.f32.gmra.mrb[36].mxu1 %vm75_vm0, %v7472_v26  ;;  %6382 = vmatprep.mubr.msk.f32.mxu0 %vm75_vm0, %v7479_v27 }
  0x52   :  { %6398 = vmatprep.mubr.msk.f32.mxu1 %vm75_vm0, %v7479_v27 }
  0x54   :  { %6383 = vmatmul.mubr.msk.f32.gmra.mrb[38].mxu0 %vm75_vm0, %v7496_v30 }
  0x55   :  { %6399 = vmatmul.mubr.msk.f32.gmra.mrb[38].mxu1 %vm75_vm0, %v7496_v30  ;;  %6405 = vmatprep.mubr.msk.f32.mxu0 %vm75_vm0, %v7399_v6 }
  0x56   :  { %6421 = vmatprep.mubr.msk.f32.mxu1 %vm75_vm0, %v7399_v6 }
  0x58   :  { %6406 = vmatmul.mubr.msk.f32.vlgmr.msra.gmra.mrb[40].mxu0 %vm75_vm0, %v7414_v10 }
  0x59   :  { %6422 = vmatmul.mubr.msk.f32.vlgmr.msra.gmra.mrb[40].mxu1 %vm75_vm0, %v7414_v10  ;;  %6408 = vmatprep.mubr.msk.f32.mxu0 %vm75_vm0, %v7425_v14 }
  0x5a   :  { %6424 = vmatprep.mubr.msk.f32.mxu1 %vm75_vm0, %v7425_v14  ;;  %6808 = vmatpush3.bf16.msra.mxu1 %v6805_v57 }
  0x5b   :  { %6804 = vmatpush3.bf16.msra.mxu0 %v6801_v58  ;;  %6814 = vmatprep.subr.bf16.mxu1 %v6813_v63 }
  0x5c   :  { %6409 = vmatmul.mubr.msk.f32.gmra.mrb[42].mxu0 %vm75_vm0, %v7448_v22  ;;  %6810 = vmatprep.subr.bf16.mxu0 %v6809_v0 }
  0x5d   :  { %6425 = vmatmul.mubr.msk.f32.gmra.mrb[42].mxu1 %vm75_vm0, %v7448_v22  ;;  %6411 = vmatprep.mubr.msk.f32.mxu0 %vm75_vm0, %v7455_v23 }
  0x5e   :  { %6427 = vmatprep.mubr.msk.f32.mxu1 %vm75_vm0, %v7455_v23 }
  0x60   :  { %6412 = vmatmul.mubr.msk.f32.gmra.mrb[44].mxu0 %vm75_vm0, %v7472_v26 }
  0x61   :  { %6428 = vmatmul.mubr.msk.f32.gmra.mrb[44].mxu1 %vm75_vm0, %v7472_v26  ;;  %6414 = vmatprep.mubr.msk.f32.mxu0 %vm75_vm0, %v7479_v27 }
  0x62   :  { %6430 = vmatprep.mubr.msk.f32.mxu1 %vm75_vm0, %v7479_v27 }
  0x64   :  { %6415 = vmatmul.mubr.msk.f32.gmra.mrb[46].mxu0 %vm75_vm0, %v7496_v30 }
  0x65   :  { %6431 = vmatmul.mubr.msk.f32.gmra.mrb[46].mxu1 %vm75_vm0, %v7496_v30  ;;  %6437 = vmatprep.mubr.msk.f32.mxu0 %vm75_vm0, %v7399_v6 }
  0x66   :  { %6453 = vmatprep.mubr.msk.f32.mxu1 %vm75_vm0, %v7399_v6 }
  0x68   :  { %6438 = vmatmul.mubr.msk.f32.vlgmr.msra.gmra.mrb[48].mxu0 %vm75_vm0, %v7414_v10 }
  0x69   :  { %6454 = vmatmul.mubr.msk.f32.vlgmr.msra.gmra.mrb[48].mxu1 %vm75_vm0, %v7414_v10  ;;  %6440 = vmatprep.mubr.msk.f32.mxu0 %vm75_vm0, %v7425_v14 }
  0x6a   :  { %6456 = vmatprep.mubr.msk.f32.mxu1 %vm75_vm0, %v7425_v14  ;;  %6816 = vmatpush3.bf16.msra.mxu1 %v6813_v63 }
  0x6b   :  { %6812 = vmatpush3.bf16.msra.mxu0 %v6809_v0  ;;  %6505 = vmatprep.subr.mxu1 %v7358_v1 }
  0x6c   :  { %6441 = vmatmul.mubr.msk.f32.gmra.mrb[50].mxu0 %vm75_vm0, %v7448_v22  ;;  %6497 = vmatprep.subr.mxu0 %v7358_v1 }
  0x6d   :  { %6457 = vmatmul.mubr.msk.f32.gmra.mrb[50].mxu1 %vm75_vm0, %v7448_v22  ;;  %6443 = vmatprep.mubr.msk.f32.mxu0 %vm75_vm0, %v7455_v23 }
  0x6e   :  { %6459 = vmatprep.mubr.msk.f32.mxu1 %vm75_vm0, %v7455_v23 }
  0x70   :  { %6444 = vmatmul.mubr.msk.f32.gmra.mrb[52].mxu0 %vm75_vm0, %v7472_v26 }
  0x71   :  { %6460 = vmatmul.mubr.msk.f32.gmra.mrb[52].mxu1 %vm75_vm0, %v7472_v26  ;;  %6446 = vmatprep.mubr.msk.f32.mxu0 %vm75_vm0, %v7479_v27 }
  0x72   :  { %6462 = vmatprep.mubr.msk.f32.mxu1 %vm75_vm0, %v7479_v27 }
  0x74   :  { %6447 = vmatmul.mubr.msk.f32.gmra.mrb[54].mxu0 %vm75_vm0, %v7496_v30 }
  0x75   :  { %6463 = vmatmul.mubr.msk.f32.gmra.mrb[54].mxu1 %vm75_vm0, %v7496_v30  ;;  %6469 = vmatprep.mubr.msk.f32.mxu0 %vm75_vm0, %v7399_v6 }
  0x76   :  { %6485 = vmatprep.mubr.msk.f32.mxu1 %vm75_vm0, %v7399_v6  ;;  %v7827_v6 = vld [vmem:[%s8733_s2 + $0x10] sm:$0xff] }
  0x78   :  { %6470 = vmatmul.mubr.msk.f32.vlgmr.msra.gmra.mrb[56].mxu0 %vm75_vm0, %v7414_v10 }
  0x79   :  { %6486 = vmatmul.mubr.msk.f32.vlgmr.msra.gmra.mrb[56].mxu1 %vm75_vm0, %v7414_v10  ;;  %6472 = vmatprep.mubr.msk.f32.mxu0 %vm75_vm0, %v7425_v14 }
  0x7a   :  { %6488 = vmatprep.mubr.msk.f32.mxu1 %vm75_vm0, %v7425_v14  ;;  %6498 = vmatpush3.msra.mxu0 %v7358_v1 }
  0x7b   :  { %6506 = vmatpush3.msra.mxu1 %v7358_v1 }
  0x7c   :  { %6473 = vmatmul.mubr.msk.f32.gmra.mrb[58].mxu0 %vm75_vm0, %v7448_v22 }
  0x7d   :  { %6489 = vmatmul.mubr.msk.f32.gmra.mrb[58].mxu1 %vm75_vm0, %v7448_v22  ;;  %6475 = vmatprep.mubr.msk.f32.mxu0 %vm75_vm0, %v7455_v23 }
  0x7e   :  { %6491 = vmatprep.mubr.msk.f32.mxu1 %vm75_vm0, %v7455_v23 }
  0x80   :  { %6476 = vmatmul.mubr.msk.f32.gmra.mrb[60].mxu0 %vm75_vm0, %v7472_v26 }
  0x81   :  { %6492 = vmatmul.mubr.msk.f32.gmra.mrb[60].mxu1 %vm75_vm0, %v7472_v26  ;;  %6478 = vmatprep.mubr.msk.f32.mxu0 %vm75_vm0, %v7479_v27 }
  0x82   :  { %6494 = vmatprep.mubr.msk.f32.mxu1 %vm75_vm0, %v7479_v27 }
  0x84   :  { %6479 = vmatmul.mubr.msk.f32.gmra.mrb[62].mxu0 %vm75_vm0, %v7496_v30 }
  0x85   :  { %6495 = vmatmul.mubr.msk.f32.gmra.mrb[62].mxu1 %vm75_vm0, %v7496_v30  ;;  %6499 = vmatprep.mubr.msk.f32.mxu0 %vm1996_vm1, %v7799_v2 }
  0x86   :  { %6507 = vmatprep.mubr.msk.f32.mxu1 %vm1996_vm1, %v7804_v3 }
  0x87   :  { %v7860_v10 = vpop.permute.xlu0 %35 }
  0x88   :  { %6500 = vmatmul.mubr.msk.f32.vlgmr.msra.gmra.mrb[64].mxu0 %vm1996_vm1, %v7815_v4 }
  0x89   :  { %6508 = vmatmul.mubr.msk.f32.vlgmr.msra.gmra.mrb[64].mxu1 %vm1996_vm1, %v7822_v5  ;;  %6502 = vmatprep.mubr.msk.f32.mxu0 %vm1996_vm1, %v7827_v6 }
  0x8a   :  { %6510 = vmatprep.mubr.msk.f32.mxu1 %vm1996_vm1, %v7832_v7 }
  0x8c   :  { %6503 = vmatmul.mubr.msk.f32.gmra.mrb[66].mxu0 %vm1996_vm1, %v7843_v8 }
  0x8d   :  { %6511 = vmatmul.mubr.msk.f32.gmra.mrb[66].mxu1 %vm1996_vm1, %v7850_v9  ;;  %6515 = vmatprep.mubr.msk.f32.mxu0 %vm1996_vm1, %v7799_v2  ;;  %v7864_v12 = vpop.permute.xlu1 %55 }
  0x8e   :  { %6523 = vmatprep.mubr.msk.f32.mxu1 %vm1996_vm1, %v7804_v3  ;;  %v7862_v11 = vpop.permute.xlu0 %40 }
  0x91   :  { %v7868_v14 = vpop.permute.xlu1 %60 }
  0x92   :  { %v7866_v13 = vpop.permute.xlu0 %45 }
  0x95   :  { %v7879_v25 = vpop.permute.xlu1 %65 }
  0x96   :  { %v7875_v23 = vpop.permute.xlu0 %50 }
  0x9d   :  { %v7895_v41 = vpop.permute.xlu1 %70 }
  0xdb   :  { %v6247_v15 = vpop.f32.mrb[0].mxu0 }
  0xdc   :  { %v6263_v16 = vpop.f32.mrb[0].mxu1  ;;  %v172_v17 = vadd.f32 %v6247_v15, %v7862_v11  ;;  %v166_v18 = vpop.f32.mrb[1].mxu0 }
  0xdd   :  { %v289_v19 = vadd.f32 %v6263_v16, %v7862_v11  ;;  %v283_v20 = vpop.f32.mrb[1].mxu1  ;;  %v167_v21 = vadd.f32 %v166_v18, %v7860_v10 }
  0xde   :  { %207 = vst.msk [vmem:[#allocation2 + $0x8] sm:$0xff] %vm205_vm2, %v172_v17  ;;  %v284_v22 = vadd.f32 %v283_v20, %v7860_v10 }
  0xdf   :  { %324 = vst.msk [vmem:[#allocation2 + $0x28] sm:$0xff] %vm205_vm2, %v289_v19  ;;  %206 = vst.msk [vmem:[#allocation2] sm:$0xff] %vm205_vm2, %v167_v21  ;;  %v6250_v24 = vpop.f32.mrb[2].mxu0 }
  0xe0   :  { %323 = vst.msk [vmem:[#allocation2 + $0x20] sm:$0xff] %vm205_vm2, %v284_v22  ;;  %v6266_v26 = vpop.f32.mrb[2].mxu1  ;;  %v182_v27 = vadd.f32 %v6250_v24, %v7875_v23  ;;  %v176_v28 = vpop.f32.mrb[3].mxu0 }
  0xe1   :  { %v299_v29 = vadd.f32 %v6266_v26, %v7875_v23  ;;  %v293_v30 = vpop.f32.mrb[3].mxu1  ;;  %v177_v31 = vadd.f32 %v176_v28, %v7866_v13 }
  0xe2   :  { %209 = vst.msk [vmem:[#allocation2 + $0x18] sm:$0xff] %vm205_vm2, %v182_v27  ;;  %v294_v32 = vadd.f32 %v293_v30, %v7866_v13 }
  0xe3   :  { %326 = vst.msk [vmem:[#allocation2 + $0x38] sm:$0xff] %vm205_vm2, %v299_v29  ;;  %208 = vst.msk [vmem:[#allocation2 + $0x10] sm:$0xff] %vm205_vm2, %v177_v31  ;;  %v6253_v33 = vpop.f32.mrb[4].mxu0 }
  0xe4   :  { %325 = vst.msk [vmem:[#allocation2 + $0x30] sm:$0xff] %vm205_vm2, %v294_v32  ;;  %v6269_v34 = vpop.f32.mrb[4].mxu1  ;;  %v192_v35 = vadd.f32 %v6253_v33, %v7868_v14  ;;  %v186_v36 = vpop.f32.mrb[5].mxu0 }
  0xe5   :  { %v309_v37 = vadd.f32 %v6269_v34, %v7868_v14  ;;  %v303_v38 = vpop.f32.mrb[5].mxu1  ;;  %v187_v39 = vadd.f32 %v186_v36, %v7864_v12 }
  0xe6   :  { %211 = vst.msk [vmem:[#allocation3 + $0x8] sm:$0xff] %vm205_vm2, %v192_v35  ;;  %v304_v40 = vadd.f32 %v303_v38, %v7864_v12 }
  0xe7   :  { %329 = vst.msk [vmem:[#allocation3 + $0x28] sm:$0xff] %vm205_vm2, %v309_v37  ;;  %210 = vst.msk [vmem:[#allocation3] sm:$0xff] %vm205_vm2, %v187_v39  ;;  %v6256_v42 = vpop.f32.mrb[6].mxu0 }
  0xe8   :  { %328 = vst.msk [vmem:[#allocation3 + $0x20] sm:$0xff] %vm205_vm2, %v304_v40  ;;  %v6272_v43 = vpop.f32.mrb[6].mxu1  ;;  %v202_v44 = vadd.f32 %v6256_v42, %v7895_v41  ;;  %v196_v45 = vpop.f32.mrb[7].mxu0 }
  0xe9   :  { %v319_v46 = vadd.f32 %v6272_v43, %v7895_v41  ;;  %v313_v47 = vpop.f32.mrb[7].mxu1  ;;  %v197_v48 = vadd.f32 %v196_v45, %v7879_v25 }
  0xea   :  { %213 = vst.msk [vmem:[#allocation3 + $0x18] sm:$0xff] %vm205_vm2, %v202_v44  ;;  %v314_v49 = vadd.f32 %v313_v47, %v7879_v25 }
  0xeb   :  { %331 = vst.msk [vmem:[#allocation3 + $0x38] sm:$0xff] %vm205_vm2, %v319_v46  ;;  %212 = vst.msk [vmem:[#allocation3 + $0x10] sm:$0xff] %vm205_vm2, %v197_v48  ;;  %v6279_v50 = vpop.f32.mrb[8].mxu0 }
  0xec   :  { %330 = vst.msk [vmem:[#allocation3 + $0x30] sm:$0xff] %vm205_vm2, %v314_v49  ;;  %v6295_v51 = vpop.f32.mrb[8].mxu1  ;;  %v407_v52 = vadd.f32 %v6279_v50, %v7862_v11  ;;  %v401_v53 = vpop.f32.mrb[9].mxu0 }
  0xed   :  { %v525_v54 = vadd.f32 %v6295_v51, %v7862_v11  ;;  %v519_v55 = vpop.f32.mrb[9].mxu1  ;;  %v402_v56 = vadd.f32 %v401_v53, %v7860_v10 }
  0xee   :  { %442 = vst.msk [vmem:[#allocation2 + $0x48] sm:$0xff] %vm205_vm2, %v407_v52  ;;  %v520_v57 = vadd.f32 %v519_v55, %v7860_v10 }
  0xef   :  { %560 = vst.msk [vmem:[#allocation2 + $0x68] sm:$0xff] %vm205_vm2, %v525_v54  ;;  %441 = vst.msk [vmem:[#allocation2 + $0x40] sm:$0xff] %vm205_vm2, %v402_v56  ;;  %v6282_v58 = vpop.f32.mrb[10].mxu0 }
  0xf0   :  { %559 = vst.msk [vmem:[#allocation2 + $0x60] sm:$0xff] %vm205_vm2, %v520_v57  ;;  %v6298_v59 = vpop.f32.mrb[10].mxu1  ;;  %v417_v60 = vadd.f32 %v6282_v58, %v7875_v23  ;;  %v411_v61 = vpop.f32.mrb[11].mxu0 }
  0xf1   :  { %v535_v62 = vadd.f32 %v6298_v59, %v7875_v23  ;;  %v529_v63 = vpop.f32.mrb[11].mxu1  ;;  %v412_v0 = vadd.f32 %v411_v61, %v7866_v13 }
  0xf2   :  { %444 = vst.msk [vmem:[#allocation2 + $0x58] sm:$0xff] %vm205_vm2, %v417_v60  ;;  %v530_v1 = vadd.f32 %v529_v63, %v7866_v13 }
  0xf3   :  { %562 = vst.msk [vmem:[#allocation2 + $0x78] sm:$0xff] %vm205_vm2, %v535_v62  ;;  %443 = vst.msk [vmem:[#allocation2 + $0x50] sm:$0xff] %vm205_vm2, %v412_v0  ;;  %v6285_v15 = vpop.f32.mrb[12].mxu0 }
  0xf4   :  { %561 = vst.msk [vmem:[#allocation2 + $0x70] sm:$0xff] %vm205_vm2, %v530_v1  ;;  %v6301_v16 = vpop.f32.mrb[12].mxu1  ;;  %v427_v17 = vadd.f32 %v6285_v15, %v7868_v14  ;;  %v421_v18 = vpop.f32.mrb[13].mxu0 }
  0xf5   :  { %v545_v19 = vadd.f32 %v6301_v16, %v7868_v14  ;;  %v539_v20 = vpop.f32.mrb[13].mxu1  ;;  %v422_v21 = vadd.f32 %v421_v18, %v7864_v12 }
  0xf6   :  { %447 = vst.msk [vmem:[#allocation3 + $0x48] sm:$0xff] %vm205_vm2, %v427_v17  ;;  %v540_v22 = vadd.f32 %v539_v20, %v7864_v12 }
  0xf7   :  { %565 = vst.msk [vmem:[#allocation3 + $0x68] sm:$0xff] %vm205_vm2, %v545_v19  ;;  %446 = vst.msk [vmem:[#allocation3 + $0x40] sm:$0xff] %vm205_vm2, %v422_v21  ;;  %v6288_v24 = vpop.f32.mrb[14].mxu0 }
  0xf8   :  { %564 = vst.msk [vmem:[#allocation3 + $0x60] sm:$0xff] %vm205_vm2, %v540_v22  ;;  %v6304_v26 = vpop.f32.mrb[14].mxu1  ;;  %v437_v27 = vadd.f32 %v6288_v24, %v7895_v41  ;;  %v431_v28 = vpop.f32.mrb[15].mxu0 }
  0xf9   :  { %v555_v29 = vadd.f32 %v6304_v26, %v7895_v41  ;;  %v549_v30 = vpop.f32.mrb[15].mxu1  ;;  %v432_v31 = vadd.f32 %v431_v28, %v7879_v25 }
  0xfa   :  { %449 = vst.msk [vmem:[#allocation3 + $0x58] sm:$0xff] %vm205_vm2, %v437_v27  ;;  %v550_v32 = vadd.f32 %v549_v30, %v7879_v25 }
  0xfb   :  { %567 = vst.msk [vmem:[#allocation3 + $0x78] sm:$0xff] %vm205_vm2, %v555_v29  ;;  %448 = vst.msk [vmem:[#allocation3 + $0x50] sm:$0xff] %vm205_vm2, %v432_v31  ;;  %v6311_v33 = vpop.f32.mrb[16].mxu0 }
  0xfc   :  { %566 = vst.msk [vmem:[#allocation3 + $0x70] sm:$0xff] %vm205_vm2, %v550_v32  ;;  %v6327_v34 = vpop.f32.mrb[16].mxu1  ;;  %v643_v35 = vadd.f32 %v6311_v33, %v7862_v11  ;;  %v637_v36 = vpop.f32.mrb[17].mxu0 }
  0xfd   :  { %v761_v37 = vadd.f32 %v6327_v34, %v7862_v11  ;;  %v755_v38 = vpop.f32.mrb[17].mxu1  ;;  %v638_v39 = vadd.f32 %v637_v36, %v7860_v10 }
  0xfe   :  { %678 = vst.msk [vmem:[#allocation2 + $0x88] sm:$0xff] %vm205_vm2, %v643_v35  ;;  %v756_v40 = vadd.f32 %v755_v38, %v7860_v10 }
  0xff   :  { %796 = vst.msk [vmem:[#allocation2 + $0xa8] sm:$0xff] %vm205_vm2, %v761_v37  ;;  %677 = vst.msk [vmem:[#allocation2 + $0x80] sm:$0xff] %vm205_vm2, %v638_v39  ;;  %v6314_v42 = vpop.f32.mrb[18].mxu0 }
 0x100   :  { %795 = vst.msk [vmem:[#allocation2 + $0xa0] sm:$0xff] %vm205_vm2, %v756_v40  ;;  %v6330_v43 = vpop.f32.mrb[18].mxu1  ;;  %v653_v44 = vadd.f32 %v6314_v42, %v7875_v23  ;;  %v647_v45 = vpop.f32.mrb[19].mxu0 }
 0x101   :  { %v771_v46 = vadd.f32 %v6330_v43, %v7875_v23  ;;  %v765_v47 = vpop.f32.mrb[19].mxu1  ;;  %v648_v48 = vadd.f32 %v647_v45, %v7866_v13 }
 0x102   :  { %680 = vst.msk [vmem:[#allocation2 + $0x98] sm:$0xff] %vm205_vm2, %v653_v44  ;;  %v766_v49 = vadd.f32 %v765_v47, %v7866_v13 }
 0x103   :  { %798 = vst.msk [vmem:[#allocation2 + $0xb8] sm:$0xff] %vm205_vm2, %v771_v46  ;;  %679 = vst.msk [vmem:[#allocation2 + $0x90] sm:$0xff] %vm205_vm2, %v648_v48  ;;  %v6317_v50 = vpop.f32.mrb[20].mxu0 }
 0x104   :  { %797 = vst.msk [vmem:[#allocation2 + $0xb0] sm:$0xff] %vm205_vm2, %v766_v49  ;;  %v6333_v51 = vpop.f32.mrb[20].mxu1  ;;  %v663_v52 = vadd.f32 %v6317_v50, %v7868_v14  ;;  %v657_v53 = vpop.f32.mrb[21].mxu0 }
 0x105   :  { %v781_v54 = vadd.f32 %v6333_v51, %v7868_v14  ;;  %v775_v55 = vpop.f32.mrb[21].mxu1  ;;  %v658_v56 = vadd.f32 %v657_v53, %v7864_v12 }
 0x106   :  { %683 = vst.msk [vmem:[#allocation3 + $0x88] sm:$0xff] %vm205_vm2, %v663_v52  ;;  %v776_v57 = vadd.f32 %v775_v55, %v7864_v12 }
 0x107   :  { %801 = vst.msk [vmem:[#allocation3 + $0xa8] sm:$0xff] %vm205_vm2, %v781_v54  ;;  %682 = vst.msk [vmem:[#allocation3 + $0x80] sm:$0xff] %vm205_vm2, %v658_v56  ;;  %v6320_v58 = vpop.f32.mrb[22].mxu0 }
 0x108   :  { %800 = vst.msk [vmem:[#allocation3 + $0xa0] sm:$0xff] %vm205_vm2, %v776_v57  ;;  %v6336_v59 = vpop.f32.mrb[22].mxu1  ;;  %v673_v60 = vadd.f32 %v6320_v58, %v7895_v41  ;;  %v667_v61 = vpop.f32.mrb[23].mxu0 }
 0x109   :  { %v791_v62 = vadd.f32 %v6336_v59, %v7895_v41  ;;  %v785_v63 = vpop.f32.mrb[23].mxu1  ;;  %v668_v0 = vadd.f32 %v667_v61, %v7879_v25 }
 0x10a   :  { %685 = vst.msk [vmem:[#allocation3 + $0x98] sm:$0xff] %vm205_vm2, %v673_v60  ;;  %v786_v1 = vadd.f32 %v785_v63, %v7879_v25 }
 0x10b   :  { %803 = vst.msk [vmem:[#allocation3 + $0xb8] sm:$0xff] %vm205_vm2, %v791_v62  ;;  %684 = vst.msk [vmem:[#allocation3 + $0x90] sm:$0xff] %vm205_vm2, %v668_v0  ;;  %v6343_v15 = vpop.f32.mrb[24].mxu0 }
 0x10c   :  { %802 = vst.msk [vmem:[#allocation3 + $0xb0] sm:$0xff] %vm205_vm2, %v786_v1  ;;  %v6359_v16 = vpop.f32.mrb[24].mxu1  ;;  %v879_v17 = vadd.f32 %v6343_v15, %v7862_v11  ;;  %v873_v18 = vpop.f32.mrb[25].mxu0 }
 0x10d   :  { %v997_v19 = vadd.f32 %v6359_v16, %v7862_v11  ;;  %v991_v20 = vpop.f32.mrb[25].mxu1  ;;  %v874_v21 = vadd.f32 %v873_v18, %v7860_v10 }
 0x10e   :  { %914 = vst.msk [vmem:[#allocation2 + $0xc8] sm:$0xff] %vm205_vm2, %v879_v17  ;;  %v992_v22 = vadd.f32 %v991_v20, %v7860_v10 }
 0x10f   :  { %1032 = vst.msk [vmem:[#allocation2 + $0xe8] sm:$0xff] %vm205_vm2, %v997_v19  ;;  %913 = vst.msk [vmem:[#allocation2 + $0xc0] sm:$0xff] %vm205_vm2, %v874_v21  ;;  %v6346_v24 = vpop.f32.mrb[26].mxu0 }
 0x110   :  { %1031 = vst.msk [vmem:[#allocation2 + $0xe0] sm:$0xff] %vm205_vm2, %v992_v22  ;;  %v6362_v26 = vpop.f32.mrb[26].mxu1  ;;  %v889_v27 = vadd.f32 %v6346_v24, %v7875_v23  ;;  %v883_v28 = vpop.f32.mrb[27].mxu0 }
 0x111   :  { %v1007_v29 = vadd.f32 %v6362_v26, %v7875_v23  ;;  %v1001_v30 = vpop.f32.mrb[27].mxu1  ;;  %v884_v31 = vadd.f32 %v883_v28, %v7866_v13 }
 0x112   :  { %916 = vst.msk [vmem:[#allocation2 + $0xd8] sm:$0xff] %vm205_vm2, %v889_v27  ;;  %v1002_v32 = vadd.f32 %v1001_v30, %v7866_v13 }
 0x113   :  { %1034 = vst.msk [vmem:[#allocation2 + $0xf8] sm:$0xff] %vm205_vm2, %v1007_v29  ;;  %915 = vst.msk [vmem:[#allocation2 + $0xd0] sm:$0xff] %vm205_vm2, %v884_v31  ;;  %v6349_v33 = vpop.f32.mrb[28].mxu0 }
 0x114   :  { %1033 = vst.msk [vmem:[#allocation2 + $0xf0] sm:$0xff] %vm205_vm2, %v1002_v32  ;;  %v6365_v34 = vpop.f32.mrb[28].mxu1  ;;  %v899_v35 = vadd.f32 %v6349_v33, %v7868_v14  ;;  %v893_v36 = vpop.f32.mrb[29].mxu0 }
 0x115   :  { %v1017_v37 = vadd.f32 %v6365_v34, %v7868_v14  ;;  %v1011_v38 = vpop.f32.mrb[29].mxu1  ;;  %v894_v39 = vadd.f32 %v893_v36, %v7864_v12 }
 0x116   :  { %919 = vst.msk [vmem:[#allocation3 + $0xc8] sm:$0xff] %vm205_vm2, %v899_v35  ;;  %v1012_v40 = vadd.f32 %v1011_v38, %v7864_v12 }
 0x117   :  { %1037 = vst.msk [vmem:[#allocation3 + $0xe8] sm:$0xff] %vm205_vm2, %v1017_v37  ;;  %918 = vst.msk [vmem:[#allocation3 + $0xc0] sm:$0xff] %vm205_vm2, %v894_v39  ;;  %v6352_v42 = vpop.f32.mrb[30].mxu0 }
 0x118   :  { %1036 = vst.msk [vmem:[#allocation3 + $0xe0] sm:$0xff] %vm205_vm2, %v1012_v40  ;;  %v6368_v43 = vpop.f32.mrb[30].mxu1  ;;  %v909_v44 = vadd.f32 %v6352_v42, %v7895_v41  ;;  %v903_v45 = vpop.f32.mrb[31].mxu0 }
 0x119   :  { %v1027_v46 = vadd.f32 %v6368_v43, %v7895_v41  ;;  %v1021_v47 = vpop.f32.mrb[31].mxu1  ;;  %v904_v48 = vadd.f32 %v903_v45, %v7879_v25 }
 0x11a   :  { %921 = vst.msk [vmem:[#allocation3 + $0xd8] sm:$0xff] %vm205_vm2, %v909_v44  ;;  %v1022_v49 = vadd.f32 %v1021_v47, %v7879_v25 }
 0x11b   :  { %1039 = vst.msk [vmem:[#allocation3 + $0xf8] sm:$0xff] %vm205_vm2, %v1027_v46  ;;  %920 = vst.msk [vmem:[#allocation3 + $0xd0] sm:$0xff] %vm205_vm2, %v904_v48  ;;  %v6375_v50 = vpop.f32.mrb[32].mxu0 }
 0x11c   :  { %1038 = vst.msk [vmem:[#allocation3 + $0xf0] sm:$0xff] %vm205_vm2, %v1022_v49  ;;  %v6391_v51 = vpop.f32.mrb[32].mxu1  ;;  %v1115_v52 = vadd.f32 %v6375_v50, %v7862_v11  ;;  %v1109_v53 = vpop.f32.mrb[33].mxu0 }
 0x11d   :  { %v1233_v54 = vadd.f32 %v6391_v51, %v7862_v11  ;;  %v1227_v55 = vpop.f32.mrb[33].mxu1  ;;  %v1110_v56 = vadd.f32 %v1109_v53, %v7860_v10 }
 0x11e   :  { %1150 = vst.msk [vmem:[#allocation2 + $0x108] sm:$0xff] %vm205_vm2, %v1115_v52  ;;  %v1228_v57 = vadd.f32 %v1227_v55, %v7860_v10 }
 0x11f   :  { %1268 = vst.msk [vmem:[#allocation2 + $0x128] sm:$0xff] %vm205_vm2, %v1233_v54  ;;  %1149 = vst.msk [vmem:[#allocation2 + $0x100] sm:$0xff] %vm205_vm2, %v1110_v56  ;;  %v6378_v58 = vpop.f32.mrb[34].mxu0 }
 0x120   :  { %1267 = vst.msk [vmem:[#allocation2 + $0x120] sm:$0xff] %vm205_vm2, %v1228_v57  ;;  %v6394_v59 = vpop.f32.mrb[34].mxu1  ;;  %v1125_v60 = vadd.f32 %v6378_v58, %v7875_v23  ;;  %v1119_v61 = vpop.f32.mrb[35].mxu0 }
 0x121   :  { %v1243_v62 = vadd.f32 %v6394_v59, %v7875_v23  ;;  %v1237_v63 = vpop.f32.mrb[35].mxu1  ;;  %v1120_v0 = vadd.f32 %v1119_v61, %v7866_v13 }
 0x122   :  { %1152 = vst.msk [vmem:[#allocation2 + $0x118] sm:$0xff] %vm205_vm2, %v1125_v60  ;;  %v1238_v1 = vadd.f32 %v1237_v63, %v7866_v13 }
 0x123   :  { %1270 = vst.msk [vmem:[#allocation2 + $0x138] sm:$0xff] %vm205_vm2, %v1243_v62  ;;  %1151 = vst.msk [vmem:[#allocation2 + $0x110] sm:$0xff] %vm205_vm2, %v1120_v0  ;;  %v6381_v15 = vpop.f32.mrb[36].mxu0 }
 0x124   :  { %1269 = vst.msk [vmem:[#allocation2 + $0x130] sm:$0xff] %vm205_vm2, %v1238_v1  ;;  %v6397_v16 = vpop.f32.mrb[36].mxu1  ;;  %v1135_v17 = vadd.f32 %v6381_v15, %v7868_v14  ;;  %v1129_v18 = vpop.f32.mrb[37].mxu0 }
 0x125   :  { %v1253_v19 = vadd.f32 %v6397_v16, %v7868_v14  ;;  %v1247_v20 = vpop.f32.mrb[37].mxu1  ;;  %v1130_v21 = vadd.f32 %v1129_v18, %v7864_v12 }
 0x126   :  { %1155 = vst.msk [vmem:[#allocation3 + $0x108] sm:$0xff] %vm205_vm2, %v1135_v17  ;;  %v1248_v22 = vadd.f32 %v1247_v20, %v7864_v12 }
 0x127   :  { %1273 = vst.msk [vmem:[#allocation3 + $0x128] sm:$0xff] %vm205_vm2, %v1253_v19  ;;  %1154 = vst.msk [vmem:[#allocation3 + $0x100] sm:$0xff] %vm205_vm2, %v1130_v21  ;;  %v6384_v24 = vpop.f32.mrb[38].mxu0 }
 0x128   :  { %1272 = vst.msk [vmem:[#allocation3 + $0x120] sm:$0xff] %vm205_vm2, %v1248_v22  ;;  %v6400_v26 = vpop.f32.mrb[38].mxu1  ;;  %v1145_v27 = vadd.f32 %v6384_v24, %v7895_v41  ;;  %v1139_v28 = vpop.f32.mrb[39].mxu0 }
 0x129   :  { %v1263_v29 = vadd.f32 %v6400_v26, %v7895_v41  ;;  %v1257_v30 = vpop.f32.mrb[39].mxu1  ;;  %v1140_v31 = vadd.f32 %v1139_v28, %v7879_v25 }
 0x12a   :  { %1157 = vst.msk [vmem:[#allocation3 + $0x118] sm:$0xff] %vm205_vm2, %v1145_v27  ;;  %v1258_v32 = vadd.f32 %v1257_v30, %v7879_v25 }
 0x12b   :  { %1275 = vst.msk [vmem:[#allocation3 + $0x138] sm:$0xff] %vm205_vm2, %v1263_v29  ;;  %1156 = vst.msk [vmem:[#allocation3 + $0x110] sm:$0xff] %vm205_vm2, %v1140_v31  ;;  %v6407_v33 = vpop.f32.mrb[40].mxu0 }
 0x12c   :  { %1274 = vst.msk [vmem:[#allocation3 + $0x130] sm:$0xff] %vm205_vm2, %v1258_v32  ;;  %v6423_v34 = vpop.f32.mrb[40].mxu1  ;;  %v1351_v35 = vadd.f32 %v6407_v33, %v7862_v11  ;;  %v1345_v36 = vpop.f32.mrb[41].mxu0 }
 0x12d   :  { %v1469_v37 = vadd.f32 %v6423_v34, %v7862_v11  ;;  %v1463_v38 = vpop.f32.mrb[41].mxu1  ;;  %v1346_v39 = vadd.f32 %v1345_v36, %v7860_v10 }
 0x12e   :  { %1386 = vst.msk [vmem:[#allocation2 + $0x148] sm:$0xff] %vm205_vm2, %v1351_v35  ;;  %v1464_v40 = vadd.f32 %v1463_v38, %v7860_v10 }
 0x12f   :  { %1504 = vst.msk [vmem:[#allocation2 + $0x168] sm:$0xff] %vm205_vm2, %v1469_v37  ;;  %1385 = vst.msk [vmem:[#allocation2 + $0x140] sm:$0xff] %vm205_vm2, %v1346_v39  ;;  %v6410_v42 = vpop.f32.mrb[42].mxu0 }
 0x130   :  { %1503 = vst.msk [vmem:[#allocation2 + $0x160] sm:$0xff] %vm205_vm2, %v1464_v40  ;;  %v6426_v43 = vpop.f32.mrb[42].mxu1  ;;  %v1361_v44 = vadd.f32 %v6410_v42, %v7875_v23  ;;  %v1355_v45 = vpop.f32.mrb[43].mxu0 }
 0x131   :  { %v1479_v46 = vadd.f32 %v6426_v43, %v7875_v23  ;;  %v1473_v47 = vpop.f32.mrb[43].mxu1  ;;  %v1356_v48 = vadd.f32 %v1355_v45, %v7866_v13 }
 0x132   :  { %1388 = vst.msk [vmem:[#allocation2 + $0x158] sm:$0xff] %vm205_vm2, %v1361_v44  ;;  %v1474_v49 = vadd.f32 %v1473_v47, %v7866_v13 }
 0x133   :  { %1506 = vst.msk [vmem:[#allocation2 + $0x178] sm:$0xff] %vm205_vm2, %v1479_v46  ;;  %1387 = vst.msk [vmem:[#allocation2 + $0x150] sm:$0xff] %vm205_vm2, %v1356_v48  ;;  %v6413_v50 = vpop.f32.mrb[44].mxu0 }
 0x134   :  { %1505 = vst.msk [vmem:[#allocation2 + $0x170] sm:$0xff] %vm205_vm2, %v1474_v49  ;;  %v6429_v51 = vpop.f32.mrb[44].mxu1  ;;  %v1371_v52 = vadd.f32 %v6413_v50, %v7868_v14  ;;  %v1365_v53 = vpop.f32.mrb[45].mxu0 }
 0x135   :  { %v1489_v54 = vadd.f32 %v6429_v51, %v7868_v14  ;;  %v1483_v55 = vpop.f32.mrb[45].mxu1  ;;  %v1366_v56 = vadd.f32 %v1365_v53, %v7864_v12 }
 0x136   :  { %1391 = vst.msk [vmem:[#allocation3 + $0x148] sm:$0xff] %vm205_vm2, %v1371_v52  ;;  %v1484_v57 = vadd.f32 %v1483_v55, %v7864_v12 }
 0x137   :  { %1509 = vst.msk [vmem:[#allocation3 + $0x168] sm:$0xff] %vm205_vm2, %v1489_v54  ;;  %1390 = vst.msk [vmem:[#allocation3 + $0x140] sm:$0xff] %vm205_vm2, %v1366_v56  ;;  %v6416_v58 = vpop.f32.mrb[46].mxu0 }
 0x138   :  { %1508 = vst.msk [vmem:[#allocation3 + $0x160] sm:$0xff] %vm205_vm2, %v1484_v57  ;;  %v6432_v59 = vpop.f32.mrb[46].mxu1  ;;  %v1381_v60 = vadd.f32 %v6416_v58, %v7895_v41  ;;  %v1375_v61 = vpop.f32.mrb[47].mxu0 }
 0x139   :  { %v1499_v62 = vadd.f32 %v6432_v59, %v7895_v41  ;;  %v1493_v63 = vpop.f32.mrb[47].mxu1  ;;  %v1376_v0 = vadd.f32 %v1375_v61, %v7879_v25 }
 0x13a   :  { %1393 = vst.msk [vmem:[#allocation3 + $0x158] sm:$0xff] %vm205_vm2, %v1381_v60  ;;  %v1494_v1 = vadd.f32 %v1493_v63, %v7879_v25 }
 0x13b   :  { %1511 = vst.msk [vmem:[#allocation3 + $0x178] sm:$0xff] %vm205_vm2, %v1499_v62  ;;  %1392 = vst.msk [vmem:[#allocation3 + $0x150] sm:$0xff] %vm205_vm2, %v1376_v0  ;;  %v6439_v15 = vpop.f32.mrb[48].mxu0 }
 0x13c   :  { %1510 = vst.msk [vmem:[#allocation3 + $0x170] sm:$0xff] %vm205_vm2, %v1494_v1  ;;  %v6455_v16 = vpop.f32.mrb[48].mxu1  ;;  %v1587_v17 = vadd.f32 %v6439_v15, %v7862_v11  ;;  %v1581_v18 = vpop.f32.mrb[49].mxu0 }
 0x13d   :  { %v1705_v19 = vadd.f32 %v6455_v16, %v7862_v11  ;;  %v1699_v20 = vpop.f32.mrb[49].mxu1  ;;  %v1582_v21 = vadd.f32 %v1581_v18, %v7860_v10 }
 0x13e   :  { %1622 = vst.msk [vmem:[#allocation2 + $0x188] sm:$0xff] %vm205_vm2, %v1587_v17  ;;  %v1700_v22 = vadd.f32 %v1699_v20, %v7860_v10 }
 0x13f   :  { %1740 = vst.msk [vmem:[#allocation2 + $0x1a8] sm:$0xff] %vm205_vm2, %v1705_v19  ;;  %1621 = vst.msk [vmem:[#allocation2 + $0x180] sm:$0xff] %vm205_vm2, %v1582_v21  ;;  %v6442_v24 = vpop.f32.mrb[50].mxu0 }
 0x140   :  { %1739 = vst.msk [vmem:[#allocation2 + $0x1a0] sm:$0xff] %vm205_vm2, %v1700_v22  ;;  %v6458_v26 = vpop.f32.mrb[50].mxu1  ;;  %v1597_v27 = vadd.f32 %v6442_v24, %v7875_v23  ;;  %v1591_v28 = vpop.f32.mrb[51].mxu0 }
 0x141   :  { %v1715_v29 = vadd.f32 %v6458_v26, %v7875_v23  ;;  %v1709_v30 = vpop.f32.mrb[51].mxu1  ;;  %v1592_v31 = vadd.f32 %v1591_v28, %v7866_v13 }
 0x142   :  { %1624 = vst.msk [vmem:[#allocation2 + $0x198] sm:$0xff] %vm205_vm2, %v1597_v27  ;;  %v1710_v32 = vadd.f32 %v1709_v30, %v7866_v13  ;;  %v1993_v27 = vld [vmem:[#allocation2 + $0x8] sm:$0xff] }
 0x143   :  { %1742 = vst.msk [vmem:[#allocation2 + $0x1b8] sm:$0xff] %vm205_vm2, %v1715_v29  ;;  %1623 = vst.msk [vmem:[#allocation2 + $0x190] sm:$0xff] %vm205_vm2, %v1592_v31  ;;  %v6445_v33 = vpop.f32.mrb[52].mxu0  ;;  %v1992_v31 = vld [vmem:[#allocation2] sm:$0xff] }
 0x144   :  { %1741 = vst.msk [vmem:[#allocation2 + $0x1b0] sm:$0xff] %vm205_vm2, %v1710_v32  ;;  %v6461_v34 = vpop.f32.mrb[52].mxu1  ;;  %v1607_v35 = vadd.f32 %v6445_v33, %v7868_v14  ;;  %v1601_v36 = vpop.f32.mrb[53].mxu0 }
 0x145   :  { %v1725_v37 = vadd.f32 %v6461_v34, %v7868_v14  ;;  %v1719_v38 = vpop.f32.mrb[53].mxu1  ;;  %v1602_v39 = vadd.f32 %v1601_v36, %v7864_v12 }
 0x146   :  { %1627 = vst.msk [vmem:[#allocation3 + $0x188] sm:$0xff] %vm205_vm2, %v1607_v35  ;;  %v1720_v40 = vadd.f32 %v1719_v38, %v7864_v12 }
 0x147   :  { %1745 = vst.msk [vmem:[#allocation3 + $0x1a8] sm:$0xff] %vm205_vm2, %v1725_v37  ;;  %1626 = vst.msk [vmem:[#allocation3 + $0x180] sm:$0xff] %vm205_vm2, %v1602_v39  ;;  %v6448_v42 = vpop.f32.mrb[54].mxu0 }
 0x148   :  { %1744 = vst.msk [vmem:[#allocation3 + $0x1a0] sm:$0xff] %vm205_vm2, %v1720_v40  ;;  %v6464_v43 = vpop.f32.mrb[54].mxu1  ;;  %v1617_v44 = vadd.f32 %v6448_v42, %v7895_v41  ;;  %v1611_v45 = vpop.f32.mrb[55].mxu0 }
 0x149   :  { %v1735_v46 = vadd.f32 %v6464_v43, %v7895_v41  ;;  %v1729_v47 = vpop.f32.mrb[55].mxu1  ;;  %v1612_v48 = vadd.f32 %v1611_v45, %v7879_v25  ;;  %v1994_v43 = vld [vmem:[#allocation2 + $0x10] sm:$0xff] }
 0x14a   :  { %1629 = vst.msk [vmem:[#allocation3 + $0x198] sm:$0xff] %vm205_vm2, %v1617_v44  ;;  %v1730_v49 = vadd.f32 %v1729_v47, %v7879_v25 }
 0x14b   :  { %1747 = vst.msk [vmem:[#allocation3 + $0x1b8] sm:$0xff] %vm205_vm2, %v1735_v46  ;;  %1628 = vst.msk [vmem:[#allocation3 + $0x190] sm:$0xff] %vm205_vm2, %v1612_v48  ;;  %v6471_v50 = vpop.f32.mrb[56].mxu0 }
 0x14c   :  { %1746 = vst.msk [vmem:[#allocation3 + $0x1b0] sm:$0xff] %vm205_vm2, %v1730_v49  ;;  %v6487_v51 = vpop.f32.mrb[56].mxu1  ;;  %v1823_v52 = vadd.f32 %v6471_v50, %v7862_v11  ;;  %v1817_v53 = vpop.f32.mrb[57].mxu0 }
 0x14d   :  { %v1941_v54 = vadd.f32 %v6487_v51, %v7862_v11  ;;  %v1935_v55 = vpop.f32.mrb[57].mxu1  ;;  %v1818_v56 = vadd.f32 %v1817_v53, %v7860_v10 }
 0x14e   :  { %1858 = vst.msk [vmem:[#allocation2 + $0x1c8] sm:$0xff] %vm205_vm2, %v1823_v52  ;;  %v1936_v57 = vadd.f32 %v1935_v55, %v7860_v10 }
 0x14f   :  { %1976 = vst.msk [vmem:[#allocation2 + $0x1e8] sm:$0xff] %vm205_vm2, %v1941_v54  ;;  %1857 = vst.msk [vmem:[#allocation2 + $0x1c0] sm:$0xff] %vm205_vm2, %v1818_v56  ;;  %v6474_v58 = vpop.f32.mrb[58].mxu0  ;;  %v1995_v56 = vld [vmem:[#allocation2 + $0x18] sm:$0xff] }
 0x150   :  { %1975 = vst.msk [vmem:[#allocation2 + $0x1e0] sm:$0xff] %vm205_vm2, %v1936_v57  ;;  %v1833_v59 = vadd.f32 %v6474_v58, %v7875_v23  ;;  %v6490_v60 = vpop.f32.mrb[58].mxu1  ;;  %v1827_v61 = vpop.f32.mrb[59].mxu0 }
 0x151   :  { %v1951_v11 = vadd.f32 %v6490_v60, %v7875_v23  ;;  %v1828_v62 = vadd.f32 %v1827_v61, %v7866_v13  ;;  %v1945_v63 = vpop.f32.mrb[59].mxu1 }
 0x152   :  { %1860 = vst.msk [vmem:[#allocation2 + $0x1d8] sm:$0xff] %vm205_vm2, %v1833_v59  ;;  %v1946_v10 = vadd.f32 %v1945_v63, %v7866_v13 }
 0x153   :  { %1978 = vst.msk [vmem:[#allocation2 + $0x1f8] sm:$0xff] %vm205_vm2, %v1951_v11  ;;  %1859 = vst.msk [vmem:[#allocation2 + $0x1d0] sm:$0xff] %vm205_vm2, %v1828_v62  ;;  %v6477_v0 = vpop.f32.mrb[60].mxu0 }
 0x154   :  { %1977 = vst.msk [vmem:[#allocation2 + $0x1f0] sm:$0xff] %vm205_vm2, %v1946_v10  ;;  %v1843_v1 = vadd.f32 %v6477_v0, %v7868_v14  ;;  %v6493_v15 = vpop.f32.mrb[60].mxu1  ;;  %v1837_v16 = vpop.f32.mrb[61].mxu0 }
 0x155   :  { %v1961_v23 = vadd.f32 %v6493_v15, %v7868_v14  ;;  %v1838_v17 = vadd.f32 %v1837_v16, %v7864_v12  ;;  %v1955_v18 = vpop.f32.mrb[61].mxu1 }
 0x156   :  { %1863 = vst.msk [vmem:[#allocation3 + $0x1c8] sm:$0xff] %vm205_vm2, %v1843_v1  ;;  %v1956_v13 = vadd.f32 %v1955_v18, %v7864_v12 }
 0x157   :  { %1981 = vst.msk [vmem:[#allocation3 + $0x1e8] sm:$0xff] %vm205_vm2, %v1961_v23  ;;  %1862 = vst.msk [vmem:[#allocation3 + $0x1c0] sm:$0xff] %vm205_vm2, %v1838_v17  ;;  %v6480_v19 = vpop.f32.mrb[62].mxu0 }
 0x158   :  { %1980 = vst.msk [vmem:[#allocation3 + $0x1e0] sm:$0xff] %vm205_vm2, %v1956_v13  ;;  %v1853_v20 = vadd.f32 %v6480_v19, %v7895_v41  ;;  %v6496_v21 = vpop.f32.mrb[62].mxu1  ;;  %v1847_v22 = vpop.f32.mrb[63].mxu0 }
 0x159   :  { %v1971_v14 = vadd.f32 %v6496_v21, %v7895_v41  ;;  %v1848_v24 = vadd.f32 %v1847_v22, %v7879_v25  ;;  %v1965_v26 = vpop.f32.mrb[63].mxu1 }
 0x15a   :  { %1865 = vst.msk [vmem:[#allocation3 + $0x1d8] sm:$0xff] %vm205_vm2, %v1853_v20  ;;  %v1966_v12 = vadd.f32 %v1965_v26, %v7879_v25 }
 0x15b   :  { %1983 = vst.msk [vmem:[#allocation3 + $0x1f8] sm:$0xff] %vm205_vm2, %v1971_v14  ;;  %1864 = vst.msk [vmem:[#allocation3 + $0x1d0] sm:$0xff] %vm205_vm2, %v1848_v24  ;;  %v6501_v28 = vpop.f32.mrb[64].mxu0 }
 0x15c   :  { %1982 = vst.msk [vmem:[#allocation3 + $0x1f0] sm:$0xff] %vm205_vm2, %v1966_v12  ;;  %v2081_v29 = vadd.f32 %v6501_v28, %v1993_v27  ;;  %v2075_v30 = vpop.f32.mrb[65].mxu0  ;;  %v6509_v32 = vpop.f32.mrb[64].mxu1 }
 0x15d   :  { %v2076_v41 = vadd.f32 %v2075_v30, %v1992_v31  ;;  %v2176_v33 = vpop.f32.mrb[65].mxu1 }
 0x15e   :  { %v2196_v34 = vsub.f32 0.0, %v2081_v29  ;;  %v2095_v35 = vld [vmem:[#allocation3 + $0x1e8] sm:$0xff] }
 0x15f   :  { %v2195_v36 = vsub.f32 0.0, %v2076_v41  ;;  %v2182_v37 = vadd.f32 %v6509_v32, %v2095_v35  ;;  %v2094_v38 = vld [vmem:[#allocation3 + $0x1e0] sm:$0xff]  ;;  %v6504_v25 = vpop.f32.mrb[66].mxu0 }
 0x160   :  { %v2200_v39 = vmul.f32 1.442695, %v2196_v34  ;;  %v2177_v40 = vadd.f32 %v2176_v33, %v2094_v38  ;;  %v2085_v42 = vpop.f32.mrb[67].mxu0  ;;  %v6512_v44 = vpop.f32.mrb[66].mxu1  ;;  %v2091_v57 = vadd.f32 %v6504_v25, %v1995_v56 }
 0x161   :  { %v2198_v45 = vmul.f32 1.442695, %v2195_v36  ;;  %v2217_v46 = vsub.f32 0.0, %v2182_v37  ;;  %v2086_v47 = vadd.f32 %v2085_v42, %v1994_v43  ;;  %v2186_v48 = vpop.f32.mrb[67].mxu1  ;;  %v2329_v43 = vld [vmem:[#allocation3 + $0x1c0] sm:$0xff] }
 0x162   :  { %6821 = vpow2.f32 %v2200_v39  ;;  %v2216_v49 = vsub.f32 0.0, %v2177_v40  ;;  %v2097_v59 = vld [vmem:[#allocation3 + $0x1f8] sm:$0xff] }
 0x163   :  { %6823 = vpow2.f32 %v2198_v45  ;;  %v2221_v50 = vmul.f32 1.442695, %v2217_v46  ;;  %v2096_v51 = vld [vmem:[#allocation3 + $0x1f0] sm:$0xff]  ;;  %v2197_v54 = vsub.f32 0.0, %v2086_v47  ;;  %v2192_v63 = vadd.f32 %v6512_v44, %v2097_v59 }
 0x164   :  { %v2219_v52 = vmul.f32 1.442695, %v2216_v49  ;;  %v2187_v53 = vadd.f32 %v2186_v48, %v2096_v51  ;;  %v2242_v46 = vld [vmem:[#allocation2 + $0x30] sm:$0xff] }
 0x165   :  { %6825 = vpow2.f32 %v2221_v50  ;;  %v2202_v58 = vmul.f32 1.442695, %v2197_v54 }
 0x166   :  { %6827 = vpow2.f32 %v2219_v52  ;;  %v2218_v55 = vsub.f32 0.0, %v2187_v53  ;;  %v2331_v53 = vld [vmem:[#allocation3 + $0x1d0] sm:$0xff] }
 0x167   :  { %6829 = vtanh.f32 %v2091_v57 }
 0x168   :  { %v2223_v60 = vmul.f32 1.442695, %v2218_v55  ;;  %6831 = vpow2.f32 %v2202_v58  ;;  %v2243_v58 = vld [vmem:[#allocation2 + $0x38] sm:$0xff] }
 0x16a   :  { %6833 = vpow2.f32 %v2223_v60 }
 0x16c   :  { %v6822_v61 = vpop.eup %6821 }
 0x16d   :  { %v6824_v11 = vpop.eup %6823  ;;  %v2205_v62 = vadd.f32 1.0, %v6822_v61 }
 0x16e   :  { %v2204_v10 = vadd.f32 1.0, %v6824_v11 }
 0x16f   :  { %v6826_v0 = vpop.eup %6825  ;;  %6835 = vrcp.f32 %v2205_v62  ;;  %v2332_v62 = vld [vmem:[#allocation3 + $0x1d8] sm:$0xff] }
 0x170   :  { %v6828_v1 = vpop.eup %6827  ;;  %6837 = vrcp.f32 %v2204_v10  ;;  %v2226_v15 = vadd.f32 1.0, %v6826_v0 }
 0x171   :  { %v2225_v16 = vadd.f32 1.0, %v6828_v1  ;;  %6839 = vtanh.f32 %v2192_v63  ;;  %v6830_v23 = vpop.eup %6829 }
 0x172   :  { %6841 = vrcp.f32 %v2226_v15  ;;  %v6832_v17 = vpop.eup %6831 }
 0x173   :  { %6843 = vrcp.f32 %v2225_v16  ;;  %v2206_v21 = vadd.f32 1.0, %v6832_v17 }
 0x174   :  { %v6834_v18 = vpop.eup %6833 }
 0x175   :  { %v2227_v28 = vadd.f32 1.0, %v6834_v18  ;;  %6845 = vrcp.f32 %v2206_v21 }
 0x179   :  { %v6836_v13 = vpop.eup %6835 }
 0x17a   :  { %v6838_v19 = vpop.eup %6837  ;;  %v2211_v20 = vmul.f32 0.0, %v6836_v13 }
 0x17b   :  { %v6840_v22 = vpop.eup %6839  ;;  %v2212_v14 = vmul.f32 %v6838_v19, %v6830_v23 }
 0x17c   :  { %v6842_v24 = vpop.eup %6841 }
 0x17d   :  { %v6844_v26 = vpop.eup %6843  ;;  %v2232_v12 = vmul.f32 0.0, %v6842_v24  ;;  %v8132_v27 = vadd.f32 %v2212_v14, %v2211_v20 }
 0x17e   :  { %v2233_v29 = vmul.f32 %v6844_v26, %v6840_v22 }
 0x17f   :  { %6847 = vtanh.f32 %v8132_v27  ;;  %v6846_v31 = vpop.eup %6845 }
 0x180   :  { %v8135_v30 = vadd.f32 %v2233_v29, %v2232_v12  ;;  %6849 = vrcp.f32 %v2227_v28 }
 0x182   :  { %6851 = vtanh.f32 %v8135_v30 }
 0x189   :  { %v6848_v32 = vpop.eup %6847 }
 0x18a   :  { %v2215_v41 = vmul.f32 %v6848_v32, %v6846_v31  ;;  %v6850_v33 = vpop.eup %6849 }
 0x18c   :  { %v6852_v34 = vpop.eup %6851  ;;  %2237 = vst.msk [vmem:[%s8734_s4] sm:$0xff] %vm205_vm2, %v2215_v41  ;;  %6513 = vmatprep.subr.mxu0 %v2215_v41 }
 0x18d   :  { %6514 = vmatpush3.msra.mxu0 %v2215_v41  ;;  %v2236_v35 = vmul.f32 %v6852_v34, %v6850_v33 }
 0x18e   :  { %6516 = vmatmul.mubr.msk.f32.vlgmr.msra.gmra.mrb[68].mxu0 %vm1996_vm1, %v7815_v4  ;;  %v2241_v4 = vld [vmem:[#allocation2 + $0x28] sm:$0xff] }
 0x18f   :  { %5770 = vst.msk [vmem:[%s8734_s4 + $0xf8] sm:$0xff] %vm205_vm2, %v2236_v35  ;;  %6521 = vmatprep.subr.mxu1 %v2236_v35  ;;  %6518 = vmatprep.mubr.msk.f32.mxu0 %vm1996_vm1, %v7827_v6 }
 0x190   :  { %6522 = vmatpush3.msra.mxu1 %v2236_v35 }
 0x191   :  { %6524 = vmatmul.mubr.msk.f32.vlgmr.msra.gmra.mrb[68].mxu1 %vm1996_vm1, %v7822_v5  ;;  %v2240_v5 = vld [vmem:[#allocation2 + $0x20] sm:$0xff] }
 0x192   :  { %6519 = vmatmul.mubr.msk.f32.gmra.mrb[70].mxu0 %vm1996_vm1, %v7843_v8  ;;  %6526 = vmatprep.mubr.msk.f32.mxu1 %vm1996_vm1, %v7832_v7  ;;  %v2330_v8 = vld [vmem:[#allocation3 + $0x1c8] sm:$0xff] }
 0x193   :  { %6531 = vmatprep.mubr.msk.f32.mxu0 %vm1996_vm1, %v7799_v2 }
 0x195   :  { %6527 = vmatmul.mubr.msk.f32.gmra.mrb[70].mxu1 %vm1996_vm1, %v7850_v9 }
 0x196   :  { %6539 = vmatprep.mubr.msk.f32.mxu1 %vm1996_vm1, %v7804_v3 }
 0x261   :  { %v6517_v6 = vpop.f32.mrb[68].mxu0 }
 0x262   :  { %v2316_v36 = vadd.f32 %v6517_v6, %v2241_v4  ;;  %v2310_v37 = vpop.f32.mrb[69].mxu0 }
 0x263   :  { %v2311_v38 = vadd.f32 %v2310_v37, %v2240_v5  ;;  %v8188_v37 = vld [vmem:[%s8733_s2 + $0x10] sm:$0xff]  ;;  %v8195_v5 = vld [vmem:[%s8733_s2 + $0x28] sm:$0xff] }
 0x264   :  { %v2419_v25 = vsub.f32 0.0, %v2316_v36  ;;  %v6525_v39 = vpop.f32.mrb[68].mxu1  ;;  %v8177_v36 = vld [vmem:[%s8733_s2 + $0x8] sm:$0xff] }
 0x265   :  { %v2418_v40 = vsub.f32 0.0, %v2311_v38  ;;  %v2405_v7 = vadd.f32 %v6525_v39, %v2330_v8  ;;  %v2399_v42 = vpop.f32.mrb[69].mxu1  ;;  %v6520_v2 = vpop.f32.mrb[70].mxu0  ;;  %v8202_v38 = vld [vmem:[%s8733_s2 + $0x18] sm:$0xff]  ;;  %v8216_v8 = vld [vmem:[%s8733_s2] sm:$0xff] }
 0x266   :  { %v2423_v44 = vmul.f32 1.442695, %v2419_v25  ;;  %v2400_v45 = vadd.f32 %v2399_v42, %v2329_v43  ;;  %v2320_v9 = vpop.f32.mrb[71].mxu0  ;;  %v2326_v59 = vadd.f32 %v6520_v2, %v2243_v58  ;;  %v8209_v25 = vld [vmem:[%s8733_s2 + $0x30] sm:$0xff]  ;;  %v8223_v39 = vld [vmem:[%s8733_s2 + $0x38] sm:$0xff] }
 0x267   :  { %v2421_v47 = vmul.f32 1.442695, %v2418_v40  ;;  %v2440_v3 = vsub.f32 0.0, %v2405_v7  ;;  %v2321_v48 = vadd.f32 %v2320_v9, %v2242_v46  ;;  %v8230_v40 = vld [vmem:[%s8733_s2 + $0x20] sm:$0xff]  ;;  %v2465_v7 = vld [vmem:[#allocation2 + $0x48] sm:$0xff] }
 0x268   :  { %6853 = vpow2.f32 %v2423_v44  ;;  %v2439_v49 = vsub.f32 0.0, %v2400_v45  ;;  %v6528_v50 = vpop.f32.mrb[70].mxu1  ;;  %v2464_v44 = vld [vmem:[#allocation2 + $0x40] sm:$0xff]  ;;  %v2554_v46 = vld [vmem:[#allocation3 + $0x1a8] sm:$0xff] }
 0x269   :  { %6855 = vpow2.f32 %v2421_v47  ;;  %v2444_v51 = vmul.f32 1.442695, %v2440_v3  ;;  %v2409_v52 = vpop.f32.mrb[71].mxu1  ;;  %v2420_v56 = vsub.f32 0.0, %v2321_v48  ;;  %v2415_v0 = vadd.f32 %v6528_v50, %v2332_v62  ;;  %v2553_v50 = vld [vmem:[#allocation3 + $0x1a0] sm:$0xff]  ;;  %v2555_v62 = vld [vmem:[#allocation3 + $0x1b0] sm:$0xff] }
 0x26a   :  { %v2442_v54 = vmul.f32 1.442695, %v2439_v49  ;;  %v2410_v55 = vadd.f32 %v2409_v52, %v2331_v53 }
 0x26b   :  { %6857 = vpow2.f32 %v2444_v51  ;;  %v2425_v60 = vmul.f32 1.442695, %v2420_v56 }
 0x26c   :  { %6859 = vpow2.f32 %v2442_v54  ;;  %v2441_v57 = vsub.f32 0.0, %v2410_v55  ;;  %v2466_v55 = vld [vmem:[#allocation2 + $0x50] sm:$0xff] }
 0x26d   :  { %6861 = vtanh.f32 %v2326_v59 }
 0x26e   :  { %v2446_v61 = vmul.f32 1.442695, %v2441_v57  ;;  %6863 = vpow2.f32 %v2425_v60 }
 0x270   :  { %6865 = vpow2.f32 %v2446_v61 }
 0x272   :  { %v6854_v11 = vpop.eup %6853 }
 0x273   :  { %v6856_v63 = vpop.eup %6855  ;;  %v2428_v10 = vadd.f32 1.0, %v6854_v11 }
 0x274   :  { %v2427_v1 = vadd.f32 1.0, %v6856_v63 }
 0x275   :  { %v6858_v15 = vpop.eup %6857  ;;  %6867 = vrcp.f32 %v2428_v10 }
 0x276   :  { %v6860_v16 = vpop.eup %6859  ;;  %6869 = vrcp.f32 %v2427_v1  ;;  %v2449_v23 = vadd.f32 1.0, %v6858_v15  ;;  %v2467_v15 = vld [vmem:[#allocation2 + $0x58] sm:$0xff] }
 0x277   :  { %v2448_v17 = vadd.f32 1.0, %v6860_v16  ;;  %6871 = vtanh.f32 %v2415_v0  ;;  %v6862_v18 = vpop.eup %6861 }
 0x278   :  { %6873 = vrcp.f32 %v2449_v23  ;;  %v6864_v13 = vpop.eup %6863 }
 0x279   :  { %6875 = vrcp.f32 %v2448_v17  ;;  %v2429_v14 = vadd.f32 1.0, %v6864_v13  ;;  %v2556_v13 = vld [vmem:[#allocation3 + $0x1b8] sm:$0xff] }
 0x27a   :  { %v6866_v19 = vpop.eup %6865 }
 0x27b   :  { %v2450_v32 = vadd.f32 1.0, %v6866_v19  ;;  %6877 = vrcp.f32 %v2429_v14 }
 0x27f   :  { %v6868_v20 = vpop.eup %6867 }
 0x280   :  { %v6870_v21 = vpop.eup %6869  ;;  %v2434_v22 = vmul.f32 %v6868_v20, %v8132_v27 }
 0x281   :  { %v6872_v24 = vpop.eup %6871  ;;  %v2435_v26 = vmul.f32 %v6870_v21, %v6862_v18 }
 0x282   :  { %v6874_v12 = vpop.eup %6873 }
 0x283   :  { %v6876_v28 = vpop.eup %6875  ;;  %v8163_v29 = vadd.f32 %v2435_v26, %v2434_v22  ;;  %v2455_v31 = vmul.f32 %v6874_v12, %v8135_v30 }
 0x284   :  { %v2456_v41 = vmul.f32 %v6876_v28, %v6872_v24 }
 0x285   :  { %6879 = vtanh.f32 %v8163_v29  ;;  %v6878_v27 = vpop.eup %6877 }
 0x286   :  { %v8167_v33 = vadd.f32 %v2456_v41, %v2455_v31  ;;  %6881 = vrcp.f32 %v2450_v32 }
 0x288   :  { %6883 = vtanh.f32 %v8167_v33 }
 0x28f   :  { %v6880_v34 = vpop.eup %6879 }
 0x290   :  { %v2438_v35 = vmul.f32 %v6880_v34, %v6878_v27  ;;  %v6882_v4 = vpop.eup %6881 }
 0x292   :  { %v6884_v6 = vpop.eup %6883  ;;  %5779 = vst.msk [vmem:[%s8734_s4 + $0x10] sm:$0xff] %vm205_vm2, %v2438_v35  ;;  %6529 = vmatprep.subr.mxu0 %v2438_v35 }
 0x293   :  { %6530 = vmatpush3.msra.mxu0 %v2438_v35  ;;  %v2459_v30 = vmul.f32 %v6884_v6, %v6882_v4 }
 0x294   :  { %6532 = vmatmul.mubr.msk.f32.vlgmr.msra.gmra.mrb[72].mxu0 %vm1996_vm1, %v8177_v36 }
 0x295   :  { %5780 = vst.msk [vmem:[%s8734_s4 + $0xe8] sm:$0xff] %vm205_vm2, %v2459_v30  ;;  %6537 = vmatprep.subr.mxu1 %v2459_v30  ;;  %6534 = vmatprep.mubr.msk.f32.mxu0 %vm1996_vm1, %v8188_v37 }
 0x296   :  { %6538 = vmatpush3.msra.mxu1 %v2459_v30 }
 0x297   :  { %6540 = vmatmul.mubr.msk.f32.vlgmr.msra.gmra.mrb[72].mxu1 %vm1996_vm1, %v8195_v5 }
 0x298   :  { %6535 = vmatmul.mubr.msk.f32.gmra.mrb[74].mxu0 %vm1996_vm1, %v8202_v38  ;;  %6542 = vmatprep.mubr.msk.f32.mxu1 %vm1996_vm1, %v8209_v25 }
 0x299   :  { %6547 = vmatprep.mubr.msk.f32.mxu0 %vm1996_vm1, %v8216_v8 }
 0x29b   :  { %6543 = vmatmul.mubr.msk.f32.gmra.mrb[74].mxu1 %vm1996_vm1, %v8223_v39 }
 0x29c   :  { %6555 = vmatprep.mubr.msk.f32.mxu1 %vm1996_vm1, %v8230_v40 }
 0x367   :  { %v6533_v42 = vpop.f32.mrb[72].mxu0 }
 0x368   :  { %v2540_v43 = vadd.f32 %v6533_v42, %v2465_v7  ;;  %v2534_v2 = vpop.f32.mrb[73].mxu0 }
 0x369   :  { %v2535_v45 = vadd.f32 %v2534_v2, %v2464_v44 }
 0x36a   :  { %v2643_v9 = vsub.f32 0.0, %v2540_v43  ;;  %v6541_v47 = vpop.f32.mrb[72].mxu1 }
 0x36b   :  { %v2642_v3 = vsub.f32 0.0, %v2535_v45  ;;  %v2629_v48 = vadd.f32 %v6541_v47, %v2554_v46  ;;  %v2623_v49 = vpop.f32.mrb[73].mxu1  ;;  %v6536_v51 = vpop.f32.mrb[74].mxu0 }
 0x36c   :  { %v2647_v52 = vmul.f32 1.442695, %v2643_v9  ;;  %v2624_v53 = vadd.f32 %v2623_v49, %v2553_v50  ;;  %v2544_v54 = vpop.f32.mrb[75].mxu0  ;;  %v2550_v16 = vadd.f32 %v6536_v51, %v2467_v15 }
 0x36d   :  { %v2645_v56 = vmul.f32 1.442695, %v2642_v3  ;;  %v2664_v57 = vsub.f32 0.0, %v2629_v48  ;;  %v2545_v58 = vadd.f32 %v2544_v54, %v2466_v55  ;;  %v2689_v48 = vld [vmem:[#allocation2 + $0x68] sm:$0xff] }
 0x36e   :  { %6885 = vpow2.f32 %v2647_v52  ;;  %v2663_v59 = vsub.f32 0.0, %v2624_v53  ;;  %v6544_v60 = vpop.f32.mrb[74].mxu1  ;;  %v2688_v52 = vld [vmem:[#allocation2 + $0x60] sm:$0xff]  ;;  %v2778_v55 = vld [vmem:[#allocation3 + $0x188] sm:$0xff] }
 0x36f   :  { %6887 = vpow2.f32 %v2645_v56  ;;  %v2668_v61 = vmul.f32 1.442695, %v2664_v57  ;;  %v2633_v11 = vpop.f32.mrb[75].mxu1  ;;  %v2644_v0 = vsub.f32 0.0, %v2545_v58  ;;  %v2639_v21 = vadd.f32 %v6544_v60, %v2556_v13  ;;  %v2777_v60 = vld [vmem:[#allocation3 + $0x180] sm:$0xff]  ;;  %v2779_v13 = vld [vmem:[#allocation3 + $0x190] sm:$0xff] }
 0x370   :  { %v2666_v63 = vmul.f32 1.442695, %v2663_v59  ;;  %v2634_v10 = vadd.f32 %v2633_v11, %v2555_v62 }
 0x371   :  { %6889 = vpow2.f32 %v2668_v61  ;;  %v2649_v23 = vmul.f32 1.442695, %v2644_v0 }
 0x372   :  { %6891 = vpow2.f32 %v2666_v63  ;;  %v2665_v1 = vsub.f32 0.0, %v2634_v10  ;;  %v2690_v10 = vld [vmem:[#allocation2 + $0x70] sm:$0xff] }
 0x373   :  { %6893 = vtanh.f32 %v2550_v16 }
 0x374   :  { %v2670_v17 = vmul.f32 1.442695, %v2665_v1  ;;  %6895 = vpow2.f32 %v2649_v23 }
 0x376   :  { %6897 = vpow2.f32 %v2670_v17 }
 0x378   :  { %v6886_v18 = vpop.eup %6885 }
 0x379   :  { %v6888_v19 = vpop.eup %6887  ;;  %v2652_v20 = vadd.f32 1.0, %v6886_v18 }
 0x37a   :  { %v2651_v22 = vadd.f32 1.0, %v6888_v19 }
 0x37b   :  { %v6890_v14 = vpop.eup %6889  ;;  %6899 = vrcp.f32 %v2652_v20 }
 0x37c   :  { %v6892_v24 = vpop.eup %6891  ;;  %6901 = vrcp.f32 %v2651_v22  ;;  %v2673_v26 = vadd.f32 1.0, %v6890_v14  ;;  %v2691_v14 = vld [vmem:[#allocation2 + $0x78] sm:$0xff] }
 0x37d   :  { %v2672_v12 = vadd.f32 1.0, %v6892_v24  ;;  %6903 = vtanh.f32 %v2639_v21  ;;  %v6894_v28 = vpop.eup %6893 }
 0x37e   :  { %6905 = vrcp.f32 %v2673_v26  ;;  %v6896_v31 = vpop.eup %6895 }
 0x37f   :  { %6907 = vrcp.f32 %v2672_v12  ;;  %v2653_v35 = vadd.f32 1.0, %v6896_v31  ;;  %v2780_v31 = vld [vmem:[#allocation3 + $0x198] sm:$0xff] }
 0x380   :  { %v6898_v32 = vpop.eup %6897 }
 0x381   :  { %v2674_v2 = vadd.f32 1.0, %v6898_v32  ;;  %6909 = vrcp.f32 %v2653_v35 }
 0x385   :  { %v6900_v41 = vpop.eup %6899 }
 0x386   :  { %v6902_v27 = vpop.eup %6901  ;;  %v2658_v34 = vmul.f32 %v6900_v41, %v8163_v29 }
 0x387   :  { %v6904_v4 = vpop.eup %6903  ;;  %v2659_v6 = vmul.f32 %v6902_v27, %v6894_v28 }
 0x388   :  { %v6906_v30 = vpop.eup %6905 }
 0x389   :  { %v6908_v7 = vpop.eup %6907  ;;  %v8235_v42 = vadd.f32 %v2659_v6, %v2658_v34  ;;  %v2679_v43 = vmul.f32 %v6906_v30, %v8167_v33 }
 0x38a   :  { %v2680_v44 = vmul.f32 %v6908_v7, %v6904_v4 }
 0x38b   :  { %6911 = vtanh.f32 %v8235_v42  ;;  %v6910_v29 = vpop.eup %6909 }
 0x38c   :  { %v8239_v45 = vadd.f32 %v2680_v44, %v2679_v43  ;;  %6913 = vrcp.f32 %v2674_v2 }
 0x38e   :  { %6915 = vtanh.f32 %v8239_v45 }
 0x395   :  { %v6912_v9 = vpop.eup %6911 }
 0x396   :  { %v2662_v46 = vmul.f32 %v6912_v9, %v6910_v29  ;;  %v6914_v47 = vpop.eup %6913 }
 0x398   :  { %v6916_v3 = vpop.eup %6915  ;;  %5789 = vst.msk [vmem:[%s8734_s4 + $0x20] sm:$0xff] %vm205_vm2, %v2662_v46  ;;  %6545 = vmatprep.subr.mxu0 %v2662_v46 }
 0x399   :  { %6546 = vmatpush3.msra.mxu0 %v2662_v46  ;;  %v2683_v33 = vmul.f32 %v6916_v3, %v6914_v47 }
 0x39a   :  { %6548 = vmatmul.mubr.msk.f32.vlgmr.msra.gmra.mrb[76].mxu0 %vm1996_vm1, %v8177_v36 }
 0x39b   :  { %5790 = vst.msk [vmem:[%s8734_s4 + $0xd8] sm:$0xff] %vm205_vm2, %v2683_v33  ;;  %6553 = vmatprep.subr.mxu1 %v2683_v33  ;;  %6550 = vmatprep.mubr.msk.f32.mxu0 %vm1996_vm1, %v8188_v37 }
 0x39c   :  { %6554 = vmatpush3.msra.mxu1 %v2683_v33 }
 0x39d   :  { %6556 = vmatmul.mubr.msk.f32.vlgmr.msra.gmra.mrb[76].mxu1 %vm1996_vm1, %v8195_v5 }
 0x39e   :  { %6551 = vmatmul.mubr.msk.f32.gmra.mrb[78].mxu0 %vm1996_vm1, %v8202_v38  ;;  %6558 = vmatprep.mubr.msk.f32.mxu1 %vm1996_vm1, %v8209_v25 }
 0x39f   :  { %6563 = vmatprep.mubr.msk.f32.mxu0 %vm1996_vm1, %v8216_v8 }
 0x3a1   :  { %6559 = vmatmul.mubr.msk.f32.gmra.mrb[78].mxu1 %vm1996_vm1, %v8223_v39 }
 0x3a2   :  { %6571 = vmatprep.mubr.msk.f32.mxu1 %vm1996_vm1, %v8230_v40 }
 0x46d   :  { %v6549_v49 = vpop.f32.mrb[76].mxu0 }
 0x46e   :  { %v2764_v50 = vadd.f32 %v6549_v49, %v2689_v48  ;;  %v2758_v51 = vpop.f32.mrb[77].mxu0 }
 0x46f   :  { %v2759_v53 = vadd.f32 %v2758_v51, %v2688_v52 }
 0x470   :  { %v2867_v54 = vsub.f32 0.0, %v2764_v50  ;;  %v6557_v56 = vpop.f32.mrb[76].mxu1 }
 0x471   :  { %v2866_v57 = vsub.f32 0.0, %v2759_v53  ;;  %v2853_v58 = vadd.f32 %v6557_v56, %v2778_v55  ;;  %v2847_v59 = vpop.f32.mrb[77].mxu1  ;;  %v6552_v61 = vpop.f32.mrb[78].mxu0 }
 0x472   :  { %v2871_v11 = vmul.f32 1.442695, %v2867_v54  ;;  %v2848_v62 = vadd.f32 %v2847_v59, %v2777_v60  ;;  %v2768_v63 = vpop.f32.mrb[79].mxu0  ;;  %v2774_v24 = vadd.f32 %v6552_v61, %v2691_v14 }
 0x473   :  { %v2869_v0 = vmul.f32 1.442695, %v2866_v57  ;;  %v2888_v1 = vsub.f32 0.0, %v2853_v58  ;;  %v2769_v15 = vadd.f32 %v2768_v63, %v2690_v10  ;;  %v2913_v58 = vld [vmem:[#allocation2 + $0x88] sm:$0xff] }
 0x474   :  { %6917 = vpow2.f32 %v2871_v11  ;;  %v2887_v16 = vsub.f32 0.0, %v2848_v62  ;;  %v6560_v23 = vpop.f32.mrb[78].mxu1  ;;  %v2912_v11 = vld [vmem:[#allocation2 + $0x80] sm:$0xff]  ;;  %v3002_v10 = vld [vmem:[#allocation3 + $0x168] sm:$0xff] }
 0x475   :  { %6919 = vpow2.f32 %v2869_v0  ;;  %v2892_v17 = vmul.f32 1.442695, %v2888_v1  ;;  %v2857_v18 = vpop.f32.mrb[79].mxu1  ;;  %v2868_v21 = vsub.f32 0.0, %v2769_v15  ;;  %v2863_v27 = vadd.f32 %v6560_v23, %v2780_v31  ;;  %v3001_v23 = vld [vmem:[#allocation3 + $0x160] sm:$0xff]  ;;  %v3003_v31 = vld [vmem:[#allocation3 + $0x170] sm:$0xff] }
 0x476   :  { %v2890_v19 = vmul.f32 1.442695, %v2887_v16  ;;  %v2858_v20 = vadd.f32 %v2857_v18, %v2779_v13 }
 0x477   :  { %6921 = vpow2.f32 %v2892_v17  ;;  %v2873_v26 = vmul.f32 1.442695, %v2868_v21 }
 0x478   :  { %6923 = vpow2.f32 %v2890_v19  ;;  %v2889_v22 = vsub.f32 0.0, %v2858_v20  ;;  %v2914_v20 = vld [vmem:[#allocation2 + $0x90] sm:$0xff] }
 0x479   :  { %6925 = vtanh.f32 %v2774_v24 }
 0x47a   :  { %v2894_v12 = vmul.f32 1.442695, %v2889_v22  ;;  %6927 = vpow2.f32 %v2873_v26 }
 0x47c   :  { %6929 = vpow2.f32 %v2894_v12 }
 0x47e   :  { %v6918_v28 = vpop.eup %6917 }
 0x47f   :  { %v6920_v32 = vpop.eup %6919  ;;  %v2876_v41 = vadd.f32 1.0, %v6918_v28 }
 0x480   :  { %v2875_v34 = vadd.f32 1.0, %v6920_v32 }
 0x481   :  { %v6922_v35 = vpop.eup %6921  ;;  %6931 = vrcp.f32 %v2876_v41 }
 0x482   :  { %v6924_v4 = vpop.eup %6923  ;;  %6933 = vrcp.f32 %v2875_v34  ;;  %v2897_v6 = vadd.f32 1.0, %v6922_v35  ;;  %v2915_v35 = vld [vmem:[#allocation2 + $0x98] sm:$0xff] }
 0x483   :  { %v2896_v30 = vadd.f32 1.0, %v6924_v4  ;;  %6935 = vtanh.f32 %v2863_v27  ;;  %v6926_v7 = vpop.eup %6925 }
 0x484   :  { %6937 = vrcp.f32 %v2897_v6  ;;  %v6928_v43 = vpop.eup %6927 }
 0x485   :  { %6939 = vrcp.f32 %v2896_v30  ;;  %v2877_v46 = vadd.f32 1.0, %v6928_v43  ;;  %v3004_v43 = vld [vmem:[#allocation3 + $0x178] sm:$0xff] }
 0x486   :  { %v6930_v2 = vpop.eup %6929 }
 0x487   :  { %v2898_v51 = vadd.f32 1.0, %v6930_v2  ;;  %6941 = vrcp.f32 %v2877_v46 }
 0x48b   :  { %v6932_v44 = vpop.eup %6931 }
 0x48c   :  { %v6934_v29 = vpop.eup %6933  ;;  %v2882_v9 = vmul.f32 %v6932_v44, %v8235_v42 }
 0x48d   :  { %v6936_v47 = vpop.eup %6935  ;;  %v2883_v3 = vmul.f32 %v6934_v29, %v6926_v7 }
 0x48e   :  { %v6938_v33 = vpop.eup %6937 }
 0x48f   :  { %v6940_v48 = vpop.eup %6939  ;;  %v8267_v49 = vadd.f32 %v2883_v3, %v2882_v9  ;;  %v2903_v50 = vmul.f32 %v6938_v33, %v8239_v45 }
 0x490   :  { %v2904_v52 = vmul.f32 %v6940_v48, %v6936_v47 }
 0x491   :  { %6943 = vtanh.f32 %v8267_v49  ;;  %v6942_v42 = vpop.eup %6941 }
 0x492   :  { %v8271_v53 = vadd.f32 %v2904_v52, %v2903_v50  ;;  %6945 = vrcp.f32 %v2898_v51 }
 0x494   :  { %6947 = vtanh.f32 %v8271_v53 }
 0x49b   :  { %v6944_v54 = vpop.eup %6943 }
 0x49c   :  { %v2886_v55 = vmul.f32 %v6944_v54, %v6942_v42  ;;  %v6946_v56 = vpop.eup %6945 }
 0x49e   :  { %v6948_v57 = vpop.eup %6947  ;;  %5799 = vst.msk [vmem:[%s8734_s4 + $0x30] sm:$0xff] %vm205_vm2, %v2886_v55  ;;  %6561 = vmatprep.subr.mxu0 %v2886_v55 }
 0x49f   :  { %6562 = vmatpush3.msra.mxu0 %v2886_v55  ;;  %v2907_v45 = vmul.f32 %v6948_v57, %v6946_v56 }
 0x4a0   :  { %6564 = vmatmul.mubr.msk.f32.vlgmr.msra.gmra.mrb[80].mxu0 %vm1996_vm1, %v8177_v36 }
 0x4a1   :  { %5800 = vst.msk [vmem:[%s8734_s4 + $0xc8] sm:$0xff] %vm205_vm2, %v2907_v45  ;;  %6569 = vmatprep.subr.mxu1 %v2907_v45  ;;  %6566 = vmatprep.mubr.msk.f32.mxu0 %vm1996_vm1, %v8188_v37 }
 0x4a2   :  { %6570 = vmatpush3.msra.mxu1 %v2907_v45 }
 0x4a3   :  { %6572 = vmatmul.mubr.msk.f32.vlgmr.msra.gmra.mrb[80].mxu1 %vm1996_vm1, %v8195_v5 }
 0x4a4   :  { %6567 = vmatmul.mubr.msk.f32.gmra.mrb[82].mxu0 %vm1996_vm1, %v8202_v38  ;;  %6574 = vmatprep.mubr.msk.f32.mxu1 %vm1996_vm1, %v8209_v25 }
 0x4a5   :  { %6579 = vmatprep.mubr.msk.f32.mxu0 %vm1996_vm1, %v8216_v8 }
 0x4a7   :  { %6575 = vmatmul.mubr.msk.f32.gmra.mrb[82].mxu1 %vm1996_vm1, %v8223_v39 }
 0x4a8   :  { %6587 = vmatprep.mubr.msk.f32.mxu1 %vm1996_vm1, %v8230_v40 }
 0x573   :  { %v6565_v59 = vpop.f32.mrb[80].mxu0 }
 0x574   :  { %v2988_v60 = vadd.f32 %v6565_v59, %v2913_v58  ;;  %v2982_v61 = vpop.f32.mrb[81].mxu0 }
 0x575   :  { %v2983_v62 = vadd.f32 %v2982_v61, %v2912_v11 }
 0x576   :  { %v3091_v63 = vsub.f32 0.0, %v2988_v60  ;;  %v6573_v0 = vpop.f32.mrb[80].mxu1 }
 0x577   :  { %v3090_v1 = vsub.f32 0.0, %v2983_v62  ;;  %v3077_v15 = vadd.f32 %v6573_v0, %v3002_v10  ;;  %v3071_v16 = vpop.f32.mrb[81].mxu1  ;;  %v6568_v17 = vpop.f32.mrb[82].mxu0 }
 0x578   :  { %v3095_v18 = vmul.f32 1.442695, %v3091_v63  ;;  %v3072_v13 = vadd.f32 %v3071_v16, %v3001_v23  ;;  %v2992_v19 = vpop.f32.mrb[83].mxu0  ;;  %v2998_v4 = vadd.f32 %v6568_v17, %v2915_v35 }
 0x579   :  { %v3093_v21 = vmul.f32 1.442695, %v3090_v1  ;;  %v3112_v22 = vsub.f32 0.0, %v3077_v15  ;;  %v2993_v14 = vadd.f32 %v2992_v19, %v2914_v20  ;;  %v3137_v15 = vld [vmem:[#allocation2 + $0xa8] sm:$0xff] }
 0x57a   :  { %6949 = vpow2.f32 %v3095_v18  ;;  %v3111_v24 = vsub.f32 0.0, %v3072_v13  ;;  %v6576_v26 = vpop.f32.mrb[82].mxu1  ;;  %v3136_v18 = vld [vmem:[#allocation2 + $0xa0] sm:$0xff]  ;;  %v3226_v20 = vld [vmem:[#allocation3 + $0x148] sm:$0xff] }
 0x57b   :  { %6951 = vpow2.f32 %v3093_v21  ;;  %v3116_v12 = vmul.f32 1.442695, %v3112_v22  ;;  %v3081_v28 = vpop.f32.mrb[83].mxu1  ;;  %v3092_v27 = vsub.f32 0.0, %v2993_v14  ;;  %v3087_v29 = vadd.f32 %v6576_v26, %v3004_v43  ;;  %v3225_v26 = vld [vmem:[#allocation3 + $0x140] sm:$0xff]  ;;  %v3227_v43 = vld [vmem:[#allocation3 + $0x150] sm:$0xff] }
 0x57c   :  { %v3114_v32 = vmul.f32 1.442695, %v3111_v24  ;;  %v3082_v41 = vadd.f32 %v3081_v28, %v3003_v31 }
 0x57d   :  { %6953 = vpow2.f32 %v3116_v12  ;;  %v3097_v6 = vmul.f32 1.442695, %v3092_v27 }
 0x57e   :  { %6955 = vpow2.f32 %v3114_v32  ;;  %v3113_v34 = vsub.f32 0.0, %v3082_v41  ;;  %v3138_v41 = vld [vmem:[#allocation2 + $0xb0] sm:$0xff] }
 0x57f   :  { %6957 = vtanh.f32 %v2998_v4 }
 0x580   :  { %v3118_v30 = vmul.f32 1.442695, %v3113_v34  ;;  %6959 = vpow2.f32 %v3097_v6 }
 0x582   :  { %6961 = vpow2.f32 %v3118_v30 }
 0x584   :  { %v6950_v7 = vpop.eup %6949 }
 0x585   :  { %v6952_v2 = vpop.eup %6951  ;;  %v3100_v44 = vadd.f32 1.0, %v6950_v7 }
 0x586   :  { %v3099_v9 = vadd.f32 1.0, %v6952_v2 }
 0x587   :  { %v6954_v46 = vpop.eup %6953  ;;  %6963 = vrcp.f32 %v3100_v44 }
 0x588   :  { %v6956_v47 = vpop.eup %6955  ;;  %6965 = vrcp.f32 %v3099_v9  ;;  %v3121_v3 = vadd.f32 1.0, %v6954_v46  ;;  %v3139_v46 = vld [vmem:[#allocation2 + $0xb8] sm:$0xff] }
 0x589   :  { %v3120_v33 = vadd.f32 1.0, %v6956_v47  ;;  %6967 = vtanh.f32 %v3087_v29  ;;  %v6958_v48 = vpop.eup %6957 }
 0x58a   :  { %6969 = vrcp.f32 %v3121_v3  ;;  %v6960_v50 = vpop.eup %6959 }
 0x58b   :  { %6971 = vrcp.f32 %v3120_v33  ;;  %v3101_v55 = vadd.f32 1.0, %v6960_v50  ;;  %v3228_v50 = vld [vmem:[#allocation3 + $0x158] sm:$0xff] }
 0x58c   :  { %v6962_v51 = vpop.eup %6961 }
 0x58d   :  { %v3122_v61 = vadd.f32 1.0, %v6962_v51  ;;  %6973 = vrcp.f32 %v3101_v55 }
 0x591   :  { %v6964_v52 = vpop.eup %6963 }
 0x592   :  { %v6966_v42 = vpop.eup %6965  ;;  %v3106_v54 = vmul.f32 %v6964_v52, %v8267_v49 }
 0x593   :  { %v6968_v56 = vpop.eup %6967  ;;  %v3107_v57 = vmul.f32 %v6966_v42, %v6958_v48 }
 0x594   :  { %v6970_v45 = vpop.eup %6969 }
 0x595   :  { %v6972_v58 = vpop.eup %6971  ;;  %v8299_v59 = vadd.f32 %v3107_v57, %v3106_v54  ;;  %v3127_v60 = vmul.f32 %v6970_v45, %v8271_v53 }
 0x596   :  { %v3128_v11 = vmul.f32 %v6972_v58, %v6968_v56 }
 0x597   :  { %6975 = vtanh.f32 %v8299_v59  ;;  %v6974_v49 = vpop.eup %6973 }
 0x598   :  { %v8303_v62 = vadd.f32 %v3128_v11, %v3127_v60  ;;  %6977 = vrcp.f32 %v3122_v61 }
 0x59a   :  { %6979 = vtanh.f32 %v8303_v62 }
 0x5a1   :  { %v6976_v63 = vpop.eup %6975 }
 0x5a2   :  { %v3110_v10 = vmul.f32 %v6976_v63, %v6974_v49  ;;  %v6978_v0 = vpop.eup %6977 }
 0x5a4   :  { %v6980_v1 = vpop.eup %6979  ;;  %5809 = vst.msk [vmem:[%s8734_s4 + $0x40] sm:$0xff] %vm205_vm2, %v3110_v10  ;;  %6577 = vmatprep.subr.mxu0 %v3110_v10 }
 0x5a5   :  { %6578 = vmatpush3.msra.mxu0 %v3110_v10  ;;  %v3131_v53 = vmul.f32 %v6980_v1, %v6978_v0 }
 0x5a6   :  { %6580 = vmatmul.mubr.msk.f32.vlgmr.msra.gmra.mrb[84].mxu0 %vm1996_vm1, %v8177_v36 }
 0x5a7   :  { %5810 = vst.msk [vmem:[%s8734_s4 + $0xb8] sm:$0xff] %vm205_vm2, %v3131_v53  ;;  %6585 = vmatprep.subr.mxu1 %v3131_v53  ;;  %6582 = vmatprep.mubr.msk.f32.mxu0 %vm1996_vm1, %v8188_v37 }
 0x5a8   :  { %6586 = vmatpush3.msra.mxu1 %v3131_v53 }
 0x5a9   :  { %6588 = vmatmul.mubr.msk.f32.vlgmr.msra.gmra.mrb[84].mxu1 %vm1996_vm1, %v8195_v5 }
 0x5aa   :  { %6583 = vmatmul.mubr.msk.f32.gmra.mrb[86].mxu0 %vm1996_vm1, %v8202_v38  ;;  %6590 = vmatprep.mubr.msk.f32.mxu1 %vm1996_vm1, %v8209_v25 }
 0x5ab   :  { %6595 = vmatprep.mubr.msk.f32.mxu0 %vm1996_vm1, %v8216_v8 }
 0x5ad   :  { %6591 = vmatmul.mubr.msk.f32.gmra.mrb[86].mxu1 %vm1996_vm1, %v8223_v39 }
 0x5ae   :  { %6603 = vmatprep.mubr.msk.f32.mxu1 %vm1996_vm1, %v8230_v40 }
 0x679   :  { %v6581_v16 = vpop.f32.mrb[84].mxu0 }
 0x67a   :  { %v3212_v23 = vadd.f32 %v6581_v16, %v3137_v15  ;;  %v3206_v17 = vpop.f32.mrb[85].mxu0 }
 0x67b   :  { %v3207_v13 = vadd.f32 %v3206_v17, %v3136_v18 }
 0x67c   :  { %v3315_v19 = vsub.f32 0.0, %v3212_v23  ;;  %v6589_v21 = vpop.f32.mrb[84].mxu1 }
 0x67d   :  { %v3314_v22 = vsub.f32 0.0, %v3207_v13  ;;  %v3301_v14 = vadd.f32 %v6589_v21, %v3226_v20  ;;  %v3295_v24 = vpop.f32.mrb[85].mxu1  ;;  %v6584_v12 = vpop.f32.mrb[86].mxu0 }
 0x67e   :  { %v3319_v28 = vmul.f32 1.442695, %v3315_v19  ;;  %v3296_v31 = vadd.f32 %v3295_v24, %v3225_v26  ;;  %v3216_v32 = vpop.f32.mrb[87].mxu0  ;;  %v3222_v47 = vadd.f32 %v6584_v12, %v3139_v46 }
 0x67f   :  { %v3317_v27 = vmul.f32 1.442695, %v3314_v22  ;;  %v3336_v34 = vsub.f32 0.0, %v3301_v14  ;;  %v3217_v35 = vadd.f32 %v3216_v32, %v3138_v41  ;;  %v3361_v14 = vld [vmem:[#allocation2 + $0xc8] sm:$0xff] }
 0x680   :  { %6981 = vpow2.f32 %v3319_v28  ;;  %v3335_v4 = vsub.f32 0.0, %v3296_v31  ;;  %v6592_v6 = vpop.f32.mrb[86].mxu1  ;;  %v3360_v28 = vld [vmem:[#allocation2 + $0xc0] sm:$0xff]  ;;  %v3450_v41 = vld [vmem:[#allocation3 + $0x128] sm:$0xff] }
 0x681   :  { %6983 = vpow2.f32 %v3317_v27  ;;  %v3340_v30 = vmul.f32 1.442695, %v3336_v34  ;;  %v3305_v7 = vpop.f32.mrb[87].mxu1  ;;  %v3316_v29 = vsub.f32 0.0, %v3217_v35  ;;  %v3311_v42 = vadd.f32 %v6592_v6, %v3228_v50  ;;  %v3449_v6 = vld [vmem:[#allocation3 + $0x120] sm:$0xff]  ;;  %v3451_v50 = vld [vmem:[#allocation3 + $0x130] sm:$0xff] }
 0x682   :  { %v3338_v2 = vmul.f32 1.442695, %v3335_v4  ;;  %v3306_v44 = vadd.f32 %v3305_v7, %v3227_v43 }
 0x683   :  { %6985 = vpow2.f32 %v3340_v30  ;;  %v3321_v3 = vmul.f32 1.442695, %v3316_v29 }
 0x684   :  { %6987 = vpow2.f32 %v3338_v2  ;;  %v3337_v9 = vsub.f32 0.0, %v3306_v44  ;;  %v3362_v44 = vld [vmem:[#allocation2 + $0xd0] sm:$0xff] }
 0x685   :  { %6989 = vtanh.f32 %v3222_v47 }
 0x686   :  { %v3342_v33 = vmul.f32 1.442695, %v3337_v9  ;;  %6991 = vpow2.f32 %v3321_v3 }
 0x688   :  { %6993 = vpow2.f32 %v3342_v33 }
 0x68a   :  { %v6982_v48 = vpop.eup %6981 }
 0x68b   :  { %v6984_v51 = vpop.eup %6983  ;;  %v3324_v52 = vadd.f32 1.0, %v6982_v48 }
 0x68c   :  { %v3323_v54 = vadd.f32 1.0, %v6984_v51 }
 0x68d   :  { %v6986_v55 = vpop.eup %6985  ;;  %6995 = vrcp.f32 %v3324_v52 }
 0x68e   :  { %v6988_v56 = vpop.eup %6987  ;;  %6997 = vrcp.f32 %v3323_v54  ;;  %v3345_v57 = vadd.f32 1.0, %v6986_v55  ;;  %v3363_v55 = vld [vmem:[#allocation2 + $0xd8] sm:$0xff] }
 0x68f   :  { %v3344_v45 = vadd.f32 1.0, %v6988_v56  ;;  %6999 = vtanh.f32 %v3311_v42  ;;  %v6990_v58 = vpop.eup %6989 }
 0x690   :  { %7001 = vrcp.f32 %v3345_v57  ;;  %v6992_v60 = vpop.eup %6991 }
 0x691   :  { %7003 = vrcp.f32 %v3344_v45  ;;  %v3325_v10 = vadd.f32 1.0, %v6992_v60  ;;  %v3452_v60 = vld [vmem:[#allocation3 + $0x138] sm:$0xff] }
 0x692   :  { %v6994_v61 = vpop.eup %6993 }
 0x693   :  { %v3346_v17 = vadd.f32 1.0, %v6994_v61  ;;  %7005 = vrcp.f32 %v3325_v10 }
 0x697   :  { %v6996_v11 = vpop.eup %6995 }
 0x698   :  { %v6998_v49 = vpop.eup %6997  ;;  %v3330_v63 = vmul.f32 %v6996_v11, %v8299_v59 }
 0x699   :  { %v7000_v0 = vpop.eup %6999  ;;  %v3331_v1 = vmul.f32 %v6998_v49, %v6990_v58 }
 0x69a   :  { %v7002_v53 = vpop.eup %7001 }
 0x69b   :  { %v7004_v15 = vpop.eup %7003  ;;  %v8331_v16 = vadd.f32 %v3331_v1, %v3330_v63  ;;  %v3351_v23 = vmul.f32 %v7002_v53, %v8303_v62 }
 0x69c   :  { %v3352_v18 = vmul.f32 %v7004_v15, %v7000_v0 }
 0x69d   :  { %7007 = vtanh.f32 %v8331_v16  ;;  %v7006_v59 = vpop.eup %7005 }
 0x69e   :  { %v8335_v13 = vadd.f32 %v3352_v18, %v3351_v23  ;;  %7009 = vrcp.f32 %v3346_v17 }
 0x6a0   :  { %7011 = vtanh.f32 %v8335_v13 }
 0x6a7   :  { %v7008_v19 = vpop.eup %7007 }
 0x6a8   :  { %v3334_v20 = vmul.f32 %v7008_v19, %v7006_v59  ;;  %v7010_v21 = vpop.eup %7009 }
 0x6aa   :  { %v7012_v22 = vpop.eup %7011  ;;  %5819 = vst.msk [vmem:[%s8734_s4 + $0x50] sm:$0xff] %vm205_vm2, %v3334_v20  ;;  %6593 = vmatprep.subr.mxu0 %v3334_v20 }
 0x6ab   :  { %6594 = vmatpush3.msra.mxu0 %v3334_v20  ;;  %v3355_v62 = vmul.f32 %v7012_v22, %v7010_v21 }
 0x6ac   :  { %6596 = vmatmul.mubr.msk.f32.vlgmr.msra.gmra.mrb[88].mxu0 %vm1996_vm1, %v8177_v36 }
 0x6ad   :  { %5820 = vst.msk [vmem:[%s8734_s4 + $0xa8] sm:$0xff] %vm205_vm2, %v3355_v62  ;;  %6601 = vmatprep.subr.mxu1 %v3355_v62  ;;  %6598 = vmatprep.mubr.msk.f32.mxu0 %vm1996_vm1, %v8188_v37 }
 0x6ae   :  { %6602 = vmatpush3.msra.mxu1 %v3355_v62 }
 0x6af   :  { %6604 = vmatmul.mubr.msk.f32.vlgmr.msra.gmra.mrb[88].mxu1 %vm1996_vm1, %v8195_v5 }
 0x6b0   :  { %6599 = vmatmul.mubr.msk.f32.gmra.mrb[90].mxu0 %vm1996_vm1, %v8202_v38  ;;  %6606 = vmatprep.mubr.msk.f32.mxu1 %vm1996_vm1, %v8209_v25 }
 0x6b1   :  { %6611 = vmatprep.mubr.msk.f32.mxu0 %vm1996_vm1, %v8216_v8 }
 0x6b3   :  { %6607 = vmatmul.mubr.msk.f32.gmra.mrb[90].mxu1 %vm1996_vm1, %v8223_v39 }
 0x6b4   :  { %6619 = vmatprep.mubr.msk.f32.mxu1 %vm1996_vm1, %v8230_v40 }
 0x77f   :  { %v6597_v24 = vpop.f32.mrb[88].mxu0 }
 0x780   :  { %v3436_v26 = vadd.f32 %v6597_v24, %v3361_v14  ;;  %v3430_v12 = vpop.f32.mrb[89].mxu0 }
 0x781   :  { %v3431_v31 = vadd.f32 %v3430_v12, %v3360_v28 }
 0x782   :  { %v3539_v32 = vsub.f32 0.0, %v3436_v26  ;;  %v6605_v27 = vpop.f32.mrb[88].mxu1 }
 0x783   :  { %v3538_v34 = vsub.f32 0.0, %v3431_v31  ;;  %v3525_v35 = vadd.f32 %v6605_v27, %v3450_v41  ;;  %v3519_v4 = vpop.f32.mrb[89].mxu1  ;;  %v6600_v30 = vpop.f32.mrb[90].mxu0 }
 0x784   :  { %v3543_v7 = vmul.f32 1.442695, %v3539_v32  ;;  %v3520_v43 = vadd.f32 %v3519_v4, %v3449_v6  ;;  %v3440_v2 = vpop.f32.mrb[91].mxu0  ;;  %v3446_v56 = vadd.f32 %v6600_v30, %v3363_v55 }
 0x785   :  { %v3541_v29 = vmul.f32 1.442695, %v3538_v34  ;;  %v3560_v9 = vsub.f32 0.0, %v3525_v35  ;;  %v3441_v46 = vadd.f32 %v3440_v2, %v3362_v44  ;;  %v3673_v44 = vld [vmem:[#allocation3 + $0x100] sm:$0xff] }
 0x786   :  { %7013 = vpow2.f32 %v3543_v7  ;;  %v3559_v47 = vsub.f32 0.0, %v3520_v43  ;;  %v6608_v3 = vpop.f32.mrb[90].mxu1 }
 0x787   :  { %7015 = vpow2.f32 %v3541_v29  ;;  %v3564_v33 = vmul.f32 1.442695, %v3560_v9  ;;  %v3529_v48 = vpop.f32.mrb[91].mxu1  ;;  %v3540_v42 = vsub.f32 0.0, %v3441_v46  ;;  %v3535_v49 = vadd.f32 %v6608_v3, %v3452_v60  ;;  %v3586_v46 = vld [vmem:[#allocation2 + $0xf0] sm:$0xff] }
 0x788   :  { %v3562_v51 = vmul.f32 1.442695, %v3559_v47  ;;  %v3530_v52 = vadd.f32 %v3529_v48, %v3451_v50 }
 0x789   :  { %7017 = vpow2.f32 %v3564_v33  ;;  %v3545_v57 = vmul.f32 1.442695, %v3540_v42 }
 0x78a   :  { %7019 = vpow2.f32 %v3562_v51  ;;  %v3561_v54 = vsub.f32 0.0, %v3530_v52  ;;  %v3675_v52 = vld [vmem:[#allocation3 + $0x110] sm:$0xff] }
 0x78b   :  { %7021 = vtanh.f32 %v3446_v56 }
 0x78c   :  { %v3566_v45 = vmul.f32 1.442695, %v3561_v54  ;;  %7023 = vpow2.f32 %v3545_v57  ;;  %v3587_v57 = vld [vmem:[#allocation2 + $0xf8] sm:$0xff] }
 0x78e   :  { %7025 = vpow2.f32 %v3566_v45 }
 0x790   :  { %v7014_v58 = vpop.eup %7013 }
 0x791   :  { %v7016_v61 = vpop.eup %7015  ;;  %v3548_v11 = vadd.f32 1.0, %v7014_v58 }
 0x792   :  { %v3547_v63 = vadd.f32 1.0, %v7016_v61 }
 0x793   :  { %v7018_v10 = vpop.eup %7017  ;;  %7027 = vrcp.f32 %v3548_v11  ;;  %v3676_v11 = vld [vmem:[#allocation3 + $0x118] sm:$0xff] }
 0x794   :  { %v7020_v0 = vpop.eup %7019  ;;  %7029 = vrcp.f32 %v3547_v63  ;;  %v3569_v1 = vadd.f32 1.0, %v7018_v10 }
 0x795   :  { %v3568_v53 = vadd.f32 1.0, %v7020_v0  ;;  %7031 = vtanh.f32 %v3535_v49  ;;  %v7022_v15 = vpop.eup %7021 }
 0x796   :  { %7033 = vrcp.f32 %v3569_v1  ;;  %v7024_v23 = vpop.eup %7023 }
 0x797   :  { %7035 = vrcp.f32 %v3568_v53  ;;  %v3549_v20 = vadd.f32 1.0, %v7024_v23 }
 0x798   :  { %v7026_v17 = vpop.eup %7025 }
 0x799   :  { %v3570_v12 = vadd.f32 1.0, %v7026_v17  ;;  %7037 = vrcp.f32 %v3549_v20 }
 0x79d   :  { %v7028_v18 = vpop.eup %7027 }
 0x79e   :  { %v7030_v59 = vpop.eup %7029  ;;  %v3554_v19 = vmul.f32 %v7028_v18, %v8331_v16 }
 0x79f   :  { %v7032_v21 = vpop.eup %7031  ;;  %v3555_v22 = vmul.f32 %v7030_v59, %v7022_v15 }
 0x7a0   :  { %v7034_v62 = vpop.eup %7033 }
 0x7a1   :  { %v7036_v14 = vpop.eup %7035  ;;  %v8363_v24 = vadd.f32 %v3555_v22, %v3554_v19  ;;  %v3575_v26 = vmul.f32 %v7034_v62, %v8335_v13 }
 0x7a2   :  { %v3576_v28 = vmul.f32 %v7036_v14, %v7032_v21 }
 0x7a3   :  { %7039 = vtanh.f32 %v8363_v24  ;;  %v7038_v16 = vpop.eup %7037 }
 0x7a4   :  { %v8367_v31 = vadd.f32 %v3576_v28, %v3575_v26  ;;  %7041 = vrcp.f32 %v3570_v12 }
 0x7a6   :  { %7043 = vtanh.f32 %v8367_v31 }
 0x7ad   :  { %v7040_v32 = vpop.eup %7039 }
 0x7ae   :  { %v3558_v41 = vmul.f32 %v7040_v32, %v7038_v16  ;;  %v7042_v27 = vpop.eup %7041 }
 0x7b0   :  { %v7044_v34 = vpop.eup %7043  ;;  %5829 = vst.msk [vmem:[%s8734_s4 + $0x60] sm:$0xff] %vm205_vm2, %v3558_v41  ;;  %6609 = vmatprep.subr.mxu0 %v3558_v41 }
 0x7b1   :  { %6610 = vmatpush3.msra.mxu0 %v3558_v41  ;;  %v3579_v13 = vmul.f32 %v7044_v34, %v7042_v27 }
 0x7b2   :  { %6612 = vmatmul.mubr.msk.f32.vlgmr.msra.gmra.mrb[92].mxu0 %vm1996_vm1, %v8177_v36  ;;  %v3585_v36 = vld [vmem:[#allocation2 + $0xe8] sm:$0xff] }
 0x7b3   :  { %5830 = vst.msk [vmem:[%s8734_s4 + $0x98] sm:$0xff] %vm205_vm2, %v3579_v13  ;;  %6617 = vmatprep.subr.mxu1 %v3579_v13  ;;  %6614 = vmatprep.mubr.msk.f32.mxu0 %vm1996_vm1, %v8188_v37 }
 0x7b4   :  { %6618 = vmatpush3.msra.mxu1 %v3579_v13 }
 0x7b5   :  { %6620 = vmatmul.mubr.msk.f32.vlgmr.msra.gmra.mrb[92].mxu1 %vm1996_vm1, %v8195_v5  ;;  %v3584_v5 = vld [vmem:[#allocation2 + $0xe0] sm:$0xff] }
 0x7b6   :  { %6615 = vmatmul.mubr.msk.f32.gmra.mrb[94].mxu0 %vm1996_vm1, %v8202_v38  ;;  %6622 = vmatprep.mubr.msk.f32.mxu1 %vm1996_vm1, %v8209_v25  ;;  %v3674_v38 = vld [vmem:[#allocation3 + $0x108] sm:$0xff] }
 0x7b7   :  { %6627 = vmatprep.mubr.msk.f32.mxu0 %vm1996_vm1, %v8216_v8 }
 0x7b9   :  { %6623 = vmatmul.mubr.msk.f32.gmra.mrb[94].mxu1 %vm1996_vm1, %v8223_v39 }
 0x7ba   :  { %6635 = vmatprep.mubr.msk.f32.mxu1 %vm1996_vm1, %v8230_v40 }
 0x885   :  { %v6613_v37 = vpop.f32.mrb[92].mxu0 }
 0x886   :  { %v3660_v35 = vadd.f32 %v6613_v37, %v3585_v36  ;;  %v3654_v4 = vpop.f32.mrb[93].mxu0 }
 0x887   :  { %v3655_v6 = vadd.f32 %v3654_v4, %v3584_v5  ;;  %v8420_v4 = vld [vmem:[%s8733_s2 + $0x10] sm:$0xff]  ;;  %v8427_v5 = vld [vmem:[%s8733_s2 + $0x28] sm:$0xff] }
 0x888   :  { %v3763_v30 = vsub.f32 0.0, %v3660_v35  ;;  %v6621_v7 = vpop.f32.mrb[92].mxu1  ;;  %v8409_v35 = vld [vmem:[%s8733_s2 + $0x8] sm:$0xff] }
 0x889   :  { %v3762_v43 = vsub.f32 0.0, %v3655_v6  ;;  %v3749_v25 = vadd.f32 %v6621_v7, %v3674_v38  ;;  %v3743_v2 = vpop.f32.mrb[93].mxu1  ;;  %v6616_v8 = vpop.f32.mrb[94].mxu0  ;;  %v8434_v6 = vld [vmem:[%s8733_s2 + $0x18] sm:$0xff]  ;;  %v8448_v38 = vld [vmem:[%s8733_s2] sm:$0xff] }
 0x88a   :  { %v3767_v29 = vmul.f32 1.442695, %v3763_v30  ;;  %v3744_v9 = vadd.f32 %v3743_v2, %v3673_v44  ;;  %v3664_v39 = vpop.f32.mrb[95].mxu0  ;;  %v3670_v45 = vadd.f32 %v6616_v8, %v3587_v57  ;;  %v8441_v30 = vld [vmem:[%s8733_s2 + $0x30] sm:$0xff]  ;;  %v8455_v7 = vld [vmem:[%s8733_s2 + $0x38] sm:$0xff] }
 0x88b   :  { %v3765_v47 = vmul.f32 1.442695, %v3762_v43  ;;  %v3784_v40 = vsub.f32 0.0, %v3749_v25  ;;  %v3665_v3 = vadd.f32 %v3664_v39, %v3586_v46  ;;  %v8462_v43 = vld [vmem:[%s8733_s2 + $0x20] sm:$0xff]  ;;  %v3809_v25 = vld [vmem:[#allocation2 + $0x108] sm:$0xff] }
 0x88c   :  { %7045 = vpow2.f32 %v3767_v29  ;;  %v3783_v33 = vsub.f32 0.0, %v3744_v9  ;;  %v6624_v48 = vpop.f32.mrb[94].mxu1  ;;  %v3808_v29 = vld [vmem:[#allocation2 + $0x100] sm:$0xff]  ;;  %v3898_v46 = vld [vmem:[#allocation3 + $0xe8] sm:$0xff] }
 0x88d   :  { %7047 = vpow2.f32 %v3765_v47  ;;  %v3788_v50 = vmul.f32 1.442695, %v3784_v40  ;;  %v3753_v51 = vpop.f32.mrb[95].mxu1  ;;  %v3764_v55 = vsub.f32 0.0, %v3665_v3  ;;  %v3759_v10 = vadd.f32 %v6624_v48, %v3676_v11  ;;  %v3897_v48 = vld [vmem:[#allocation3 + $0xe0] sm:$0xff]  ;;  %v3899_v11 = vld [vmem:[#allocation3 + $0xf0] sm:$0xff] }
 0x88e   :  { %v3786_v42 = vmul.f32 1.442695, %v3783_v33  ;;  %v3754_v54 = vadd.f32 %v3753_v51, %v3675_v52 }
 0x88f   :  { %7049 = vpow2.f32 %v3788_v50  ;;  %v3769_v58 = vmul.f32 1.442695, %v3764_v55 }
 0x890   :  { %7051 = vpow2.f32 %v3786_v42  ;;  %v3785_v56 = vsub.f32 0.0, %v3754_v54  ;;  %v3810_v54 = vld [vmem:[#allocation2 + $0x110] sm:$0xff] }
 0x891   :  { %7053 = vtanh.f32 %v3670_v45 }
 0x892   :  { %v3790_v60 = vmul.f32 1.442695, %v3785_v56  ;;  %7055 = vpow2.f32 %v3769_v58 }
 0x894   :  { %7057 = vpow2.f32 %v3790_v60 }
 0x896   :  { %v7046_v61 = vpop.eup %7045 }
 0x897   :  { %v7048_v49 = vpop.eup %7047  ;;  %v3772_v63 = vadd.f32 1.0, %v7046_v61 }
 0x898   :  { %v3771_v0 = vadd.f32 1.0, %v7048_v49 }
 0x899   :  { %v7050_v1 = vpop.eup %7049  ;;  %7059 = vrcp.f32 %v3772_v63 }
 0x89a   :  { %v7052_v53 = vpop.eup %7051  ;;  %7061 = vrcp.f32 %v3771_v0  ;;  %v3793_v15 = vadd.f32 1.0, %v7050_v1  ;;  %v3811_v1 = vld [vmem:[#allocation2 + $0x118] sm:$0xff] }
 0x89b   :  { %v3792_v23 = vadd.f32 1.0, %v7052_v53  ;;  %7063 = vtanh.f32 %v3759_v10  ;;  %v7054_v17 = vpop.eup %7053 }
 0x89c   :  { %7065 = vrcp.f32 %v3793_v15  ;;  %v7056_v18 = vpop.eup %7055 }
 0x89d   :  { %7067 = vrcp.f32 %v3792_v23  ;;  %v3773_v22 = vadd.f32 1.0, %v7056_v18  ;;  %v3900_v18 = vld [vmem:[#allocation3 + $0xf8] sm:$0xff] }
 0x89e   :  { %v7058_v59 = vpop.eup %7057 }
 0x89f   :  { %v3794_v32 = vadd.f32 1.0, %v7058_v59  ;;  %7069 = vrcp.f32 %v3773_v22 }
 0x8a3   :  { %v7060_v19 = vpop.eup %7059 }
 0x8a4   :  { %v7062_v20 = vpop.eup %7061  ;;  %v3778_v21 = vmul.f32 %v7060_v19, %v8363_v24 }
 0x8a5   :  { %v7064_v62 = vpop.eup %7063  ;;  %v3779_v14 = vmul.f32 %v7062_v20, %v7054_v17 }
 0x8a6   :  { %v7066_v26 = vpop.eup %7065 }
 0x8a7   :  { %v7068_v12 = vpop.eup %7067  ;;  %v8395_v28 = vadd.f32 %v3779_v14, %v3778_v21  ;;  %v3799_v16 = vmul.f32 %v7066_v26, %v8367_v31 }
 0x8a8   :  { %v3800_v41 = vmul.f32 %v7068_v12, %v7064_v62 }
 0x8a9   :  { %7071 = vtanh.f32 %v8395_v28  ;;  %v7070_v24 = vpop.eup %7069 }
 0x8aa   :  { %v8399_v27 = vadd.f32 %v3800_v41, %v3799_v16  ;;  %7073 = vrcp.f32 %v3794_v32 }
 0x8ac   :  { %7075 = vtanh.f32 %v8399_v27 }
 0x8b3   :  { %v7072_v34 = vpop.eup %7071 }
 0x8b4   :  { %v3782_v13 = vmul.f32 %v7072_v34, %v7070_v24  ;;  %v7074_v36 = vpop.eup %7073 }
 0x8b6   :  { %v7076_v37 = vpop.eup %7075  ;;  %5839 = vst.msk [vmem:[%s8734_s4 + $0x70] sm:$0xff] %vm205_vm2, %v3782_v13  ;;  %6625 = vmatprep.subr.mxu0 %v3782_v13 }
 0x8b7   :  { %6626 = vmatpush3.msra.mxu0 %v3782_v13  ;;  %v3803_v31 = vmul.f32 %v7076_v37, %v7074_v36 }
 0x8b8   :  { %6628 = vmatmul.mubr.msk.f32.vlgmr.msra.gmra.mrb[96].mxu0 %vm1996_vm1, %v8409_v35 }
 0x8b9   :  { %5840 = vst.msk [vmem:[%s8734_s4 + $0x88] sm:$0xff] %vm205_vm2, %v3803_v31  ;;  %6633 = vmatprep.subr.mxu1 %v3803_v31  ;;  %6630 = vmatprep.mubr.msk.f32.mxu0 %vm1996_vm1, %v8420_v4 }
 0x8ba   :  { %6634 = vmatpush3.msra.mxu1 %v3803_v31 }
 0x8bb   :  { %6636 = vmatmul.mubr.msk.f32.vlgmr.msra.gmra.mrb[96].mxu1 %vm1996_vm1, %v8427_v5 }
 0x8bc   :  { %6631 = vmatmul.mubr.msk.f32.gmra.mrb[98].mxu0 %vm1996_vm1, %v8434_v6  ;;  %6638 = vmatprep.mubr.msk.f32.mxu1 %vm1996_vm1, %v8441_v30 }
 0x8bd   :  { %6643 = vmatprep.mubr.msk.f32.mxu0 %vm1996_vm1, %v8448_v38 }
 0x8bf   :  { %6639 = vmatmul.mubr.msk.f32.gmra.mrb[98].mxu1 %vm1996_vm1, %v8455_v7 }
 0x8c0   :  { %6651 = vmatprep.mubr.msk.f32.mxu1 %vm1996_vm1, %v8462_v43 }
 0x98b   :  { %v6629_v2 = vpop.f32.mrb[96].mxu0 }
 0x98c   :  { %v3884_v44 = vadd.f32 %v6629_v2, %v3809_v25  ;;  %v3878_v8 = vpop.f32.mrb[97].mxu0 }
 0x98d   :  { %v3879_v9 = vadd.f32 %v3878_v8, %v3808_v29 }
 0x98e   :  { %v3987_v39 = vsub.f32 0.0, %v3884_v44  ;;  %v6637_v47 = vpop.f32.mrb[96].mxu1 }
 0x98f   :  { %v3986_v40 = vsub.f32 0.0, %v3879_v9  ;;  %v3973_v3 = vadd.f32 %v6637_v47, %v3898_v46  ;;  %v3967_v33 = vpop.f32.mrb[97].mxu1  ;;  %v6632_v50 = vpop.f32.mrb[98].mxu0 }
 0x990   :  { %v3991_v51 = vmul.f32 1.442695, %v3987_v39  ;;  %v3968_v52 = vadd.f32 %v3967_v33, %v3897_v48  ;;  %v3888_v42 = vpop.f32.mrb[99].mxu0  ;;  %v3894_v53 = vadd.f32 %v6632_v50, %v3811_v1 }
 0x991   :  { %v3989_v55 = vmul.f32 1.442695, %v3986_v40  ;;  %v4008_v56 = vsub.f32 0.0, %v3973_v3  ;;  %v3889_v57 = vadd.f32 %v3888_v42, %v3810_v54  ;;  %v4033_v3 = vld [vmem:[#allocation2 + $0x128] sm:$0xff] }
 0x992   :  { %7077 = vpow2.f32 %v3991_v51  ;;  %v4007_v45 = vsub.f32 0.0, %v3968_v52  ;;  %v6640_v58 = vpop.f32.mrb[98].mxu1  ;;  %v4032_v51 = vld [vmem:[#allocation2 + $0x120] sm:$0xff]  ;;  %v4122_v54 = vld [vmem:[#allocation3 + $0xc8] sm:$0xff] }
 0x993   :  { %7079 = vpow2.f32 %v3989_v55  ;;  %v4012_v60 = vmul.f32 1.442695, %v4008_v56  ;;  %v3977_v61 = vpop.f32.mrb[99].mxu1  ;;  %v3988_v10 = vsub.f32 0.0, %v3889_v57  ;;  %v3983_v20 = vadd.f32 %v6640_v58, %v3900_v18  ;;  %v4121_v58 = vld [vmem:[#allocation3 + $0xc0] sm:$0xff]  ;;  %v4123_v18 = vld [vmem:[#allocation3 + $0xd0] sm:$0xff] }
 0x994   :  { %v4010_v49 = vmul.f32 1.442695, %v4007_v45  ;;  %v3978_v63 = vadd.f32 %v3977_v61, %v3899_v11 }
 0x995   :  { %7081 = vpow2.f32 %v4012_v60  ;;  %v3993_v15 = vmul.f32 1.442695, %v3988_v10 }
 0x996   :  { %7083 = vpow2.f32 %v4010_v49  ;;  %v4009_v0 = vsub.f32 0.0, %v3978_v63  ;;  %v4034_v63 = vld [vmem:[#allocation2 + $0x130] sm:$0xff] }
 0x997   :  { %7085 = vtanh.f32 %v3894_v53 }
 0x998   :  { %v4014_v23 = vmul.f32 1.442695, %v4009_v0  ;;  %7087 = vpow2.f32 %v3993_v15 }
 0x99a   :  { %7089 = vpow2.f32 %v4014_v23 }
 0x99c   :  { %v7078_v17 = vpop.eup %7077 }
 0x99d   :  { %v7080_v59 = vpop.eup %7079  ;;  %v3996_v19 = vadd.f32 1.0, %v7078_v17 }
 0x99e   :  { %v3995_v21 = vadd.f32 1.0, %v7080_v59 }
 0x99f   :  { %v7082_v22 = vpop.eup %7081  ;;  %7091 = vrcp.f32 %v3996_v19 }
 0x9a0   :  { %v7084_v62 = vpop.eup %7083  ;;  %7093 = vrcp.f32 %v3995_v21  ;;  %v4017_v14 = vadd.f32 1.0, %v7082_v22  ;;  %v4035_v22 = vld [vmem:[#allocation2 + $0x138] sm:$0xff] }
 0x9a1   :  { %v4016_v26 = vadd.f32 1.0, %v7084_v62  ;;  %7095 = vtanh.f32 %v3983_v20  ;;  %v7086_v12 = vpop.eup %7085 }
 0x9a2   :  { %7097 = vrcp.f32 %v4017_v14  ;;  %v7088_v16 = vpop.eup %7087 }
 0x9a3   :  { %7099 = vrcp.f32 %v4016_v26  ;;  %v3997_v13 = vadd.f32 1.0, %v7088_v16  ;;  %v4124_v16 = vld [vmem:[#allocation3 + $0xd8] sm:$0xff] }
 0x9a4   :  { %v7090_v32 = vpop.eup %7089 }
 0x9a5   :  { %v4018_v8 = vadd.f32 1.0, %v7090_v32  ;;  %7101 = vrcp.f32 %v3997_v13 }
 0x9a9   :  { %v7092_v41 = vpop.eup %7091 }
 0x9aa   :  { %v7094_v24 = vpop.eup %7093  ;;  %v4002_v34 = vmul.f32 %v7092_v41, %v8395_v28 }
 0x9ab   :  { %v7096_v36 = vpop.eup %7095  ;;  %v4003_v37 = vmul.f32 %v7094_v24, %v7086_v12 }
 0x9ac   :  { %v7098_v31 = vpop.eup %7097 }
 0x9ad   :  { %v7100_v25 = vpop.eup %7099  ;;  %v8467_v2 = vadd.f32 %v4003_v37, %v4002_v34  ;;  %v4023_v44 = vmul.f32 %v7098_v31, %v8399_v27 }
 0x9ae   :  { %v4024_v29 = vmul.f32 %v7100_v25, %v7096_v36 }
 0x9af   :  { %7103 = vtanh.f32 %v8467_v2  ;;  %v7102_v28 = vpop.eup %7101 }
 0x9b0   :  { %v8471_v9 = vadd.f32 %v4024_v29, %v4023_v44  ;;  %7105 = vrcp.f32 %v4018_v8 }
 0x9b2   :  { %7107 = vtanh.f32 %v8471_v9 }
 0x9b9   :  { %v7104_v39 = vpop.eup %7103 }
 0x9ba   :  { %v4006_v46 = vmul.f32 %v7104_v39, %v7102_v28  ;;  %v7106_v47 = vpop.eup %7105 }
 0x9bc   :  { %v7108_v40 = vpop.eup %7107  ;;  %5849 = vst.msk [vmem:[%s8734_s4 + $0x80] sm:$0xff] %vm205_vm2, %v4006_v46  ;;  %6641 = vmatprep.subr.mxu0 %v4006_v46 }
 0x9bd   :  { %6642 = vmatpush3.msra.mxu0 %v4006_v46  ;;  %v4027_v27 = vmul.f32 %v7108_v40, %v7106_v47 }
 0x9be   :  { %6644 = vmatmul.mubr.msk.f32.vlgmr.msra.gmra.mrb[100].mxu0 %vm1996_vm1, %v8409_v35 }
 0x9bf   :  { %5850 = vst.msk [vmem:[%s8734_s4 + $0x78] sm:$0xff] %vm205_vm2, %v4027_v27  ;;  %6649 = vmatprep.subr.mxu1 %v4027_v27  ;;  %6646 = vmatprep.mubr.msk.f32.mxu0 %vm1996_vm1, %v8420_v4 }
 0x9c0   :  { %6650 = vmatpush3.msra.mxu1 %v4027_v27 }
 0x9c1   :  { %6652 = vmatmul.mubr.msk.f32.vlgmr.msra.gmra.mrb[100].mxu1 %vm1996_vm1, %v8427_v5 }
 0x9c2   :  { %6647 = vmatmul.mubr.msk.f32.gmra.mrb[102].mxu0 %vm1996_vm1, %v8434_v6  ;;  %6654 = vmatprep.mubr.msk.f32.mxu1 %vm1996_vm1, %v8441_v30 }
 0x9c3   :  { %6659 = vmatprep.mubr.msk.f32.mxu0 %vm1996_vm1, %v8448_v38 }
 0x9c5   :  { %6655 = vmatmul.mubr.msk.f32.gmra.mrb[102].mxu1 %vm1996_vm1, %v8455_v7 }
 0x9c6   :  { %6667 = vmatprep.mubr.msk.f32.mxu1 %vm1996_vm1, %v8462_v43 }
 0xa91   :  { %v6645_v33 = vpop.f32.mrb[100].mxu0 }
 0xa92   :  { %v4108_v48 = vadd.f32 %v6645_v33, %v4033_v3  ;;  %v4102_v50 = vpop.f32.mrb[101].mxu0 }
 0xa93   :  { %v4103_v52 = vadd.f32 %v4102_v50, %v4032_v51 }
 0xa94   :  { %v4211_v42 = vsub.f32 0.0, %v4108_v48  ;;  %v6653_v55 = vpop.f32.mrb[100].mxu1 }
 0xa95   :  { %v4210_v56 = vsub.f32 0.0, %v4103_v52  ;;  %v4197_v57 = vadd.f32 %v6653_v55, %v4122_v54  ;;  %v4191_v45 = vpop.f32.mrb[101].mxu1  ;;  %v6648_v60 = vpop.f32.mrb[102].mxu0 }
 0xa96   :  { %v4215_v61 = vmul.f32 1.442695, %v4211_v42  ;;  %v4192_v11 = vadd.f32 %v4191_v45, %v4121_v58  ;;  %v4112_v49 = vpop.f32.mrb[103].mxu0  ;;  %v4118_v62 = vadd.f32 %v6648_v60, %v4035_v22 }
 0xa97   :  { %v4213_v10 = vmul.f32 1.442695, %v4210_v56  ;;  %v4232_v0 = vsub.f32 0.0, %v4197_v57  ;;  %v4113_v1 = vadd.f32 %v4112_v49, %v4034_v63  ;;  %v4257_v57 = vld [vmem:[#allocation2 + $0x148] sm:$0xff] }
 0xa98   :  { %7109 = vpow2.f32 %v4215_v61  ;;  %v4231_v53 = vsub.f32 0.0, %v4192_v11  ;;  %v6656_v15 = vpop.f32.mrb[102].mxu1  ;;  %v4256_v61 = vld [vmem:[#allocation2 + $0x140] sm:$0xff]  ;;  %v4346_v63 = vld [vmem:[#allocation3 + $0xa8] sm:$0xff] }
 0xa99   :  { %7111 = vpow2.f32 %v4213_v10  ;;  %v4236_v23 = vmul.f32 1.442695, %v4232_v0  ;;  %v4201_v17 = vpop.f32.mrb[103].mxu1  ;;  %v4212_v20 = vsub.f32 0.0, %v4113_v1  ;;  %v4207_v24 = vadd.f32 %v6656_v15, %v4124_v16  ;;  %v4345_v15 = vld [vmem:[#allocation3 + $0xa0] sm:$0xff]  ;;  %v4347_v16 = vld [vmem:[#allocation3 + $0xb0] sm:$0xff] }
 0xa9a   :  { %v4234_v59 = vmul.f32 1.442695, %v4231_v53  ;;  %v4202_v19 = vadd.f32 %v4201_v17, %v4123_v18 }
 0xa9b   :  { %7113 = vpow2.f32 %v4236_v23  ;;  %v4217_v14 = vmul.f32 1.442695, %v4212_v20 }
 0xa9c   :  { %7115 = vpow2.f32 %v4234_v59  ;;  %v4233_v21 = vsub.f32 0.0, %v4202_v19  ;;  %v4258_v19 = vld [vmem:[#allocation2 + $0x150] sm:$0xff] }
 0xa9d   :  { %7117 = vtanh.f32 %v4118_v62 }
 0xa9e   :  { %v4238_v26 = vmul.f32 1.442695, %v4233_v21  ;;  %7119 = vpow2.f32 %v4217_v14 }
 0xaa0   :  { %7121 = vpow2.f32 %v4238_v26 }
 0xaa2   :  { %v7110_v12 = vpop.eup %7109 }
 0xaa3   :  { %v7112_v32 = vpop.eup %7111  ;;  %v4220_v41 = vadd.f32 1.0, %v7110_v12 }
 0xaa4   :  { %v4219_v34 = vadd.f32 1.0, %v7112_v32 }
 0xaa5   :  { %v7114_v13 = vpop.eup %7113  ;;  %7123 = vrcp.f32 %v4220_v41 }
 0xaa6   :  { %v7116_v36 = vpop.eup %7115  ;;  %7125 = vrcp.f32 %v4219_v34  ;;  %v4241_v37 = vadd.f32 1.0, %v7114_v13  ;;  %v4259_v13 = vld [vmem:[#allocation2 + $0x158] sm:$0xff] }
 0xaa7   :  { %v4240_v31 = vadd.f32 1.0, %v7116_v36  ;;  %7127 = vtanh.f32 %v4207_v24  ;;  %v7118_v25 = vpop.eup %7117 }
 0xaa8   :  { %7129 = vrcp.f32 %v4241_v37  ;;  %v7120_v44 = vpop.eup %7119 }
 0xaa9   :  { %7131 = vrcp.f32 %v4240_v31  ;;  %v4221_v46 = vadd.f32 1.0, %v7120_v44  ;;  %v4348_v44 = vld [vmem:[#allocation3 + $0xb8] sm:$0xff] }
 0xaaa   :  { %v7122_v8 = vpop.eup %7121 }
 0xaab   :  { %v4242_v50 = vadd.f32 1.0, %v7122_v8  ;;  %7133 = vrcp.f32 %v4221_v46 }
 0xaaf   :  { %v7124_v29 = vpop.eup %7123 }
 0xab0   :  { %v7126_v28 = vpop.eup %7125  ;;  %v4226_v39 = vmul.f32 %v7124_v29, %v8467_v2 }
 0xab1   :  { %v7128_v47 = vpop.eup %7127  ;;  %v4227_v40 = vmul.f32 %v7126_v28, %v7118_v25 }
 0xab2   :  { %v7130_v27 = vpop.eup %7129 }
 0xab3   :  { %v7132_v3 = vpop.eup %7131  ;;  %v8499_v33 = vadd.f32 %v4227_v40, %v4226_v39  ;;  %v4247_v48 = vmul.f32 %v7130_v27, %v8471_v9 }
 0xab4   :  { %v4248_v51 = vmul.f32 %v7132_v3, %v7128_v47 }
 0xab5   :  { %7135 = vtanh.f32 %v8499_v33  ;;  %v7134_v2 = vpop.eup %7133 }
 0xab6   :  { %v8503_v52 = vadd.f32 %v4248_v51, %v4247_v48  ;;  %7137 = vrcp.f32 %v4242_v50 }
 0xab8   :  { %7139 = vtanh.f32 %v8503_v52 }
 0xabf   :  { %v7136_v42 = vpop.eup %7135 }
 0xac0   :  { %v4230_v54 = vmul.f32 %v7136_v42, %v7134_v2  ;;  %v7138_v55 = vpop.eup %7137 }
 0xac2   :  { %v7140_v56 = vpop.eup %7139  ;;  %5859 = vst.msk [vmem:[%s8734_s4 + $0x90] sm:$0xff] %vm205_vm2, %v4230_v54  ;;  %6657 = vmatprep.subr.mxu0 %v4230_v54 }
 0xac3   :  { %6658 = vmatpush3.msra.mxu0 %v4230_v54  ;;  %v4251_v9 = vmul.f32 %v7140_v56, %v7138_v55 }
 0xac4   :  { %6660 = vmatmul.mubr.msk.f32.vlgmr.msra.gmra.mrb[104].mxu0 %vm1996_vm1, %v8409_v35 }
 0xac5   :  { %5860 = vst.msk [vmem:[%s8734_s4 + $0x68] sm:$0xff] %vm205_vm2, %v4251_v9  ;;  %6665 = vmatprep.subr.mxu1 %v4251_v9  ;;  %6662 = vmatprep.mubr.msk.f32.mxu0 %vm1996_vm1, %v8420_v4 }
 0xac6   :  { %6666 = vmatpush3.msra.mxu1 %v4251_v9 }
 0xac7   :  { %6668 = vmatmul.mubr.msk.f32.vlgmr.msra.gmra.mrb[104].mxu1 %vm1996_vm1, %v8427_v5 }
 0xac8   :  { %6663 = vmatmul.mubr.msk.f32.gmra.mrb[106].mxu0 %vm1996_vm1, %v8434_v6  ;;  %6670 = vmatprep.mubr.msk.f32.mxu1 %vm1996_vm1, %v8441_v30 }
 0xac9   :  { %6675 = vmatprep.mubr.msk.f32.mxu0 %vm1996_vm1, %v8448_v38 }
 0xacb   :  { %6671 = vmatmul.mubr.msk.f32.gmra.mrb[106].mxu1 %vm1996_vm1, %v8455_v7 }
 0xacc   :  { %6683 = vmatprep.mubr.msk.f32.mxu1 %vm1996_vm1, %v8462_v43 }
 0xb97   :  { %v6661_v45 = vpop.f32.mrb[104].mxu0 }
 0xb98   :  { %v4332_v58 = vadd.f32 %v6661_v45, %v4257_v57  ;;  %v4326_v60 = vpop.f32.mrb[105].mxu0 }
 0xb99   :  { %v4327_v11 = vadd.f32 %v4326_v60, %v4256_v61 }
 0xb9a   :  { %v4435_v49 = vsub.f32 0.0, %v4332_v58  ;;  %v6669_v10 = vpop.f32.mrb[104].mxu1 }
 0xb9b   :  { %v4434_v0 = vsub.f32 0.0, %v4327_v11  ;;  %v4421_v1 = vadd.f32 %v6669_v10, %v4346_v63  ;;  %v4415_v53 = vpop.f32.mrb[105].mxu1  ;;  %v6664_v23 = vpop.f32.mrb[106].mxu0 }
 0xb9c   :  { %v4439_v17 = vmul.f32 1.442695, %v4435_v49  ;;  %v4416_v18 = vadd.f32 %v4415_v53, %v4345_v15  ;;  %v4336_v59 = vpop.f32.mrb[107].mxu0  ;;  %v4342_v36 = vadd.f32 %v6664_v23, %v4259_v13 }
 0xb9d   :  { %v4437_v20 = vmul.f32 1.442695, %v4434_v0  ;;  %v4456_v21 = vsub.f32 0.0, %v4421_v1  ;;  %v4337_v22 = vadd.f32 %v4336_v59, %v4258_v19  ;;  %v4481_v1 = vld [vmem:[#allocation2 + $0x168] sm:$0xff] }
 0xb9e   :  { %7141 = vpow2.f32 %v4439_v17  ;;  %v4455_v62 = vsub.f32 0.0, %v4416_v18  ;;  %v6672_v14 = vpop.f32.mrb[106].mxu1  ;;  %v4480_v17 = vld [vmem:[#allocation2 + $0x160] sm:$0xff]  ;;  %v4570_v19 = vld [vmem:[#allocation3 + $0x88] sm:$0xff] }
 0xb9f   :  { %7143 = vpow2.f32 %v4437_v20  ;;  %v4460_v26 = vmul.f32 1.442695, %v4456_v21  ;;  %v4425_v12 = vpop.f32.mrb[107].mxu1  ;;  %v4436_v24 = vsub.f32 0.0, %v4337_v22  ;;  %v4431_v28 = vadd.f32 %v6672_v14, %v4348_v44  ;;  %v4569_v14 = vld [vmem:[#allocation3 + $0x80] sm:$0xff]  ;;  %v4571_v44 = vld [vmem:[#allocation3 + $0x90] sm:$0xff] }
 0xba0   :  { %v4458_v32 = vmul.f32 1.442695, %v4455_v62  ;;  %v4426_v41 = vadd.f32 %v4425_v12, %v4347_v16 }
 0xba1   :  { %7145 = vpow2.f32 %v4460_v26  ;;  %v4441_v37 = vmul.f32 1.442695, %v4436_v24 }
 0xba2   :  { %7147 = vpow2.f32 %v4458_v32  ;;  %v4457_v34 = vsub.f32 0.0, %v4426_v41  ;;  %v4482_v41 = vld [vmem:[#allocation2 + $0x170] sm:$0xff] }
 0xba3   :  { %7149 = vtanh.f32 %v4342_v36 }
 0xba4   :  { %v4462_v31 = vmul.f32 1.442695, %v4457_v34  ;;  %7151 = vpow2.f32 %v4441_v37 }
 0xba6   :  { %7153 = vpow2.f32 %v4462_v31 }
 0xba8   :  { %v7142_v25 = vpop.eup %7141 }
 0xba9   :  { %v7144_v8 = vpop.eup %7143  ;;  %v4444_v29 = vadd.f32 1.0, %v7142_v25 }
 0xbaa   :  { %v4443_v39 = vadd.f32 1.0, %v7144_v8 }
 0xbab   :  { %v7146_v46 = vpop.eup %7145  ;;  %7155 = vrcp.f32 %v4444_v29 }
 0xbac   :  { %v7148_v47 = vpop.eup %7147  ;;  %7157 = vrcp.f32 %v4443_v39  ;;  %v4465_v40 = vadd.f32 1.0, %v7146_v46  ;;  %v4483_v46 = vld [vmem:[#allocation2 + $0x178] sm:$0xff] }
 0xbad   :  { %v4464_v27 = vadd.f32 1.0, %v7148_v47  ;;  %7159 = vtanh.f32 %v4431_v28  ;;  %v7150_v3 = vpop.eup %7149 }
 0xbae   :  { %7161 = vrcp.f32 %v4465_v40  ;;  %v7152_v48 = vpop.eup %7151 }
 0xbaf   :  { %7163 = vrcp.f32 %v4464_v27  ;;  %v4445_v54 = vadd.f32 1.0, %v7152_v48  ;;  %v4572_v48 = vld [vmem:[#allocation3 + $0x98] sm:$0xff] }
 0xbb0   :  { %v7154_v50 = vpop.eup %7153 }
 0xbb1   :  { %v4466_v60 = vadd.f32 1.0, %v7154_v50  ;;  %7165 = vrcp.f32 %v4445_v54 }
 0xbb5   :  { %v7156_v51 = vpop.eup %7155 }
 0xbb6   :  { %v7158_v2 = vpop.eup %7157  ;;  %v4450_v42 = vmul.f32 %v7156_v51, %v8499_v33 }
 0xbb7   :  { %v7160_v55 = vpop.eup %7159  ;;  %v4451_v56 = vmul.f32 %v7158_v2, %v7150_v3 }
 0xbb8   :  { %v7162_v9 = vpop.eup %7161 }
 0xbb9   :  { %v7164_v57 = vpop.eup %7163  ;;  %v8531_v45 = vadd.f32 %v4451_v56, %v4450_v42  ;;  %v4471_v58 = vmul.f32 %v7162_v9, %v8503_v52 }
 0xbba   :  { %v4472_v61 = vmul.f32 %v7164_v57, %v7160_v55 }
 0xbbb   :  { %7167 = vtanh.f32 %v8531_v45  ;;  %v7166_v33 = vpop.eup %7165 }
 0xbbc   :  { %v8535_v11 = vadd.f32 %v4472_v61, %v4471_v58  ;;  %7169 = vrcp.f32 %v4466_v60 }
 0xbbe   :  { %7171 = vtanh.f32 %v8535_v11 }
 0xbc5   :  { %v7168_v49 = vpop.eup %7167 }
 0xbc6   :  { %v4454_v63 = vmul.f32 %v7168_v49, %v7166_v33  ;;  %v7170_v10 = vpop.eup %7169 }
 0xbc8   :  { %v7172_v0 = vpop.eup %7171  ;;  %5869 = vst.msk [vmem:[%s8734_s4 + $0xa0] sm:$0xff] %vm205_vm2, %v4454_v63  ;;  %6673 = vmatprep.subr.mxu0 %v4454_v63 }
 0xbc9   :  { %6674 = vmatpush3.msra.mxu0 %v4454_v63  ;;  %v4475_v52 = vmul.f32 %v7172_v0, %v7170_v10 }
 0xbca   :  { %6676 = vmatmul.mubr.msk.f32.vlgmr.msra.gmra.mrb[108].mxu0 %vm1996_vm1, %v8409_v35 }
 0xbcb   :  { %5870 = vst.msk [vmem:[%s8734_s4 + $0x58] sm:$0xff] %vm205_vm2, %v4475_v52  ;;  %6681 = vmatprep.subr.mxu1 %v4475_v52  ;;  %6678 = vmatprep.mubr.msk.f32.mxu0 %vm1996_vm1, %v8420_v4 }
 0xbcc   :  { %6682 = vmatpush3.msra.mxu1 %v4475_v52 }
 0xbcd   :  { %6684 = vmatmul.mubr.msk.f32.vlgmr.msra.gmra.mrb[108].mxu1 %vm1996_vm1, %v8427_v5 }
 0xbce   :  { %6679 = vmatmul.mubr.msk.f32.gmra.mrb[110].mxu0 %vm1996_vm1, %v8434_v6  ;;  %6686 = vmatprep.mubr.msk.f32.mxu1 %vm1996_vm1, %v8441_v30 }
 0xbcf   :  { %6691 = vmatprep.mubr.msk.f32.mxu0 %vm1996_vm1, %v8448_v38 }
 0xbd1   :  { %6687 = vmatmul.mubr.msk.f32.gmra.mrb[110].mxu1 %vm1996_vm1, %v8455_v7 }
 0xbd2   :  { %6699 = vmatprep.mubr.msk.f32.mxu1 %vm1996_vm1, %v8462_v43 }
 0xc9d   :  { %v6677_v53 = vpop.f32.mrb[108].mxu0 }
 0xc9e   :  { %v4556_v15 = vadd.f32 %v6677_v53, %v4481_v1  ;;  %v4550_v23 = vpop.f32.mrb[109].mxu0 }
 0xc9f   :  { %v4551_v18 = vadd.f32 %v4550_v23, %v4480_v17 }
 0xca0   :  { %v4659_v59 = vsub.f32 0.0, %v4556_v15  ;;  %v6685_v20 = vpop.f32.mrb[108].mxu1 }
 0xca1   :  { %v4658_v21 = vsub.f32 0.0, %v4551_v18  ;;  %v4645_v22 = vadd.f32 %v6685_v20, %v4570_v19  ;;  %v4639_v62 = vpop.f32.mrb[109].mxu1  ;;  %v6680_v26 = vpop.f32.mrb[110].mxu0 }
 0xca2   :  { %v4663_v12 = vmul.f32 1.442695, %v4659_v59  ;;  %v4640_v16 = vadd.f32 %v4639_v62, %v4569_v14  ;;  %v4560_v32 = vpop.f32.mrb[111].mxu0  ;;  %v4566_v47 = vadd.f32 %v6680_v26, %v4483_v46 }
 0xca3   :  { %v4661_v24 = vmul.f32 1.442695, %v4658_v21  ;;  %v4680_v34 = vsub.f32 0.0, %v4645_v22  ;;  %v4561_v13 = vadd.f32 %v4560_v32, %v4482_v41  ;;  %v4705_v22 = vld [vmem:[#allocation2 + $0x188] sm:$0xff] }
 0xca4   :  { %7173 = vpow2.f32 %v4663_v12  ;;  %v4679_v36 = vsub.f32 0.0, %v4640_v16  ;;  %v6688_v37 = vpop.f32.mrb[110].mxu1  ;;  %v4704_v12 = vld [vmem:[#allocation2 + $0x180] sm:$0xff]  ;;  %v4794_v41 = vld [vmem:[#allocation3 + $0x68] sm:$0xff] }
 0xca5   :  { %7175 = vpow2.f32 %v4661_v24  ;;  %v4684_v31 = vmul.f32 1.442695, %v4680_v34  ;;  %v4649_v25 = vpop.f32.mrb[111].mxu1  ;;  %v4660_v28 = vsub.f32 0.0, %v4561_v13  ;;  %v4655_v2 = vadd.f32 %v6688_v37, %v4572_v48  ;;  %v4793_v37 = vld [vmem:[#allocation3 + $0x60] sm:$0xff]  ;;  %v4795_v48 = vld [vmem:[#allocation3 + $0x70] sm:$0xff] }
 0xca6   :  { %v4682_v8 = vmul.f32 1.442695, %v4679_v36  ;;  %v4650_v29 = vadd.f32 %v4649_v25, %v4571_v44 }
 0xca7   :  { %7177 = vpow2.f32 %v4684_v31  ;;  %v4665_v40 = vmul.f32 1.442695, %v4660_v28 }
 0xca8   :  { %7179 = vpow2.f32 %v4682_v8  ;;  %v4681_v39 = vsub.f32 0.0, %v4650_v29  ;;  %v4706_v29 = vld [vmem:[#allocation2 + $0x190] sm:$0xff] }
 0xca9   :  { %7181 = vtanh.f32 %v4566_v47 }
 0xcaa   :  { %v4686_v27 = vmul.f32 1.442695, %v4681_v39  ;;  %7183 = vpow2.f32 %v4665_v40 }
 0xcac   :  { %7185 = vpow2.f32 %v4686_v27 }
 0xcae   :  { %v7174_v3 = vpop.eup %7173 }
 0xcaf   :  { %v7176_v50 = vpop.eup %7175  ;;  %v4668_v51 = vadd.f32 1.0, %v7174_v3 }
 0xcb0   :  { %v4667_v42 = vadd.f32 1.0, %v7176_v50 }
 0xcb1   :  { %v7178_v54 = vpop.eup %7177  ;;  %7187 = vrcp.f32 %v4668_v51 }
 0xcb2   :  { %v7180_v55 = vpop.eup %7179  ;;  %7189 = vrcp.f32 %v4667_v42  ;;  %v4689_v56 = vadd.f32 1.0, %v7178_v54  ;;  %v4707_v54 = vld [vmem:[#allocation2 + $0x198] sm:$0xff] }
 0xcb3   :  { %v4688_v9 = vadd.f32 1.0, %v7180_v55  ;;  %7191 = vtanh.f32 %v4655_v2  ;;  %v7182_v57 = vpop.eup %7181 }
 0xcb4   :  { %7193 = vrcp.f32 %v4689_v56  ;;  %v7184_v58 = vpop.eup %7183 }
 0xcb5   :  { %7195 = vrcp.f32 %v4688_v9  ;;  %v4669_v63 = vadd.f32 1.0, %v7184_v58  ;;  %v4796_v58 = vld [vmem:[#allocation3 + $0x78] sm:$0xff] }
 0xcb6   :  { %v7186_v60 = vpop.eup %7185 }
 0xcb7   :  { %v4690_v23 = vadd.f32 1.0, %v7186_v60  ;;  %7197 = vrcp.f32 %v4669_v63 }
 0xcbb   :  { %v7188_v61 = vpop.eup %7187 }
 0xcbc   :  { %v7190_v33 = vpop.eup %7189  ;;  %v4674_v49 = vmul.f32 %v7188_v61, %v8531_v45 }
 0xcbd   :  { %v7192_v10 = vpop.eup %7191  ;;  %v4675_v0 = vmul.f32 %v7190_v33, %v7182_v57 }
 0xcbe   :  { %v7194_v52 = vpop.eup %7193 }
 0xcbf   :  { %v7196_v1 = vpop.eup %7195  ;;  %v8563_v53 = vadd.f32 %v4675_v0, %v4674_v49  ;;  %v4695_v15 = vmul.f32 %v7194_v52, %v8535_v11 }
 0xcc0   :  { %v4696_v17 = vmul.f32 %v7196_v1, %v7192_v10 }
 0xcc1   :  { %7199 = vtanh.f32 %v8563_v53  ;;  %v7198_v45 = vpop.eup %7197 }
 0xcc2   :  { %v8567_v18 = vadd.f32 %v4696_v17, %v4695_v15  ;;  %7201 = vrcp.f32 %v4690_v23 }
 0xcc4   :  { %7203 = vtanh.f32 %v8567_v18 }
 0xccb   :  { %v7200_v59 = vpop.eup %7199 }
 0xccc   :  { %v4678_v19 = vmul.f32 %v7200_v59, %v7198_v45  ;;  %v7202_v20 = vpop.eup %7201 }
 0xcce   :  { %v7204_v21 = vpop.eup %7203  ;;  %5879 = vst.msk [vmem:[%s8734_s4 + $0xb0] sm:$0xff] %vm205_vm2, %v4678_v19  ;;  %6689 = vmatprep.subr.mxu0 %v4678_v19 }
 0xccf   :  { %6690 = vmatpush3.msra.mxu0 %v4678_v19  ;;  %v4699_v11 = vmul.f32 %v7204_v21, %v7202_v20 }
 0xcd0   :  { %6692 = vmatmul.mubr.msk.f32.vlgmr.msra.gmra.mrb[112].mxu0 %vm1996_vm1, %v8409_v35 }
 0xcd1   :  { %5880 = vst.msk [vmem:[%s8734_s4 + $0x48] sm:$0xff] %vm205_vm2, %v4699_v11  ;;  %6697 = vmatprep.subr.mxu1 %v4699_v11  ;;  %6694 = vmatprep.mubr.msk.f32.mxu0 %vm1996_vm1, %v8420_v4 }
 0xcd2   :  { %6698 = vmatpush3.msra.mxu1 %v4699_v11 }
 0xcd3   :  { %6700 = vmatmul.mubr.msk.f32.vlgmr.msra.gmra.mrb[112].mxu1 %vm1996_vm1, %v8427_v5 }
 0xcd4   :  { %6695 = vmatmul.mubr.msk.f32.gmra.mrb[114].mxu0 %vm1996_vm1, %v8434_v6  ;;  %6702 = vmatprep.mubr.msk.f32.mxu1 %vm1996_vm1, %v8441_v30 }
 0xcd5   :  { %6707 = vmatprep.mubr.msk.f32.mxu0 %vm1996_vm1, %v8448_v38 }
 0xcd7   :  { %6703 = vmatmul.mubr.msk.f32.gmra.mrb[114].mxu1 %vm1996_vm1, %v8455_v7 }
 0xcd8   :  { %6715 = vmatprep.mubr.msk.f32.mxu1 %vm1996_vm1, %v8462_v43 }
 0xda3   :  { %v6693_v62 = vpop.f32.mrb[112].mxu0 }
 0xda4   :  { %v4780_v14 = vadd.f32 %v6693_v62, %v4705_v22  ;;  %v4774_v26 = vpop.f32.mrb[113].mxu0 }
 0xda5   :  { %v4775_v16 = vadd.f32 %v4774_v26, %v4704_v12 }
 0xda6   :  { %v4883_v32 = vsub.f32 0.0, %v4780_v14  ;;  %v6701_v24 = vpop.f32.mrb[112].mxu1 }
 0xda7   :  { %v4882_v34 = vsub.f32 0.0, %v4775_v16  ;;  %v4869_v13 = vadd.f32 %v6701_v24, %v4794_v41  ;;  %v4863_v36 = vpop.f32.mrb[113].mxu1  ;;  %v6696_v31 = vpop.f32.mrb[114].mxu0 }
 0xda8   :  { %v4887_v25 = vmul.f32 1.442695, %v4883_v32  ;;  %v4864_v44 = vadd.f32 %v4863_v36, %v4793_v37  ;;  %v4784_v8 = vpop.f32.mrb[115].mxu0  ;;  %v4790_v55 = vadd.f32 %v6696_v31, %v4707_v54 }
 0xda9   :  { %v4885_v28 = vmul.f32 1.442695, %v4882_v34  ;;  %v4904_v39 = vsub.f32 0.0, %v4869_v13  ;;  %v4785_v46 = vadd.f32 %v4784_v8, %v4706_v29  ;;  %v5017_v29 = vld [vmem:[#allocation3 + $0x40] sm:$0xff] }
 0xdaa   :  { %7205 = vpow2.f32 %v4887_v25  ;;  %v4903_v47 = vsub.f32 0.0, %v4864_v44  ;;  %v6704_v40 = vpop.f32.mrb[114].mxu1 }
 0xdab   :  { %7207 = vpow2.f32 %v4885_v28  ;;  %v4908_v27 = vmul.f32 1.442695, %v4904_v39  ;;  %v4873_v3 = vpop.f32.mrb[115].mxu1  ;;  %v4884_v2 = vsub.f32 0.0, %v4785_v46  ;;  %v4879_v33 = vadd.f32 %v6704_v40, %v4796_v58  ;;  %v4930_v46 = vld [vmem:[#allocation2 + $0x1b0] sm:$0xff] }
 0xdac   :  { %v4906_v50 = vmul.f32 1.442695, %v4903_v47  ;;  %v4874_v51 = vadd.f32 %v4873_v3, %v4795_v48 }
 0xdad   :  { %7209 = vpow2.f32 %v4908_v27  ;;  %v4889_v56 = vmul.f32 1.442695, %v4884_v2 }
 0xdae   :  { %7211 = vpow2.f32 %v4906_v50  ;;  %v4905_v42 = vsub.f32 0.0, %v4874_v51  ;;  %v5019_v51 = vld [vmem:[#allocation3 + $0x50] sm:$0xff] }
 0xdaf   :  { %7213 = vtanh.f32 %v4790_v55 }
 0xdb0   :  { %v4910_v9 = vmul.f32 1.442695, %v4905_v42  ;;  %7215 = vpow2.f32 %v4889_v56  ;;  %v4931_v56 = vld [vmem:[#allocation2 + $0x1b8] sm:$0xff] }
 0xdb2   :  { %7217 = vpow2.f32 %v4910_v9 }
 0xdb4   :  { %v7206_v57 = vpop.eup %7205 }
 0xdb5   :  { %v7208_v60 = vpop.eup %7207  ;;  %v4892_v61 = vadd.f32 1.0, %v7206_v57 }
 0xdb6   :  { %v4891_v49 = vadd.f32 1.0, %v7208_v60 }
 0xdb7   :  { %v7210_v63 = vpop.eup %7209  ;;  %7219 = vrcp.f32 %v4892_v61  ;;  %v5020_v61 = vld [vmem:[#allocation3 + $0x58] sm:$0xff] }
 0xdb8   :  { %v7212_v10 = vpop.eup %7211  ;;  %7221 = vrcp.f32 %v4891_v49  ;;  %v4913_v0 = vadd.f32 1.0, %v7210_v63 }
 0xdb9   :  { %v4912_v52 = vadd.f32 1.0, %v7212_v10  ;;  %7223 = vtanh.f32 %v4879_v33  ;;  %v7214_v1 = vpop.eup %7213 }
 0xdba   :  { %7225 = vrcp.f32 %v4913_v0  ;;  %v7216_v15 = vpop.eup %7215 }
 0xdbb   :  { %7227 = vrcp.f32 %v4912_v52  ;;  %v4893_v19 = vadd.f32 1.0, %v7216_v15 }
 0xdbc   :  { %v7218_v23 = vpop.eup %7217 }
 0xdbd   :  { %v4914_v26 = vadd.f32 1.0, %v7218_v23  ;;  %7229 = vrcp.f32 %v4893_v19 }
 0xdc1   :  { %v7220_v17 = vpop.eup %7219 }
 0xdc2   :  { %v7222_v45 = vpop.eup %7221  ;;  %v4898_v59 = vmul.f32 %v7220_v17, %v8563_v53 }
 0xdc3   :  { %v7224_v20 = vpop.eup %7223  ;;  %v4899_v21 = vmul.f32 %v7222_v45, %v7214_v1 }
 0xdc4   :  { %v7226_v11 = vpop.eup %7225 }
 0xdc5   :  { %v7228_v22 = vpop.eup %7227  ;;  %v8595_v62 = vadd.f32 %v4899_v21, %v4898_v59  ;;  %v4919_v14 = vmul.f32 %v7226_v11, %v8567_v18 }
 0xdc6   :  { %v4920_v12 = vmul.f32 %v7228_v22, %v7224_v20 }
 0xdc7   :  { %7231 = vtanh.f32 %v8595_v62  ;;  %v7230_v53 = vpop.eup %7229 }
 0xdc8   :  { %v8599_v16 = vadd.f32 %v4920_v12, %v4919_v14  ;;  %7233 = vrcp.f32 %v4914_v26 }
 0xdca   :  { %7235 = vtanh.f32 %v8599_v16 }
 0xdd1   :  { %v7232_v32 = vpop.eup %7231 }
 0xdd2   :  { %v4902_v41 = vmul.f32 %v7232_v32, %v7230_v53  ;;  %v7234_v24 = vpop.eup %7233 }
 0xdd4   :  { %v7236_v34 = vpop.eup %7235  ;;  %5889 = vst.msk [vmem:[%s8734_s4 + $0xc0] sm:$0xff] %vm205_vm2, %v4902_v41  ;;  %6705 = vmatprep.subr.mxu0 %v4902_v41 }
 0xdd5   :  { %6706 = vmatpush3.msra.mxu0 %v4902_v41  ;;  %v4923_v18 = vmul.f32 %v7236_v34, %v7234_v24 }
 0xdd6   :  { %6708 = vmatmul.mubr.msk.f32.vlgmr.msra.gmra.mrb[116].mxu0 %vm1996_vm1, %v8409_v35  ;;  %v4929_v35 = vld [vmem:[#allocation2 + $0x1a8] sm:$0xff] }
 0xdd7   :  { %5890 = vst.msk [vmem:[%s8734_s4 + $0x38] sm:$0xff] %vm205_vm2, %v4923_v18  ;;  %6713 = vmatprep.subr.mxu1 %v4923_v18  ;;  %6710 = vmatprep.mubr.msk.f32.mxu0 %vm1996_vm1, %v8420_v4 }
 0xdd8   :  { %6714 = vmatpush3.msra.mxu1 %v4923_v18 }
 0xdd9   :  { %6716 = vmatmul.mubr.msk.f32.vlgmr.msra.gmra.mrb[116].mxu1 %vm1996_vm1, %v8427_v5  ;;  %v4928_v5 = vld [vmem:[#allocation2 + $0x1a0] sm:$0xff] }
 0xdda   :  { %6711 = vmatmul.mubr.msk.f32.gmra.mrb[118].mxu0 %vm1996_vm1, %v8434_v6  ;;  %6718 = vmatprep.mubr.msk.f32.mxu1 %vm1996_vm1, %v8441_v30  ;;  %v5018_v6 = vld [vmem:[#allocation3 + $0x48] sm:$0xff] }
 0xddb   :  { %6723 = vmatprep.mubr.msk.f32.mxu0 %vm1996_vm1, %v8448_v38 }
 0xddd   :  { %6719 = vmatmul.mubr.msk.f32.gmra.mrb[118].mxu1 %vm1996_vm1, %v8455_v7 }
 0xdde   :  { %6731 = vmatprep.mubr.msk.f32.mxu1 %vm1996_vm1, %v8462_v43 }
 0xea9   :  { %v6709_v4 = vpop.f32.mrb[116].mxu0 }
 0xeaa   :  { %v5004_v13 = vadd.f32 %v6709_v4, %v4929_v35  ;;  %v4998_v36 = vpop.f32.mrb[117].mxu0 }
 0xeab   :  { %v4999_v37 = vadd.f32 %v4998_v36, %v4928_v5  ;;  %v8652_v36 = vld [vmem:[%s8733_s2 + $0x10] sm:$0xff]  ;;  %v8659_v5 = vld [vmem:[%s8733_s2 + $0x28] sm:$0xff] }
 0xeac   :  { %v5107_v31 = vsub.f32 0.0, %v5004_v13  ;;  %v6717_v25 = vpop.f32.mrb[116].mxu1  ;;  %v8641_v13 = vld [vmem:[%s8733_s2 + $0x8] sm:$0xff] }
 0xead   :  { %v5106_v44 = vsub.f32 0.0, %v4999_v37  ;;  %v5093_v30 = vadd.f32 %v6717_v25, %v5018_v6  ;;  %v5087_v8 = vpop.f32.mrb[117].mxu1  ;;  %v6712_v38 = vpop.f32.mrb[118].mxu0  ;;  %v8666_v37 = vld [vmem:[%s8733_s2 + $0x18] sm:$0xff]  ;;  %v7354_v6 = vld [vmem:[%s8733_s2] sm:$0xff] }
 0xeae   :  { %v5111_v28 = vmul.f32 1.442695, %v5107_v31  ;;  %v5088_v39 = vadd.f32 %v5087_v8, %v5017_v29  ;;  %v5008_v7 = vpop.f32.mrb[119].mxu0  ;;  %v5014_v9 = vadd.f32 %v6712_v38, %v4931_v56  ;;  %v8673_v31 = vld [vmem:[%s8733_s2 + $0x30] sm:$0xff]  ;;  %v8684_v25 = vld [vmem:[%s8733_s2 + $0x38] sm:$0xff] }
 0xeaf   :  { %v5109_v47 = vmul.f32 1.442695, %v5106_v44  ;;  %v5128_v43 = vsub.f32 0.0, %v5093_v30  ;;  %v5009_v40 = vadd.f32 %v5008_v7, %v4930_v46  ;;  %v7356_v44 = vld [vmem:[%s8733_s2 + $0x20] sm:$0xff]  ;;  %v5153_v30 = vld [vmem:[#allocation2 + $0x1c8] sm:$0xff] }
 0xeb0   :  { %7237 = vpow2.f32 %v5111_v28  ;;  %v5127_v27 = vsub.f32 0.0, %v5088_v39  ;;  %v6720_v3 = vpop.f32.mrb[118].mxu1  ;;  %v5152_v28 = vld [vmem:[#allocation2 + $0x1c0] sm:$0xff]  ;;  %v5242_v46 = vld [vmem:[#allocation3 + $0x28] sm:$0xff] }
 0xeb1   :  { %7239 = vpow2.f32 %v5109_v47  ;;  %v5132_v48 = vmul.f32 1.442695, %v5128_v43  ;;  %v5097_v50 = vpop.f32.mrb[119].mxu1  ;;  %v5108_v54 = vsub.f32 0.0, %v5009_v40  ;;  %v5103_v63 = vadd.f32 %v6720_v3, %v5020_v61  ;;  %v5241_v3 = vld [vmem:[#allocation3 + $0x20] sm:$0xff]  ;;  %v5243_v61 = vld [vmem:[#allocation3 + $0x30] sm:$0xff] }
 0xeb2   :  { %v5130_v2 = vmul.f32 1.442695, %v5127_v27  ;;  %v5098_v42 = vadd.f32 %v5097_v50, %v5019_v51 }
 0xeb3   :  { %7241 = vpow2.f32 %v5132_v48  ;;  %v5113_v57 = vmul.f32 1.442695, %v5108_v54 }
 0xeb4   :  { %7243 = vpow2.f32 %v5130_v2  ;;  %v5129_v55 = vsub.f32 0.0, %v5098_v42  ;;  %v5154_v42 = vld [vmem:[#allocation2 + $0x1d0] sm:$0xff] }
 0xeb5   :  { %7245 = vtanh.f32 %v5014_v9 }
 0xeb6   :  { %v5134_v58 = vmul.f32 1.442695, %v5129_v55  ;;  %7247 = vpow2.f32 %v5113_v57 }
 0xeb8   :  { %7249 = vpow2.f32 %v5134_v58 }
 0xeba   :  { %v7238_v60 = vpop.eup %7237 }
 0xebb   :  { %v7240_v33 = vpop.eup %7239  ;;  %v5116_v49 = vadd.f32 1.0, %v7238_v60 }
 0xebc   :  { %v5115_v10 = vadd.f32 1.0, %v7240_v33 }
 0xebd   :  { %v7242_v0 = vpop.eup %7241  ;;  %7251 = vrcp.f32 %v5116_v49 }
 0xebe   :  { %v7244_v52 = vpop.eup %7243  ;;  %7253 = vrcp.f32 %v5115_v10  ;;  %v5137_v1 = vadd.f32 1.0, %v7242_v0  ;;  %v5155_v0 = vld [vmem:[#allocation2 + $0x1d8] sm:$0xff] }
 0xebf   :  { %v5136_v15 = vadd.f32 1.0, %v7244_v52  ;;  %7255 = vtanh.f32 %v5103_v63  ;;  %v7246_v23 = vpop.eup %7245 }
 0xec0   :  { %7257 = vrcp.f32 %v5137_v1  ;;  %v7248_v17 = vpop.eup %7247 }
 0xec1   :  { %7259 = vrcp.f32 %v5136_v15  ;;  %v5117_v21 = vadd.f32 1.0, %v7248_v17  ;;  %v5244_v17 = vld [vmem:[#allocation3 + $0x38] sm:$0xff] }
 0xec2   :  { %v7250_v45 = vpop.eup %7249 }
 0xec3   :  { %v5138_v32 = vadd.f32 1.0, %v7250_v45  ;;  %7261 = vrcp.f32 %v5117_v21 }
 0xec7   :  { %v7252_v59 = vpop.eup %7251 }
 0xec8   :  { %v7254_v19 = vpop.eup %7253  ;;  %v5122_v20 = vmul.f32 %v7252_v59, %v8595_v62 }
 0xec9   :  { %v7256_v11 = vpop.eup %7255  ;;  %v5123_v22 = vmul.f32 %v7254_v19, %v7246_v23 }
 0xeca   :  { %v7258_v14 = vpop.eup %7257 }
 0xecb   :  { %v7260_v26 = vpop.eup %7259  ;;  %v8627_v12 = vadd.f32 %v5123_v22, %v5122_v20  ;;  %v5143_v53 = vmul.f32 %v7258_v14, %v8599_v16 }
 0xecc   :  { %v5144_v41 = vmul.f32 %v7260_v26, %v7256_v11 }
 0xecd   :  { %7263 = vtanh.f32 %v8627_v12  ;;  %v7262_v62 = vpop.eup %7261 }
 0xece   :  { %v8631_v24 = vadd.f32 %v5144_v41, %v5143_v53  ;;  %7265 = vrcp.f32 %v5138_v32 }
 0xed0   :  { %7267 = vtanh.f32 %v8631_v24 }
 0xed7   :  { %v7264_v34 = vpop.eup %7263 }
 0xed8   :  { %v5126_v18 = vmul.f32 %v7264_v34, %v7262_v62  ;;  %v7266_v35 = vpop.eup %7265 }
 0xeda   :  { %v7268_v4 = vpop.eup %7267  ;;  %5899 = vst.msk [vmem:[%s8734_s4 + $0xd0] sm:$0xff] %vm205_vm2, %v5126_v18  ;;  %6721 = vmatprep.subr.mxu0 %v5126_v18 }
 0xedb   :  { %6722 = vmatpush3.msra.mxu0 %v5126_v18  ;;  %v5147_v16 = vmul.f32 %v7268_v4, %v7266_v35 }
 0xedc   :  { %6724 = vmatmul.mubr.msk.f32.vlgmr.msra.gmra.mrb[120].mxu0 %vm1996_vm1, %v8641_v13 }
 0xedd   :  { %5900 = vst.msk [vmem:[%s8734_s4 + $0x28] sm:$0xff] %vm205_vm2, %v5147_v16  ;;  %6729 = vmatprep.subr.mxu1 %v5147_v16  ;;  %6726 = vmatprep.mubr.msk.f32.mxu0 %vm1996_vm1, %v8652_v36 }
 0xede   :  { %6730 = vmatpush3.msra.mxu1 %v5147_v16 }
 0xedf   :  { %6732 = vmatmul.mubr.msk.f32.vlgmr.msra.gmra.mrb[120].mxu1 %vm1996_vm1, %v8659_v5 }
 0xee0   :  { %6727 = vmatmul.mubr.msk.f32.gmra.mrb[122].mxu0 %vm1996_vm1, %v8666_v37  ;;  %6734 = vmatprep.mubr.msk.f32.mxu1 %vm1996_vm1, %v8673_v31 }
 0xee1   :  { %6739 = vmatprep.mubr.msk.f32.mxu0 %vm1996_vm1, %v7354_v6 }
 0xee3   :  { %6735 = vmatmul.mubr.msk.f32.gmra.mrb[122].mxu1 %vm1996_vm1, %v8684_v25 }
 0xee4   :  { %6747 = vmatprep.mubr.msk.f32.mxu1 %vm1996_vm1, %v7356_v44 }
 0xfaf   :  { %v6725_v8 = vpop.f32.mrb[120].mxu0 }
 0xfb0   :  { %v5228_v29 = vadd.f32 %v6725_v8, %v5153_v30  ;;  %v5222_v38 = vpop.f32.mrb[121].mxu0 }
 0xfb1   :  { %v5223_v39 = vadd.f32 %v5222_v38, %v5152_v28 }
 0xfb2   :  { %v5331_v7 = vsub.f32 0.0, %v5228_v29  ;;  %v6733_v47 = vpop.f32.mrb[120].mxu1 }
 0xfb3   :  { %v5330_v43 = vsub.f32 0.0, %v5223_v39  ;;  %v5317_v40 = vadd.f32 %v6733_v47, %v5242_v46  ;;  %v5311_v27 = vpop.f32.mrb[121].mxu1  ;;  %v6728_v48 = vpop.f32.mrb[122].mxu0 }
 0xfb4   :  { %v5335_v50 = vmul.f32 1.442695, %v5331_v7  ;;  %v5312_v51 = vadd.f32 %v5311_v27, %v5241_v3  ;;  %v5232_v2 = vpop.f32.mrb[123].mxu0  ;;  %v5238_v52 = vadd.f32 %v6728_v48, %v5155_v0  ;;  %v5376_v27 = vld [vmem:[#allocation2 + $0x1e0] sm:$0xff]  ;;  %v5466_v48 = vld [vmem:[#allocation3 + $0x8] sm:$0xff] }
 0xfb5   :  { %v5333_v54 = vmul.f32 1.442695, %v5330_v43  ;;  %v5352_v55 = vsub.f32 0.0, %v5317_v40  ;;  %v5233_v56 = vadd.f32 %v5232_v2, %v5154_v42  ;;  %v5465_v42 = vld [vmem:[#allocation3] sm:$0xff] }
 0xfb6   :  { %7269 = vpow2.f32 %v5335_v50  ;;  %v5351_v9 = vsub.f32 0.0, %v5312_v51  ;;  %v6736_v57 = vpop.f32.mrb[122].mxu1 }
 0xfb7   :  { %7271 = vpow2.f32 %v5333_v54  ;;  %v5356_v58 = vmul.f32 1.442695, %v5352_v55  ;;  %v5321_v60 = vpop.f32.mrb[123].mxu1  ;;  %v5332_v63 = vsub.f32 0.0, %v5233_v56  ;;  %v5327_v19 = vadd.f32 %v6736_v57, %v5244_v17  ;;  %v5378_v56 = vld [vmem:[#allocation2 + $0x1f0] sm:$0xff] }
 0xfb8   :  { %v5354_v33 = vmul.f32 1.442695, %v5351_v9  ;;  %v5322_v49 = vadd.f32 %v5321_v60, %v5243_v61 }
 0xfb9   :  { %7273 = vpow2.f32 %v5356_v58  ;;  %v5337_v1 = vmul.f32 1.442695, %v5332_v63 }
 0xfba   :  { %7275 = vpow2.f32 %v5354_v33  ;;  %v5353_v10 = vsub.f32 0.0, %v5322_v49  ;;  %v5467_v49 = vld [vmem:[#allocation3 + $0x10] sm:$0xff] }
 0xfbb   :  { %7277 = vtanh.f32 %v5238_v52 }
 0xfbc   :  { %v5358_v15 = vmul.f32 1.442695, %v5353_v10  ;;  %7279 = vpow2.f32 %v5337_v1  ;;  %v5379_v1 = vld [vmem:[#allocation2 + $0x1f8] sm:$0xff] }
 0xfbe   :  { %7281 = vpow2.f32 %v5358_v15 }
 0xfc0   :  { %v7270_v23 = vpop.eup %7269 }
 0xfc1   :  { %v7272_v45 = vpop.eup %7271  ;;  %v5340_v59 = vadd.f32 1.0, %v7270_v23 }
 0xfc2   :  { %v5339_v20 = vadd.f32 1.0, %v7272_v45 }
 0xfc3   :  { %v7274_v21 = vpop.eup %7273  ;;  %7283 = vrcp.f32 %v5340_v59  ;;  %v5468_v59 = vld [vmem:[#allocation3 + $0x18] sm:$0xff] }
 0xfc4   :  { %v7276_v11 = vpop.eup %7275  ;;  %7285 = vrcp.f32 %v5339_v20  ;;  %v5361_v22 = vadd.f32 1.0, %v7274_v21 }
 0xfc5   :  { %v5360_v14 = vadd.f32 1.0, %v7276_v11  ;;  %7287 = vtanh.f32 %v5327_v19  ;;  %v7278_v26 = vpop.eup %7277 }
 0xfc6   :  { %7289 = vrcp.f32 %v5361_v22  ;;  %v7280_v53 = vpop.eup %7279 }
 0xfc7   :  { %7291 = vrcp.f32 %v5360_v14  ;;  %v5341_v18 = vadd.f32 1.0, %v7280_v53 }
 0xfc8   :  { %v7282_v32 = vpop.eup %7281 }
 0xfc9   :  { %v5362_v8 = vadd.f32 1.0, %v7282_v32  ;;  %7293 = vrcp.f32 %v5341_v18 }
 0xfcd   :  { %v7284_v41 = vpop.eup %7283 }
 0xfce   :  { %v7286_v62 = vpop.eup %7285  ;;  %v5346_v34 = vmul.f32 %v7284_v41, %v8627_v12 }
 0xfcf   :  { %v7288_v35 = vpop.eup %7287  ;;  %v5347_v4 = vmul.f32 %v7286_v62, %v7278_v26 }
 0xfd0   :  { %v7290_v16 = vpop.eup %7289 }
 0xfd1   :  { %v7292_v6 = vpop.eup %7291  ;;  %v8693_v44 = vadd.f32 %v5347_v4, %v5346_v34  ;;  %v5367_v30 = vmul.f32 %v7290_v16, %v8631_v24 }
 0xfd2   :  { %v5368_v29 = vmul.f32 %v7292_v6, %v7288_v35 }
 0xfd3   :  { %7295 = vtanh.f32 %v8693_v44  ;;  %v7294_v12 = vpop.eup %7293 }
 0xfd4   :  { %v8697_v38 = vadd.f32 %v5368_v29, %v5367_v30  ;;  %7297 = vrcp.f32 %v5362_v8 }
 0xfd6   :  { %7299 = vtanh.f32 %v8697_v38 }
 0xfdd   :  { %v7296_v28 = vpop.eup %7295 }
 0xfde   :  { %v5350_v39 = vmul.f32 %v7296_v28, %v7294_v12  ;;  %v7298_v7 = vpop.eup %7297 }
 0xfe0   :  { %v7300_v46 = vpop.eup %7299  ;;  %5909 = vst.msk [vmem:[%s8734_s4 + $0xe0] sm:$0xff] %vm205_vm2, %v5350_v39  ;;  %6737 = vmatprep.subr.mxu0 %v5350_v39 }
 0xfe1   :  { %6738 = vmatpush3.msra.mxu0 %v5350_v39  ;;  %v5371_v24 = vmul.f32 %v7300_v46, %v7298_v7 }
 0xfe2   :  { %6740 = vmatmul.mubr.msk.f32.vlgmr.msra.gmra.mrb[124].mxu0 %vm1996_vm1, %v8641_v13  ;;  %v5377_v13 = vld [vmem:[#allocation2 + $0x1e8] sm:$0xff] }
 0xfe3   :  { %5910 = vst.msk [vmem:[%s8734_s4 + $0x18] sm:$0xff] %vm205_vm2, %v5371_v24  ;;  %6745 = vmatprep.subr.mxu1 %v5371_v24  ;;  %6742 = vmatprep.mubr.msk.f32.mxu0 %vm1996_vm1, %v8652_v36 }
 0xfe4   :  { %6746 = vmatpush3.msra.mxu1 %v5371_v24 }
 0xfe5   :  { %6748 = vmatmul.mubr.msk.f32.vlgmr.msra.gmra.mrb[124].mxu1 %vm1996_vm1, %v8659_v5 }
 0xfe6   :  { %6743 = vmatmul.mubr.msk.f32.gmra.mrb[126].mxu0 %vm1996_vm1, %v8666_v37  ;;  %6750 = vmatprep.mubr.msk.f32.mxu1 %vm1996_vm1, %v8673_v31 }
 0xfe9   :  { %6751 = vmatmul.mubr.msk.f32.gmra.mrb[126].mxu1 %vm1996_vm1, %v8684_v25 }
0x10b5   :  { %v6741_v47 = vpop.f32.mrb[124].mxu0 }
0x10b6   :  { %v5452_v43 = vadd.f32 %v6741_v47, %v5377_v13  ;;  %v5446_v40 = vpop.f32.mrb[125].mxu0 }
0x10b7   :  { %v5447_v3 = vadd.f32 %v5446_v40, %v5376_v27 }
0x10b8   :  { %v5555_v36 = vsub.f32 0.0, %v5452_v43  ;;  %v6749_v50 = vpop.f32.mrb[124].mxu1 }
0x10b9   :  { %v5554_v51 = vsub.f32 0.0, %v5447_v3  ;;  %v5541_v5 = vadd.f32 %v6749_v50, %v5466_v48  ;;  %v5535_v2 = vpop.f32.mrb[125].mxu1  ;;  %v6744_v37 = vpop.f32.mrb[126].mxu0 }
0x10ba   :  { %v5559_v54 = vmul.f32 1.442695, %v5555_v36  ;;  %v5536_v55 = vadd.f32 %v5535_v2, %v5465_v42  ;;  %v5456_v31 = vpop.f32.mrb[127].mxu0  ;;  %v5462_v15 = vadd.f32 %v6744_v37, %v5379_v1 }
0x10bb   :  { %v5557_v9 = vmul.f32 1.442695, %v5554_v51  ;;  %v5576_v25 = vsub.f32 0.0, %v5541_v5  ;;  %v5457_v57 = vadd.f32 %v5456_v31, %v5378_v56 }
0x10bc   :  { %7301 = vpow2.f32 %v5559_v54  ;;  %v5575_v58 = vsub.f32 0.0, %v5536_v55  ;;  %v6752_v60 = vpop.f32.mrb[126].mxu1 }
0x10bd   :  { %7303 = vpow2.f32 %v5557_v9  ;;  %v5580_v61 = vmul.f32 1.442695, %v5576_v25  ;;  %v5545_v33 = vpop.f32.mrb[127].mxu1  ;;  %v5556_v0 = vsub.f32 0.0, %v5457_v57  ;;  %v5551_v21 = vadd.f32 %v6752_v60, %v5468_v59 }
0x10be   :  { %v5578_v63 = vmul.f32 1.442695, %v5575_v58  ;;  %v5546_v10 = vadd.f32 %v5545_v33, %v5467_v49 }
0x10bf   :  { %7305 = vpow2.f32 %v5580_v61  ;;  %v5561_v23 = vmul.f32 1.442695, %v5556_v0 }
0x10c0   :  { %7307 = vpow2.f32 %v5578_v63  ;;  %v5577_v52 = vsub.f32 0.0, %v5546_v10 }
0x10c1   :  { %7309 = vtanh.f32 %v5462_v15 }
0x10c2   :  { %v5582_v17 = vmul.f32 1.442695, %v5577_v52  ;;  %7311 = vpow2.f32 %v5561_v23 }
0x10c4   :  { %7313 = vpow2.f32 %v5582_v17 }
0x10c6   :  { %v7302_v45 = vpop.eup %7301 }
0x10c7   :  { %v7304_v19 = vpop.eup %7303  ;;  %v5564_v20 = vadd.f32 1.0, %v7302_v45 }
0x10c8   :  { %v5563_v11 = vadd.f32 1.0, %v7304_v19 }
0x10c9   :  { %v7306_v22 = vpop.eup %7305  ;;  %7315 = vrcp.f32 %v5564_v20 }
0x10ca   :  { %v7308_v14 = vpop.eup %7307  ;;  %7317 = vrcp.f32 %v5563_v11  ;;  %v5585_v26 = vadd.f32 1.0, %v7306_v22 }
0x10cb   :  { %v5584_v53 = vadd.f32 1.0, %v7308_v14  ;;  %7319 = vtanh.f32 %v5551_v21  ;;  %v7310_v32 = vpop.eup %7309 }
0x10cc   :  { %7321 = vrcp.f32 %v5585_v26  ;;  %v7312_v41 = vpop.eup %7311 }
0x10cd   :  { %7323 = vrcp.f32 %v5584_v53  ;;  %v5565_v4 = vadd.f32 1.0, %v7312_v41 }
0x10ce   :  { %v7314_v62 = vpop.eup %7313 }
0x10cf   :  { %v5586_v28 = vadd.f32 1.0, %v7314_v62  ;;  %7325 = vrcp.f32 %v5565_v4 }
0x10d3   :  { %v7316_v34 = vpop.eup %7315 }
0x10d4   :  { %v7318_v18 = vpop.eup %7317  ;;  %v5570_v35 = vmul.f32 %v7316_v34, %v8693_v44 }
0x10d5   :  { %v7320_v16 = vpop.eup %7319  ;;  %v5571_v6 = vmul.f32 %v7318_v18, %v7310_v32 }
0x10d6   :  { %v7322_v30 = vpop.eup %7321 }
0x10d7   :  { %v7324_v8 = vpop.eup %7323  ;;  %v5572_v29 = vadd.f32 %v5571_v6, %v5570_v35  ;;  %v5591_v12 = vmul.f32 %v7322_v30, %v8697_v38 }
0x10d8   :  { %v5592_v39 = vmul.f32 %v7324_v8, %v7320_v16 }
0x10d9   :  { %7327 = vtanh.f32 %v5572_v29  ;;  %v7326_v46 = vpop.eup %7325 }
0x10da   :  { %v5593_v7 = vadd.f32 %v5592_v39, %v5591_v12  ;;  %7329 = vrcp.f32 %v5586_v28 }
0x10dc   :  { %7331 = vtanh.f32 %v5593_v7 }
0x10e3   :  { %v7328_v24 = vpop.eup %7327 }
0x10e4   :  { %v5574_v13 = vmul.f32 %v7328_v24, %v7326_v46  ;;  %v7330_v47 = vpop.eup %7329 }
0x10e6   :  { %v7332_v44 = vpop.eup %7331  ;;  %5919 = vst.msk [vmem:[%s8734_s4 + $0xf0] sm:$0xff] %vm205_vm2, %v5574_v13 }
0x10e7   :  { %v5595_v43 = vmul.f32 %v7332_v44, %v7330_v47 }
0x10e9   :  { %5920 = vst.msk [vmem:[%s8734_s4 + $0x8] sm:$0xff] %vm205_vm2, %v5595_v43 }

// kernel: attention_global_forward.7
= control target key start
LH: loop header
LB: loop body
LE: loop exit
PB: predicated region body
PF: predicated region fallthrough
CT: control target
= control target key end

     0   :  { %vm49_vm0 = vcmask 293888   ;;  %vm146_vm1 = vcmask 1043456   ;;  %s1536_s0 = inlined_call_operand.vmem [shape: f32[2,256,36], index: 0, kind: input, shape index: {}]   ;;  %s1537_s1 = inlined_call_operand.vmem [shape: f32[2,36,16], index: 1, kind: input, shape index: {}]   ;;  %s1538_s2 = inlined_call_operand.hbm [shape: f32[2,256,16], index: 2, kind: output, shape index: {}]  }
   0x1   :  { %v44_v0 = vld [vmem:[%s1537_s1] sm:$0xff]  ;;  %v45_v1 = vld [vmem:[%s1537_s1 + $0x8] sm:$0xff]  ;;  %v886_v4 = vld [vmem:[%s1537_s1 + $0x30] sm:$0xff] }
   0x2   :  { %v885_v2 = vld [vmem:[%s1537_s1 + $0x28] sm:$0xff]  ;;  %v1113_v3 = vpack.c.bf16 %v45_v1, %v44_v0  ;;  %v46_v5 = vld [vmem:[%s1537_s1 + $0x10] sm:$0xff]  ;;  %v47_v6 = vld [vmem:[%s1537_s1 + $0x18] sm:$0xff] }
   0x3   :  { %v1121_v7 = vpack.c.bf16 %v886_v4, %v885_v2  ;;  %v1117_v8 = vpack.c.bf16 %v47_v6, %v46_v5  ;;  %v887_v9 = vld [vmem:[%s1537_s1 + $0x38] sm:$0xff]  ;;  %v888_v10 = vld [vmem:[%s1537_s1 + $0x40] sm:$0xff]  ;;  %v889_v15 = vld [vmem:[%s1537_s1 + $0x48] sm:$0xf] }
   0x4   :  { %1114 = vmatprep.subr.bf16.mxu0 %v1113_v3  ;;  %v1125_v11 = vpack.c.bf16 %v888_v10, %v887_v9  ;;  %v12_v12 = vld [vmem:[%s1536_s0] sm:$0xff]  ;;  %v13_v16 = vld [vmem:[%s1536_s0 + $0x8] sm:$0xff]  ;;  %v14_v18 = vld [vmem:[%s1536_s0 + $0x10] sm:$0xff] }
   0x5   :  { %1122 = vmatprep.subr.bf16.mxu1 %v1121_v7  ;;  %1116 = vmatpush3.bf16.msra.mxu0 %v1113_v3  ;;  %v853_v13 = vld [vmem:[%s1536_s0 + $0x100] sm:$0xff]  ;;  %v854_v17 = vld [vmem:[%s1536_s0 + $0x108] sm:$0xff]  ;;  %v855_v19 = vld [vmem:[%s1536_s0 + $0x110] sm:$0xff] }
   0x6   :  { %1124 = vmatpush3.bf16.msra.mxu1 %v1121_v7  ;;  %1118 = vmatprep.subr.bf16.mxu0 %v1117_v8  ;;  %v48_v14 = vld [vmem:[%s1537_s1 + $0x20] sm:$0xf]  ;;  %v15_v20 = vld [vmem:[%s1536_s0 + $0x18] sm:$0xff]  ;;  %v17_v24 = vld [vmem:[%s1536_s0 + $0x28] sm:$0xff] }
   0x7   :  { %1126 = vmatprep.subr.bf16.mxu1 %v1125_v11  ;;  %1007 = vmatprep.mubr.msk.f32.mxu0 %vm49_vm0, %v12_v12  ;;  %v856_v21 = vld [vmem:[%s1536_s0 + $0x118] sm:$0xff]  ;;  %v16_v22 = vld [vmem:[%s1536_s0 + $0x20] sm:$0xff]  ;;  %v858_v25 = vld [vmem:[%s1536_s0 + $0x128] sm:$0xff] }
   0x8   :  { %1065 = vmatprep.mubr.msk.f32.mxu1 %vm49_vm0, %v853_v13  ;;  %v857_v23 = vld [vmem:[%s1536_s0 + $0x120] sm:$0xff]  ;;  %v18_v26 = vld [vmem:[%s1536_s0 + $0x30] sm:$0xff]  ;;  %v19_v28 = vld [vmem:[%s1536_s0 + $0x38] sm:$0xff] }
   0x9   :  { %1120 = vmatpush3.bf16.msra.mxu0 %v1117_v8  ;;  %v859_v27 = vld [vmem:[%s1536_s0 + $0x130] sm:$0xff]  ;;  %v860_v29 = vld [vmem:[%s1536_s0 + $0x138] sm:$0xff]  ;;  %v20_v30 = vld [vmem:[%s1536_s0 + $0x40] sm:$0xff] }
   0xa   :  { %1128 = vmatpush3.bf16.msra.mxu1 %v1125_v11  ;;  %1005 = vmatprep.subr.msk.mxu0 %vm146_vm1, %v48_v14  ;;  %v861_v31 = vld [vmem:[%s1536_s0 + $0x140] sm:$0xff] }
   0xb   :  { %1063 = vmatprep.subr.msk.mxu1 %vm146_vm1, %v889_v15 }
   0xd   :  { %1006 = vmatpush3.msk.msra.mxu0 %vm146_vm1, %v48_v14 }
   0xe   :  { %1064 = vmatpush3.msk.msra.mxu1 %vm146_vm1, %v889_v15  ;;  %1008 = vmatmul.mubr.msk.f32.vlgmr.msra.gmra.mrb[0].mxu0 %vm49_vm0, %v13_v16 }
   0xf   :  { %1066 = vmatmul.mubr.msk.f32.vlgmr.msra.gmra.mrb[0].mxu1 %vm49_vm0, %v854_v17  ;;  %1010 = vmatprep.mubr.msk.f32.mxu0 %vm49_vm0, %v14_v18 }
  0x10   :  { %1068 = vmatprep.mubr.msk.f32.mxu1 %vm49_vm0, %v855_v19 }
  0x12   :  { %1011 = vmatmul.mubr.msk.f32.gmra.mrb[2].mxu0 %vm49_vm0, %v15_v20 }
  0x13   :  { %1069 = vmatmul.mubr.msk.f32.gmra.mrb[2].mxu1 %vm49_vm0, %v856_v21  ;;  %1013 = vmatprep.mubr.msk.f32.mxu0 %vm49_vm0, %v16_v22 }
  0x14   :  { %1071 = vmatprep.mubr.msk.f32.mxu1 %vm49_vm0, %v857_v23 }
  0x16   :  { %1014 = vmatmul.mubr.msk.f32.gmra.mrb[4].mxu0 %vm49_vm0, %v17_v24 }
  0x17   :  { %1072 = vmatmul.mubr.msk.f32.gmra.mrb[4].mxu1 %vm49_vm0, %v858_v25  ;;  %1016 = vmatprep.mubr.msk.f32.mxu0 %vm49_vm0, %v18_v26 }
  0x18   :  { %1074 = vmatprep.mubr.msk.f32.mxu1 %vm49_vm0, %v859_v27 }
  0x19   :  { %7 = vsyncpa [#allocation3], 0  ;;  %v21_v32 = vld [vmem:[%s1536_s0 + $0x48] sm:$0xff]  ;;  %v22_v34 = vld [vmem:[%s1536_s0 + $0x50] sm:$0xff]  ;;  %vm375_vm2 = vcmask 130048  }
  0x1a   :  { %1017 = vmatmul.mubr.msk.f32.gmra.mrb[6].mxu0 %vm49_vm0, %v19_v28  ;;  %v862_v33 = vld [vmem:[%s1536_s0 + $0x148] sm:$0xff]  ;;  %v863_v35 = vld [vmem:[%s1536_s0 + $0x150] sm:$0xff]  ;;  %v23_v36 = vld [vmem:[%s1536_s0 + $0x58] sm:$0xff] }
  0x1b   :  { %1075 = vmatmul.mubr.msk.f32.gmra.mrb[6].mxu1 %vm49_vm0, %v860_v29  ;;  %1019 = vmatprep.mubr.msk.f32.mxu0 %vm49_vm0, %v20_v30  ;;  %v864_v37 = vld [vmem:[%s1536_s0 + $0x158] sm:$0xff]  ;;  %v24_v38 = vld [vmem:[%s1536_s0 + $0x60] sm:$0xff]  ;;  %v25_v40 = vld [vmem:[%s1536_s0 + $0x68] sm:$0xff] }
  0x1c   :  { %1077 = vmatprep.mubr.msk.f32.mxu1 %vm49_vm0, %v861_v31  ;;  %v865_v39 = vld [vmem:[%s1536_s0 + $0x160] sm:$0xff]  ;;  %v866_v41 = vld [vmem:[%s1536_s0 + $0x168] sm:$0xff]  ;;  %v26_v42 = vld [vmem:[%s1536_s0 + $0x70] sm:$0xff] }
  0x1d   :  { %v867_v43 = vld [vmem:[%s1536_s0 + $0x170] sm:$0xff]  ;;  %v27_v44 = vld [vmem:[%s1536_s0 + $0x78] sm:$0xff]  ;;  %v28_v46 = vld [vmem:[%s1536_s0 + $0x80] sm:$0xff] }
  0x1e   :  { %1020 = vmatmul.mubr.msk.f32.gmra.mrb[8].mxu0 %vm49_vm0, %v21_v32  ;;  %v868_v45 = vld [vmem:[%s1536_s0 + $0x178] sm:$0xff]  ;;  %v869_v47 = vld [vmem:[%s1536_s0 + $0x180] sm:$0xff]  ;;  %v29_v48 = vld [vmem:[%s1536_s0 + $0x88] sm:$0xff] }
  0x1f   :  { %1078 = vmatmul.mubr.msk.f32.gmra.mrb[8].mxu1 %vm49_vm0, %v862_v33  ;;  %1022 = vmatprep.mubr.msk.f32.mxu0 %vm49_vm0, %v22_v34  ;;  %v870_v49 = vld [vmem:[%s1536_s0 + $0x188] sm:$0xff]  ;;  %v30_v50 = vld [vmem:[%s1536_s0 + $0x90] sm:$0xff]  ;;  %v31_v52 = vld [vmem:[%s1536_s0 + $0x98] sm:$0xff] }
  0x20   :  { %1080 = vmatprep.mubr.msk.f32.mxu1 %vm49_vm0, %v863_v35  ;;  %v871_v51 = vld [vmem:[%s1536_s0 + $0x190] sm:$0xff]  ;;  %v872_v53 = vld [vmem:[%s1536_s0 + $0x198] sm:$0xff]  ;;  %v32_v54 = vld [vmem:[%s1536_s0 + $0xa0] sm:$0xff] }
  0x21   :  { %v873_v55 = vld [vmem:[%s1536_s0 + $0x1a0] sm:$0xff]  ;;  %v33_v56 = vld [vmem:[%s1536_s0 + $0xa8] sm:$0xff]  ;;  %v34_v58 = vld [vmem:[%s1536_s0 + $0xb0] sm:$0xff] }
  0x22   :  { %1023 = vmatmul.mubr.msk.f32.gmra.mrb[10].mxu0 %vm49_vm0, %v23_v36  ;;  %v874_v57 = vld [vmem:[%s1536_s0 + $0x1a8] sm:$0xff]  ;;  %v875_v59 = vld [vmem:[%s1536_s0 + $0x1b0] sm:$0xff]  ;;  %v35_v60 = vld [vmem:[%s1536_s0 + $0xb8] sm:$0xff] }
  0x23   :  { %1081 = vmatmul.mubr.msk.f32.gmra.mrb[10].mxu1 %vm49_vm0, %v864_v37  ;;  %1025 = vmatprep.mubr.msk.f32.mxu0 %vm49_vm0, %v24_v38  ;;  %v876_v61 = vld [vmem:[%s1536_s0 + $0x1b8] sm:$0xff]  ;;  %v36_v62 = vld [vmem:[%s1536_s0 + $0xc0] sm:$0xff]  ;;  %v37_v0 = vld [vmem:[%s1536_s0 + $0xc8] sm:$0xff] }
  0x24   :  { %1083 = vmatprep.mubr.msk.f32.mxu1 %vm49_vm0, %v865_v39  ;;  %v877_v63 = vld [vmem:[%s1536_s0 + $0x1c0] sm:$0xff]  ;;  %v878_v1 = vld [vmem:[%s1536_s0 + $0x1c8] sm:$0xff]  ;;  %v38_v2 = vld [vmem:[%s1536_s0 + $0xd0] sm:$0xff] }
  0x25   :  { %v879_v3 = vld [vmem:[%s1536_s0 + $0x1d0] sm:$0xff]  ;;  %v39_v4 = vld [vmem:[%s1536_s0 + $0xd8] sm:$0xff]  ;;  %v40_v6 = vld [vmem:[%s1536_s0 + $0xe0] sm:$0xff] }
  0x26   :  { %1026 = vmatmul.mubr.msk.f32.gmra.mrb[12].mxu0 %vm49_vm0, %v25_v40  ;;  %v880_v5 = vld [vmem:[%s1536_s0 + $0x1d8] sm:$0xff]  ;;  %v881_v7 = vld [vmem:[%s1536_s0 + $0x1e0] sm:$0xff]  ;;  %v41_v8 = vld [vmem:[%s1536_s0 + $0xe8] sm:$0xff] }
  0x27   :  { %1084 = vmatmul.mubr.msk.f32.gmra.mrb[12].mxu1 %vm49_vm0, %v866_v41  ;;  %1028 = vmatprep.mubr.msk.f32.mxu0 %vm49_vm0, %v26_v42  ;;  %v882_v9 = vld [vmem:[%s1536_s0 + $0x1e8] sm:$0xff]  ;;  %v42_v10 = vld [vmem:[%s1536_s0 + $0xf0] sm:$0xff]  ;;  %v43_v12 = vld [vmem:[%s1536_s0 + $0xf8] sm:$0xff] }
  0x28   :  { %1086 = vmatprep.mubr.msk.f32.mxu1 %vm49_vm0, %v867_v43  ;;  %v883_v11 = vld [vmem:[%s1536_s0 + $0x1f0] sm:$0xff]  ;;  %v884_v13 = vld [vmem:[%s1536_s0 + $0x1f8] sm:$0xff]  ;;  %s1156_s0 = smov [#allocation2]  }
  0x29   :  { %s809_s12 = sshll.u32 %s1156_s0, 4  ;;  %s810_s12 = int_to_ptr.vmem [resolvable:$true] %s809_s12 }
  0x2a   :  { %1029 = vmatmul.mubr.msk.f32.gmra.mrb[14].mxu0 %vm49_vm0, %v27_v44  ;;  %s1132_s13 = scalar_lea.vmem %s810_s12, 8192  ;;  %p1137_p1 = scmp.lt.s32.totalorder %s810_s12, %s810_s12 }
  0x2b   :  { %1087 = vmatmul.mubr.msk.f32.gmra.mrb[14].mxu1 %vm49_vm0, %v868_v45  ;;  %1031 = vmatprep.mubr.msk.f32.mxu0 %vm49_vm0, %v28_v46  ;;  %p1133_p0 = scmp.ne.s32.totalorder %s810_s12, %s1132_s13  ;;  %p1138_p2 = scmp.lt.s32.totalorder %s1132_s13, %s1132_s13 }
  0x2c   :  { %1089 = vmatprep.mubr.msk.f32.mxu1 %vm49_vm0, %v869_v47 }
  0x2d   :  { %p1139_p3 = por %p1138_p2, %p1137_p1 }
  0x2e   :  { %1032 = vmatmul.mubr.msk.f32.gmra.mrb[16].mxu0 %vm49_vm0, %v29_v48 }
  0x2f   :  { %1090 = vmatmul.mubr.msk.f32.gmra.mrb[16].mxu1 %vm49_vm0, %v870_v49  ;;  %1034 = vmatprep.mubr.msk.f32.mxu0 %vm49_vm0, %v30_v50  ;;  %p1140_p4 = pnand %p1139_p3, %p1133_p0 }
  0x30   :  { %1092 = vmatprep.mubr.msk.f32.mxu1 %vm49_vm0, %v871_v51 }
  0x32   :  { %1035 = vmatmul.mubr.msk.f32.gmra.mrb[18].mxu0 %vm49_vm0, %v31_v52 }
  0x33   :  { %1093 = vmatmul.mubr.msk.f32.gmra.mrb[18].mxu1 %vm49_vm0, %v872_v53  ;;  %1037 = vmatprep.mubr.msk.f32.mxu0 %vm49_vm0, %v32_v54 }
  0x34   :  { %1095 = vmatprep.mubr.msk.f32.mxu1 %vm49_vm0, %v873_v55 }
  0x36   :  { %1038 = vmatmul.mubr.msk.f32.gmra.mrb[20].mxu0 %vm49_vm0, %v33_v56 }
  0x37   :  { %1096 = vmatmul.mubr.msk.f32.gmra.mrb[20].mxu1 %vm49_vm0, %v874_v57  ;;  %1040 = vmatprep.mubr.msk.f32.mxu0 %vm49_vm0, %v34_v58 }
  0x38   :  { %1098 = vmatprep.mubr.msk.f32.mxu1 %vm49_vm0, %v875_v59 }
  0x3a   :  { %1041 = vmatmul.mubr.msk.f32.gmra.mrb[22].mxu0 %vm49_vm0, %v35_v60 }
  0x3b   :  { %1099 = vmatmul.mubr.msk.f32.gmra.mrb[22].mxu1 %vm49_vm0, %v876_v61  ;;  %1043 = vmatprep.mubr.msk.f32.mxu0 %vm49_vm0, %v36_v62 }
  0x3c   :  { %1101 = vmatprep.mubr.msk.f32.mxu1 %vm49_vm0, %v877_v63 }
  0x3e   :  { %1044 = vmatmul.mubr.msk.f32.gmra.mrb[24].mxu0 %vm49_vm0, %v37_v0 }
  0x3f   :  { %1102 = vmatmul.mubr.msk.f32.gmra.mrb[24].mxu1 %vm49_vm0, %v878_v1  ;;  %1046 = vmatprep.mubr.msk.f32.mxu0 %vm49_vm0, %v38_v2 }
  0x40   :  { %1104 = vmatprep.mubr.msk.f32.mxu1 %vm49_vm0, %v879_v3 }
  0x42   :  { %1047 = vmatmul.mubr.msk.f32.gmra.mrb[26].mxu0 %vm49_vm0, %v39_v4 }
  0x43   :  { %1105 = vmatmul.mubr.msk.f32.gmra.mrb[26].mxu1 %vm49_vm0, %v880_v5  ;;  %1049 = vmatprep.mubr.msk.f32.mxu0 %vm49_vm0, %v40_v6 }
  0x44   :  { %1107 = vmatprep.mubr.msk.f32.mxu1 %vm49_vm0, %v881_v7 }
  0x46   :  { %1050 = vmatmul.mubr.msk.f32.gmra.mrb[28].mxu0 %vm49_vm0, %v41_v8 }
  0x47   :  { %1108 = vmatmul.mubr.msk.f32.gmra.mrb[28].mxu1 %vm49_vm0, %v882_v9  ;;  %1052 = vmatprep.mubr.msk.f32.mxu0 %vm49_vm0, %v42_v10 }
  0x48   :  { %1110 = vmatprep.mubr.msk.f32.mxu1 %vm49_vm0, %v883_v11 }
  0x4a   :  { %1053 = vmatmul.mubr.msk.f32.gmra.mrb[30].mxu0 %vm49_vm0, %v43_v12 }
  0x4b   :  { %1111 = vmatmul.mubr.msk.f32.gmra.mrb[30].mxu1 %vm49_vm0, %v884_v13 }
  0xe1   :  { %v1009_v14 = vpop.f32.mrb[0].mxu0 }
  0xe2   :  { %377 = vst.msk [vmem:[#allocation2 + $0x8] sm:$0xff] %vm375_vm2, %v1009_v14  ;;  %v1067_v15 = vpop.f32.mrb[0].mxu1  ;;  %v216_v16 = vpop.f32.mrb[1].mxu0 }
  0xe3   :  { %773 = vst.msk [vmem:[#allocation2 + $0x108] sm:$0xff] %vm375_vm2, %v1067_v15  ;;  %376 = vst.msk [vmem:[#allocation2] sm:$0xff] %vm375_vm2, %v216_v16  ;;  %v612_v17 = vpop.f32.mrb[1].mxu1 }
  0xe4   :  { %772 = vst.msk [vmem:[#allocation2 + $0x100] sm:$0xff] %vm375_vm2, %v612_v17 }
  0xe5   :  { %v1012_v18 = vpop.f32.mrb[2].mxu0 }
  0xe6   :  { %379 = vst.msk [vmem:[#allocation2 + $0x18] sm:$0xff] %vm375_vm2, %v1012_v18  ;;  %v1070_v19 = vpop.f32.mrb[2].mxu1  ;;  %v226_v20 = vpop.f32.mrb[3].mxu0 }
  0xe7   :  { %775 = vst.msk [vmem:[#allocation2 + $0x118] sm:$0xff] %vm375_vm2, %v1070_v19  ;;  %378 = vst.msk [vmem:[#allocation2 + $0x10] sm:$0xff] %vm375_vm2, %v226_v20  ;;  %v622_v21 = vpop.f32.mrb[3].mxu1 }
  0xe8   :  { %774 = vst.msk [vmem:[#allocation2 + $0x110] sm:$0xff] %vm375_vm2, %v622_v21 }
  0xe9   :  { %v1015_v22 = vpop.f32.mrb[4].mxu0 }
  0xea   :  { %381 = vst.msk [vmem:[#allocation2 + $0x28] sm:$0xff] %vm375_vm2, %v1015_v22  ;;  %v1073_v23 = vpop.f32.mrb[4].mxu1  ;;  %v236_v24 = vpop.f32.mrb[5].mxu0 }
  0xeb   :  { %777 = vst.msk [vmem:[#allocation2 + $0x128] sm:$0xff] %vm375_vm2, %v1073_v23  ;;  %380 = vst.msk [vmem:[#allocation2 + $0x20] sm:$0xff] %vm375_vm2, %v236_v24  ;;  %v632_v25 = vpop.f32.mrb[5].mxu1 }
  0xec   :  { %776 = vst.msk [vmem:[#allocation2 + $0x120] sm:$0xff] %vm375_vm2, %v632_v25 }
  0xed   :  { %v1018_v26 = vpop.f32.mrb[6].mxu0 }
  0xee   :  { %383 = vst.msk [vmem:[#allocation2 + $0x38] sm:$0xff] %vm375_vm2, %v1018_v26  ;;  %v1076_v27 = vpop.f32.mrb[6].mxu1  ;;  %v246_v28 = vpop.f32.mrb[7].mxu0 }
  0xef   :  { %779 = vst.msk [vmem:[#allocation2 + $0x138] sm:$0xff] %vm375_vm2, %v1076_v27  ;;  %382 = vst.msk [vmem:[#allocation2 + $0x30] sm:$0xff] %vm375_vm2, %v246_v28  ;;  %v642_v29 = vpop.f32.mrb[7].mxu1 }
  0xf0   :  { %778 = vst.msk [vmem:[#allocation2 + $0x130] sm:$0xff] %vm375_vm2, %v642_v29 }
  0xf1   :  { %v1021_v30 = vpop.f32.mrb[8].mxu0 }
  0xf2   :  { %385 = vst.msk [vmem:[#allocation2 + $0x48] sm:$0xff] %vm375_vm2, %v1021_v30  ;;  %v1079_v31 = vpop.f32.mrb[8].mxu1  ;;  %v256_v32 = vpop.f32.mrb[9].mxu0 }
  0xf3   :  { %781 = vst.msk [vmem:[#allocation2 + $0x148] sm:$0xff] %vm375_vm2, %v1079_v31  ;;  %384 = vst.msk [vmem:[#allocation2 + $0x40] sm:$0xff] %vm375_vm2, %v256_v32  ;;  %v652_v33 = vpop.f32.mrb[9].mxu1 }
  0xf4   :  { %780 = vst.msk [vmem:[#allocation2 + $0x140] sm:$0xff] %vm375_vm2, %v652_v33 }
  0xf5   :  { %v1024_v34 = vpop.f32.mrb[10].mxu0 }
  0xf6   :  { %387 = vst.msk [vmem:[#allocation2 + $0x58] sm:$0xff] %vm375_vm2, %v1024_v34  ;;  %v1082_v35 = vpop.f32.mrb[10].mxu1  ;;  %v266_v36 = vpop.f32.mrb[11].mxu0 }
  0xf7   :  { %783 = vst.msk [vmem:[#allocation2 + $0x158] sm:$0xff] %vm375_vm2, %v1082_v35  ;;  %386 = vst.msk [vmem:[#allocation2 + $0x50] sm:$0xff] %vm375_vm2, %v266_v36  ;;  %v662_v37 = vpop.f32.mrb[11].mxu1 }
  0xf8   :  { %782 = vst.msk [vmem:[#allocation2 + $0x150] sm:$0xff] %vm375_vm2, %v662_v37 }
  0xf9   :  { %v1027_v38 = vpop.f32.mrb[12].mxu0 }
  0xfa   :  { %389 = vst.msk [vmem:[#allocation2 + $0x68] sm:$0xff] %vm375_vm2, %v1027_v38  ;;  %v1085_v39 = vpop.f32.mrb[12].mxu1  ;;  %v276_v40 = vpop.f32.mrb[13].mxu0 }
  0xfb   :  { %785 = vst.msk [vmem:[#allocation2 + $0x168] sm:$0xff] %vm375_vm2, %v1085_v39  ;;  %388 = vst.msk [vmem:[#allocation2 + $0x60] sm:$0xff] %vm375_vm2, %v276_v40  ;;  %v672_v41 = vpop.f32.mrb[13].mxu1 }
  0xfc   :  { %784 = vst.msk [vmem:[#allocation2 + $0x160] sm:$0xff] %vm375_vm2, %v672_v41 }
  0xfd   :  { %v1030_v42 = vpop.f32.mrb[14].mxu0 }
  0xfe   :  { %391 = vst.msk [vmem:[#allocation2 + $0x78] sm:$0xff] %vm375_vm2, %v1030_v42  ;;  %v1088_v43 = vpop.f32.mrb[14].mxu1  ;;  %v286_v44 = vpop.f32.mrb[15].mxu0 }
  0xff   :  { %787 = vst.msk [vmem:[#allocation2 + $0x178] sm:$0xff] %vm375_vm2, %v1088_v43  ;;  %390 = vst.msk [vmem:[#allocation2 + $0x70] sm:$0xff] %vm375_vm2, %v286_v44  ;;  %v682_v45 = vpop.f32.mrb[15].mxu1 }
 0x100   :  { %786 = vst.msk [vmem:[#allocation2 + $0x170] sm:$0xff] %vm375_vm2, %v682_v45 }
 0x101   :  { %v1033_v46 = vpop.f32.mrb[16].mxu0 }
 0x102   :  { %393 = vst.msk [vmem:[#allocation2 + $0x88] sm:$0xff] %vm375_vm2, %v1033_v46  ;;  %v1091_v47 = vpop.f32.mrb[16].mxu1  ;;  %v296_v48 = vpop.f32.mrb[17].mxu0 }
 0x103   :  { %789 = vst.msk [vmem:[#allocation2 + $0x188] sm:$0xff] %vm375_vm2, %v1091_v47  ;;  %392 = vst.msk [vmem:[#allocation2 + $0x80] sm:$0xff] %vm375_vm2, %v296_v48  ;;  %v692_v49 = vpop.f32.mrb[17].mxu1 }
 0x104   :  { %788 = vst.msk [vmem:[#allocation2 + $0x180] sm:$0xff] %vm375_vm2, %v692_v49 }
 0x105   :  { %v1036_v50 = vpop.f32.mrb[18].mxu0 }
 0x106   :  { %395 = vst.msk [vmem:[#allocation2 + $0x98] sm:$0xff] %vm375_vm2, %v1036_v50  ;;  %v1094_v51 = vpop.f32.mrb[18].mxu1  ;;  %v306_v52 = vpop.f32.mrb[19].mxu0 }
 0x107   :  { %791 = vst.msk [vmem:[#allocation2 + $0x198] sm:$0xff] %vm375_vm2, %v1094_v51  ;;  %394 = vst.msk [vmem:[#allocation2 + $0x90] sm:$0xff] %vm375_vm2, %v306_v52  ;;  %v702_v53 = vpop.f32.mrb[19].mxu1 }
 0x108   :  { %790 = vst.msk [vmem:[#allocation2 + $0x190] sm:$0xff] %vm375_vm2, %v702_v53 }
 0x109   :  { %v1039_v54 = vpop.f32.mrb[20].mxu0 }
 0x10a   :  { %397 = vst.msk [vmem:[#allocation2 + $0xa8] sm:$0xff] %vm375_vm2, %v1039_v54  ;;  %v1097_v55 = vpop.f32.mrb[20].mxu1  ;;  %v316_v56 = vpop.f32.mrb[21].mxu0 }
 0x10b   :  { %793 = vst.msk [vmem:[#allocation2 + $0x1a8] sm:$0xff] %vm375_vm2, %v1097_v55  ;;  %396 = vst.msk [vmem:[#allocation2 + $0xa0] sm:$0xff] %vm375_vm2, %v316_v56  ;;  %v712_v57 = vpop.f32.mrb[21].mxu1 }
 0x10c   :  { %792 = vst.msk [vmem:[#allocation2 + $0x1a0] sm:$0xff] %vm375_vm2, %v712_v57 }
 0x10d   :  { %v1042_v58 = vpop.f32.mrb[22].mxu0 }
 0x10e   :  { %399 = vst.msk [vmem:[#allocation2 + $0xb8] sm:$0xff] %vm375_vm2, %v1042_v58  ;;  %v1100_v59 = vpop.f32.mrb[22].mxu1  ;;  %v326_v60 = vpop.f32.mrb[23].mxu0 }
 0x10f   :  { %795 = vst.msk [vmem:[#allocation2 + $0x1b8] sm:$0xff] %vm375_vm2, %v1100_v59  ;;  %398 = vst.msk [vmem:[#allocation2 + $0xb0] sm:$0xff] %vm375_vm2, %v326_v60  ;;  %v722_v61 = vpop.f32.mrb[23].mxu1 }
 0x110   :  { %794 = vst.msk [vmem:[#allocation2 + $0x1b0] sm:$0xff] %vm375_vm2, %v722_v61 }
 0x111   :  { %v1045_v62 = vpop.f32.mrb[24].mxu0 }
 0x112   :  { %401 = vst.msk [vmem:[#allocation2 + $0xc8] sm:$0xff] %vm375_vm2, %v1045_v62  ;;  %v1103_v63 = vpop.f32.mrb[24].mxu1  ;;  %v336_v0 = vpop.f32.mrb[25].mxu0 }
 0x113   :  { %797 = vst.msk [vmem:[#allocation2 + $0x1c8] sm:$0xff] %vm375_vm2, %v1103_v63  ;;  %400 = vst.msk [vmem:[#allocation2 + $0xc0] sm:$0xff] %vm375_vm2, %v336_v0  ;;  %v732_v1 = vpop.f32.mrb[25].mxu1 }
 0x114   :  { %796 = vst.msk [vmem:[#allocation2 + $0x1c0] sm:$0xff] %vm375_vm2, %v732_v1 }
 0x115   :  { %v1048_v2 = vpop.f32.mrb[26].mxu0 }
 0x116   :  { %403 = vst.msk [vmem:[#allocation2 + $0xd8] sm:$0xff] %vm375_vm2, %v1048_v2  ;;  %v1106_v3 = vpop.f32.mrb[26].mxu1  ;;  %v346_v4 = vpop.f32.mrb[27].mxu0 }
 0x117   :  { %799 = vst.msk [vmem:[#allocation2 + $0x1d8] sm:$0xff] %vm375_vm2, %v1106_v3  ;;  %402 = vst.msk [vmem:[#allocation2 + $0xd0] sm:$0xff] %vm375_vm2, %v346_v4  ;;  %v742_v5 = vpop.f32.mrb[27].mxu1 }
 0x118   :  { %798 = vst.msk [vmem:[#allocation2 + $0x1d0] sm:$0xff] %vm375_vm2, %v742_v5 }
 0x119   :  { %v1051_v6 = vpop.f32.mrb[28].mxu0 }
 0x11a   :  { %405 = vst.msk [vmem:[#allocation2 + $0xe8] sm:$0xff] %vm375_vm2, %v1051_v6  ;;  %v1109_v7 = vpop.f32.mrb[28].mxu1  ;;  %v356_v8 = vpop.f32.mrb[29].mxu0 }
 0x11b   :  { %801 = vst.msk [vmem:[#allocation2 + $0x1e8] sm:$0xff] %vm375_vm2, %v1109_v7  ;;  %404 = vst.msk [vmem:[#allocation2 + $0xe0] sm:$0xff] %vm375_vm2, %v356_v8  ;;  %v752_v9 = vpop.f32.mrb[29].mxu1 }
 0x11c   :  { %800 = vst.msk [vmem:[#allocation2 + $0x1e0] sm:$0xff] %vm375_vm2, %v752_v9 }
 0x11d   :  { %v1054_v10 = vpop.f32.mrb[30].mxu0 }
 0x11e   :  { %407 = vst.msk [vmem:[#allocation2 + $0xf8] sm:$0xff] %vm375_vm2, %v1054_v10  ;;  %v1112_v11 = vpop.f32.mrb[30].mxu1  ;;  %v366_v12 = vpop.f32.mrb[31].mxu0 }
 0x11f   :  { %803 = vst.msk [vmem:[#allocation2 + $0x1f8] sm:$0xff] %vm375_vm2, %v1112_v11  ;;  %406 = vst.msk [vmem:[#allocation2 + $0xf0] sm:$0xff] %vm375_vm2, %v366_v12  ;;  %v762_v13 = vpop.f32.mrb[31].mxu1 }
 0x120   :  { %802 = vst.msk [vmem:[#allocation2 + $0x1f0] sm:$0xff] %vm375_vm2, %v762_v13 }
 0x121   :  { %1143 = shalt.err (!%p1140_p4)
}
 0x122   :  { %s1144_s16 = scalar_lea.hbm %s1538_s2, 8192 }
 0x123   :  { %p1145_p5 = scmp.ne.s32.totalorder %s1538_s2, %s1144_s16  ;;  %p1148_p6 = scmp.lt.u32.totalorder %s1144_s16, %s1538_s2 }
 0x125   :  { %p1150_p7 = pnand %p1148_p6, %p1145_p5 }
 0x127   :  { %1153 = shalt.err (!%p1150_p7)
}
 0x128   :  { %s1157_s21 = smov 128   ;;  %s1158_s22 = smov 8  }
 0x129   :  { %815 = dma.vmem_to_hbm [thread:$0]  %s810_s12, 8192, %s1538_s2, [#allocation3], %s1157_s21, %s1157_s21, %s1158_s22  }
 0x12a   :  { %1154 = dma.done.wait [#allocation3], 8192  }
 0x12b   :  { %1155 = vsyncadd [#allocation3], 4294959104 }
 0x12c   :  { %819 = vsyncpa [#allocation3], 1 }

</bundles_post_ra>
